<compile_context>
chip_gen: v5e
topology: v5e:2x2
jax: 0.10.0
libtpu: 0.0.40
codegen_flags: <defaults>
</compile_context>

<pallas_src>
import jax
import jax.numpy as jnp
from jax.experimental import pallas as pl
from jax.experimental.pallas import tpu as pltpu

H1 = 512
H2 = 1024
N_OUT = 784          # 28 * 28
N_OUT_PAD = 896      # 7 * 128 -> lane-dense output stores
TM_MAX = 1024        # v7x-safe (64 MiB VMEM/TC); near-optimal on v5e/v6e too


def _round_up(x, m):
    return ((x + m - 1) // m) * m


def _cdiv(a, b):
    return (a + b - 1) // b


def _choose_batch_tile(B):
    """Pick the batch tile TM and padded batch B_pad.

    Goals (from perf review): TM as large as possible up to TM_MAX, >=2 grid
    steps when the batch is big enough (v7x megacore), and minimal padding
    waste (TM snaps to ceil(B / n_tiles) rounded to a sublane group of 8).
    """
    if B <= 8:
        tm = _round_up(max(B, 1), 8)
        return tm, tm
    n_tiles = _cdiv(B, TM_MAX)
    if n_tiles == 1 and B >= 512:
        n_tiles = 2                      # give both v7x TensorCores a tile
    tm = _round_up(_cdiv(B, n_tiles), 8)
    b_pad = _round_up(B, tm)
    return tm, b_pad


def _recnet_kernel(x_ref, w1_ref, b1_ref, w2_ref, b2_ref, w3_ref, b3_ref, o_ref):
    # x_ref: (TM, n_inp_pad) bf16; w*: bf16 (in, out); b*: (1, out) f32.
    x = x_ref[...]

    h1 = jnp.dot(x, w1_ref[...], preferred_element_type=jnp.float32)    # (TM, 512) f32
    h1 = jnp.maximum(h1 + b1_ref[...], 0.0).astype(jnp.bfloat16)        # ReLU -> bf16

    h2 = jnp.dot(h1, w2_ref[...], preferred_element_type=jnp.float32)   # (TM, 1024) f32
    h2 = jnp.maximum(h2 + b2_ref[...], 0.0).astype(jnp.bfloat16)        # ReLU -> bf16

    h3 = jnp.dot(h2, w3_ref[...], preferred_element_type=jnp.float32)   # (TM, 896) f32
    h3 = h3 + b3_ref[...]
    o_ref[...] = jax.nn.sigmoid(h3).astype(o_ref.dtype)


def prepare_recnet_params(params):
    """f32 (in,out)/(1,out) params -> kernel-ready arrays.

    * weights cast to bf16 (halves weight HBM traffic; native MXU dtype)
    * biases stay f32
    * fc1 weight rows zero-padded n_inp -> round_up(n_inp, 128) (lane-dense x)
    * fc3 weight/bias zero-padded 784 -> 896 output columns (lane-dense store)
    """
    w1, b1, w2, b2, w3, b3 = params
    n_inp = w1.shape[0]
    n_inp_pad = _round_up(n_inp, 128)
    w1p = jnp.pad(w1, ((0, n_inp_pad - n_inp), (0, 0)))
    out_pad = N_OUT_PAD - N_OUT
    w3p = jnp.pad(w3, ((0, 0), (0, out_pad)))
    b3p = jnp.pad(b3, ((0, 0), (0, out_pad)))
    return (
        w1p.astype(jnp.bfloat16), b1.astype(jnp.float32),
        w2.astype(jnp.bfloat16), b2.astype(jnp.float32),
        w3p.astype(jnp.bfloat16), b3p.astype(jnp.float32),
    )


def recnet_forward(x, prep_params, *, out_dtype=jnp.bfloat16, crop=True,
                   single_buffer_weights=True):
    """x: (B, ...) with prod(...) == n_inp_nodes.

    Returns (B, 28, 28) in `out_dtype` when crop=True (PyTorch semantics),
    or the padded (B_pad, 896) kernel output when crop=False (lets the
    consumer fuse the crop and avoid an extra HBM pass).
    """
    w1, b1, w2, b2, w3, b3 = prep_params
    n_inp_pad = w1.shape[0]
    B = x.shape[0]

    # torch .view(B, n_inp) equivalent + bf16 cast + feature-dim pad to 128*.
    xf = x.reshape(B, -1).astype(jnp.bfloat16)
    n_inp = xf.shape[1]
    if n_inp_pad != n_inp:
        xf = jnp.pad(xf, ((0, 0), (0, n_inp_pad - n_inp)))

    TM, B_pad = _choose_batch_tile(B)
    if B_pad != B:
        xf = jnp.pad(xf, ((0, B_pad - B), (0, 0)))
    grid = (B_pad // TM,)

    # Weights/biases: constant index_map -> VMEM-resident across the grid;
    # single buffering (a second buffer would be pure waste for a constant block).
    weight_buffering = pl.Buffered(1) if single_buffer_weights else None

    def resident_spec(shape):
        if weight_buffering is None:
            return pl.BlockSpec(shape, lambda i: (0, 0))
        return pl.BlockSpec(shape, lambda i: (0, 0), pipeline_mode=weight_buffering)

    out_itemsize = jnp.dtype(out_dtype).itemsize
    cost = pl.CostEstimate(
        flops=2 * B_pad * (n_inp_pad * H1 + H1 * H2 + H2 * N_OUT_PAD),
        transcendentals=B_pad * N_OUT_PAD,
        bytes_accessed=(
            B_pad * n_inp_pad * 2                               # x (bf16)
            + (w1.size + w2.size + w3.size) * 2                 # weights (bf16)
            + (b1.size + b2.size + b3.size) * 4                 # biases (f32)
            + B_pad * N_OUT_PAD * out_itemsize                  # output
        ),
    )

    out_padded = pl.pallas_call(
        _recnet_kernel,
        out_shape=jax.ShapeDtypeStruct((B_pad, N_OUT_PAD), out_dtype),
        grid=grid,
        in_specs=[
            pl.BlockSpec((TM, n_inp_pad), lambda i: (i, 0)),    # x streams per tile
            resident_spec(w1.shape),
            resident_spec(b1.shape),
            resident_spec(w2.shape),
            resident_spec(b2.shape),
            resident_spec(w3.shape),
            resident_spec(b3.shape),
        ],
        out_specs=pl.BlockSpec((TM, N_OUT_PAD), lambda i: (i, 0)),
        compiler_params=pltpu.CompilerParams(
            dimension_semantics=("parallel",),      # megacore sharding on v7x
            vmem_limit_bytes=48 << 20,              # TM<=1024 footprint; <64 MiB v7x VMEM
        ),
        cost_estimate=cost,
    )(xf, w1, b1, w2, b2, w3, b3)

    if not crop:
        return out_padded                            # (B_pad, 896); caller crops lazily
    return out_padded[:B, :N_OUT].reshape(B, 28, 28)


def init_recnet_params(key, n_inp_nodes):
    """Deterministic init mimicking PyTorch nn.Linear default U(-1/sqrt(fan_in), +)."""
    dims = [(n_inp_nodes, H1), (H1, H2), (H2, N_OUT)]
    params = []
    for (fan_in, fan_out) in dims:
        key, kw, kb = jax.random.split(key, 3)
        bound = 1.0 / (fan_in ** 0.5)
        w = jax.random.uniform(kw, (fan_in, fan_out), jnp.float32, -bound, bound)
        b = jax.random.uniform(kb, (1, fan_out), jnp.float32, -bound, bound)
        params += [w, b]
    return tuple(params)


def recnet_reference_f32(x, params):
    """Plain-JAX f32 reference of the PyTorch forward (semantic check)."""
    w1, b1, w2, b2, w3, b3 = params
    xf = x.reshape(x.shape[0], -1)
    h = jnp.maximum(xf @ w1 + b1, 0.0)
    h = jnp.maximum(h @ w2 + b2, 0.0)
    h = jax.nn.sigmoid(h @ w3 + b3)
    return h.reshape(x.shape[0], 28, 28)


def recnet_reference_mixed(x, prep_params):
    """Reference mirroring the kernel's bf16-MXU / f32-accumulate math."""
    w1, b1, w2, b2, w3, b3 = prep_params
    xf = x.reshape(x.shape[0], -1).astype(jnp.bfloat16)
    n_inp_pad = w1.shape[0]
    if xf.shape[1] != n_inp_pad:
        xf = jnp.pad(xf, ((0, 0), (0, n_inp_pad - xf.shape[1])))
    h1 = jnp.maximum(jnp.dot(xf, w1, preferred_element_type=jnp.float32) + b1, 0.0)
    h2 = jnp.maximum(
        jnp.dot(h1.astype(jnp.bfloat16), w2, preferred_element_type=jnp.float32) + b2, 0.0)
    h3 = jnp.dot(h2.astype(jnp.bfloat16), w3, preferred_element_type=jnp.float32) + b3
    return jax.nn.sigmoid(h3)[:, :N_OUT].reshape(x.shape[0], 28, 28)


if __name__ == "__main__":
    key = jax.random.PRNGKey(0)

    # Capsule-decoder-sized input: 10 capsules x 16 dims = 160 input nodes.
    B = 2
    n_inp_nodes = 160

    kparam, kx = jax.random.split(key)
    params = init_recnet_params(kparam, n_inp_nodes)
    prep = prepare_recnet_params(params)
    x = jax.random.normal(kx, (B, 10, 16), jnp.float32)   # .view(B, 160) inside

    try:
        out = jax.block_until_ready(recnet_forward(x, prep, single_buffer_weights=True))
    except Exception:
        # Fallback for jax versions without per-BlockSpec pipeline_mode support:
        # identical kernel, default (double-buffered) weight specs.
        out = jax.block_until_ready(recnet_forward(x, prep, single_buffer_weights=False))

    assert out.shape == (B, 28, 28), out.shape

    # NOTE: kernel uses bf16 MXU inputs and a bf16 output; matches the f32
    # PyTorch forward only to ~5e-2 absolute (fine for a reconstruction decoder).
    ref_mixed = recnet_reference_mixed(x, prep)
    ref_f32 = recnet_reference_f32(x, params)
    out_f32 = out.astype(jnp.float32)
    assert jnp.allclose(out_f32, ref_mixed, atol=1e-2, rtol=0), "mismatch vs mixed-precision reference"
    assert jnp.allclose(out_f32, ref_f32, atol=6e-2, rtol=0), "mismatch vs f32 reference"

    print("KERNEL_OK")
</pallas_src>

<mosaic_0001>
module attributes {stable_mosaic.version = 11 : i64} {
  func.func @_recnet_kernel(%arg0: i32, %arg1: memref<8x256xbf16, #tpu.memory_space<vmem>>, %arg2: memref<256x512xbf16, #tpu.memory_space<vmem>>, %arg3: memref<1x512xf32, #tpu.memory_space<vmem>>, %arg4: memref<512x1024xbf16, #tpu.memory_space<vmem>>, %arg5: memref<1x1024xf32, #tpu.memory_space<vmem>>, %arg6: memref<1024x896xbf16, #tpu.memory_space<vmem>>, %arg7: memref<1x896xf32, #tpu.memory_space<vmem>>, %arg8: memref<8x896xbf16, #tpu.memory_space<vmem>>) attributes {dimension_semantics = [#tpu.dimension_semantics<parallel>], iteration_bounds = array<i64: 1>, scalar_prefetch = 0 : i64, scratch_operands = 0 : i64, tpu.core_type = #tpu.core_type<tc>, window_params = [{transform_indices = @transform_0, window_bounds = array<i64: 8, 256>}, {pipeline_mode = #tpu.pipeline_mode<synchronous>, transform_indices = @transform_1, window_bounds = array<i64: 256, 512>}, {pipeline_mode = #tpu.pipeline_mode<synchronous>, transform_indices = @transform_2, window_bounds = array<i64: 1, 512>}, {pipeline_mode = #tpu.pipeline_mode<synchronous>, transform_indices = @transform_3, window_bounds = array<i64: 512, 1024>}, {pipeline_mode = #tpu.pipeline_mode<synchronous>, transform_indices = @transform_4, window_bounds = array<i64: 1, 1024>}, {pipeline_mode = #tpu.pipeline_mode<synchronous>, transform_indices = @transform_5, window_bounds = array<i64: 1024, 896>}, {pipeline_mode = #tpu.pipeline_mode<synchronous>, transform_indices = @transform_6, window_bounds = array<i64: 1, 896>}, {transform_indices = @transform_7, window_bounds = array<i64: 8, 896>}]} {
    %c0 = arith.constant 0 : index
    %c0_0 = arith.constant 0 : index
    %0 = vector.load %arg1[%c0, %c0_0] : memref<8x256xbf16, #tpu.memory_space<vmem>>, vector<8x256xbf16>
    %c0_1 = arith.constant 0 : index
    %c0_2 = arith.constant 0 : index
    %1 = vector.load %arg2[%c0_1, %c0_2] : memref<256x512xbf16, #tpu.memory_space<vmem>>, vector<256x512xbf16>
    %cst = arith.constant dense<0.000000e+00> : vector<8x512xf32>
    %2 = tpu.matmul %0, %1, %cst {dimension_numbers = #tpu.dot_dimension_numbers<[1], [0], [0], [1], [0, 0, 1, 1], [], []>} : vector<8x256xbf16>, vector<256x512xbf16>, vector<8x512xf32> -> vector<8x512xf32>
    %c0_3 = arith.constant 0 : index
    %c0_4 = arith.constant 0 : index
    %3 = vector.load %arg3[%c0_3, %c0_4] : memref<1x512xf32, #tpu.memory_space<vmem>>, vector<1x512xf32>
    %4 = vector.broadcast %3 : vector<1x512xf32> to vector<8x512xf32>
    %5 = arith.addf %2, %4 : vector<8x512xf32>
    %cst_5 = arith.constant 0.000000e+00 : f32
    %6 = vector.broadcast %cst_5 : f32 to vector<8x512xf32>
    %7 = arith.maximumf %5, %6 : vector<8x512xf32>
    %8 = arith.truncf %7 : vector<8x512xf32> to vector<8x512xbf16>
    %c0_6 = arith.constant 0 : index
    %c0_7 = arith.constant 0 : index
    %9 = vector.load %arg4[%c0_6, %c0_7] : memref<512x1024xbf16, #tpu.memory_space<vmem>>, vector<512x1024xbf16>
    %cst_8 = arith.constant dense<0.000000e+00> : vector<8x1024xf32>
    %10 = tpu.matmul %8, %9, %cst_8 {dimension_numbers = #tpu.dot_dimension_numbers<[1], [0], [0], [1], [0, 0, 1, 1], [], []>} : vector<8x512xbf16>, vector<512x1024xbf16>, vector<8x1024xf32> -> vector<8x1024xf32>
    %c0_9 = arith.constant 0 : index
    %c0_10 = arith.constant 0 : index
    %11 = vector.load %arg5[%c0_9, %c0_10] : memref<1x1024xf32, #tpu.memory_space<vmem>>, vector<1x1024xf32>
    %12 = vector.broadcast %11 : vector<1x1024xf32> to vector<8x1024xf32>
    %13 = arith.addf %10, %12 : vector<8x1024xf32>
    %cst_11 = arith.constant 0.000000e+00 : f32
    %14 = vector.broadcast %cst_11 : f32 to vector<8x1024xf32>
    %15 = arith.maximumf %13, %14 : vector<8x1024xf32>
    %16 = arith.truncf %15 : vector<8x1024xf32> to vector<8x1024xbf16>
    %c0_12 = arith.constant 0 : index
    %c0_13 = arith.constant 0 : index
    %17 = vector.load %arg6[%c0_12, %c0_13] : memref<1024x896xbf16, #tpu.memory_space<vmem>>, vector<1024x896xbf16>
    %cst_14 = arith.constant dense<0.000000e+00> : vector<8x896xf32>
    %18 = tpu.matmul %16, %17, %cst_14 {dimension_numbers = #tpu.dot_dimension_numbers<[1], [0], [0], [1], [0, 0, 1, 1], [], []>} : vector<8x1024xbf16>, vector<1024x896xbf16>, vector<8x896xf32> -> vector<8x896xf32>
    %c0_15 = arith.constant 0 : index
    %c0_16 = arith.constant 0 : index
    %19 = vector.load %arg7[%c0_15, %c0_16] : memref<1x896xf32, #tpu.memory_space<vmem>>, vector<1x896xf32>
    %20 = vector.broadcast %19 : vector<1x896xf32> to vector<8x896xf32>
    %21 = arith.addf %18, %20 : vector<8x896xf32>
    %22 = arith.negf %21 : vector<8x896xf32>
    %23 = math.exp %22 : vector<8x896xf32>
    %cst_17 = arith.constant 1.000000e+00 : f32
    %24 = vector.broadcast %cst_17 : f32 to vector<8x896xf32>
    %25 = arith.addf %24, %23 : vector<8x896xf32>
    %26 = arith.divf %24, %25 : vector<8x896xf32>
    %27 = arith.truncf %26 : vector<8x896xf32> to vector<8x896xbf16>
    %c0_18 = arith.constant 0 : index
    %c0_19 = arith.constant 0 : index
    %28 = vector.load %arg8[%c0_18, %c0_19] : memref<8x896xbf16, #tpu.memory_space<vmem>>, vector<8x896xbf16>
    tpu.vector_store %arg8[%c0_18, %c0_19], %27 {strides = array<i32>} : memref<8x896xbf16, #tpu.memory_space<vmem>>, vector<8x896xbf16>,
    return
  }
  func.func @transform_0(%arg0: i32) -> (i32, i32) {
    %c0_i32 = arith.constant 0 : i32
    %c0_i32_0 = arith.constant 0 : i32
    return %arg0, %c0_i32 : i32, i32
  }
  func.func @transform_1(%arg0: i32) -> (i32, i32) {
    %c0_i32 = arith.constant 0 : i32
    %c0_i32_0 = arith.constant 0 : i32
    %c0_i32_1 = arith.constant 0 : i32
    return %c0_i32, %c0_i32_0 : i32, i32
  }
  func.func @transform_2(%arg0: i32) -> (i32, i32) {
    %c0_i32 = arith.constant 0 : i32
    %c0_i32_0 = arith.constant 0 : i32
    %c0_i32_1 = arith.constant 0 : i32
    return %c0_i32, %c0_i32_0 : i32, i32
  }
  func.func @transform_3(%arg0: i32) -> (i32, i32) {
    %c0_i32 = arith.constant 0 : i32
    %c0_i32_0 = arith.constant 0 : i32
    %c0_i32_1 = arith.constant 0 : i32
    return %c0_i32, %c0_i32_0 : i32, i32
  }
  func.func @transform_4(%arg0: i32) -> (i32, i32) {
    %c0_i32 = arith.constant 0 : i32
    %c0_i32_0 = arith.constant 0 : i32
    %c0_i32_1 = arith.constant 0 : i32
    return %c0_i32, %c0_i32_0 : i32, i32
  }
  func.func @transform_5(%arg0: i32) -> (i32, i32) {
    %c0_i32 = arith.constant 0 : i32
    %c0_i32_0 = arith.constant 0 : i32
    %c0_i32_1 = arith.constant 0 : i32
    return %c0_i32, %c0_i32_0 : i32, i32
  }
  func.func @transform_6(%arg0: i32) -> (i32, i32) {
    %c0_i32 = arith.constant 0 : i32
    %c0_i32_0 = arith.constant 0 : i32
    %c0_i32_1 = arith.constant 0 : i32
    return %c0_i32, %c0_i32_0 : i32, i32
  }
  func.func @transform_7(%arg0: i32) -> (i32, i32) {
    %c0_i32 = arith.constant 0 : i32
    %c0_i32_0 = arith.constant 0 : i32
    return %arg0, %c0_i32 : i32, i32
  }
}

module attributes {stable_mosaic.version = 11 : i64} {
  func.func @_recnet_kernel(%arg0: i32, %arg1: memref<8x256xbf16, #tpu.memory_space<vmem>>, %arg2: memref<256x512xbf16, #tpu.memory_space<vmem>>, %arg3: memref<1x512xf32, #tpu.memory_space<vmem>>, %arg4: memref<512x1024xbf16, #tpu.memory_space<vmem>>, %arg5: memref<1x1024xf32, #tpu.memory_space<vmem>>, %arg6: memref<1024x896xbf16, #tpu.memory_space<vmem>>, %arg7: memref<1x896xf32, #tpu.memory_space<vmem>>, %arg8: memref<8x896xbf16, #tpu.memory_space<vmem>>) attributes {dimension_semantics = [#tpu.dimension_semantics<parallel>], iteration_bounds = array<i64: 1>, scalar_prefetch = 0 : i64, scratch_operands = 0 : i64, tpu.core_type = #tpu.core_type<tc>, window_params = [{transform_indices = @transform_0, window_bounds = array<i64: 8, 256>}, {pipeline_mode = #tpu.pipeline_mode<synchronous>, transform_indices = @transform_1, window_bounds = array<i64: 256, 512>}, {pipeline_mode = #tpu.pipeline_mode<synchronous>, transform_indices = @transform_2, window_bounds = array<i64: 1, 512>}, {pipeline_mode = #tpu.pipeline_mode<synchronous>, transform_indices = @transform_3, window_bounds = array<i64: 512, 1024>}, {pipeline_mode = #tpu.pipeline_mode<synchronous>, transform_indices = @transform_4, window_bounds = array<i64: 1, 1024>}, {pipeline_mode = #tpu.pipeline_mode<synchronous>, transform_indices = @transform_5, window_bounds = array<i64: 1024, 896>}, {pipeline_mode = #tpu.pipeline_mode<synchronous>, transform_indices = @transform_6, window_bounds = array<i64: 1, 896>}, {transform_indices = @transform_7, window_bounds = array<i64: 8, 896>}]} {
    %c0 = arith.constant 0 : index
    %c0_0 = arith.constant 0 : index
    %0 = vector.load %arg1[%c0, %c0_0] : memref<8x256xbf16, #tpu.memory_space<vmem>>, vector<8x256xbf16>
    %c0_1 = arith.constant 0 : index
    %c0_2 = arith.constant 0 : index
    %1 = vector.load %arg2[%c0_1, %c0_2] : memref<256x512xbf16, #tpu.memory_space<vmem>>, vector<256x512xbf16>
    %cst = arith.constant dense<0.000000e+00> : vector<8x512xf32>
    %2 = tpu.matmul %0, %1, %cst {dimension_numbers = #tpu.dot_dimension_numbers<[1], [0], [0], [1], [0, 0, 1, 1], [], []>} : vector<8x256xbf16>, vector<256x512xbf16>, vector<8x512xf32> -> vector<8x512xf32>
    %c0_3 = arith.constant 0 : index
    %c0_4 = arith.constant 0 : index
    %3 = vector.load %arg3[%c0_3, %c0_4] : memref<1x512xf32, #tpu.memory_space<vmem>>, vector<1x512xf32>
    %4 = vector.broadcast %3 : vector<1x512xf32> to vector<8x512xf32>
    %5 = arith.addf %2, %4 : vector<8x512xf32>
    %cst_5 = arith.constant 0.000000e+00 : f32
    %6 = vector.broadcast %cst_5 : f32 to vector<8x512xf32>
    %7 = arith.maximumf %5, %6 : vector<8x512xf32>
    %8 = arith.truncf %7 : vector<8x512xf32> to vector<8x512xbf16>
    %c0_6 = arith.constant 0 : index
    %c0_7 = arith.constant 0 : index
    %9 = vector.load %arg4[%c0_6, %c0_7] : memref<512x1024xbf16, #tpu.memory_space<vmem>>, vector<512x1024xbf16>
    %cst_8 = arith.constant dense<0.000000e+00> : vector<8x1024xf32>
    %10 = tpu.matmul %8, %9, %cst_8 {dimension_numbers = #tpu.dot_dimension_numbers<[1], [0], [0], [1], [0, 0, 1, 1], [], []>} : vector<8x512xbf16>, vector<512x1024xbf16>, vector<8x1024xf32> -> vector<8x1024xf32>
    %c0_9 = arith.constant 0 : index
    %c0_10 = arith.constant 0 : index
    %11 = vector.load %arg5[%c0_9, %c0_10] : memref<1x1024xf32, #tpu.memory_space<vmem>>, vector<1x1024xf32>
    %12 = vector.broadcast %11 : vector<1x1024xf32> to vector<8x1024xf32>
    %13 = arith.addf %10, %12 : vector<8x1024xf32>
    %cst_11 = arith.constant 0.000000e+00 : f32
    %14 = vector.broadcast %cst_11 : f32 to vector<8x1024xf32>
    %15 = arith.maximumf %13, %14 : vector<8x1024xf32>
    %16 = arith.truncf %15 : vector<8x1024xf32> to vector<8x1024xbf16>
    %c0_12 = arith.constant 0 : index
    %c0_13 = arith.constant 0 : index
    %17 = vector.load %arg6[%c0_12, %c0_13] : memref<1024x896xbf16, #tpu.memory_space<vmem>>, vector<1024x896xbf16>
    %cst_14 = arith.constant dense<0.000000e+00> : vector<8x896xf32>
    %18 = tpu.matmul %16, %17, %cst_14 {dimension_numbers = #tpu.dot_dimension_numbers<[1], [0], [0], [1], [0, 0, 1, 1], [], []>} : vector<8x1024xbf16>, vector<1024x896xbf16>, vector<8x896xf32> -> vector<8x896xf32>
    %c0_15 = arith.constant 0 : index
    %c0_16 = arith.constant 0 : index
    %19 = vector.load %arg7[%c0_15, %c0_16] : memref<1x896xf32, #tpu.memory_space<vmem>>, vector<1x896xf32>
    %20 = vector.broadcast %19 : vector<1x896xf32> to vector<8x896xf32>
    %21 = arith.addf %18, %20 : vector<8x896xf32>
    %22 = arith.negf %21 : vector<8x896xf32>
    %23 = math.exp %22 : vector<8x896xf32>
    %cst_17 = arith.constant 1.000000e+00 : f32
    %24 = vector.broadcast %cst_17 : f32 to vector<8x896xf32>
    %25 = arith.addf %24, %23 : vector<8x896xf32>
    %26 = arith.divf %24, %25 : vector<8x896xf32>
    %27 = arith.truncf %26 : vector<8x896xf32> to vector<8x896xbf16>
    %c0_18 = arith.constant 0 : index
    %c0_19 = arith.constant 0 : index
    %28 = vector.load %arg8[%c0_18, %c0_19] : memref<8x896xbf16, #tpu.memory_space<vmem>>, vector<8x896xbf16>
    tpu.vector_store %arg8[%c0_18, %c0_19], %27 {strides = array<i32>} : memref<8x896xbf16, #tpu.memory_space<vmem>>, vector<8x896xbf16>,
    return
  }
  func.func @transform_0(%arg0: i32) -> (i32, i32) {
    %c0_i32 = arith.constant 0 : i32
    %c0_i32_0 = arith.constant 0 : i32
    return %arg0, %c0_i32 : i32, i32
  }
  func.func @transform_1(%arg0: i32) -> (i32, i32) {
    %c0_i32 = arith.constant 0 : i32
    %c0_i32_0 = arith.constant 0 : i32
    %c0_i32_1 = arith.constant 0 : i32
    return %c0_i32, %c0_i32_0 : i32, i32
  }
  func.func @transform_2(%arg0: i32) -> (i32, i32) {
    %c0_i32 = arith.constant 0 : i32
    %c0_i32_0 = arith.constant 0 : i32
    %c0_i32_1 = arith.constant 0 : i32
    return %c0_i32, %c0_i32_0 : i32, i32
  }
  func.func @transform_3(%arg0: i32) -> (i32, i32) {
    %c0_i32 = arith.constant 0 : i32
    %c0_i32_0 = arith.constant 0 : i32
    %c0_i32_1 = arith.constant 0 : i32
    return %c0_i32, %c0_i32_0 : i32, i32
  }
  func.func @transform_4(%arg0: i32) -> (i32, i32) {
    %c0_i32 = arith.constant 0 : i32
    %c0_i32_0 = arith.constant 0 : i32
    %c0_i32_1 = arith.constant 0 : i32
    return %c0_i32, %c0_i32_0 : i32, i32
  }
  func.func @transform_5(%arg0: i32) -> (i32, i32) {
    %c0_i32 = arith.constant 0 : i32
    %c0_i32_0 = arith.constant 0 : i32
    %c0_i32_1 = arith.constant 0 : i32
    return %c0_i32, %c0_i32_0 : i32, i32
  }
  func.func @transform_6(%arg0: i32) -> (i32, i32) {
    %c0_i32 = arith.constant 0 : i32
    %c0_i32_0 = arith.constant 0 : i32
    %c0_i32_1 = arith.constant 0 : i32
    return %c0_i32, %c0_i32_0 : i32, i32
  }
  func.func @transform_7(%arg0: i32) -> (i32, i32) {
    %c0_i32 = arith.constant 0 : i32
    %c0_i32_0 = arith.constant 0 : i32
    return %arg0, %c0_i32 : i32, i32
  }
}

</mosaic_0001>

<bundles_post_ra>
// kernel: tpu_custom_call.1
= control target key start
LH: loop header
LB: loop body
LE: loop exit
PB: predicated region body
PF: predicated region fallthrough
CT: control target
= control target key end

     0   :  { %12 = vsyncpa [#allocation3], 0  ;;  %s10915_s0 = inlined_call_operand.hbm [shape: bf16[8,256], index: 0, kind: input, shape index: {}]   ;;  %s10916_s1 = inlined_call_operand.hbm [shape: bf16[256,512], index: 1, kind: input, shape index: {}]   ;;  %s10917_s2 = inlined_call_operand.hbm [shape: f32[1,512], index: 2, kind: input, shape index: {}]   ;;  %s10918_s3 = inlined_call_operand.hbm [shape: bf16[512,1024], index: 3, kind: input, shape index: {}]   ;;  %s10919_s4 = inlined_call_operand.hbm [shape: f32[1,1024], index: 4, kind: input, shape index: {}]   ;;  %s10920_s5 = inlined_call_operand.hbm [shape: bf16[1024,896], index: 5, kind: input, shape index: {}]   ;;  %s10921_s6 = inlined_call_operand.hbm [shape: f32[1,896], index: 6, kind: input, shape index: {}]   ;;  %s10922_s7 = inlined_call_operand.hbm [shape: bf16[8,896], index: 7, kind: output, shape index: {}]  }
   0x1   :  { %13 = vsyncpa [#allocation6], 0 }
   0x2   :  { %14 = vsyncpa [#allocation9], 0 }
   0x3   :  { %15 = vsyncpa [#allocation12], 0  ;;  %s32_s26 = sshll.u32 %s10916_s1, 4  ;;  %s33_s26 = int_to_ptr.hbm [resolvable:$true] %s32_s26 }
   0x4   :  { %16 = vsyncpa [#allocation4], 0  ;;  %s10443_s27 = smov [#allocation5]   ;;  %s56_s8 = sshll.u32 %s10918_s3, 4  ;;  %s57_s8 = int_to_ptr.hbm [resolvable:$true] %s56_s8 }
   0x5   :  { %s34_s28 = sshll.u32 %s10443_s27, 4  ;;  %s10444_s9 = smov 256   ;;  %s35_s28 = int_to_ptr.vmem [resolvable:$true] %s34_s28 }
   0x6   :  { %s10445_s10 = smov 16   ;;  %s10446_s11 = smov [#allocation8]  }
   0x7   :  { %40 = dma.hbm_to_vmem [thread:$0]  %s33_s26, 8192, %s35_s28, [#allocation6], %s10444_s9, %s10444_s9, %s10445_s10  }
   0x8   :  { %s58_s12 = sshll.u32 %s10446_s11, 4  ;;  %s10447_s13 = smov 512   ;;  %s59_s12 = int_to_ptr.vmem [resolvable:$true] %s58_s12 }
   0x9   :  { %s10448_s14 = smov 32   ;;  %s80_s16 = sshll.u32 %s10920_s5, 4  ;;  %s81_s16 = int_to_ptr.hbm [resolvable:$true] %s80_s16 }
   0xa   :  { %64 = dma.hbm_to_vmem [thread:$0]  %s57_s8, 32768, %s59_s12, [#allocation9], %s10447_s13, %s10447_s13, %s10448_s14  }
   0xb   :  { %s10449_s17 = smov [#allocation11]   ;;  %s22_s20 = sshll.u32 %s10915_s0, 4  ;;  %s23_s20 = int_to_ptr.hbm [resolvable:$true] %s22_s20 }
   0xc   :  { %s82_s18 = sshll.u32 %s10449_s17, 4  ;;  %s10450_s21 = smov 448   ;;  %s83_s18 = int_to_ptr.vmem [resolvable:$true] %s82_s18 }
   0xd   :  { %s10451_s22 = smov 28   ;;  %s10452_s23 = smov [#allocation2]  }
   0xe   :  { %88 = dma.hbm_to_vmem [thread:$0]  %s81_s16, 57344, %s83_s18, [#allocation12], %s10450_s21, %s10450_s21, %s10451_s22  }
   0xf   :  { %s24_s24 = sshll.u32 %s10452_s23, 4  ;;  %s46_s27 = sshll.u32 %s10917_s2, 4  ;;  %s25_s24 = int_to_ptr.vmem [resolvable:$true] %s24_s24  ;;  %s47_s27 = int_to_ptr.hbm [resolvable:$true] %s46_s27 }
  0x10   :  { %27 = dma.hbm_to_vmem [thread:$0]  %s23_s20, 128, %s25_s24, [#allocation3]  }
  0x11   :  { %s70_s29 = sshll.u32 %s10919_s4, 4  ;;  %s10453_s30 = smov [#allocation7]   ;;  %s71_s29 = int_to_ptr.hbm [resolvable:$true] %s70_s29 }
  0x12   :  { %s48_s8 = sshll.u32 %s10453_s30, 4  ;;  %s10454_s0 = smov [#allocation10]   ;;  %s49_s8 = int_to_ptr.vmem [resolvable:$true] %s48_s8 }
  0x13   :  { %51 = dma.hbm_to_vmem [thread:$0]  %s47_s27, 64, %s49_s8, [#allocation6]  }
  0x14   :  { %s72_s9 = sshll.u32 %s10454_s0, 4  ;;  %s94_s12 = sshll.u32 %s10921_s6, 4  ;;  %s73_s9 = int_to_ptr.vmem [resolvable:$true] %s72_s9  ;;  %s95_s12 = int_to_ptr.hbm [resolvable:$true] %s94_s12 }
  0x15   :  { %75 = dma.hbm_to_vmem [thread:$0]  %s71_s29, 128, %s73_s9, [#allocation9]  }
  0x16   :  { %s10455_s2 = smov [#allocation13]  }
  0x17   :  { %s96_s13 = sshll.u32 %s10455_s2, 4  ;;  %s97_s13 = int_to_ptr.vmem [resolvable:$true] %s96_s13 }
  0x18   :  { %99 = dma.hbm_to_vmem [thread:$0]  %s95_s12, 112, %s97_s13, [#allocation12]  }
  0x19   :  { %10433 = dma.done.wait [#allocation3], 128  }
  0x1a   :  { %10434 = vsyncadd [#allocation3], 4294967168 }
  0x1b   :  { %10435 = dma.done.wait [#allocation6], 8256  }
  0x1c   :  { %10436 = vsyncadd [#allocation6], 4294959040 }
  0x1d   :  { %10437 = dma.done.wait [#allocation9], 32896  }
  0x1e   :  { %10438 = vsyncadd [#allocation9], 4294934400 }
  0x1f   :  { %10439 = dma.done.wait [#allocation12], 57456  }
  0x20   :  { %10440 = vsyncadd [#allocation12], 4294909840  ;;  %v6463_v0 = vld [vmem:[#allocation5 + $0xe0] sm:$0xf]  ;;  %v9458_v1 = vld [vmem:[#allocation5 + $0xec] sm:$0xf0] }
  0x21   :  { %v6591_v2 = vld [vmem:[#allocation5 + $0x1e0] sm:$0xf]  ;;  %v6464_v3 = vor.u32 %v9458_v1, %v6463_v0  ;;  %v9490_v4 = vld [vmem:[#allocation5 + $0x1ec] sm:$0xf0]  ;;  %v9456_v5 = vld [vmem:[#allocation5 + $0xe4] sm:$0xf] }
  0x22   :  { %v6465_v6 = vld [vmem:[#allocation5 + $0xf0] sm:$0xf0]  ;;  %v6592_v7 = vor.u32 %v9490_v4, %v6591_v2  ;;  %v9488_v9 = vld [vmem:[#allocation5 + $0x1e4] sm:$0xf]  ;;  %v6447_v11 = vld [vmem:[#allocation5 + $0xc0] sm:$0xf] }
  0x23   :  { %v6468_v8 = vor.u32 %v9456_v5, %v6465_v6  ;;  %v6593_v10 = vld [vmem:[#allocation5 + $0x1f0] sm:$0xf0]  ;;  %530 = vmatpush.bf16.msra.mxu0 %v6464_v3  ;;  %v9454_v13 = vld [vmem:[#allocation5 + $0xcc] sm:$0xf0]  ;;  %v6575_v14 = vld [vmem:[#allocation5 + $0x1c0] sm:$0xf] }
  0x24   :  { %v6596_v12 = vor.u32 %v9488_v9, %v6593_v10  ;;  %v9486_v15 = vld [vmem:[#allocation5 + $0x1cc] sm:$0xf0]  ;;  %543 = vmatpush.bf16.msra.mxu1 %v6592_v7  ;;  %v6448_v16 = vor.u32 %v9454_v13, %v6447_v11  ;;  %v9452_v18 = vld [vmem:[#allocation5 + $0xc4] sm:$0xf]  ;;  %v6449_v19 = vld [vmem:[#allocation5 + $0xd0] sm:$0xf0] }
  0x25   :  { %556 = vmatpush.bf16.msra.mxu2 %v6468_v8  ;;  %v6576_v17 = vor.u32 %v9486_v15, %v6575_v14  ;;  %v9484_v20 = vld [vmem:[#allocation5 + $0x1c4] sm:$0xf]  ;;  %v6452_v21 = vor.u32 %v9452_v18, %v6449_v19  ;;  %v6577_v22 = vld [vmem:[#allocation5 + $0x1d0] sm:$0xf0]  ;;  %v6431_v23 = vld [vmem:[#allocation5 + $0xa0] sm:$0xf] }
  0x26   :  { %569 = vmatpush.bf16.msra.mxu3 %v6596_v12  ;;  %v9450_v24 = vld [vmem:[#allocation5 + $0xac] sm:$0xf0]  ;;  %v6580_v25 = vor.u32 %v9484_v20, %v6577_v22  ;;  %v6559_v26 = vld [vmem:[#allocation5 + $0x1a0] sm:$0xf]  ;;  %v9448_v28 = vld [vmem:[#allocation5 + $0xa4] sm:$0xf] }
  0x27   :  { %v9482_v27 = vld [vmem:[#allocation5 + $0x1ac] sm:$0xf0]  ;;  %531 = vmatpush.bf16.msra.mxu0 %v6448_v16  ;;  %v6432_v29 = vor.u32 %v9450_v24, %v6431_v23  ;;  %v6433_v30 = vld [vmem:[#allocation5 + $0xb0] sm:$0xf0]  ;;  %v9480_v31 = vld [vmem:[#allocation5 + $0x1a4] sm:$0xf] }
  0x28   :  { %v6561_v32 = vld [vmem:[#allocation5 + $0x1b0] sm:$0xf0]  ;;  %544 = vmatpush.bf16.msra.mxu1 %v6576_v17  ;;  %v6560_v33 = vor.u32 %v9482_v27, %v6559_v26  ;;  %v6436_v34 = vor.u32 %v9448_v28, %v6433_v30  ;;  %v6415_v35 = vld [vmem:[#allocation5 + $0x80] sm:$0xf]  ;;  %v9446_v36 = vld [vmem:[#allocation5 + $0x8c] sm:$0xf0] }
  0x29   :  { %557 = vmatpush.bf16.msra.mxu2 %v6452_v21  ;;  %v6543_v37 = vld [vmem:[#allocation5 + $0x180] sm:$0xf]  ;;  %v6564_v38 = vor.u32 %v9480_v31, %v6561_v32  ;;  %v9478_v39 = vld [vmem:[#allocation5 + $0x18c] sm:$0xf0]  ;;  %v9444_v40 = vld [vmem:[#allocation5 + $0x84] sm:$0xf]  ;;  %v6416_v44 = vor.u32 %v9446_v36, %v6415_v35 }
  0x2a   :  { %570 = vmatpush.bf16.msra.mxu3 %v6580_v25  ;;  %v6417_v41 = vld [vmem:[#allocation5 + $0x90] sm:$0xf0]  ;;  %v9476_v42 = vld [vmem:[#allocation5 + $0x184] sm:$0xf]  ;;  %v6544_v45 = vor.u32 %v9478_v39, %v6543_v37  ;;  %v6399_v47 = vld [vmem:[#allocation5 + $0x60] sm:$0xf] }
  0x2b   :  { %v6545_v43 = vld [vmem:[#allocation5 + $0x190] sm:$0xf0]  ;;  %532 = vmatpush.bf16.msra.mxu0 %v6432_v29  ;;  %v6420_v46 = vor.u32 %v9444_v40, %v6417_v41  ;;  %v9442_v48 = vld [vmem:[#allocation5 + $0x6c] sm:$0xf0]  ;;  %v6527_v49 = vld [vmem:[#allocation5 + $0x160] sm:$0xf] }
  0x2c   :  { %545 = vmatpush.bf16.msra.mxu1 %v6560_v33  ;;  %v6548_v50 = vor.u32 %v9476_v42, %v6545_v43  ;;  %v9474_v51 = vld [vmem:[#allocation5 + $0x16c] sm:$0xf0]  ;;  %v9440_v52 = vld [vmem:[#allocation5 + $0x64] sm:$0xf]  ;;  %v6401_v53 = vld [vmem:[#allocation5 + $0x70] sm:$0xf0]  ;;  %v6400_v56 = vor.u32 %v9442_v48, %v6399_v47 }
  0x2d   :  { %558 = vmatpush.bf16.msra.mxu2 %v6436_v34  ;;  %v9472_v54 = vld [vmem:[#allocation5 + $0x164] sm:$0xf]  ;;  %v6529_v55 = vld [vmem:[#allocation5 + $0x170] sm:$0xf0]  ;;  %v6528_v57 = vor.u32 %v9474_v51, %v6527_v49  ;;  %v6404_v58 = vor.u32 %v9440_v52, %v6401_v53  ;;  %v6383_v59 = vld [vmem:[#allocation5 + $0x40] sm:$0xf] }
  0x2e   :  { %571 = vmatpush.bf16.msra.mxu3 %v6564_v38  ;;  %v9438_v60 = vld [vmem:[#allocation5 + $0x4c] sm:$0xf0]  ;;  %v6511_v61 = vld [vmem:[#allocation5 + $0x140] sm:$0xf]  ;;  %v6532_v62 = vor.u32 %v9472_v54, %v6529_v55  ;;  %v9436_v0 = vld [vmem:[#allocation5 + $0x44] sm:$0xf] }
  0x2f   :  { %533 = vmatpush.bf16.msra.mxu0 %v6416_v44  ;;  %v9470_v63 = vld [vmem:[#allocation5 + $0x14c] sm:$0xf0]  ;;  %v6385_v1 = vld [vmem:[#allocation5 + $0x50] sm:$0xf0]  ;;  %v9468_v2 = vld [vmem:[#allocation5 + $0x144] sm:$0xf]  ;;  %v6384_v4 = vor.u32 %v9438_v60, %v6383_v59 }
  0x30   :  { %546 = vmatpush.bf16.msra.mxu1 %v6544_v45  ;;  %v6513_v3 = vld [vmem:[#allocation5 + $0x150] sm:$0xf0]  ;;  %v6512_v5 = vor.u32 %v9470_v63, %v6511_v61  ;;  %v6388_v6 = vor.u32 %v9436_v0, %v6385_v1  ;;  %v6367_v7 = vld [vmem:[#allocation5 + $0x20] sm:$0xf]  ;;  %v9434_v8 = vld [vmem:[#allocation5 + $0x2c] sm:$0xf0] }
  0x31   :  { %559 = vmatpush.bf16.msra.mxu2 %v6420_v46  ;;  %v6495_v9 = vld [vmem:[#allocation5 + $0x120] sm:$0xf]  ;;  %v6516_v10 = vor.u32 %v9468_v2, %v6513_v3  ;;  %v9466_v11 = vld [vmem:[#allocation5 + $0x12c] sm:$0xf0]  ;;  %v9432_v12 = vld [vmem:[#allocation5 + $0x24] sm:$0xf]  ;;  %v6368_v16 = vor.u32 %v9434_v8, %v6367_v7 }
  0x32   :  { %572 = vmatpush.bf16.msra.mxu3 %v6548_v50  ;;  %v6369_v13 = vld [vmem:[#allocation5 + $0x30] sm:$0xf0]  ;;  %v9464_v14 = vld [vmem:[#allocation5 + $0x124] sm:$0xf]  ;;  %v6351_v17 = vld [vmem:[#allocation5] sm:$0xf]  ;;  %v6496_v20 = vor.u32 %v9466_v11, %v6495_v9 }
  0x33   :  { %534 = vmatpush.bf16.msra.mxu0 %v6400_v56  ;;  %v6497_v15 = vld [vmem:[#allocation5 + $0x130] sm:$0xf0]  ;;  %v9430_v18 = vld [vmem:[#allocation5 + $0xc] sm:$0xf0]  ;;  %v6479_v19 = vld [vmem:[#allocation5 + $0x100] sm:$0xf]  ;;  %v6372_v21 = vor.u32 %v9432_v12, %v6369_v13 }
  0x34   :  { %547 = vmatpush.bf16.msra.mxu1 %v6528_v57  ;;  %v9462_v22 = vld [vmem:[#allocation5 + $0x10c] sm:$0xf0]  ;;  %v9428_v23 = vld [vmem:[#allocation5 + $0x4] sm:$0xf]  ;;  %v128_v24 = vld [vmem:[#allocation2] sm:$0xff]  ;;  %v6500_v25 = vor.u32 %v9464_v14, %v6497_v15  ;;  %v6352_v32 = vor.u32 %v9430_v18, %v6351_v17  ;;  %s10456_s4 = smov [#allocation14]  }
  0x35   :  { %560 = vmatpush.bf16.msra.mxu2 %v6404_v58  ;;  %v6353_v26 = vld [vmem:[#allocation5 + $0x10] sm:$0xf0]  ;;  %v9460_v27 = vld [vmem:[#allocation5 + $0x104] sm:$0xf]  ;;  %v6471_v29 = vld [vmem:[#allocation5 + $0xe8] sm:$0xf]  ;;  %v204_v36 = vunpack.c.l.b16 %v128_v24  ;;  %v6480_v37 = vor.u32 %v9462_v22, %v6479_v19  ;;  %v205_v41 = vunpack.c.h.b16 %v128_v24 }
  0x36   :  { %573 = vmatpush.bf16.msra.mxu3 %v6532_v62  ;;  %v6481_v28 = vld [vmem:[#allocation5 + $0x110] sm:$0xf0]  ;;  %v9459_v30 = vld [vmem:[#allocation5 + $0xf4] sm:$0xf0]  ;;  %v6599_v31 = vld [vmem:[#allocation5 + $0x1e8] sm:$0xf]  ;;  %v6356_v38 = vor.u32 %v9428_v23, %v6353_v26 }
  0x37   :  { %535 = vmatpush.bf16.msra.mxu0 %v6384_v4  ;;  %v9491_v33 = vld [vmem:[#allocation5 + $0x1f4] sm:$0xf0]  ;;  %v9457_v34 = vld [vmem:[#allocation5 + $0xec] sm:$0xf]  ;;  %v6473_v35 = vld [vmem:[#allocation5 + $0xf8] sm:$0xf0]  ;;  %v6484_v42 = vor.u32 %v9460_v27, %v6481_v28  ;;  %v6472_v43 = vor.u32 %v9459_v30, %v6471_v29  ;;  %v10518_v50 = vpack.c.b16 %v204_v36, %v204_v36  ;;  %v10520_v54 = vpack.c.b16 %v205_v41, %v205_v41 }
  0x38   :  { %548 = vmatpush.bf16.msra.mxu1 %v6512_v5  ;;  %v9489_v39 = vld [vmem:[#allocation5 + $0x1ec] sm:$0xf]  ;;  %v6601_v40 = vld [vmem:[#allocation5 + $0x1f8] sm:$0xf0]  ;;  %v6600_v44 = vor.u32 %v9491_v33, %v6599_v31  ;;  %v6476_v45 = vor.u32 %v9457_v34, %v6473_v35  ;;  %v6455_v46 = vld [vmem:[#allocation5 + $0xc8] sm:$0xf] }
  0x39   :  { %561 = vmatpush.bf16.msra.mxu2 %v6388_v6  ;;  %v9455_v47 = vld [vmem:[#allocation5 + $0xd4] sm:$0xf0]  ;;  %v6583_v48 = vld [vmem:[#allocation5 + $0x1c8] sm:$0xf]  ;;  %v6604_v49 = vor.u32 %v9489_v39, %v6601_v40  ;;  %v9453_v52 = vld [vmem:[#allocation5 + $0xcc] sm:$0xf] }
  0x3a   :  { %574 = vmatpush.bf16.msra.mxu3 %v6516_v10  ;;  %v9487_v51 = vld [vmem:[#allocation5 + $0x1d4] sm:$0xf0]  ;;  %v6457_v53 = vld [vmem:[#allocation5 + $0xd8] sm:$0xf0]  ;;  %v9485_v55 = vld [vmem:[#allocation5 + $0x1cc] sm:$0xf]  ;;  %v6456_v57 = vor.u32 %v9455_v47, %v6455_v46 }
  0x3b   :  { %536 = vmatpush.bf16.msra.mxu0 %v6368_v16  ;;  %v6585_v56 = vld [vmem:[#allocation5 + $0x1d8] sm:$0xf0]  ;;  %v6584_v58 = vor.u32 %v9487_v51, %v6583_v48  ;;  %v6460_v59 = vor.u32 %v9453_v52, %v6457_v53  ;;  %v6439_v60 = vld [vmem:[#allocation5 + $0xa8] sm:$0xf]  ;;  %v9451_v61 = vld [vmem:[#allocation5 + $0xb4] sm:$0xf0] }
  0x3c   :  { %549 = vmatpush.bf16.msra.mxu1 %v6496_v20  ;;  %v6567_v62 = vld [vmem:[#allocation5 + $0x1a8] sm:$0xf]  ;;  %v6588_v63 = vor.u32 %v9485_v55, %v6585_v56  ;;  %v9483_v0 = vld [vmem:[#allocation5 + $0x1b4] sm:$0xf0]  ;;  %v9449_v1 = vld [vmem:[#allocation5 + $0xac] sm:$0xf]  ;;  %v6440_v5 = vor.u32 %v9451_v61, %v6439_v60 }
  0x3d   :  { %562 = vmatpush.bf16.msra.mxu2 %v6372_v21  ;;  %v6441_v2 = vld [vmem:[#allocation5 + $0xb8] sm:$0xf0]  ;;  %v9481_v3 = vld [vmem:[#allocation5 + $0x1ac] sm:$0xf]  ;;  %v6568_v6 = vor.u32 %v9483_v0, %v6567_v62  ;;  %v6423_v8 = vld [vmem:[#allocation5 + $0x88] sm:$0xf] }
  0x3e   :  { %575 = vmatpush.bf16.msra.mxu3 %v6500_v25  ;;  %v6569_v4 = vld [vmem:[#allocation5 + $0x1b8] sm:$0xf0]  ;;  %v6444_v7 = vor.u32 %v9449_v1, %v6441_v2  ;;  %v9447_v9 = vld [vmem:[#allocation5 + $0x94] sm:$0xf0]  ;;  %v6551_v10 = vld [vmem:[#allocation5 + $0x188] sm:$0xf] }
  0x3f   :  { %537 = vmatpush.bf16.msra.mxu0 %v6352_v32  ;;  %v6572_v11 = vor.u32 %v9481_v3, %v6569_v4  ;;  %v9479_v12 = vld [vmem:[#allocation5 + $0x194] sm:$0xf0]  ;;  %v9445_v13 = vld [vmem:[#allocation5 + $0x8c] sm:$0xf]  ;;  %v6425_v14 = vld [vmem:[#allocation5 + $0x98] sm:$0xf0]  ;;  %v6424_v17 = vor.u32 %v9447_v9, %v6423_v8 }
  0x40   :  { %550 = vmatpush.bf16.msra.mxu1 %v6480_v37  ;;  %v9477_v15 = vld [vmem:[#allocation5 + $0x18c] sm:$0xf]  ;;  %v6553_v16 = vld [vmem:[#allocation5 + $0x198] sm:$0xf0]  ;;  %v6552_v18 = vor.u32 %v9479_v12, %v6551_v10  ;;  %v6428_v19 = vor.u32 %v9445_v13, %v6425_v14  ;;  %v6407_v20 = vld [vmem:[#allocation5 + $0x68] sm:$0xf] }
  0x41   :  { %563 = vmatpush.bf16.msra.mxu2 %v6356_v38  ;;  %v9443_v21 = vld [vmem:[#allocation5 + $0x74] sm:$0xf0]  ;;  %v6535_v22 = vld [vmem:[#allocation5 + $0x168] sm:$0xf]  ;;  %v6556_v23 = vor.u32 %v9477_v15, %v6553_v16  ;;  %v9441_v25 = vld [vmem:[#allocation5 + $0x6c] sm:$0xf] }
  0x42   :  { %576 = vmatpush.bf16.msra.mxu3 %v6484_v42  ;;  %538 = vmatmul.bf16.vlgmr.msra.gmra.mxu0 %v10518_v50  ;;  %v9475_v24 = vld [vmem:[#allocation5 + $0x174] sm:$0xf0]  ;;  %v6409_v26 = vld [vmem:[#allocation5 + $0x78] sm:$0xf0]  ;;  %v9473_v27 = vld [vmem:[#allocation5 + $0x16c] sm:$0xf]  ;;  %v6408_v29 = vor.u32 %v9443_v21, %v6407_v20 }
  0x43   :  { %582 = vmatpush.bf16.msrb.mxu0 %v6472_v43  ;;  %551 = vmatmul.bf16.vlgmr.msra.gmra.mxu1 %v10520_v54  ;;  %v6537_v28 = vld [vmem:[#allocation5 + $0x178] sm:$0xf0]  ;;  %v6536_v30 = vor.u32 %v9475_v24, %v6535_v22  ;;  %v6412_v31 = vor.u32 %v9441_v25, %v6409_v26  ;;  %v6391_v32 = vld [vmem:[#allocation5 + $0x48] sm:$0xf]  ;;  %v9439_v33 = vld [vmem:[#allocation5 + $0x54] sm:$0xf0] }
  0x44   :  { %595 = vmatpush.bf16.msrb.mxu1 %v6600_v44  ;;  %564 = vmatmul.bf16.vlgmr.msra.gmra.mxu2 %v10518_v50  ;;  %v6519_v34 = vld [vmem:[#allocation5 + $0x148] sm:$0xf]  ;;  %v6540_v35 = vor.u32 %v9473_v27, %v6537_v28  ;;  %v9471_v36 = vld [vmem:[#allocation5 + $0x154] sm:$0xf0]  ;;  %v9437_v37 = vld [vmem:[#allocation5 + $0x4c] sm:$0xf]  ;;  %v6392_v41 = vor.u32 %v9439_v33, %v6391_v32 }
  0x45   :  { %608 = vmatpush.bf16.msrb.mxu2 %v6476_v45  ;;  %577 = vmatmul.bf16.vlgmr.msra.gmra.mxu3 %v10520_v54  ;;  %v6393_v38 = vld [vmem:[#allocation5 + $0x58] sm:$0xf0]  ;;  %v9469_v39 = vld [vmem:[#allocation5 + $0x14c] sm:$0xf]  ;;  %v6520_v42 = vor.u32 %v9471_v36, %v6519_v34  ;;  %v6375_v44 = vld [vmem:[#allocation5 + $0x28] sm:$0xf] }
  0x46   :  { %621 = vmatpush.bf16.msrb.mxu3 %v6604_v49  ;;  %v6521_v40 = vld [vmem:[#allocation5 + $0x158] sm:$0xf0]  ;;  %v6396_v43 = vor.u32 %v9437_v37, %v6393_v38  ;;  %v9435_v45 = vld [vmem:[#allocation5 + $0x34] sm:$0xf0]  ;;  %v6503_v46 = vld [vmem:[#allocation5 + $0x128] sm:$0xf] }
  0x47   :  { %583 = vmatpush.bf16.msrb.mxu0 %v6456_v57  ;;  %v6524_v47 = vor.u32 %v9469_v39, %v6521_v40  ;;  %v9467_v48 = vld [vmem:[#allocation5 + $0x134] sm:$0xf0]  ;;  %v9433_v49 = vld [vmem:[#allocation5 + $0x2c] sm:$0xf]  ;;  %v6377_v51 = vld [vmem:[#allocation5 + $0x38] sm:$0xf0]  ;;  %v6376_v55 = vor.u32 %v9435_v45, %v6375_v44 }
  0x48   :  { %596 = vmatpush.bf16.msrb.mxu1 %v6584_v58  ;;  %v9465_v52 = vld [vmem:[#allocation5 + $0x12c] sm:$0xf]  ;;  %v6505_v53 = vld [vmem:[#allocation5 + $0x138] sm:$0xf0]  ;;  %v6359_v56 = vld [vmem:[#allocation5 + $0x8] sm:$0xf]  ;;  %v6504_v57 = vor.u32 %v9467_v48, %v6503_v46  ;;  %v6380_v58 = vor.u32 %v9433_v49, %v6377_v51 }
  0x49   :  { %609 = vmatpush.bf16.msrb.mxu2 %v6460_v59  ;;  %v9431_v59 = vld [vmem:[#allocation5 + $0x14] sm:$0xf0]  ;;  %v6487_v60 = vld [vmem:[#allocation5 + $0x108] sm:$0xf]  ;;  %v6508_v62 = vor.u32 %v9465_v52, %v6505_v53  ;;  %v6361_v0 = vld [vmem:[#allocation5 + $0x18] sm:$0xf0] }
  0x4a   :  { %622 = vmatpush.bf16.msrb.mxu3 %v6588_v63  ;;  %v9463_v61 = vld [vmem:[#allocation5 + $0x114] sm:$0xf0]  ;;  %v9429_v63 = vld [vmem:[#allocation5 + $0xc] sm:$0xf]  ;;  %v6489_v2 = vld [vmem:[#allocation5 + $0x118] sm:$0xf0] }
  0x4b   :  { %584 = vmatpush.bf16.msrb.mxu0 %v6440_v5  ;;  %v9461_v1 = vld [vmem:[#allocation5 + $0x10c] sm:$0xf]  ;;  %v6831_v3 = vld [vmem:[#allocation8 + $0x1c0] sm:$0xf]  ;;  %v6360_v5 = vor.u32 %v9431_v59, %v6359_v56  ;;  %v6488_v8 = vor.u32 %v9463_v61, %v6487_v60  ;;  %v6364_v9 = vor.u32 %v9429_v63, %v6361_v0  ;;  %s6334_s6 = sshll.u32 %s10456_s4, 4  ;;  %s6336_s15 = sshll.u32 %s10922_s7, 4  ;;  %s6335_s6 = int_to_ptr.vmem [resolvable:$true] %s6334_s6  ;;  %s6337_s15 = int_to_ptr.hbm [resolvable:$true] %s6336_s15 }
  0x4c   :  { %597 = vmatpush.bf16.msrb.mxu1 %v6568_v6  ;;  %v9552_v4 = vld [vmem:[#allocation8 + $0x1dc] sm:$0xf0]  ;;  %v6492_v10 = vor.u32 %v9461_v1, %v6489_v2 }
  0x4d   :  { %610 = vmatpush.bf16.msrb.mxu2 %v6444_v7  ;;  %v7087_v6 = vld [vmem:[#allocation8 + $0x3c0] sm:$0xf] }
  0x4e   :  { %623 = vmatpush.bf16.msrb.mxu3 %v6572_v11  ;;  %v9616_v7 = vld [vmem:[#allocation8 + $0x3dc] sm:$0xf0]  ;;  %v6832_v11 = vor.u32 %v9552_v4, %v6831_v3 }
  0x4f   :  { %585 = vmatpush.bf16.msrb.mxu0 %v6424_v17  ;;  %v7343_v12 = vld [vmem:[#allocation8 + $0x5c0] sm:$0xf]  ;;  %v7088_v16 = vor.u32 %v9616_v7, %v7087_v6 }
  0x50   :  { %598 = vmatpush.bf16.msrb.mxu1 %v6552_v18  ;;  %v9680_v13 = vld [vmem:[#allocation8 + $0x5dc] sm:$0xf0] }
  0x51   :  { %611 = vmatpush.bf16.msrb.mxu2 %v6428_v19  ;;  %v6799_v14 = vld [vmem:[#allocation8 + $0x180] sm:$0xf]  ;;  %v7344_v19 = vor.u32 %v9680_v13, %v7343_v12  ;;  %v9548_v13 = vld [vmem:[#allocation8 + $0x1c4] sm:$0xf] }
  0x52   :  { %624 = vmatpush.bf16.msrb.mxu3 %v6556_v23  ;;  %v9544_v15 = vld [vmem:[#allocation8 + $0x19c] sm:$0xf0] }
  0x53   :  { %586 = vmatpush.bf16.msrb.mxu0 %v6408_v29  ;;  %v7055_v17 = vld [vmem:[#allocation8 + $0x380] sm:$0xf]  ;;  %v6800_v20 = vor.u32 %v9544_v15, %v6799_v14  ;;  %v6833_v15 = vld [vmem:[#allocation8 + $0x1e0] sm:$0xf0] }
  0x54   :  { %599 = vmatpush.bf16.msrb.mxu1 %v6536_v30  ;;  %v9608_v18 = vld [vmem:[#allocation8 + $0x39c] sm:$0xf0] }
  0x55   :  { %612 = vmatpush.bf16.msrb.mxu2 %v6412_v31  ;;  %v7311_v21 = vld [vmem:[#allocation8 + $0x580] sm:$0xf]  ;;  %v7056_v25 = vor.u32 %v9608_v18, %v7055_v17  ;;  %v9612_v18 = vld [vmem:[#allocation8 + $0x3c4] sm:$0xf] }
  0x56   :  { %625 = vmatpush.bf16.msrb.mxu3 %v6540_v35  ;;  %v9672_v22 = vld [vmem:[#allocation8 + $0x59c] sm:$0xf0] }
  0x57   :  { %587 = vmatpush.bf16.msrb.mxu0 %v6392_v41  ;;  %v6767_v23 = vld [vmem:[#allocation8 + $0x140] sm:$0xf]  ;;  %v7312_v30 = vor.u32 %v9672_v22, %v7311_v21  ;;  %v6836_v21 = vor.u32 %v9548_v13, %v6833_v15 }
  0x58   :  { %600 = vmatpush.bf16.msrb.mxu1 %v6520_v42  ;;  %v9536_v24 = vld [vmem:[#allocation8 + $0x15c] sm:$0xf0] }
  0x59   :  { %613 = vmatpush.bf16.msrb.mxu2 %v6396_v43  ;;  %v7599_v26 = vld [vmem:[#allocation8 + $0x7c0] sm:$0xf]  ;;  %v6768_v32 = vor.u32 %v9536_v24, %v6767_v23  ;;  %v9540_v23 = vld [vmem:[#allocation8 + $0x184] sm:$0xf] }
  0x5a   :  { %626 = vmatpush.bf16.msrb.mxu3 %v6524_v47  ;;  %v7023_v27 = vld [vmem:[#allocation8 + $0x340] sm:$0xf]  ;;  %v6801_v24 = vld [vmem:[#allocation8 + $0x1a0] sm:$0xf0] }
  0x5b   :  { %588 = vmatpush.bf16.msrb.mxu0 %v6376_v55  ;;  %v9600_v28 = vld [vmem:[#allocation8 + $0x35c] sm:$0xf0] }
  0x5c   :  { %601 = vmatpush.bf16.msrb.mxu1 %v6504_v57  ;;  %v9744_v29 = vld [vmem:[#allocation8 + $0x7dc] sm:$0xf0]  ;;  %v7024_v37 = vor.u32 %v9600_v28, %v7023_v27  ;;  %v7057_v27 = vld [vmem:[#allocation8 + $0x3a0] sm:$0xf0]  ;;  %v6804_v28 = vor.u32 %v9540_v23, %v6801_v24 }
  0x5d   :  { %614 = vmatpush.bf16.msrb.mxu2 %v6380_v58  ;;  %v7600_v31 = vor.u32 %v9744_v29, %v7599_v26  ;;  %v6735_v33 = vld [vmem:[#allocation8 + $0x100] sm:$0xf]  ;;  %v9604_v26 = vld [vmem:[#allocation8 + $0x384] sm:$0xf] }
  0x5e   :  { %627 = vmatpush.bf16.msrb.mxu3 %v6508_v62  ;;  %v7279_v34 = vld [vmem:[#allocation8 + $0x540] sm:$0xf]  ;;  %v9532_v29 = vld [vmem:[#allocation8 + $0x144] sm:$0xf] }
  0x5f   :  { %589 = vmatpush.bf16.msrb.mxu0 %v6360_v5  ;;  %v9664_v35 = vld [vmem:[#allocation8 + $0x55c] sm:$0xf0] }
  0x60   :  { %602 = vmatpush.bf16.msrb.mxu1 %v6488_v8  ;;  %v9528_v36 = vld [vmem:[#allocation8 + $0x11c] sm:$0xf0]  ;;  %v7280_v42 = vor.u32 %v9664_v35, %v7279_v34  ;;  %v9524_v35 = vld [vmem:[#allocation8 + $0x104] sm:$0xf] }
  0x61   :  { %615 = vmatpush.bf16.msrb.mxu2 %v6364_v9  ;;  %v7567_v38 = vld [vmem:[#allocation8 + $0x780] sm:$0xf] }
  0x62   :  { %628 = vmatpush.bf16.msrb.mxu3 %v6492_v10  ;;  %590 = vmatmul.bf16.vlgmr.msrb.gmra.mxu0 %v10518_v50  ;;  %v9736_v39 = vld [vmem:[#allocation8 + $0x79c] sm:$0xf0] }
  0x63   :  { %2196 = vmatpush.bf16.msra.mxu0 %v6832_v11  ;;  %603 = vmatmul.bf16.vlgmr.msrb.gmra.mxu1 %v10520_v54  ;;  %v9592_v40 = vld [vmem:[#allocation8 + $0x31c] sm:$0xf0]  ;;  %v7568_v41 = vor.u32 %v9736_v39, %v7567_v38  ;;  %v9588_v38 = vld [vmem:[#allocation8 + $0x304] sm:$0xf] }
  0x64   :  { %2209 = vmatpush.bf16.msra.mxu1 %v7088_v16  ;;  %616 = vmatmul.bf16.vlgmr.msrb.gmra.mxu2 %v10518_v50  ;;  %v6991_v50 = vld [vmem:[#allocation8 + $0x300] sm:$0xf]  ;;  %v6993_v39 = vld [vmem:[#allocation8 + $0x320] sm:$0xf0] }
  0x65   :  { %629 = vmatmul.bf16.vlgmr.msrb.gmra.mxu3 %v10520_v54  ;;  %2222 = vmatpush.bf16.msra.mxu2 %v7344_v19  ;;  %v6736_v54 = vor.u32 %v9528_v36, %v6735_v33  ;;  %v6703_v43 = vld [vmem:[#allocation8 + $0xc0] sm:$0xf]  ;;  %v6992_v47 = vor.u32 %v9592_v40, %v6991_v50  ;;  %v7089_v19 = vld [vmem:[#allocation8 + $0x3e0] sm:$0xf0] }
  0x66   :  { %2235 = vmatpush.bf16.msra.mxu3 %v7600_v31  ;;  %v7247_v44 = vld [vmem:[#allocation8 + $0x500] sm:$0xf]  ;;  %v7060_v31 = vor.u32 %v9604_v26, %v7057_v27  ;;  %v7025_v33 = vld [vmem:[#allocation8 + $0x360] sm:$0xf0] }
  0x67   :  { %2197 = vmatpush.bf16.msra.mxu0 %v6800_v20  ;;  %v9656_v45 = vld [vmem:[#allocation8 + $0x51c] sm:$0xf0]  ;;  %v6737_v36 = vld [vmem:[#allocation8 + $0x120] sm:$0xf0] }
  0x68   :  { %2210 = vmatpush.bf16.msra.mxu1 %v7056_v25  ;;  %v9520_v46 = vld [vmem:[#allocation8 + $0xdc] sm:$0xf0]  ;;  %v7248_v55 = vor.u32 %v9656_v45, %v7247_v44  ;;  %v7092_v25 = vor.u32 %v9612_v18, %v7089_v19  ;;  %v6740_v50 = vor.u32 %v9524_v35, %v6737_v36  ;;  %v9516_v40 = vld [vmem:[#allocation8 + $0xc4] sm:$0xf] }
  0x69   :  { %2223 = vmatpush.bf16.msra.mxu2 %v7312_v30  ;;  %v7535_v48 = vld [vmem:[#allocation8 + $0x740] sm:$0xf]  ;;  %v6704_v56 = vor.u32 %v9520_v46, %v6703_v43  ;;  %v6769_v30 = vld [vmem:[#allocation8 + $0x160] sm:$0xf0] }
  0x6a   :  { %2236 = vmatpush.bf16.msra.mxu3 %v7568_v41  ;;  %v9728_v49 = vld [vmem:[#allocation8 + $0x75c] sm:$0xf0]  ;;  %v6772_v34 = vor.u32 %v9532_v29, %v6769_v30  ;;  %v6705_v41 = vld [vmem:[#allocation8 + $0xe0] sm:$0xf0] }
  0x6b   :  { %2198 = vmatpush.bf16.msra.mxu0 %v6768_v32  ;;  %v6959_v51 = vld [vmem:[#allocation8 + $0x2c0] sm:$0xf]  ;;  %v7536_v53 = vor.u32 %v9728_v49, %v7535_v48  ;;  %v9596_v32 = vld [vmem:[#allocation8 + $0x344] sm:$0xf] }
  0x6c   :  { %2211 = vmatpush.bf16.msra.mxu1 %v7024_v37  ;;  %v9584_v52 = vld [vmem:[#allocation8 + $0x2dc] sm:$0xf0]  ;;  %v7028_v37 = vor.u32 %v9596_v32, %v7025_v33  ;;  %v9508_v45 = vld [vmem:[#allocation8 + $0x84] sm:$0xf] }
  0x6d   :  { %2224 = vmatpush.bf16.msra.mxu2 %v7280_v42  ;;  %v6671_v57 = vld [vmem:[#allocation8 + $0x80] sm:$0xf]  ;;  %v6960_v61 = vor.u32 %v9584_v52, %v6959_v51  ;;  %v6996_v42 = vor.u32 %v9588_v38, %v6993_v39  ;;  %v9580_v52 = vld [vmem:[#allocation8 + $0x2c4] sm:$0xf] }
  0x6e   :  { %v7215_v58 = vld [vmem:[#allocation8 + $0x4c0] sm:$0xf]  ;;  %2237 = vmatpush.bf16.msra.mxu3 %v7536_v53  ;;  %v6897_v18 = vld [vmem:[#allocation8 + $0x260] sm:$0xf0] }
  0x6f   :  { %2199 = vmatpush.bf16.msra.mxu0 %v6736_v54  ;;  %v9648_v59 = vld [vmem:[#allocation8 + $0x4dc] sm:$0xf0]  ;;  %v6708_v54 = vor.u32 %v9516_v40, %v6705_v41  ;;  %v9556_v26 = vld [vmem:[#allocation8 + $0x204] sm:$0xf] }
  0x70   :  { %2212 = vmatpush.bf16.msra.mxu1 %v6992_v47  ;;  %v9512_v60 = vld [vmem:[#allocation8 + $0x9c] sm:$0xf0]  ;;  %v7216_v3 = vor.u32 %v9648_v59, %v7215_v58  ;;  %v6673_v47 = vld [vmem:[#allocation8 + $0xa0] sm:$0xf0] }
  0x71   :  { %v7503_v62 = vld [vmem:[#allocation8 + $0x700] sm:$0xf]  ;;  %2225 = vmatpush.bf16.msra.mxu2 %v7248_v55  ;;  %v6672_v4 = vor.u32 %v9512_v60, %v6671_v57  ;;  %v6676_v48 = vor.u32 %v9508_v45, %v6673_v47  ;;  %v6961_v55 = vld [vmem:[#allocation8 + $0x2e0] sm:$0xf0]  ;;  %v10530_v45 = vld [vmem:[#allocation7] sm:$0xf] }
  0x72   :  { %v9720_v63 = vld [vmem:[#allocation8 + $0x71c] sm:$0xf0]  ;;  %v9500_v59 = vld [vmem:[#allocation8 + $0x44] sm:$0xf] }
  0x73   :  { %v6927_v0 = vld [vmem:[#allocation8 + $0x280] sm:$0xf]  ;;  %v7504_v2 = vor.u32 %v9720_v63, %v7503_v62  ;;  %2200 = vmatpush.bf16.msra.mxu0 %v6704_v56  ;;  %v6964_v56 = vor.u32 %v9580_v52, %v6961_v55  ;;  %v6865_v27 = vld [vmem:[#allocation8 + $0x220] sm:$0xf0]  ;;  %v195_v52 = vperm.slane %v10530_v45, 0 }
  0x74   :  { %v9576_v1 = vld [vmem:[#allocation8 + $0x29c] sm:$0xf0]  ;;  %2213 = vmatpush.bf16.msra.mxu1 %v6960_v61  ;;  %v6641_v61 = vld [vmem:[#allocation8 + $0x60] sm:$0xf0]  ;;  %v6868_v29 = vor.u32 %v9556_v26, %v6865_v27  ;;  %v9617_v26 = vld [vmem:[#allocation8 + $0x3e4] sm:$0xf0] }
  0x75   :  { %v6639_v5 = vld [vmem:[#allocation8 + $0x40] sm:$0xf]  ;;  %v6928_v7 = vor.u32 %v9576_v1, %v6927_v0  ;;  %2238 = vmatpush.bf16.msra.mxu3 %v7504_v2  ;;  %2226 = vmatpush.bf16.msra.mxu2 %v7216_v3  ;;  %v6644_v62 = vor.u32 %v9500_v59, %v6641_v61  ;;  %v9572_v1 = vld [vmem:[#allocation8 + $0x284] sm:$0xf] }
  0x76   :  { %v9504_v6 = vld [vmem:[#allocation8 + $0x5c] sm:$0xf0]  ;;  %v6929_v3 = vld [vmem:[#allocation8 + $0x2a0] sm:$0xf0] }
  0x77   :  { %v6895_v8 = vld [vmem:[#allocation8 + $0x240] sm:$0xf]  ;;  %2201 = vmatpush.bf16.msra.mxu0 %v6672_v4  ;;  %v6640_v10 = vor.u32 %v9504_v6, %v6639_v5  ;;  %v6932_v4 = vor.u32 %v9572_v1, %v6929_v3  ;;  %v7601_v30 = vld [vmem:[#allocation8 + $0x7e0] sm:$0xf0]  ;;  %v6839_v3 = vld [vmem:[#allocation8 + $0x1c8] sm:$0xf] }
  0x78   :  { %v9568_v9 = vld [vmem:[#allocation8 + $0x25c] sm:$0xf0]  ;;  %2214 = vmatpush.bf16.msra.mxu1 %v6928_v7  ;;  %v9660_v32 = vld [vmem:[#allocation8 + $0x544] sm:$0xf] }
  0x79   :  { %v6607_v11 = vld [vmem:[#allocation8] sm:$0xf]  ;;  %v6896_v14 = vor.u32 %v9568_v9, %v6895_v8  ;;  %v9492_v8 = vld [vmem:[#allocation8 + $0x4] sm:$0xf] }
  0x7a   :  { %v9496_v12 = vld [vmem:[#allocation8 + $0x1c] sm:$0xf0]  ;;  %v6609_v9 = vld [vmem:[#allocation8 + $0x20] sm:$0xf0] }
  0x7b   :  { %v6863_v16 = vld [vmem:[#allocation8 + $0x200] sm:$0xf]  ;;  %2202 = vmatpush.bf16.msra.mxu0 %v6640_v10  ;;  %v6608_v20 = vor.u32 %v9496_v12, %v6607_v11  ;;  %v9676_v10 = vld [vmem:[#allocation8 + $0x5c4] sm:$0xf]  ;;  %v6612_v11 = vor.u32 %v9492_v8, %v6609_v9 }
  0x7c   :  { %v9560_v17 = vld [vmem:[#allocation8 + $0x21c] sm:$0xf0]  ;;  %2215 = vmatpush.bf16.msra.mxu1 %v6896_v14  ;;  %v7345_v12 = vld [vmem:[#allocation8 + $0x5e0] sm:$0xf0] }
  0x7d   :  { %v6864_v22 = vor.u32 %v9560_v17, %v6863_v16  ;;  %v7183_v43 = vld [vmem:[#allocation8 + $0x480] sm:$0xf]  ;;  %v7348_v13 = vor.u32 %v9676_v10, %v7345_v12  ;;  %v9564_v16 = vld [vmem:[#allocation8 + $0x244] sm:$0xf]  ;;  %v6807_v12 = vld [vmem:[#allocation8 + $0x188] sm:$0xf] }
  0x7e   :  { %v9640_v44 = vld [vmem:[#allocation8 + $0x49c] sm:$0xf0]  ;;  %v6900_v19 = vor.u32 %v9564_v16, %v6897_v18  ;;  %v7281_v33 = vld [vmem:[#allocation8 + $0x560] sm:$0xf0] }
  0x7f   :  { %2203 = vmatpush.bf16.msra.mxu0 %v6608_v20  ;;  %v7184_v46 = vor.u32 %v9640_v44, %v7183_v43  ;;  %v7471_v49 = vld [vmem:[#allocation8 + $0x6c0] sm:$0xf]  ;;  %v9668_v20 = vld [vmem:[#allocation8 + $0x584] sm:$0xf] }
  0x80   :  { %2216 = vmatpush.bf16.msra.mxu1 %v6864_v22  ;;  %v9712_v51 = vld [vmem:[#allocation8 + $0x6dc] sm:$0xf0]  ;;  %v9732_v35 = vld [vmem:[#allocation8 + $0x784] sm:$0xf] }
  0x81   :  { %2227 = vmatpush.bf16.msra.mxu2 %v7184_v46  ;;  %v7472_v53 = vor.u32 %v9712_v51, %v7471_v49  ;;  %v7151_v57 = vld [vmem:[#allocation8 + $0x440] sm:$0xf]  ;;  %v7569_v36 = vld [vmem:[#allocation8 + $0x7a0] sm:$0xf0] }
  0x82   :  { %v9632_v58 = vld [vmem:[#allocation8 + $0x45c] sm:$0xf0]  ;;  %v9652_v38 = vld [vmem:[#allocation8 + $0x504] sm:$0xf] }
  0x83   :  { %2248 = vmatpush.bf16.msrb.mxu0 %v6836_v21  ;;  %2239 = vmatpush.bf16.msra.mxu3 %v7472_v53  ;;  %v7152_v60 = vor.u32 %v9632_v58, %v7151_v57  ;;  %v7439_v63 = vld [vmem:[#allocation8 + $0x680] sm:$0xf]  ;;  %v7313_v21 = vld [vmem:[#allocation8 + $0x5a0] sm:$0xf0] }
  0x84   :  { %2261 = vmatpush.bf16.msrb.mxu1 %v7092_v25  ;;  %v9704_v0 = vld [vmem:[#allocation8 + $0x69c] sm:$0xf0]  ;;  %v7316_v22 = vor.u32 %v9668_v20, %v7313_v21  ;;  %v7249_v39 = vld [vmem:[#allocation8 + $0x520] sm:$0xf0] }
  0x85   :  { %2228 = vmatpush.bf16.msra.mxu2 %v7152_v60  ;;  %v7440_v2 = vor.u32 %v9704_v0, %v7439_v63  ;;  %v7119_v5 = vld [vmem:[#allocation8 + $0x400] sm:$0xf]  ;;  %v9724_v40 = vld [vmem:[#allocation8 + $0x744] sm:$0xf] }
  0x86   :  { %v9624_v6 = vld [vmem:[#allocation8 + $0x41c] sm:$0xf0]  ;;  %v7537_v41 = vld [vmem:[#allocation8 + $0x760] sm:$0xf0] }
  0x87   :  { %2249 = vmatpush.bf16.msrb.mxu0 %v6804_v28  ;;  %2240 = vmatpush.bf16.msra.mxu3 %v7440_v2  ;;  %v7120_v7 = vor.u32 %v9624_v6, %v7119_v5  ;;  %v7407_v14 = vld [vmem:[#allocation8 + $0x640] sm:$0xf]  ;;  %v9740_v28 = vld [vmem:[#allocation8 + $0x7c4] sm:$0xf]  ;;  %v196_v6 = vperm.slane %v10530_v45, 1 }
  0x88   :  { %2262 = vmatpush.bf16.msrb.mxu1 %v7060_v31  ;;  %v9696_v15 = vld [vmem:[#allocation8 + $0x65c] sm:$0xf0]  ;;  %v7604_v31 = vor.u32 %v9740_v28, %v7601_v30  ;;  %v7217_v43 = vld [vmem:[#allocation8 + $0x4e0] sm:$0xf0]  ;;  %v9537_v30 = vld [vmem:[#allocation8 + $0x164] sm:$0xf0] }
  0x89   :  { %2229 = vmatpush.bf16.msra.mxu2 %v7120_v7  ;;  %v7408_v17 = vor.u32 %v9696_v15, %v7407_v14  ;;  %v7375_v23 = vld [vmem:[#allocation8 + $0x600] sm:$0xf]  ;;  %v9716_v46 = vld [vmem:[#allocation8 + $0x704] sm:$0xf]  ;;  %v9545_v15 = vld [vmem:[#allocation8 + $0x1a4] sm:$0xf0] }
  0x8a   :  { %v9688_v24 = vld [vmem:[#allocation8 + $0x61c] sm:$0xf0]  ;;  %v7505_v47 = vld [vmem:[#allocation8 + $0x720] sm:$0xf0] }
  0x8b   :  { %2250 = vmatpush.bf16.msrb.mxu0 %v6772_v34  ;;  %2241 = vmatpush.bf16.msra.mxu3 %v7408_v17  ;;  %v7376_v25 = vor.u32 %v9688_v24, %v7375_v23  ;;  %v7284_v34 = vor.u32 %v9660_v32, %v7281_v33  ;;  %v9636_v49 = vld [vmem:[#allocation8 + $0x484] sm:$0xf] }
  0x8c   :  { %2263 = vmatpush.bf16.msrb.mxu1 %v7028_v37  ;;  %v7572_v37 = vor.u32 %v9732_v35, %v7569_v36  ;;  %v7185_v51 = vld [vmem:[#allocation8 + $0x4a0] sm:$0xf0]  ;;  %v7063_v36 = vld [vmem:[#allocation8 + $0x388] sm:$0xf] }
  0x8d   :  { %2274 = vmatpush.bf16.msrb.mxu2 %v7348_v13  ;;  %v7188_v53 = vor.u32 %v9636_v49, %v7185_v51  ;;  %v9708_v55 = vld [vmem:[#allocation8 + $0x6c4] sm:$0xf]  ;;  %v6999_v49 = vld [vmem:[#allocation8 + $0x308] sm:$0xf] }
  0x8e   :  { %v9628_v59 = vld [vmem:[#allocation8 + $0x444] sm:$0xf]  ;;  %v9593_v51 = vld [vmem:[#allocation8 + $0x324] sm:$0xf0] }
  0x8f   :  { %2251 = vmatpush.bf16.msrb.mxu0 %v6740_v50  ;;  %2242 = vmatpush.bf16.msra.mxu3 %v7376_v25  ;;  %v7252_v50 = vor.u32 %v9652_v38, %v7249_v39  ;;  %v7153_v60 = vld [vmem:[#allocation8 + $0x460] sm:$0xf0]  ;;  %v6808_v25 = vor.u32 %v9545_v15, %v6807_v12  ;;  %v6743_v39 = vld [vmem:[#allocation8 + $0x108] sm:$0xf]  ;;  %v198_v12 = vperm.slane %v10530_v45, 3 }
  0x90   :  { %2264 = vmatpush.bf16.msrb.mxu1 %v6996_v42  ;;  %v7540_v42 = vor.u32 %v9724_v40, %v7537_v41  ;;  %v7156_v63 = vor.u32 %v9628_v59, %v7153_v60  ;;  %v9700_v0 = vld [vmem:[#allocation8 + $0x684] sm:$0xf]  ;;  %v9585_v59 = vld [vmem:[#allocation8 + $0x2e4] sm:$0xf0] }
  0x91   :  { %2275 = vmatpush.bf16.msrb.mxu2 %v7316_v22  ;;  %v7441_v1 = vld [vmem:[#allocation8 + $0x6a0] sm:$0xf0]  ;;  %v7095_v22 = vld [vmem:[#allocation8 + $0x3c8] sm:$0xf] }
  0x92   :  { %v7444_v5 = vor.u32 %v9700_v0, %v7441_v1  ;;  %v9620_v7 = vld [vmem:[#allocation8 + $0x404] sm:$0xf]  ;;  %v7096_v33 = vor.u32 %v9617_v26, %v7095_v22  ;;  %v6647_v60 = vld [vmem:[#allocation8 + $0x48] sm:$0xf]  ;;  %v6809_v26 = vld [vmem:[#allocation8 + $0x1a8] sm:$0xf0] }
  0x93   :  { %2252 = vmatpush.bf16.msrb.mxu0 %v6708_v54  ;;  %2287 = vmatpush.bf16.msrb.mxu3 %v7604_v31  ;;  %v9644_v54 = vld [vmem:[#allocation8 + $0x4c4] sm:$0xf] }
  0x94   :  { %2265 = vmatpush.bf16.msrb.mxu1 %v6964_v56  ;;  %v7220_v44 = vor.u32 %v9644_v54, %v7217_v43  ;;  %v7473_v56 = vld [vmem:[#allocation8 + $0x6e0] sm:$0xf0]  ;;  %v7031_v54 = vld [vmem:[#allocation8 + $0x348] sm:$0xf] }
  0x95   :  { %2276 = vmatpush.bf16.msrb.mxu2 %v7284_v34  ;;  %v7476_v57 = vor.u32 %v9708_v55, %v7473_v56  ;;  %v7121_v8 = vld [vmem:[#allocation8 + $0x420] sm:$0xf0]  ;;  %v9601_v43 = vld [vmem:[#allocation8 + $0x364] sm:$0xf0]  ;;  %v7000_v55 = vor.u32 %v9593_v51, %v6999_v49  ;;  %v197_v56 = vperm.slane %v10530_v45, 2 }
  0x96   :  { %v7124_v10 = vor.u32 %v9620_v7, %v7121_v8  ;;  %v9692_v16 = vld [vmem:[#allocation8 + $0x644] sm:$0xf]  ;;  %v7351_v7 = vld [vmem:[#allocation8 + $0x5c8] sm:$0xf] }
  0x97   :  { %2253 = vmatpush.bf16.msrb.mxu0 %v6676_v48  ;;  %2288 = vmatpush.bf16.msrb.mxu3 %v7572_v37  ;;  %v7508_v48 = vor.u32 %v9716_v46, %v7505_v47  ;;  %v7409_v17 = vld [vmem:[#allocation8 + $0x660] sm:$0xf0]  ;;  %v9609_v37 = vld [vmem:[#allocation8 + $0x3a4] sm:$0xf0]  ;;  %v7032_v47 = vor.u32 %v9601_v43, %v7031_v54  ;;  %v6777_v54 = vld [vmem:[#allocation8 + $0x168] sm:$0xf0] }
  0x98   :  { %2266 = vmatpush.bf16.msrb.mxu1 %v6932_v4  ;;  %v9553_v4 = vld [vmem:[#allocation8 + $0x1e4] sm:$0xf0]  ;;  %v7412_v21 = vor.u32 %v9692_v16, %v7409_v17  ;;  %v9684_v27 = vld [vmem:[#allocation8 + $0x604] sm:$0xf]  ;;  %v7064_v41 = vor.u32 %v9609_v37, %v7063_v36 }
  0x99   :  { %2277 = vmatpush.bf16.msrb.mxu2 %v7252_v50  ;;  %v7377_v28 = vld [vmem:[#allocation8 + $0x620] sm:$0xf0]  ;;  %v9529_v50 = vld [vmem:[#allocation8 + $0x124] sm:$0xf0] }
  0x9a   :  { %v7380_v31 = vor.u32 %v9684_v27, %v7377_v28  ;;  %v9521_v46 = vld [vmem:[#allocation8 + $0xe4] sm:$0xf0] }
  0x9b   :  { %2254 = vmatpush.bf16.msrb.mxu0 %v6644_v62  ;;  %2289 = vmatpush.bf16.msrb.mxu3 %v7540_v42  ;;  %v6744_v42 = vor.u32 %v9529_v50, %v6743_v39  ;;  %v6903_v17 = vld [vmem:[#allocation8 + $0x248] sm:$0xf]  ;;  %v9613_v39 = vld [vmem:[#allocation8 + $0x3cc] sm:$0xf] }
  0x9c   :  { %2267 = vmatpush.bf16.msrb.mxu1 %v6900_v19  ;;  %v7097_v50 = vld [vmem:[#allocation8 + $0x3e8] sm:$0xf0]  ;;  %v9737_v49 = vld [vmem:[#allocation8 + $0x7a4] sm:$0xf0] }
  0x9d   :  { %2278 = vmatpush.bf16.msrb.mxu2 %v7220_v44  ;;  %v6711_v44 = vld [vmem:[#allocation8 + $0xc8] sm:$0xf] }
  0x9f   :  { %2255 = vmatpush.bf16.msrb.mxu0 %v6612_v11  ;;  %2290 = vmatpush.bf16.msrb.mxu3 %v7508_v48  ;;  %v6840_v11 = vor.u32 %v9553_v4, %v6839_v3  ;;  %v6712_v48 = vor.u32 %v9521_v46, %v6711_v44  ;;  %v6935_v3 = vld [vmem:[#allocation8 + $0x288] sm:$0xf] }
  0xa0   :  { %2268 = vmatpush.bf16.msrb.mxu1 %v6868_v29  ;;  %v6775_v29 = vld [vmem:[#allocation8 + $0x148] sm:$0xf] }
  0xa1   :  { %2279 = vmatpush.bf16.msrb.mxu2 %v7188_v53  ;;  %v6776_v35 = vor.u32 %v9537_v30, %v6775_v29  ;;  %v9513_v53 = vld [vmem:[#allocation8 + $0xa4] sm:$0xf0] }
  0xa2   :  { %v9577_v4 = vld [vmem:[#allocation8 + $0x2a4] sm:$0xf0] }
  0xa3   :  { %2291 = vmatpush.bf16.msrb.mxu3 %v7476_v57  ;;  %v6871_v30 = vld [vmem:[#allocation8 + $0x208] sm:$0xf] }
  0xa5   :  { %2280 = vmatpush.bf16.msrb.mxu2 %v7156_v63 }
  0xa7   :  { %2292 = vmatpush.bf16.msrb.mxu3 %v7444_v5  ;;  %v6615_v5 = vld [vmem:[#allocation8 + $0x8] sm:$0xf] }
  0xa9   :  { %2281 = vmatpush.bf16.msrb.mxu2 %v7124_v10  ;;  %v9549_v10 = vld [vmem:[#allocation8 + $0x1cc] sm:$0xf] }
  0xab   :  { %2293 = vmatpush.bf16.msrb.mxu3 %v7412_v21  ;;  %v7319_v21 = vld [vmem:[#allocation8 + $0x588] sm:$0xf] }
  0xaf   :  { %2294 = vmatpush.bf16.msrb.mxu3 %v7380_v31 }
  0xbf   :  { %v539_v58 = vpop.f32.mrf.mxu0 }
  0xc0   :  { %v540_v61 = vadd.f32 %v539_v58, %v195_v52  ;;  %v552_v62 = vpop.f32.mrf.mxu1  ;;  %v6679_v52 = vld [vmem:[#allocation8 + $0x88] sm:$0xf] }
  0xc1   :  { %v6680_v57 = vor.u32 %v9513_v53, %v6679_v52  ;;  %v6967_v58 = vld [vmem:[#allocation8 + $0x2c8] sm:$0xf] }
  0xc2   :  { %v553_v2 = vadd.f32 %v552_v62, %v540_v61  ;;  %v9505_v61 = vld [vmem:[#allocation8 + $0x64] sm:$0xf0]  ;;  %v6968_v63 = vor.u32 %v9585_v59, %v6967_v58 }
  0xc3   :  { %v9657_v59 = vld [vmem:[#allocation8 + $0x524] sm:$0xf0] }
  0xc4   :  { %v634_v9 = vmax.f32 %v553_v2, 0.0  ;;  %v6648_v2 = vor.u32 %v9505_v61, %v6647_v60  ;;  %v9525_v60 = vld [vmem:[#allocation8 + $0x10c] sm:$0xf] }
  0xc5   :  { %v6745_v61 = vld [vmem:[#allocation8 + $0x128] sm:$0xf0] }
  0xc6   :  { %v10534_v13 = vpack.c.bf16 %v634_v9, %v634_v9  ;;  %v9681_v9 = vld [vmem:[#allocation8 + $0x5e4] sm:$0xf0] }
  0xc7   :  { %v565_v14 = vpop.f32.mrf.mxu2  ;;  %v541_v20 = vpop.f32.mrf.mxu0 }
  0xc8   :  { %v566_v18 = vadd.f32 %v565_v14, %v196_v6  ;;  %v578_v19 = vpop.f32.mrf.mxu3  ;;  %2204 = vmatmul.bf16.vlgmr.msra.gmra.mxu0 %v10534_v13  ;;  %v554_v23 = vpop.f32.mrf.mxu1  ;;  %v9497_v6 = vld [vmem:[#allocation8 + $0x24] sm:$0xf0]  ;;  %v6936_v14 = vor.u32 %v9577_v4, %v6935_v3  ;;  %v6748_v3 = vor.u32 %v9525_v60, %v6745_v61  ;;  %v9565_v60 = vld [vmem:[#allocation8 + $0x24c] sm:$0xf] }
  0xc9   :  { %2300 = vmatpush.bf16.msra.mxu0 %v6840_v11  ;;  %v6841_v11 = vld [vmem:[#allocation8 + $0x1e8] sm:$0xf0]  ;;  %v6616_v16 = vor.u32 %v9497_v6, %v6615_v5  ;;  %v9729_v4 = vld [vmem:[#allocation8 + $0x764] sm:$0xf0] }
  0xca   :  { %v579_v24 = vadd.f32 %v578_v19, %v566_v18  ;;  %v9569_v18 = vld [vmem:[#allocation8 + $0x264] sm:$0xf0]  ;;  %v7352_v19 = vor.u32 %v9681_v9, %v7351_v7  ;;  %v6844_v20 = vor.u32 %v9549_v10, %v6841_v11  ;;  %v9597_v5 = vld [vmem:[#allocation8 + $0x34c] sm:$0xf] }
  0xcb   :  { %v6904_v45 = vor.u32 %v9569_v18, %v6903_v17  ;;  %v7033_v6 = vld [vmem:[#allocation8 + $0x368] sm:$0xf0]  ;;  %v7223_v9 = vld [vmem:[#allocation8 + $0x4c8] sm:$0xf] }
  0xcc   :  { %v635_v32 = vmax.f32 %v579_v24, 0.0  ;;  %v9673_v24 = vld [vmem:[#allocation8 + $0x5a4] sm:$0xf0]  ;;  %v9517_v7 = vld [vmem:[#allocation8 + $0xcc] sm:$0xf] }
  0xcd   :  { %2301 = vmatpush.bf16.msra.mxu0 %v6808_v25  ;;  %v9541_v25 = vld [vmem:[#allocation8 + $0x18c] sm:$0xf]  ;;  %v7320_v37 = vor.u32 %v9673_v24, %v7319_v21  ;;  %v9649_v10 = vld [vmem:[#allocation8 + $0x4e4] sm:$0xf0] }
  0xce   :  { %v10537_v34 = vpack.c.bf16 %v635_v32, %v635_v32  ;;  %v9561_v32 = vld [vmem:[#allocation8 + $0x224] sm:$0xf0]  ;;  %v9589_v17 = vld [vmem:[#allocation8 + $0x30c] sm:$0xf] }
  0xcf   :  { %v567_v38 = vpop.f32.mrf.mxu2  ;;  %v6872_v44 = vor.u32 %v9561_v32, %v6871_v30  ;;  %v7001_v18 = vld [vmem:[#allocation8 + $0x328] sm:$0xf0]  ;;  %v9641_v24 = vld [vmem:[#allocation8 + $0x4a4] sm:$0xf0] }
  0xd0   :  { %2217 = vmatmul.bf16.vlgmr.msra.gmra.mxu1 %v10537_v34  ;;  %v580_v40 = vpop.f32.mrf.mxu3  ;;  %v6812_v38 = vor.u32 %v9541_v25, %v6809_v26  ;;  %v6681_v21 = vld [vmem:[#allocation8 + $0xa8] sm:$0xf0]  ;;  %v7004_v26 = vor.u32 %v9589_v17, %v7001_v18  ;;  %v6783_v18 = vld [vmem:[#allocation8 + $0x150] sm:$0xf] }
  0xd1   :  { %2313 = vmatpush.bf16.msra.mxu1 %v7096_v33  ;;  %2302 = vmatpush.bf16.msra.mxu0 %v6776_v35  ;;  %v7607_v33 = vld [vmem:[#allocation8 + $0x7c8] sm:$0xf]  ;;  %v6969_v30 = vld [vmem:[#allocation8 + $0x2e8] sm:$0xf0] }
  0xd2   :  { %v9745_v35 = vld [vmem:[#allocation8 + $0x7e4] sm:$0xf0]  ;;  %v9501_v32 = vld [vmem:[#allocation8 + $0x4c] sm:$0xf] }
  0xd3   :  { %v7287_v40 = vld [vmem:[#allocation8 + $0x548] sm:$0xf]  ;;  %v7608_v46 = vor.u32 %v9745_v35, %v7607_v33  ;;  %v6649_v33 = vld [vmem:[#allocation8 + $0x68] sm:$0xf0] }
  0xd4   :  { %v7159_v35 = vld [vmem:[#allocation8 + $0x448] sm:$0xf]  ;;  %v6905_v61 = vld [vmem:[#allocation8 + $0x268] sm:$0xf0] }
  0xd5   :  { %2314 = vmatpush.bf16.msra.mxu1 %v7064_v41  ;;  %2303 = vmatpush.bf16.msra.mxu0 %v6744_v42  ;;  %v9665_v41 = vld [vmem:[#allocation8 + $0x564] sm:$0xf0]  ;;  %v9533_v42 = vld [vmem:[#allocation8 + $0x14c] sm:$0xf] }
  0xd6   :  { %v7288_v52 = vor.u32 %v9665_v41, %v7287_v40  ;;  %v6780_v53 = vor.u32 %v9533_v42, %v6777_v54  ;;  %v9705_v40 = vld [vmem:[#allocation8 + $0x6a4] sm:$0xf0]  ;;  %v9573_v41 = vld [vmem:[#allocation8 + $0x28c] sm:$0xf] }
  0xd7   :  { %v6937_v42 = vld [vmem:[#allocation8 + $0x2a8] sm:$0xf0] }
  0xd8   :  { %2256 = vmatmul.bf16.vlgmr.msrb.gmra.mxu0 %v10534_v13 }
  0xd9   :  { %2315 = vmatpush.bf16.msra.mxu1 %v7032_v47  ;;  %2304 = vmatpush.bf16.msra.mxu0 %v6712_v48  ;;  %v7100_v47 = vor.u32 %v9613_v39, %v7097_v50  ;;  %v7575_v48 = vld [vmem:[#allocation8 + $0x788] sm:$0xf]  ;;  %v6652_v50 = vor.u32 %v9501_v32, %v6649_v33  ;;  %v6751_v32 = vld [vmem:[#allocation8 + $0x110] sm:$0xf] }
  0xda   :  { %v7447_v39 = vld [vmem:[#allocation8 + $0x688] sm:$0xf]  ;;  %v9530_v33 = vld [vmem:[#allocation8 + $0x12c] sm:$0xf0] }
  0xdd   :  { %2316 = vmatpush.bf16.msra.mxu1 %v7000_v55  ;;  %2305 = vmatpush.bf16.msra.mxu0 %v6680_v57  ;;  %v9605_v55 = vld [vmem:[#allocation8 + $0x38c] sm:$0xf]  ;;  %v7255_v57 = vld [vmem:[#allocation8 + $0x508] sm:$0xf] }
  0xdf   :  { %v591_v62 = vpop.f32.mrf.mxu0 }
  0xe0   :  { %v592_v0 = vadd.f32 %v591_v62, %v197_v56  ;;  %v604_v1 = vpop.f32.mrf.mxu1  ;;  %2269 = vmatmul.bf16.vlgmr.msrb.gmra.mxu1 %v10537_v34  ;;  %v7065_v56 = vld [vmem:[#allocation8 + $0x3a8] sm:$0xf0] }
  0xe1   :  { %2317 = vmatpush.bf16.msra.mxu1 %v6968_v63  ;;  %2306 = vmatpush.bf16.msra.mxu0 %v6648_v2  ;;  %v7576_v63 = vor.u32 %v9737_v49, %v7575_v48  ;;  %v7256_v2 = vor.u32 %v9657_v59, %v7255_v57  ;;  %v6847_v48 = vld [vmem:[#allocation8 + $0x1d0] sm:$0xf]  ;;  %v7415_v57 = vld [vmem:[#allocation8 + $0x648] sm:$0xf] }
  0xe2   :  { %v605_v8 = vadd.f32 %v604_v1, %v592_v0  ;;  %v7068_v0 = vor.u32 %v9605_v55, %v7065_v56  ;;  %v7543_v1 = vld [vmem:[#allocation8 + $0x748] sm:$0xf]  ;;  %v9554_v49 = vld [vmem:[#allocation8 + $0x1ec] sm:$0xf0]  ;;  %v9677_v55 = vld [vmem:[#allocation8 + $0x5cc] sm:$0xf] }
  0xe3   :  { %v7544_v11 = vor.u32 %v9729_v4, %v7543_v1  ;;  %v7353_v56 = vld [vmem:[#allocation8 + $0x5e8] sm:$0xf0]  ;;  %v9697_v59 = vld [vmem:[#allocation8 + $0x664] sm:$0xf0] }
  0xe4   :  { %v636_v15 = vmax.f32 %v605_v8, 0.0  ;;  %v6713_v8 = vld [vmem:[#allocation8 + $0xe8] sm:$0xf0]  ;;  %v7416_v4 = vor.u32 %v9697_v59, %v7415_v57  ;;  %v9594_v57 = vld [vmem:[#allocation8 + $0x32c] sm:$0xf0] }
  0xe5   :  { %2318 = vmatpush.bf16.msra.mxu1 %v6936_v14  ;;  %2307 = vmatpush.bf16.msra.mxu0 %v6616_v16  ;;  %v7511_v14 = vld [vmem:[#allocation8 + $0x708] sm:$0xf]  ;;  %v9669_v1 = vld [vmem:[#allocation8 + $0x58c] sm:$0xf]  ;;  %v6687_v59 = vld [vmem:[#allocation8 + $0x90] sm:$0xf] }
  0xe6   :  { %v10544_v22 = vpack.c.bf16 %v636_v15, %v636_v15  ;;  %v6716_v15 = vor.u32 %v9517_v7, %v6713_v8  ;;  %v9721_v16 = vld [vmem:[#allocation8 + $0x724] sm:$0xf0] }
  0xe7   :  { %v617_v23 = vpop.f32.mrf.mxu2  ;;  %v593_v29 = vpop.f32.mrf.mxu0  ;;  %v7512_v25 = vor.u32 %v9721_v16, %v7511_v14  ;;  %v7383_v7 = vld [vmem:[#allocation8 + $0x608] sm:$0xf]  ;;  %v7609_v14 = vld [vmem:[#allocation8 + $0x7e8] sm:$0xf0]  ;;  %v9618_v16 = vld [vmem:[#allocation8 + $0x3ec] sm:$0xf0] }
  0xe8   :  { %v618_v27 = vadd.f32 %v617_v23, %v198_v12  ;;  %v630_v28 = vpop.f32.mrf.mxu3  ;;  %v606_v31 = vpop.f32.mrf.mxu1  ;;  %2230 = vmatmul.bf16.vlgmr.msra.gmra.mxu2 %v10544_v22  ;;  %2308 = vmatmul.bf16.vlgmr.msra.gmra.mxu0 %v10534_v13  ;;  %v7036_v12 = vor.u32 %v9597_v5, %v7033_v6  ;;  %v7191_v23 = vld [vmem:[#allocation8 + $0x488] sm:$0xf]  ;;  %v6908_v5 = vor.u32 %v9565_v60, %v6905_v61  ;;  %v7321_v6 = vld [vmem:[#allocation8 + $0x5a8] sm:$0xf0]  ;;  %v9514_v60 = vld [vmem:[#allocation8 + $0xac] sm:$0xf0] }
  0xe9   :  { %2326 = vmatpush.bf16.msra.mxu2 %v7352_v19  ;;  %2352 = vmatpush.bf16.msrb.mxu0 %v6844_v20  ;;  %v7224_v19 = vor.u32 %v9649_v10, %v7223_v9  ;;  %v9509_v20 = vld [vmem:[#allocation8 + $0x8c] sm:$0xf]  ;;  %v9713_v29 = vld [vmem:[#allocation8 + $0x6e4] sm:$0xf0]  ;;  %v7192_v31 = vor.u32 %v9641_v24, %v7191_v23  ;;  %v7324_v17 = vor.u32 %v9669_v1, %v7321_v6 }
  0xea   :  { %v631_v36 = vadd.f32 %v630_v28, %v618_v27  ;;  %2319 = vmatpush.bf16.msra.mxu1 %v6904_v45  ;;  %v7479_v27 = vld [vmem:[#allocation8 + $0x6c8] sm:$0xf]  ;;  %v6684_v28 = vor.u32 %v9509_v20, %v6681_v21  ;;  %v9581_v45 = vld [vmem:[#allocation8 + $0x2cc] sm:$0xf] }
  0xeb   :  { %v9689_v8 = vld [vmem:[#allocation8 + $0x624] sm:$0xf0]  ;;  %v9557_v9 = vld [vmem:[#allocation8 + $0x20c] sm:$0xf] }
  0xec   :  { %v637_v43 = vmax.f32 %v631_v36, 0.0  ;;  %v9633_v36 = vld [vmem:[#allocation8 + $0x464] sm:$0xf0]  ;;  %v6873_v10 = vld [vmem:[#allocation8 + $0x228] sm:$0xf0]  ;;  %v7384_v20 = vor.u32 %v9689_v8, %v7383_v7 }
  0xed   :  { %2327 = vmatpush.bf16.msra.mxu2 %v7320_v37  ;;  %2353 = vmatpush.bf16.msrb.mxu0 %v6812_v38  ;;  %v7480_v37 = vor.u32 %v9713_v29, %v7479_v27  ;;  %v6972_v38 = vor.u32 %v9581_v45, %v6969_v30  ;;  %v7160_v54 = vor.u32 %v9633_v36, %v7159_v35  ;;  %v9661_v23 = vld [vmem:[#allocation8 + $0x54c] sm:$0xf]  ;;  %v7071_v45 = vld [vmem:[#allocation8 + $0x390] sm:$0xf] }
  0xee   :  { %v10548_v51 = vpack.c.bf16 %v637_v43, %v637_v43  ;;  %2320 = vmatpush.bf16.msra.mxu1 %v6872_v44  ;;  %v7127_v43 = vld [vmem:[#allocation8 + $0x408] sm:$0xf]  ;;  %v9493_v44 = vld [vmem:[#allocation8 + $0xc] sm:$0xf]  ;;  %v6876_v21 = vor.u32 %v9557_v9, %v6873_v10  ;;  %v9610_v30 = vld [vmem:[#allocation8 + $0x3ac] sm:$0xf0] }
  0xef   :  { %v619_v58 = vpop.f32.mrf.mxu2  ;;  %v7289_v24 = vld [vmem:[#allocation8 + $0x568] sm:$0xf0]  ;;  %v6655_v7 = vld [vmem:[#allocation8 + $0x50] sm:$0xf] }
  0xf0   :  { %v632_v62 = vpop.f32.mrf.mxu3  ;;  %2243 = vmatmul.bf16.vlgmr.msra.gmra.mxu3 %v10548_v51  ;;  %v9733_v27 = vld [vmem:[#allocation8 + $0x78c] sm:$0xf]  ;;  %v9506_v8 = vld [vmem:[#allocation8 + $0x6c] sm:$0xf0] }
  0xf1   :  { %2339 = vmatpush.bf16.msra.mxu3 %v7608_v46  ;;  %2328 = vmatpush.bf16.msra.mxu2 %v7288_v52  ;;  %v6617_v46 = vld [vmem:[#allocation8 + $0x28] sm:$0xf0]  ;;  %v7448_v52 = vor.u32 %v9705_v40, %v7447_v39 }
  0xf2   :  { %2365 = vmatpush.bf16.msrb.mxu1 %v7100_v47  ;;  %2354 = vmatpush.bf16.msrb.mxu0 %v6780_v53  ;;  %v9625_v47 = vld [vmem:[#allocation8 + $0x424] sm:$0xf0]  ;;  %v6940_v53 = vor.u32 %v9573_v41, %v6937_v42  ;;  %v6620_v58 = vor.u32 %v9493_v44, %v6617_v46  ;;  %v7577_v29 = vld [vmem:[#allocation8 + $0x7a8] sm:$0xf0]  ;;  %v7039_v41 = vld [vmem:[#allocation8 + $0x350] sm:$0xf] }
  0xf3   :  { %2321 = vmatmul.bf16.vlgmr.msra.gmra.mxu1 %v10537_v34  ;;  %v7128_v62 = vor.u32 %v9625_v47, %v7127_v43  ;;  %v9653_v35 = vld [vmem:[#allocation8 + $0x50c] sm:$0xf]  ;;  %v9602_v42 = vld [vmem:[#allocation8 + $0x36c] sm:$0xf0] }
  0xf4   :  { %v7257_v36 = vld [vmem:[#allocation8 + $0x528] sm:$0xf0]  ;;  %v6719_v43 = vld [vmem:[#allocation8 + $0xd0] sm:$0xf] }
  0xf5   :  { %2340 = vmatpush.bf16.msra.mxu3 %v7576_v63  ;;  %2329 = vmatpush.bf16.msra.mxu2 %v7256_v2  ;;  %v6848_v63 = vor.u32 %v9554_v49, %v6847_v48  ;;  %v6815_v2 = vld [vmem:[#allocation8 + $0x190] sm:$0xf]  ;;  %v9725_v39 = vld [vmem:[#allocation8 + $0x74c] sm:$0xf]  ;;  %v7040_v49 = vor.u32 %v9602_v42, %v7039_v41 }
  0xf6   :  { %2366 = vmatpush.bf16.msrb.mxu1 %v7068_v0  ;;  %2355 = vmatpush.bf16.msrb.mxu0 %v6748_v3  ;;  %v7356_v0 = vor.u32 %v9677_v55, %v7353_v56  ;;  %v9546_v3 = vld [vmem:[#allocation8 + $0x1ac] sm:$0xf0]  ;;  %v7545_v40 = vld [vmem:[#allocation8 + $0x768] sm:$0xf0] }
  0xf7   :  { %v9522_v44 = vld [vmem:[#allocation8 + $0xec] sm:$0xf0]  ;;  %v9645_v46 = vld [vmem:[#allocation8 + $0x4cc] sm:$0xf]  ;;  %v7548_v48 = vor.u32 %v9725_v39, %v7545_v40  ;;  %v6817_v40 = vld [vmem:[#allocation8 + $0x1b0] sm:$0xf0] }
  0xf8   :  { %2282 = vmatmul.bf16.vlgmr.msrb.gmra.mxu2 %v10544_v22  ;;  %v7225_v47 = vld [vmem:[#allocation8 + $0x4e8] sm:$0xf0]  ;;  %v7007_v56 = vld [vmem:[#allocation8 + $0x310] sm:$0xf] }
  0xf9   :  { %2341 = vmatpush.bf16.msra.mxu3 %v7544_v11  ;;  %2330 = vmatpush.bf16.msra.mxu2 %v7224_v19  ;;  %v9741_v11 = vld [vmem:[#allocation8 + $0x7cc] sm:$0xf]  ;;  %v9538_v19 = vld [vmem:[#allocation8 + $0x16c] sm:$0xf0] }
  0xfa   :  { %2367 = vmatpush.bf16.msrb.mxu1 %v7036_v12  ;;  %2356 = vmatpush.bf16.msrb.mxu0 %v6716_v15  ;;  %v6816_v12 = vor.u32 %v9546_v3, %v6815_v2  ;;  %v7103_v15 = vld [vmem:[#allocation8 + $0x3d0] sm:$0xf]  ;;  %v7513_v55 = vld [vmem:[#allocation8 + $0x728] sm:$0xf0]  ;;  %v6688_v2 = vor.u32 %v9514_v60, %v6687_v59 }
  0xfb   :  { %v9637_v61 = vld [vmem:[#allocation8 + $0x48c] sm:$0xf]  ;;  %v7327_v39 = vld [vmem:[#allocation8 + $0x590] sm:$0xf] }
  0xfc   :  { %v9709_v1 = vld [vmem:[#allocation8 + $0x6cc] sm:$0xf] }
  0xfd   :  { %2342 = vmatpush.bf16.msra.mxu3 %v7512_v25  ;;  %2331 = vmatpush.bf16.msra.mxu2 %v7192_v31  ;;  %v7612_v25 = vor.u32 %v9741_v11, %v7609_v14  ;;  %v7292_v31 = vor.u32 %v9661_v23, %v7289_v24  ;;  %v7481_v3 = vld [vmem:[#allocation8 + $0x6e8] sm:$0xf0]  ;;  %v9498_v23 = vld [vmem:[#allocation8 + $0x2c] sm:$0xf0] }
  0xfe   :  { %2368 = vmatpush.bf16.msrb.mxu1 %v7004_v26  ;;  %2357 = vmatpush.bf16.msrb.mxu0 %v6684_v28  ;;  %v7104_v26 = vor.u32 %v9618_v16, %v7103_v15  ;;  %v6784_v28 = vor.u32 %v9538_v19, %v6783_v18  ;;  %v9629_v9 = vld [vmem:[#allocation8 + $0x44c] sm:$0xf]  ;;  %v7484_v11 = vor.u32 %v9709_v1, %v7481_v3  ;;  %v9578_v18 = vld [vmem:[#allocation8 + $0x2ac] sm:$0xf0] }
  0xff   :  { %v7161_v10 = vld [vmem:[#allocation8 + $0x468] sm:$0xf0]  ;;  %v6656_v15 = vor.u32 %v9506_v8, %v6655_v7  ;;  %v7583_v1 = vld [vmem:[#allocation8 + $0x790] sm:$0xf]  ;;  %v6753_v7 = vld [vmem:[#allocation8 + $0x130] sm:$0xf0] }
 0x100   :  { %2295 = vmatmul.bf16.vlgmr.msrb.gmra.mxu3 %v10548_v51  ;;  %v9701_v14 = vld [vmem:[#allocation8 + $0x68c] sm:$0xf]  ;;  %v7164_v19 = vor.u32 %v9629_v9, %v7161_v10  ;;  %v9738_v3 = vld [vmem:[#allocation8 + $0x7ac] sm:$0xf0] }
 0x101   :  { %2343 = vmatpush.bf16.msra.mxu3 %v7480_v37  ;;  %2332 = vmatpush.bf16.msra.mxu2 %v7160_v54  ;;  %v7580_v37 = vor.u32 %v9733_v27, %v7577_v29  ;;  %v7260_v54 = vor.u32 %v9653_v35, %v7257_v36  ;;  %v7449_v16 = vld [vmem:[#allocation8 + $0x6a8] sm:$0xf0]  ;;  %v7359_v29 = vld [vmem:[#allocation8 + $0x5d0] sm:$0xf]  ;;  %v7584_v9 = vor.u32 %v9738_v3, %v7583_v1  ;;  %v9678_v3 = vld [vmem:[#allocation8 + $0x5d4] sm:$0xf] }
 0x102   :  { %2369 = vmatpush.bf16.msrb.mxu1 %v6972_v38  ;;  %2358 = vmatpush.bf16.msrb.mxu0 %v6652_v50  ;;  %v7072_v38 = vor.u32 %v9610_v30, %v7071_v45  ;;  %v6752_v50 = vor.u32 %v9530_v33, %v6751_v32  ;;  %v7129_v24 = vld [vmem:[#allocation8 + $0x428] sm:$0xf0]  ;;  %v7452_v27 = vor.u32 %v9701_v14, %v7449_v16  ;;  %v9682_v45 = vld [vmem:[#allocation8 + $0x5ec] sm:$0xf0] }
 0x103   :  { %v9693_v30 = vld [vmem:[#allocation8 + $0x64c] sm:$0xf]  ;;  %v6911_v33 = vld [vmem:[#allocation8 + $0x250] sm:$0xf] }
 0x104   :  { %v7417_v32 = vld [vmem:[#allocation8 + $0x668] sm:$0xf0]  ;;  %v9570_v35 = vld [vmem:[#allocation8 + $0x26c] sm:$0xf0] }
 0x105   :  { %2344 = vmatpush.bf16.msra.mxu3 %v7448_v52  ;;  %2333 = vmatpush.bf16.msra.mxu2 %v7128_v62  ;;  %v9717_v52 = vld [vmem:[#allocation8 + $0x70c] sm:$0xf]  ;;  %v7420_v41 = vor.u32 %v9693_v30, %v7417_v32  ;;  %v6912_v42 = vor.u32 %v9570_v35, %v6911_v33  ;;  %v7551_v14 = vld [vmem:[#allocation8 + $0x750] sm:$0xf]  ;;  %v7009_v30 = vld [vmem:[#allocation8 + $0x330] sm:$0xf0] }
 0x106   :  { %2370 = vmatpush.bf16.msrb.mxu1 %v6940_v53  ;;  %2359 = vmatpush.bf16.msrb.mxu0 %v6620_v58  ;;  %v6720_v53 = vor.u32 %v9522_v44, %v6719_v43  ;;  %v7228_v58 = vor.u32 %v9645_v46, %v7225_v47  ;;  %v7193_v62 = vld [vmem:[#allocation8 + $0x4a8] sm:$0xf0]  ;;  %v6879_v46 = vld [vmem:[#allocation8 + $0x210] sm:$0xf]  ;;  %v6689_v32 = vld [vmem:[#allocation8 + $0xb0] sm:$0xf0] }
 0x107   :  { %v7196_v6 = vor.u32 %v9637_v61, %v7193_v62  ;;  %v9685_v43 = vld [vmem:[#allocation8 + $0x60c] sm:$0xf]  ;;  %v9562_v47 = vld [vmem:[#allocation8 + $0x22c] sm:$0xf0] }
 0x108   :  { %2334 = vmatmul.bf16.vlgmr.msra.gmra.mxu2 %v10544_v22  ;;  %v7385_v44 = vld [vmem:[#allocation8 + $0x628] sm:$0xf0]  ;;  %v6880_v60 = vor.u32 %v9562_v47, %v6879_v46  ;;  %v9730_v16 = vld [vmem:[#allocation8 + $0x76c] sm:$0xf0] }
 0x109   :  { %2378 = vmatpush.bf16.msrb.mxu2 %v7356_v0  ;;  %2345 = vmatpush.bf16.msra.mxu3 %v7416_v4  ;;  %v7008_v0 = vor.u32 %v9594_v57, %v7007_v56  ;;  %v6975_v4 = vld [vmem:[#allocation8 + $0x2d0] sm:$0xf]  ;;  %v9534_v57 = vld [vmem:[#allocation8 + $0x154] sm:$0xf]  ;;  %v7388_v59 = vor.u32 %v9685_v43, %v7385_v44 }
 0x10a   :  { %2404 = vmatpush.bf16.msra.mxu0 %v6848_v63  ;;  %2371 = vmatpush.bf16.msrb.mxu1 %v6908_v5  ;;  %v7516_v63 = vor.u32 %v9717_v52, %v7513_v55  ;;  %v9586_v5 = vld [vmem:[#allocation8 + $0x2ec] sm:$0xf0]  ;;  %v7105_v55 = vld [vmem:[#allocation8 + $0x3f0] sm:$0xf0] }
 0x10b   :  { %2360 = vmatmul.bf16.vlgmr.msrb.gmra.mxu0 %v10534_v13  ;;  %v9746_v52 = vld [vmem:[#allocation8 + $0x7ec] sm:$0xf0]  ;;  %v6657_v43 = vld [vmem:[#allocation8 + $0x70] sm:$0xf0] }
 0x10c   :  { %v7135_v1 = vld [vmem:[#allocation8 + $0x410] sm:$0xf] }
 0x10d   :  { %2379 = vmatpush.bf16.msrb.mxu2 %v7324_v17  ;;  %2346 = vmatpush.bf16.msra.mxu3 %v7384_v20  ;;  %v6943_v17 = vld [vmem:[#allocation8 + $0x290] sm:$0xf]  ;;  %v9621_v20 = vld [vmem:[#allocation8 + $0x40c] sm:$0xf] }
 0x10e   :  { %2405 = vmatpush.bf16.msra.mxu0 %v6816_v12  ;;  %2372 = vmatpush.bf16.msrb.mxu1 %v6876_v21  ;;  %v6976_v12 = vor.u32 %v9586_v5, %v6975_v4  ;;  %v6623_v21 = vld [vmem:[#allocation8 + $0x10] sm:$0xf]  ;;  %v7132_v36 = vor.u32 %v9621_v20, %v7129_v24  ;;  %v9606_v4 = vld [vmem:[#allocation8 + $0x394] sm:$0xf] }
 0x10f   :  { %v7073_v5 = vld [vmem:[#allocation8 + $0x3b0] sm:$0xf0] }
 0x110   :  { %2347 = vmatmul.bf16.vlgmr.msra.gmra.mxu3 %v10548_v51  ;;  %v7076_v10 = vor.u32 %v9606_v4, %v7073_v5  ;;  %v6721_v20 = vld [vmem:[#allocation8 + $0xf0] sm:$0xf0] }
 0x111   :  { %2391 = vmatpush.bf16.msrb.mxu3 %v7612_v25  ;;  %2373 = vmatmul.bf16.vlgmr.msrb.gmra.mxu1 %v10537_v34  ;;  %v9550_v25 = vld [vmem:[#allocation8 + $0x1d4] sm:$0xf] }
 0x112   :  { %2417 = vmatpush.bf16.msra.mxu1 %v7104_v26  ;;  %2406 = vmatpush.bf16.msra.mxu0 %v6784_v28  ;;  %v6849_v26 = vld [vmem:[#allocation8 + $0x1f0] sm:$0xf0]  ;;  %v6944_v28 = vor.u32 %v9578_v18, %v6943_v17 }
 0x113   :  { %2380 = vmatpush.bf16.msrb.mxu2 %v7292_v31  ;;  %v6624_v31 = vor.u32 %v9498_v23, %v6623_v21  ;;  %v9598_v17 = vld [vmem:[#allocation8 + $0x354] sm:$0xf]  ;;  %v7552_v23 = vor.u32 %v9730_v16, %v7551_v14  ;;  %v9547_v14 = vld [vmem:[#allocation8 + $0x1b4] sm:$0xf0] }
 0x114   :  { %v7041_v18 = vld [vmem:[#allocation8 + $0x370] sm:$0xf0] }
 0x115   :  { %2392 = vmatpush.bf16.msrb.mxu3 %v7580_v37  ;;  %v6852_v37 = vor.u32 %v9550_v25, %v6849_v26  ;;  %v7044_v24 = vor.u32 %v9598_v17, %v7041_v18  ;;  %v7231_v25 = vld [vmem:[#allocation8 + $0x4d0] sm:$0xf]  ;;  %v7361_v5 = vld [vmem:[#allocation8 + $0x5f0] sm:$0xf0] }
 0x116   :  { %2418 = vmatpush.bf16.msra.mxu1 %v7072_v38  ;;  %2407 = vmatpush.bf16.msra.mxu0 %v6752_v50  ;;  %v7360_v38 = vor.u32 %v9682_v45, %v7359_v29  ;;  %v9542_v50 = vld [vmem:[#allocation8 + $0x194] sm:$0xf]  ;;  %v9650_v26 = vld [vmem:[#allocation8 + $0x4ec] sm:$0xf0] }
 0x117   :  { %2381 = vmatpush.bf16.msrb.mxu2 %v7260_v54  ;;  %v9674_v54 = vld [vmem:[#allocation8 + $0x5ac] sm:$0xf0]  ;;  %v9590_v45 = vld [vmem:[#allocation8 + $0x314] sm:$0xf]  ;;  %v7232_v33 = vor.u32 %v9650_v26, %v7231_v25 }
 0x118   :  { %v7328_v56 = vor.u32 %v9674_v54, %v7327_v39  ;;  %v9722_v29 = vld [vmem:[#allocation8 + $0x72c] sm:$0xf0]  ;;  %v9502_v54 = vld [vmem:[#allocation8 + $0x54] sm:$0xf] }
 0x119   :  { %2393 = vmatpush.bf16.msrb.mxu3 %v7548_v48  ;;  %v7615_v48 = vld [vmem:[#allocation8 + $0x7d0] sm:$0xf]  ;;  %v9670_v17 = vld [vmem:[#allocation8 + $0x594] sm:$0xf] }
 0x11a   :  { %2419 = vmatpush.bf16.msra.mxu1 %v7040_v49  ;;  %2408 = vmatpush.bf16.msra.mxu0 %v6720_v53  ;;  %v6820_v49 = vor.u32 %v9542_v50, %v6817_v40  ;;  %v9614_v53 = vld [vmem:[#allocation8 + $0x3d4] sm:$0xf]  ;;  %v7616_v61 = vor.u32 %v9746_v52, %v7615_v48  ;;  %v7487_v39 = vld [vmem:[#allocation8 + $0x6d0] sm:$0xf] }
 0x11b   :  { %2382 = vmatpush.bf16.msrb.mxu2 %v7228_v58  ;;  %v6785_v58 = vld [vmem:[#allocation8 + $0x170] sm:$0xf0]  ;;  %v7108_v62 = vor.u32 %v9614_v53, %v7105_v55  ;;  %v9714_v40 = vld [vmem:[#allocation8 + $0x6ec] sm:$0xf0]  ;;  %v6660_v53 = vor.u32 %v9502_v54, %v6657_v43  ;;  %v9611_v54 = vld [vmem:[#allocation8 + $0x3b4] sm:$0xf0] }
 0x11c   :  { %v7488_v46 = vor.u32 %v9714_v40, %v7487_v39  ;;  %v7167_v48 = vld [vmem:[#allocation8 + $0x450] sm:$0xf]  ;;  %v7329_v18 = vld [vmem:[#allocation8 + $0x5b0] sm:$0xf0]  ;;  %v10564_v40 = vld [vmem:[#allocation10] sm:$0xff] }
 0x11d   :  { %2394 = vmatpush.bf16.msrb.mxu3 %v7516_v63  ;;  %v7295_v63 = vld [vmem:[#allocation8 + $0x550] sm:$0xf]  ;;  %v9742_v26 = vld [vmem:[#allocation8 + $0x7d4] sm:$0xf]  ;;  %v6759_v43 = vld [vmem:[#allocation8 + $0x118] sm:$0xf] }
 0x11e   :  { %2420 = vmatpush.bf16.msra.mxu1 %v7008_v0  ;;  %2409 = vmatpush.bf16.msra.mxu0 %v6688_v2  ;;  %v9666_v0 = vld [vmem:[#allocation8 + $0x56c] sm:$0xf0]  ;;  %v6788_v2 = vor.u32 %v9534_v57, %v6785_v58  ;;  %v6945_v57 = vld [vmem:[#allocation8 + $0x2b0] sm:$0xf0] }
 0x11f   :  { %2383 = vmatpush.bf16.msrb.mxu2 %v7196_v6  ;;  %v9526_v6 = vld [vmem:[#allocation8 + $0x114] sm:$0xf]  ;;  %v7296_v8 = vor.u32 %v9666_v0, %v7295_v63  ;;  %v7455_v52 = vld [vmem:[#allocation8 + $0x690] sm:$0xf] }
 0x120   :  { %v9706_v55 = vld [vmem:[#allocation8 + $0x6ac] sm:$0xf0]  ;;  %v9494_v58 = vld [vmem:[#allocation8 + $0x14] sm:$0xf] }
 0x121   :  { %2395 = vmatpush.bf16.msrb.mxu3 %v7484_v11  ;;  %v7263_v11 = vld [vmem:[#allocation8 + $0x510] sm:$0xf]  ;;  %v7456_v63 = vor.u32 %v9706_v55, %v7455_v52  ;;  %v7265_v52 = vld [vmem:[#allocation8 + $0x530] sm:$0xf0] }
 0x122   :  { %2421 = vmatpush.bf16.msra.mxu1 %v6976_v12  ;;  %2410 = vmatpush.bf16.msra.mxu0 %v6656_v15  ;;  %v9658_v12 = vld [vmem:[#allocation8 + $0x52c] sm:$0xf0]  ;;  %v6756_v15 = vor.u32 %v9526_v6, %v6753_v7 }
 0x123   :  { %2384 = vmatpush.bf16.msrb.mxu2 %v7164_v19  ;;  %v9518_v19 = vld [vmem:[#allocation8 + $0xd4] sm:$0xf]  ;;  %v7264_v21 = vor.u32 %v9658_v12, %v7263_v11  ;;  %v7423_v6 = vld [vmem:[#allocation8 + $0x650] sm:$0xf]  ;;  %v6823_v12 = vld [vmem:[#allocation8 + $0x198] sm:$0xf] }
 0x124   :  { %v9698_v7 = vld [vmem:[#allocation8 + $0x66c] sm:$0xf0]  ;;  %v6824_v25 = vor.u32 %v9547_v14, %v6823_v12 }
 0x125   :  { %2396 = vmatpush.bf16.msrb.mxu3 %v7452_v27  ;;  %v7519_v27 = vld [vmem:[#allocation8 + $0x710] sm:$0xf]  ;;  %v7424_v16 = vor.u32 %v9698_v7, %v7423_v6  ;;  %v9718_v6 = vld [vmem:[#allocation8 + $0x714] sm:$0xf] }
 0x126   :  { %2422 = vmatpush.bf16.msra.mxu1 %v6944_v28  ;;  %2411 = vmatpush.bf16.msra.mxu0 %v6624_v31  ;;  %v6724_v28 = vor.u32 %v9518_v19, %v6721_v20  ;;  %v9510_v31 = vld [vmem:[#allocation8 + $0x94] sm:$0xf]  ;;  %v7520_v35 = vor.u32 %v9722_v29, %v7519_v27  ;;  %v7391_v19 = vld [vmem:[#allocation8 + $0x610] sm:$0xf]  ;;  %v9619_v29 = vld [vmem:[#allocation8 + $0x3f4] sm:$0xf0] }
 0x127   :  { %2385 = vmatpush.bf16.msrb.mxu2 %v7132_v36  ;;  %v7012_v36 = vor.u32 %v9590_v45, %v7009_v30  ;;  %v6692_v50 = vor.u32 %v9510_v31, %v6689_v32  ;;  %v7617_v27 = vld [vmem:[#allocation8 + $0x7f0] sm:$0xf0]  ;;  %v6791_v45 = vld [vmem:[#allocation8 + $0x158] sm:$0xf]  ;;  %v7332_v31 = vor.u32 %v9670_v17, %v7329_v18 }
 0x128   :  { %v9539_v30 = vld [vmem:[#allocation8 + $0x174] sm:$0xf0]  ;;  %v7521_v7 = vld [vmem:[#allocation8 + $0x730] sm:$0xf0] }
 0x129   :  { %2397 = vmatpush.bf16.msrb.mxu3 %v7420_v41  ;;  %2412 = vmatmul.bf16.vlgmr.msra.gmra.mxu0 %v10534_v13  ;;  %v9582_v41 = vld [vmem:[#allocation8 + $0x2d4] sm:$0xf] }
 0x12a   :  { %2456 = vmatpush.bf16.msrb.mxu0 %v6852_v37  ;;  %2423 = vmatpush.bf16.msra.mxu1 %v6912_v42  ;;  %v7199_v37 = vld [vmem:[#allocation8 + $0x490] sm:$0xf]  ;;  %v6977_v42 = vld [vmem:[#allocation8 + $0x2f0] sm:$0xf0] }
 0x12b   :  { %2430 = vmatpush.bf16.msra.mxu2 %v7360_v38  ;;  %v9642_v38 = vld [vmem:[#allocation8 + $0x4ac] sm:$0xf0]  ;;  %v6980_v47 = vor.u32 %v9582_v41, %v6977_v42  ;;  %v7585_v41 = vld [vmem:[#allocation8 + $0x7b0] sm:$0xf0]  ;;  %v7079_v42 = vld [vmem:[#allocation8 + $0x398] sm:$0xf] }
 0x12c   :  { %2386 = vmatmul.bf16.vlgmr.msrb.gmra.mxu2 %v10544_v22  ;;  %v7200_v44 = vor.u32 %v9642_v38, %v7199_v37  ;;  %v7297_v37 = vld [vmem:[#allocation8 + $0x570] sm:$0xf0]  ;;  %v7080_v55 = vor.u32 %v9611_v54, %v7079_v42  ;;  %v9551_v42 = vld [vmem:[#allocation8 + $0x1dc] sm:$0xf] }
 0x12d   :  { %2398 = vmatpush.bf16.msrb.mxu3 %v7388_v59  ;;  %v6625_v59 = vld [vmem:[#allocation8 + $0x30] sm:$0xf0]  ;;  %v6857_v54 = vld [vmem:[#allocation8 + $0x1f8] sm:$0xf0] }
 0x12e   :  { %2457 = vmatpush.bf16.msrb.mxu0 %v6820_v49  ;;  %2424 = vmatpush.bf16.msra.mxu1 %v6880_v60  ;;  %v9634_v49 = vld [vmem:[#allocation8 + $0x46c] sm:$0xf0]  ;;  %v6628_v4 = vor.u32 %v9494_v58, %v6625_v59  ;;  %v9734_v38 = vld [vmem:[#allocation8 + $0x794] sm:$0xf]  ;;  %v7047_v59 = vld [vmem:[#allocation8 + $0x358] sm:$0xf] }
 0x12f   :  { %2431 = vmatpush.bf16.msra.mxu2 %v7328_v56  ;;  %v9574_v56 = vld [vmem:[#allocation8 + $0x294] sm:$0xf]  ;;  %v7168_v60 = vor.u32 %v9634_v49, %v7167_v48  ;;  %v7588_v48 = vor.u32 %v9734_v38, %v7585_v41  ;;  %v9579_v38 = vld [vmem:[#allocation8 + $0x2b4] sm:$0xf0] }
 0x130   :  { %2399 = vmatmul.bf16.vlgmr.msrb.gmra.mxu3 %v10548_v51  ;;  %v6948_v0 = vor.u32 %v9574_v56, %v6945_v57  ;;  %v9654_v49 = vld [vmem:[#allocation8 + $0x514] sm:$0xf] }
 0x131   :  { %2443 = vmatpush.bf16.msra.mxu3 %v7616_v61  ;;  %2425 = vmatmul.bf16.vlgmr.msra.gmra.mxu1 %v10537_v34  ;;  %v6855_v61 = vld [vmem:[#allocation8 + $0x1d8] sm:$0xf]  ;;  %v9726_v57 = vld [vmem:[#allocation8 + $0x754] sm:$0xf] }
 0x132   :  { %2469 = vmatpush.bf16.msrb.mxu1 %v7108_v62  ;;  %2458 = vmatpush.bf16.msrb.mxu0 %v6788_v2  ;;  %v9555_v62 = vld [vmem:[#allocation8 + $0x1f4] sm:$0xf0]  ;;  %v9626_v2 = vld [vmem:[#allocation8 + $0x42c] sm:$0xf0]  ;;  %v7553_v58 = vld [vmem:[#allocation8 + $0x770] sm:$0xf0] }
 0x133   :  { %2432 = vmatpush.bf16.msra.mxu2 %v7296_v8  ;;  %v6856_v8 = vor.u32 %v9555_v62, %v6855_v61  ;;  %v7136_v11 = vor.u32 %v9626_v2, %v7135_v1  ;;  %v6727_v61 = vld [vmem:[#allocation8 + $0xd8] sm:$0xf]  ;;  %v9646_v1 = vld [vmem:[#allocation8 + $0x4d4] sm:$0xf] }
 0x134   :  { %v9523_v62 = vld [vmem:[#allocation8 + $0xf4] sm:$0xf0]  ;;  %v7233_v2 = vld [vmem:[#allocation8 + $0x4f0] sm:$0xf0] }
 0x135   :  { %2444 = vmatpush.bf16.msra.mxu3 %v7584_v9  ;;  %v9566_v9 = vld [vmem:[#allocation8 + $0x254] sm:$0xf]  ;;  %v7236_v12 = vor.u32 %v9646_v1, %v7233_v2  ;;  %v7335_v2 = vld [vmem:[#allocation8 + $0x598] sm:$0xf] }
 0x136   :  { %2470 = vmatpush.bf16.msrb.mxu1 %v7076_v10  ;;  %2459 = vmatpush.bf16.msrb.mxu0 %v6756_v15  ;;  %v6913_v10 = vld [vmem:[#allocation8 + $0x270] sm:$0xf0]  ;;  %v7364_v15 = vor.u32 %v9678_v3, %v7361_v5  ;;  %v6728_v5 = vor.u32 %v9523_v62, %v6727_v61  ;;  %v9543_v62 = vld [vmem:[#allocation8 + $0x19c] sm:$0xf] }
 0x137   :  { %2433 = vmatpush.bf16.msra.mxu2 %v7264_v21  ;;  %v6916_v20 = vor.u32 %v9566_v9, %v6913_v10  ;;  %v9690_v21 = vld [vmem:[#allocation8 + $0x62c] sm:$0xf0]  ;;  %v9595_v9 = vld [vmem:[#allocation8 + $0x334] sm:$0xf0]  ;;  %v7201_v17 = vld [vmem:[#allocation8 + $0x4b0] sm:$0xf0] }
 0x138   :  { %v7392_v32 = vor.u32 %v9690_v21, %v7391_v19  ;;  %v6695_v10 = vld [vmem:[#allocation8 + $0x98] sm:$0xf] }
 0x139   :  { %2445 = vmatpush.bf16.msra.mxu3 %v7552_v23  ;;  %v9558_v23 = vld [vmem:[#allocation8 + $0x214] sm:$0xf] }
 0x13a   :  { %2471 = vmatpush.bf16.msrb.mxu1 %v7044_v24  ;;  %2460 = vmatpush.bf16.msrb.mxu0 %v6724_v28  ;;  %v6881_v24 = vld [vmem:[#allocation8 + $0x230] sm:$0xf0]  ;;  %v7111_v28 = vld [vmem:[#allocation8 + $0x3d8] sm:$0xf] }
 0x13b   :  { %2434 = vmatpush.bf16.msra.mxu2 %v7232_v33  ;;  %v6884_v33 = vor.u32 %v9558_v23, %v6881_v24  ;;  %v7112_v39 = vor.u32 %v9619_v29, %v7111_v28  ;;  %v9710_v23 = vld [vmem:[#allocation8 + $0x6d4] sm:$0xf]  ;;  %v9507_v28 = vld [vmem:[#allocation8 + $0x74] sm:$0xf0] }
 0x13c   :  { %v7489_v24 = vld [vmem:[#allocation8 + $0x6f0] sm:$0xf0] }
 0x13d   :  { %2446 = vmatpush.bf16.msra.mxu3 %v7520_v35  ;;  %v7620_v35 = vor.u32 %v9742_v26, %v7617_v27  ;;  %v9587_v26 = vld [vmem:[#allocation8 + $0x2f4] sm:$0xf0] }
 0x13e   :  { %2472 = vmatpush.bf16.msrb.mxu1 %v7012_v36  ;;  %2461 = vmatpush.bf16.msrb.mxu0 %v6692_v50  ;;  %v9662_v36 = vld [vmem:[#allocation8 + $0x554] sm:$0xf]  ;;  %v6792_v50 = vor.u32 %v9539_v30, %v6791_v45  ;;  %v6663_v27 = vld [vmem:[#allocation8 + $0x58] sm:$0xf]  ;;  %v7492_v45 = vor.u32 %v9710_v23, %v7489_v24 }
 0x13f   :  { %2435 = vmatpush.bf16.msra.mxu2 %v7200_v44  ;;  %v9531_v44 = vld [vmem:[#allocation8 + $0x134] sm:$0xf0]  ;;  %v9630_v30 = vld [vmem:[#allocation8 + $0x454] sm:$0xf] }
 0x140   :  { %v6760_v56 = vor.u32 %v9531_v44, %v6759_v43 }
 0x141   :  { %2447 = vmatpush.bf16.msra.mxu3 %v7488_v46  ;;  %v7300_v46 = vor.u32 %v9662_v36, %v7297_v37  ;;  %v7457_v36 = vld [vmem:[#allocation8 + $0x6b0] sm:$0xf0]  ;;  %v6951_v37 = vld [vmem:[#allocation8 + $0x298] sm:$0xf] }
 0x142   :  { %2473 = vmatpush.bf16.msrb.mxu1 %v6980_v47  ;;  %2462 = vmatpush.bf16.msrb.mxu0 %v6660_v53  ;;  %v900_v47 = vperm.slane %v10564_v40, 0 }
 0x143   :  { %2436 = vmatpush.bf16.msra.mxu2 %v7168_v60  ;;  %v9603_v60 = vld [vmem:[#allocation8 + $0x374] sm:$0xf0] }
 0x145   :  { %2448 = vmatpush.bf16.msra.mxu3 %v7456_v63  ;;  %v2205_v53 = vpop.f32.mrf.mxu0  ;;  %v7268_v63 = vor.u32 %v9654_v49, %v7265_v52  ;;  %v6952_v52 = vor.u32 %v9579_v38, %v6951_v37  ;;  %v7271_v37 = vld [vmem:[#allocation8 + $0x518] sm:$0xf] }
 0x146   :  { %2474 = vmatpush.bf16.msrb.mxu1 %v6948_v0  ;;  %2463 = vmatpush.bf16.msrb.mxu0 %v6628_v4  ;;  %v7556_v0 = vor.u32 %v9726_v57, %v7553_v58  ;;  %v2206_v3 = vadd.f32 %v2205_v53, %v900_v47  ;;  %v7048_v4 = vor.u32 %v9603_v60, %v7047_v59  ;;  %v7137_v47 = vld [vmem:[#allocation8 + $0x430] sm:$0xf0]  ;;  %v6919_v59 = vld [vmem:[#allocation8 + $0x258] sm:$0xf] }
 0x147   :  { %2437 = vmatpush.bf16.msra.mxu2 %v7136_v11  ;;  %v9515_v11 = vld [vmem:[#allocation8 + $0xb4] sm:$0xf0]  ;;  %v7425_v57 = vld [vmem:[#allocation8 + $0x670] sm:$0xf0]  ;;  %v6860_v58 = vor.u32 %v9551_v42, %v6857_v54  ;;  %v9599_v54 = vld [vmem:[#allocation8 + $0x35c] sm:$0xf] }
 0x148   :  { %v6696_v21 = vor.u32 %v9515_v11, %v6695_v10  ;;  %v9571_v60 = vld [vmem:[#allocation8 + $0x274] sm:$0xf0] }
 0x149   :  { %2449 = vmatpush.bf16.msra.mxu3 %v7424_v16  ;;  %2464 = vmatmul.bf16.vlgmr.msrb.gmra.mxu0 %v10534_v13  ;;  %v9638_v16 = vld [vmem:[#allocation8 + $0x494] sm:$0xf]  ;;  %v7623_v10 = vld [vmem:[#allocation8 + $0x7d8] sm:$0xf] }
 0x14a   :  { %2508 = vmatpush.bf16.msra.mxu0 %v6856_v8  ;;  %2475 = vmatpush.bf16.msrb.mxu1 %v6916_v20  ;;  %v7015_v8 = vld [vmem:[#allocation8 + $0x318] sm:$0xf]  ;;  %v7204_v29 = vor.u32 %v9638_v16, %v7201_v17  ;;  %v6793_v16 = vld [vmem:[#allocation8 + $0x178] sm:$0xf0] }
 0x14b   :  { %2482 = vmatpush.bf16.msrb.mxu2 %v7364_v15  ;;  %v7524_v15 = vor.u32 %v9718_v6, %v7521_v7  ;;  %v7016_v20 = vor.u32 %v9595_v9, %v7015_v8  ;;  %v7393_v6 = vld [vmem:[#allocation8 + $0x630] sm:$0xf0]  ;;  %v6887_v7 = vld [vmem:[#allocation8 + $0x218] sm:$0xf] }
 0x14c   :  { %2438 = vmatmul.bf16.vlgmr.msra.gmra.mxu2 %v10544_v22  ;;  %v9563_v8 = vld [vmem:[#allocation8 + $0x234] sm:$0xf0] }
 0x14d   :  { %2450 = vmatpush.bf16.msra.mxu3 %v7392_v32  ;;  %v2218_v14 = vpop.f32.mrf.mxu1  ;;  %v2207_v19 = vpop.f32.mrf.mxu0  ;;  %v9747_v11 = vld [vmem:[#allocation8 + $0x7f4] sm:$0xf0]  ;;  %v6888_v23 = vor.u32 %v9563_v8, %v6887_v7 }
 0x14e   :  { %2509 = vmatpush.bf16.msra.mxu0 %v6824_v25  ;;  %2476 = vmatpush.bf16.msrb.mxu1 %v6884_v33  ;;  %v10569_v18 = vadd.f32 %v2218_v14, %v2206_v3  ;;  %v6983_v25 = vld [vmem:[#allocation8 + $0x2d8] sm:$0xf]  ;;  %v6664_v33 = vor.u32 %v9507_v28, %v6663_v27  ;;  %v7113_v14 = vld [vmem:[#allocation8 + $0x3f8] sm:$0xf0]  ;;  %v7624_v24 = vor.u32 %v9747_v11, %v7623_v10 }
 0x14f   :  { %2483 = vmatpush.bf16.msrb.mxu2 %v7332_v31  ;;  %v7169_v31 = vld [vmem:[#allocation8 + $0x470] sm:$0xf0]  ;;  %v6984_v32 = vor.u32 %v9587_v26, %v6983_v25  ;;  %v9675_v3 = vld [vmem:[#allocation8 + $0x5b4] sm:$0xf0]  ;;  %v9583_v10 = vld [vmem:[#allocation8 + $0x2dc] sm:$0xf] }
 0x150   :  { %2451 = vmatmul.bf16.vlgmr.msra.gmra.mxu3 %v10548_v51  ;;  %v7172_v41 = vor.u32 %v9630_v30, %v7169_v31  ;;  %v7336_v19 = vor.u32 %v9675_v3, %v7335_v2  ;;  %v7303_v25 = vld [vmem:[#allocation8 + $0x558] sm:$0xf]  ;;  %v9607_v30 = vld [vmem:[#allocation8 + $0x39c] sm:$0xf] }
 0x151   :  { %2495 = vmatpush.bf16.msrb.mxu3 %v7620_v35  ;;  %2477 = vmatmul.bf16.vlgmr.msrb.gmra.mxu1 %v10537_v34  ;;  %v9702_v35 = vld [vmem:[#allocation8 + $0x694] sm:$0xf]  ;;  %v9667_v26 = vld [vmem:[#allocation8 + $0x574] sm:$0xf0]  ;;  %v7081_v31 = vld [vmem:[#allocation8 + $0x3b8] sm:$0xf0] }
 0x152   :  { %2521 = vmatpush.bf16.msra.mxu1 %v7112_v39  ;;  %2510 = vmatpush.bf16.msra.mxu0 %v6792_v50  ;;  %v6631_v39 = vld [vmem:[#allocation8 + $0x18] sm:$0xf]  ;;  %v7460_v44 = vor.u32 %v9702_v35, %v7457_v36  ;;  %v7304_v35 = vor.u32 %v9667_v26, %v7303_v25  ;;  %v6985_v11 = vld [vmem:[#allocation8 + $0x2f8] sm:$0xf0] }
 0x153   :  { %2484 = vmatpush.bf16.msrb.mxu2 %v7300_v46  ;;  %v9499_v50 = vld [vmem:[#allocation8 + $0x34] sm:$0xf0]  ;;  %v9622_v46 = vld [vmem:[#allocation8 + $0x414] sm:$0xf] }
 0x154   :  { %v6632_v53 = vor.u32 %v9499_v50, %v6631_v39  ;;  %v7140_v61 = vor.u32 %v9622_v46, %v7137_v47  ;;  %v9659_v38 = vld [vmem:[#allocation8 + $0x534] sm:$0xf0]  ;;  %v7084_v39 = vor.u32 %v9607_v30, %v7081_v31  ;;  %v6729_v46 = vld [vmem:[#allocation8 + $0xf8] sm:$0xf0] }
 0x155   :  { %2496 = vmatpush.bf16.msrb.mxu3 %v7588_v48  ;;  %v2220_v43 = vpop.f32.mrf.mxu1  ;;  %v7367_v48 = vld [vmem:[#allocation8 + $0x5d8] sm:$0xf]  ;;  %v10571_v49 = vpop.f32.mrf.mxu0  ;;  %v9495_v30 = vld [vmem:[#allocation8 + $0x1c] sm:$0xf] }
 0x156   :  { %2522 = vmatpush.bf16.msra.mxu1 %v7080_v55  ;;  %2511 = vmatpush.bf16.msra.mxu0 %v6760_v56  ;;  %v9683_v55 = vld [vmem:[#allocation8 + $0x5f4] sm:$0xf0]  ;;  %v9694_v56 = vld [vmem:[#allocation8 + $0x654] sm:$0xf]  ;;  %v7049_v43 = vld [vmem:[#allocation8 + $0x378] sm:$0xf0] }
 0x157   :  { %2485 = vmatpush.bf16.msrb.mxu2 %v7268_v63  ;;  %v6825_v63 = vld [vmem:[#allocation8 + $0x1b8] sm:$0xf0]  ;;  %v7428_v1 = vor.u32 %v9694_v56, %v7425_v57  ;;  %v9731_v42 = vld [vmem:[#allocation8 + $0x774] sm:$0xf0]  ;;  %v7052_v57 = vor.u32 %v9599_v54, %v7049_v43 }
 0x158   :  { %v6828_v9 = vor.u32 %v9543_v62, %v6825_v63  ;;  %v9651_v56 = vld [vmem:[#allocation8 + $0x4f4] sm:$0xf0]  ;;  %v7017_v62 = vld [vmem:[#allocation8 + $0x338] sm:$0xf0] }
 0x159   :  { %2497 = vmatpush.bf16.msrb.mxu3 %v7556_v0  ;;  %v7368_v0 = vor.u32 %v9683_v55, %v7367_v48  ;;  %v7272_v48 = vor.u32 %v9659_v38, %v7271_v37  ;;  %v7239_v55 = vld [vmem:[#allocation8 + $0x4d8] sm:$0xf]  ;;  %v9511_v63 = vld [vmem:[#allocation8 + $0x9c] sm:$0xf] }
 0x15a   :  { %2523 = vmatpush.bf16.msra.mxu1 %v7048_v4  ;;  %2512 = vmatpush.bf16.msra.mxu0 %v6728_v5  ;;  %v9686_v4 = vld [vmem:[#allocation8 + $0x614] sm:$0xf]  ;;  %v6920_v5 = vor.u32 %v9571_v60, %v6919_v59  ;;  %v7527_v59 = vld [vmem:[#allocation8 + $0x718] sm:$0xf]  ;;  %v7240_v2 = vor.u32 %v9651_v56, %v7239_v55  ;;  %v6633_v31 = vld [vmem:[#allocation8 + $0x38] sm:$0xf0] }
 0x15b   :  { %2486 = vmatpush.bf16.msrb.mxu2 %v7236_v12  ;;  %v9615_v12 = vld [vmem:[#allocation8 + $0x3dc] sm:$0xf]  ;;  %v9723_v60 = vld [vmem:[#allocation8 + $0x734] sm:$0xf0] }
 0x15c   :  { %v7116_v27 = vor.u32 %v9615_v12, %v7113_v14  ;;  %v7528_v3 = vor.u32 %v9723_v60, %v7527_v59  ;;  %v7495_v8 = vld [vmem:[#allocation8 + $0x6d8] sm:$0xf]  ;;  %v9503_v12 = vld [vmem:[#allocation8 + $0x5c] sm:$0xf] }
 0x15d   :  { %2498 = vmatpush.bf16.msrb.mxu3 %v7524_v15  ;;  %v9535_v15 = vld [vmem:[#allocation8 + $0x15c] sm:$0xf]  ;;  %v10573_v17 = vpop.f32.mrf.mxu1  ;;  %v7463_v26 = vld [vmem:[#allocation8 + $0x698] sm:$0xf] }
 0x15e   :  { %2524 = vmatpush.bf16.msra.mxu1 %v7016_v20  ;;  %2513 = vmatpush.bf16.msra.mxu0 %v6696_v21  ;;  %v7396_v20 = vor.u32 %v9686_v4, %v7393_v6  ;;  %v2259_v21 = vpop.f32.mrf.mxu0  ;;  %v6796_v28 = vor.u32 %v9535_v15, %v6793_v16  ;;  %v7207_v4 = vld [vmem:[#allocation8 + $0x498] sm:$0xf]  ;;  %v6665_v14 = vld [vmem:[#allocation8 + $0x78] sm:$0xf0] }
 0x15f   :  { %2487 = vmatpush.bf16.msrb.mxu2 %v7204_v29  ;;  %v7591_v29 = vld [vmem:[#allocation8 + $0x798] sm:$0xf]  ;;  %v6668_v25 = vor.u32 %v9503_v12, %v6665_v14  ;;  %v7369_v54 = vld [vmem:[#allocation8 + $0x5f8] sm:$0xf0] }
 0x160   :  { %v7175_v21 = vld [vmem:[#allocation8 + $0x458] sm:$0xf]  ;;  %v9671_v60 = vld [vmem:[#allocation8 + $0x59c] sm:$0xf] }
 0x161   :  { %2499 = vmatpush.bf16.msrb.mxu3 %v7492_v45  ;;  %v9739_v45 = vld [vmem:[#allocation8 + $0x7b4] sm:$0xf0] }
 0x162   :  { %2525 = vmatpush.bf16.msra.mxu1 %v6984_v32  ;;  %2514 = vmatpush.bf16.msra.mxu0 %v6664_v33  ;;  %v9527_v32 = vld [vmem:[#allocation8 + $0x11c] sm:$0xf]  ;;  %v7592_v36 = vor.u32 %v9739_v45, %v7591_v29  ;;  %v7143_v38 = vld [vmem:[#allocation8 + $0x418] sm:$0xf] }
 0x163   :  { %2488 = vmatpush.bf16.msrb.mxu2 %v7172_v41  ;;  %v6761_v33 = vld [vmem:[#allocation8 + $0x138] sm:$0xf0]  ;;  %v7559_v41 = vld [vmem:[#allocation8 + $0x758] sm:$0xf] }
 0x164   :  { %v6764_v50 = vor.u32 %v9527_v32, %v6761_v33  ;;  %v6953_v45 = vld [vmem:[#allocation8 + $0x2b8] sm:$0xf0]  ;;  %v7431_v43 = vld [vmem:[#allocation8 + $0x658] sm:$0xf] }
 0x165   :  { %2500 = vmatpush.bf16.msrb.mxu3 %v7460_v44  ;;  %v9519_v44 = vld [vmem:[#allocation8 + $0xdc] sm:$0xf]  ;;  %v2272_v47 = vpop.f32.mrf.mxu1  ;;  %v7799_v56 = vld [vmem:[#allocation11 + $0x150] sm:$0xf] }
 0x166   :  { %2526 = vmatpush.bf16.msra.mxu1 %v6952_v52  ;;  %2515 = vmatpush.bf16.msra.mxu0 %v6632_v53  ;;  %v10579_v52 = vpop.f32.mrf.mxu0  ;;  %v7560_v53 = vor.u32 %v9731_v42, %v7559_v41  ;;  %v6636_v42 = vor.u32 %v9495_v30, %v6633_v31  ;;  %v9567_v47 = vld [vmem:[#allocation8 + $0x25c] sm:$0xf]  ;;  %v7743_v30 = vld [vmem:[#allocation11 + $0xe0] sm:$0xf]  ;;  %v9779_v31 = vld [vmem:[#allocation11 + $0xf8] sm:$0xf0] }
 0x167   :  { %2489 = vmatpush.bf16.msrb.mxu2 %v7140_v61  ;;  %v9591_v61 = vld [vmem:[#allocation8 + $0x31c] sm:$0xf] }
 0x168   :  { %v7020_v6 = vor.u32 %v9591_v61, %v7017_v62  ;;  %v7337_v61 = vld [vmem:[#allocation8 + $0x5b8] sm:$0xf0]  ;;  %v7399_v62 = vld [vmem:[#allocation8 + $0x618] sm:$0xf] }
 0x169   :  { %2501 = vmatpush.bf16.msrb.mxu3 %v7428_v1  ;;  %2516 = vmatmul.bf16.vlgmr.msra.gmra.mxu0 %v10534_v13  ;;  %v7340_v14 = vor.u32 %v9671_v60, %v7337_v61  ;;  %v7967_v60 = vld [vmem:[#allocation11 + $0x2a0] sm:$0xf]  ;;  %v9835_v61 = vld [vmem:[#allocation11 + $0x2b8] sm:$0xf0] }
 0x16a   :  { %2560 = vmatpush.bf16.msrb.mxu0 %v6860_v58  ;;  %2527 = vmatpush.bf16.msra.mxu1 %v6920_v5  ;;  %v6732_v58 = vor.u32 %v9519_v44, %v6729_v46  ;;  %v9643_v5 = vld [vmem:[#allocation8 + $0x4b4] sm:$0xf0] }
 0x16b   :  { %2534 = vmatpush.bf16.msra.mxu2 %v7368_v0  ;;  %v6697_v0 = vld [vmem:[#allocation8 + $0xb8] sm:$0xf0]  ;;  %v10581_v1 = vpop.f32.mrf.mxu2  ;;  %v7208_v16 = vor.u32 %v9643_v5, %v7207_v4  ;;  %v9699_v44 = vld [vmem:[#allocation8 + $0x674] sm:$0xf0] }
 0x16c   :  { %2490 = vmatmul.bf16.vlgmr.msrb.gmra.mxu2 %v10544_v22  ;;  %v6700_v7 = vor.u32 %v9511_v63, %v6697_v0  ;;  %v7432_v59 = vor.u32 %v9699_v44, %v7431_v43  ;;  %v9691_v0 = vld [vmem:[#allocation8 + $0x634] sm:$0xf0]  ;;  %v9772_v43 = vld [vmem:[#allocation11 + $0xc0] sm:$0xf0] }
 0x16d   :  { %2502 = vmatpush.bf16.msrb.mxu3 %v7396_v20 }
 0x16e   :  { %2561 = vmatpush.bf16.msrb.mxu0 %v6828_v9  ;;  %2528 = vmatpush.bf16.msra.mxu1 %v6888_v23  ;;  %v9715_v9 = vld [vmem:[#allocation8 + $0x6f4] sm:$0xf0] }
 0x16f   :  { %2535 = vmatpush.bf16.msra.mxu2 %v7336_v19  ;;  %v2311_v19 = vpop.f32.mrf.mxu0  ;;  %v7496_v20 = vor.u32 %v9715_v9, %v7495_v8  ;;  %v9635_v23 = vld [vmem:[#allocation8 + $0x474] sm:$0xf0]  ;;  %v8051_v8 = vld [vmem:[#allocation11 + $0x348] sm:$0xf]  ;;  %v9856_v9 = vld [vmem:[#allocation11 + $0x360] sm:$0xf0] }
 0x170   :  { %2503 = vmatmul.bf16.vlgmr.msrb.gmra.mxu3 %v10548_v51  ;;  %v10583_v15 = vpop.f32.mrf.mxu1  ;;  %v7176_v33 = vor.u32 %v9635_v23, %v7175_v21  ;;  %v9663_v21 = vld [vmem:[#allocation8 + $0x55c] sm:$0xf] }
 0x171   :  { %2547 = vmatpush.bf16.msra.mxu3 %v7624_v24  ;;  %2529 = vmatmul.bf16.vlgmr.msra.gmra.mxu1 %v10537_v34  ;;  %v6988_v24 = vor.u32 %v9583_v10, %v6985_v11  ;;  %v7771_v10 = vld [vmem:[#allocation11 + $0x118] sm:$0xf]  ;;  %v9786_v11 = vld [vmem:[#allocation11 + $0x130] sm:$0xf0] }
 0x172   :  { %2573 = vmatpush.bf16.msrb.mxu1 %v7116_v27  ;;  %2562 = vmatpush.bf16.msrb.mxu0 %v6796_v28  ;;  %v9707_v27 = vld [vmem:[#allocation8 + $0x6b4] sm:$0xf0]  ;;  %v9575_v28 = vld [vmem:[#allocation8 + $0x29c] sm:$0xf] }
 0x173   :  { %2536 = vmatpush.bf16.msra.mxu2 %v7304_v35  ;;  %v10585_v29 = vpop.f32.mrf.mxu3  ;;  %v2233_v32 = vpop.f32.mrf.mxu2  ;;  %v7827_v35 = vld [vmem:[#allocation11 + $0x188] sm:$0xf]  ;;  %v7464_v37 = vor.u32 %v9707_v27, %v7463_v26  ;;  %v6956_v41 = vor.u32 %v9575_v28, %v6953_v45  ;;  %v7305_v23 = vld [vmem:[#allocation8 + $0x578] sm:$0xf0]  ;;  %v8023_v28 = vld [vmem:[#allocation11 + $0x310] sm:$0xf] }
 0x174   :  { %v9735_v26 = vld [vmem:[#allocation8 + $0x79c] sm:$0xf]  ;;  %v9849_v45 = vld [vmem:[#allocation11 + $0x328] sm:$0xf0]  ;;  %v7308_v32 = vor.u32 %v9663_v21, %v7305_v23  ;;  %v901_v21 = vperm.slane %v10564_v40, 1 }
 0x175   :  { %2548 = vmatpush.bf16.msra.mxu3 %v7592_v36  ;;  %v9800_v36 = vld [vmem:[#allocation11 + $0x1a0] sm:$0xf0]  ;;  %v7593_v27 = vld [vmem:[#allocation8 + $0x7b8] sm:$0xf0] }
 0x176   :  { %2574 = vmatpush.bf16.msrb.mxu1 %v7084_v39  ;;  %2563 = vmatpush.bf16.msrb.mxu0 %v6764_v50  ;;  %v9627_v39 = vld [vmem:[#allocation8 + $0x434] sm:$0xf0]  ;;  %v9679_v50 = vld [vmem:[#allocation8 + $0x5dc] sm:$0xf]  ;;  %v7828_v46 = vor.u32 %v9800_v36, %v7827_v35 }
 0x177   :  { %2537 = vmatpush.bf16.msra.mxu2 %v7272_v48  ;;  %v6921_v48 = vld [vmem:[#allocation8 + $0x278] sm:$0xf0]  ;;  %v7144_v55 = vor.u32 %v9627_v39, %v7143_v38  ;;  %v7744_v38 = vor.u32 %v9779_v31, %v7743_v30 }
 0x178   :  { %v6924_v63 = vor.u32 %v9567_v47, %v6921_v48  ;;  %v7273_v35 = vld [vmem:[#allocation8 + $0x538] sm:$0xf0] }
 0x179   :  { %2549 = vmatpush.bf16.msra.mxu3 %v7560_v53  ;;  %v2324_v53 = vpop.f32.mrf.mxu1  ;;  %v9727_v39 = vld [vmem:[#allocation8 + $0x75c] sm:$0xf] }
 0x17a   :  { %2575 = vmatpush.bf16.msrb.mxu1 %v7052_v57  ;;  %2564 = vmatpush.bf16.msrb.mxu0 %v6732_v58  ;;  %v9793_v57 = vld [vmem:[#allocation11 + $0x168] sm:$0xf0]  ;;  %v7372_v58 = vor.u32 %v9679_v50, %v7369_v54  ;;  %v7561_v50 = vld [vmem:[#allocation8 + $0x778] sm:$0xf0]  ;;  %v7715_v54 = vld [vmem:[#allocation11 + $0xa8] sm:$0xf] }
 0x17b   :  { %2538 = vmatpush.bf16.msra.mxu2 %v7240_v2  ;;  %v9559_v2 = vld [vmem:[#allocation8 + $0x21c] sm:$0xf]  ;;  %v2246_v4 = vpop.f32.mrf.mxu3  ;;  %v7800_v5 = vor.u32 %v9793_v57, %v7799_v56  ;;  %v10587_v12 = vpop.f32.mrf.mxu2  ;;  %v7564_v47 = vor.u32 %v9727_v39, %v7561_v50  ;;  %v7716_v57 = vor.u32 %v9772_v43, %v7715_v54  ;;  %v8723_v39 = vld [vmem:[#allocation11 + $0x888] sm:$0xf]  ;;  %v10024_v50 = vld [vmem:[#allocation11 + $0x8a0] sm:$0xf0] }
 0x17c   :  { %v9647_v48 = vld [vmem:[#allocation8 + $0x4dc] sm:$0xf]  ;;  %v8275_v54 = vld [vmem:[#allocation11 + $0x508] sm:$0xf] }
 0x17d   :  { %2550 = vmatpush.bf16.msra.mxu3 %v7528_v3  ;;  %v6889_v3 = vld [vmem:[#allocation8 + $0x238] sm:$0xf0] }
 0x17e   :  { %2576 = vmatpush.bf16.msrb.mxu1 %v7020_v6  ;;  %2565 = vmatpush.bf16.msrb.mxu0 %v6700_v7  ;;  %v9743_v6 = vld [vmem:[#allocation8 + $0x7dc] sm:$0xf]  ;;  %v6892_v19 = vor.u32 %v9559_v2, %v6889_v3 }
 0x17f   :  { %2539 = vmatpush.bf16.msra.mxu2 %v7208_v16  ;;  %v7625_v7 = vld [vmem:[#allocation8 + $0x7f8] sm:$0xf0]  ;;  %v7400_v16 = vor.u32 %v9691_v0, %v7399_v62  ;;  %v7687_v62 = vld [vmem:[#allocation11 + $0x70] sm:$0xf] }
 0x180   :  { %v7241_v53 = vld [vmem:[#allocation8 + $0x4f8] sm:$0xf0] }
 0x181   :  { %2551 = vmatpush.bf16.msra.mxu3 %v7496_v20  ;;  %v7628_v20 = vor.u32 %v9743_v6, %v7625_v7  ;;  %v9639_v2 = vld [vmem:[#allocation8 + $0x49c] sm:$0xf] }
 0x182   :  { %2577 = vmatpush.bf16.msrb.mxu1 %v6988_v24  ;;  %2566 = vmatpush.bf16.msrb.mxu0 %v6668_v25  ;;  %v8052_v24 = vor.u32 %v9856_v9, %v8051_v8  ;;  %v7772_v25 = vor.u32 %v9786_v11, %v7771_v10  ;;  %v7209_v3 = vld [vmem:[#allocation8 + $0x4b8] sm:$0xf0]  ;;  %v7939_v9 = vld [vmem:[#allocation11 + $0x268] sm:$0xf]  ;;  %v9828_v10 = vld [vmem:[#allocation11 + $0x280] sm:$0xf0] }
 0x183   :  { %2540 = vmatpush.bf16.msra.mxu2 %v7176_v33  ;;  %v9655_v33 = vld [vmem:[#allocation8 + $0x51c] sm:$0xf]  ;;  %v10591_v36 = vpop.f32.mrf.mxu3  ;;  %v2285_v44 = vpop.f32.mrf.mxu2  ;;  %v7659_v11 = vld [vmem:[#allocation11 + $0x38] sm:$0xf] }
 0x184   :  { %v9711_v7 = vld [vmem:[#allocation8 + $0x6dc] sm:$0xf] }
 0x185   :  { %2552 = vmatpush.bf16.msra.mxu3 %v7464_v37  ;;  %v8024_v37 = vor.u32 %v9849_v45, %v8023_v28  ;;  %v7497_v8 = vld [vmem:[#allocation8 + $0x6f8] sm:$0xf0]  ;;  %v7940_v28 = vor.u32 %v9828_v10, %v7939_v9 }
 0x186   :  { %2578 = vmatpush.bf16.msrb.mxu1 %v6956_v41  ;;  %2567 = vmatpush.bf16.msrb.mxu0 %v6636_v42  ;;  %v7995_v41 = vld [vmem:[#allocation11 + $0x2d8] sm:$0xf]  ;;  %v9842_v42 = vld [vmem:[#allocation11 + $0x2f0] sm:$0xf0]  ;;  %v7500_v23 = vor.u32 %v9711_v7, %v7497_v8  ;;  %v7855_v7 = vld [vmem:[#allocation11 + $0x1c0] sm:$0xf] }
 0x187   :  { %2541 = vmatpush.bf16.msra.mxu2 %v7144_v55  ;;  %v7996_v56 = vor.u32 %v9842_v42, %v7995_v41  ;;  %v9703_v30 = vld [vmem:[#allocation8 + $0x69c] sm:$0xf]  ;;  %v2258_v41 = vadd.f32 %v10571_v49, %v901_v21  ;;  %v9807_v8 = vld [vmem:[#allocation11 + $0x1d8] sm:$0xf0] }
 0x188   :  { %v10595_v55 = vpop.f32.mrf.mxu0  ;;  %v7465_v31 = vld [vmem:[#allocation8 + $0x6b8] sm:$0xf0] }
 0x189   :  { %2553 = vmatpush.bf16.msra.mxu3 %v7432_v59  ;;  %2568 = vmatmul.bf16.vlgmr.msrb.gmra.mxu0 %v10534_v13  ;;  %v7596_v13 = vor.u32 %v9735_v26, %v7593_v27  ;;  %v7529_v59 = vld [vmem:[#allocation8 + $0x738] sm:$0xf0]  ;;  %v2232_v26 = vadd.f32 %v10581_v1, %v10569_v18  ;;  %v7468_v18 = vor.u32 %v9703_v30, %v7465_v31  ;;  %v8471_v30 = vld [vmem:[#allocation11 + $0x690] sm:$0xf] }
 0x18a   :  { %5460 = vmatpush.bf16.msra.mxu0 %v7828_v46  ;;  %2579 = vmatpush.bf16.msrb.mxu1 %v6924_v63  ;;  %v7276_v46 = vor.u32 %v9655_v33, %v7273_v35  ;;  %v9765_v63 = vld [vmem:[#allocation11 + $0x88] sm:$0xf0]  ;;  %v7631_v33 = vld [vmem:[#allocation11] sm:$0xf]  ;;  %v9751_v35 = vld [vmem:[#allocation11 + $0x18] sm:$0xf0] }
 0x18b   :  { %2586 = vmatpush.bf16.msrb.mxu2 %v7372_v58  ;;  %v9719_v58 = vld [vmem:[#allocation8 + $0x71c] sm:$0xf]  ;;  %v2298_v4 = vpop.f32.mrf.mxu3  ;;  %v7688_v6 = vor.u32 %v9765_v63, %v7687_v62  ;;  %v7632_v44 = vor.u32 %v9751_v35, %v7631_v33  ;;  %v8695_v62 = vld [vmem:[#allocation11 + $0x850] sm:$0xf]  ;;  %v10017_v63 = vld [vmem:[#allocation11 + $0x868] sm:$0xf0] }
 0x18c   :  { %2542 = vmatmul.bf16.vlgmr.msra.gmra.mxu2 %v10544_v22  ;;  %v7532_v0 = vor.u32 %v9719_v58, %v7529_v59  ;;  %v9623_v1 = vld [vmem:[#allocation8 + $0x41c] sm:$0xf]  ;;  %v8724_v58 = vor.u32 %v10024_v50, %v8723_v39  ;;  %v9905_v4 = vld [vmem:[#allocation11 + $0x4e8] sm:$0xf0]  ;;  %v8696_v10 = vor.u32 %v10017_v63, %v8695_v62  ;;  %v8639_v35 = vld [vmem:[#allocation11 + $0x7e0] sm:$0xf] }
 0x18d   :  { %2554 = vmatpush.bf16.msra.mxu3 %v7400_v16  ;;  %v7145_v42 = vld [vmem:[#allocation8 + $0x438] sm:$0xf0]  ;;  %v9961_v33 = vld [vmem:[#allocation11 + $0x6a8] sm:$0xf0]  ;;  %v8919_v39 = vld [vmem:[#allocation11 + $0xa10] sm:$0xf] }
 0x18e   :  { %5461 = vmatpush.bf16.msra.mxu0 %v7800_v5  ;;  %2580 = vmatpush.bf16.msrb.mxu1 %v6892_v19  ;;  %v7968_v5 = vor.u32 %v9835_v61, %v7967_v60  ;;  %v10597_v16 = vpop.f32.mrf.mxu1  ;;  %v10599_v19 = vpop.f32.mrf.mxu2  ;;  %v7148_v61 = vor.u32 %v9623_v1, %v7145_v42  ;;  %v10010_v21 = vld [vmem:[#allocation11 + $0x830] sm:$0xf0]  ;;  %v10073_v50 = vld [vmem:[#allocation11 + $0xa28] sm:$0xf0]  ;;  %v8191_v1 = vld [vmem:[#allocation11 + $0x460] sm:$0xf] }
 0x18f   :  { %2587 = vmatpush.bf16.msrb.mxu2 %v7340_v14  ;;  %v9758_v14 = vld [vmem:[#allocation11 + $0x50] sm:$0xf0]  ;;  %v9891_v42 = vld [vmem:[#allocation11 + $0x478] sm:$0xf0]  ;;  %v8415_v63 = vld [vmem:[#allocation11 + $0x620] sm:$0xf] }
 0x190   :  { %2555 = vmatmul.bf16.vlgmr.msra.gmra.mxu3 %v10548_v51  ;;  %v2363_v27 = vpop.f32.mrf.mxu0  ;;  %v7660_v45 = vor.u32 %v9758_v14, %v7659_v11  ;;  %v8499_v11 = vld [vmem:[#allocation11 + $0x6c8] sm:$0xf]  ;;  %v9968_v14 = vld [vmem:[#allocation11 + $0x6e0] sm:$0xf0] }
 0x191   :  { %2599 = vmatpush.bf16.msrb.mxu3 %v7628_v20  ;;  %2581 = vmatmul.bf16.vlgmr.msrb.gmra.mxu1 %v10537_v34  ;;  %v7244_v34 = vor.u32 %v9647_v48, %v7241_v53  ;;  %v7212_v20 = vor.u32 %v9639_v2, %v7209_v3  ;;  %v7433_v48 = vld [vmem:[#allocation8 + $0x678] sm:$0xf0]  ;;  %v8247_v3 = vld [vmem:[#allocation11 + $0x4d0] sm:$0xf]  ;;  %v7856_v27 = vor.u32 %v9807_v8, %v7855_v7  ;;  %v9877_v7 = vld [vmem:[#allocation11 + $0x408] sm:$0xf0] }
 0x192   :  { %5473 = vmatpush.bf16.msra.mxu1 %v8052_v24  ;;  %5462 = vmatpush.bf16.msra.mxu0 %v7772_v25  ;;  %v9631_v24 = vld [vmem:[#allocation8 + $0x45c] sm:$0xf] }
 0x193   :  { %2588 = vmatpush.bf16.msrb.mxu2 %v7308_v32  ;;  %v7177_v25 = vld [vmem:[#allocation8 + $0x478] sm:$0xf0]  ;;  %v7911_v32 = vld [vmem:[#allocation11 + $0x230] sm:$0xf]  ;;  %v10607_v53 = vpop.f32.mrf.mxu3 }
 0x195   :  { %2600 = vmatpush.bf16.msrb.mxu3 %v7596_v13  ;;  %v9821_v13 = vld [vmem:[#allocation11 + $0x248] sm:$0xf0] }
 0x196   :  { %5474 = vmatpush.bf16.msra.mxu1 %v8024_v37  ;;  %5463 = vmatpush.bf16.msra.mxu0 %v7744_v38  ;;  %v2245_v37 = vadd.f32 %v10585_v29, %v2232_v26  ;;  %v7180_v38 = vor.u32 %v9631_v24, %v7177_v25  ;;  %v7912_v43 = vor.u32 %v9821_v13, %v7911_v32  ;;  %v2376_v59 = vpop.f32.mrf.mxu1  ;;  %v2337_v60 = vpop.f32.mrf.mxu2  ;;  %v10080_v24 = vld [vmem:[#allocation11 + $0xa60] sm:$0xf0] }
 0x197   :  { %2589 = vmatpush.bf16.msrb.mxu2 %v7276_v46  ;;  %v9912_v46 = vld [vmem:[#allocation11 + $0x520] sm:$0xf0]  ;;  %v2271_v29 = vadd.f32 %v10573_v17, %v2258_v41  ;;  %v9687_v17 = vld [vmem:[#allocation8 + $0x61c] sm:$0xf]  ;;  %v8248_v25 = vor.u32 %v9905_v4, %v8247_v3  ;;  %v8163_v59 = vld [vmem:[#allocation11 + $0x428] sm:$0xf] }
 0x198   :  { %v2612_v49 = vmax.f32 %v2245_v37, 0.0  ;;  %v9884_v60 = vld [vmem:[#allocation11 + $0x440] sm:$0xf0]  ;;  %v8863_v3 = vld [vmem:[#allocation11 + $0x9a0] sm:$0xf] }
 0x199   :  { %2601 = vmatpush.bf16.msrb.mxu3 %v7564_v47  ;;  %v9695_v47 = vld [vmem:[#allocation8 + $0x65c] sm:$0xf]  ;;  %v10059_v4 = vld [vmem:[#allocation11 + $0x9b8] sm:$0xf0] }
 0x19a   :  { %5475 = vmatpush.bf16.msra.mxu1 %v7996_v56  ;;  %5464 = vmatpush.bf16.msra.mxu0 %v7716_v57  ;;  %v7883_v56 = vld [vmem:[#allocation11 + $0x1f8] sm:$0xf]  ;;  %v9814_v57 = vld [vmem:[#allocation11 + $0x210] sm:$0xf0]  ;;  %v7436_v2 = vor.u32 %v9695_v47, %v7433_v48  ;;  %v8920_v47 = vor.u32 %v10073_v50, %v8919_v39  ;;  %v9996_v48 = vld [vmem:[#allocation11 + $0x7c0] sm:$0xf0] }
 0x19b   :  { %2590 = vmatpush.bf16.msrb.mxu2 %v7244_v34  ;;  %v2284_v34 = vadd.f32 %v10587_v12, %v2271_v29  ;;  %v10611_v12 = vpack.c.bf16 %v2612_v49, %v2612_v49  ;;  %v2350_v32 = vpop.f32.mrf.mxu3  ;;  %v8891_v29 = vld [vmem:[#allocation11 + $0x9d8] sm:$0xf]  ;;  %v8807_v39 = vld [vmem:[#allocation11 + $0x930] sm:$0xf]  ;;  %v10045_v50 = vld [vmem:[#allocation11 + $0x948] sm:$0xf0] }
 0x19d   :  { %2602 = vmatpush.bf16.msrb.mxu3 %v7532_v0  ;;  %v8276_v0 = vor.u32 %v9912_v46, %v8275_v54  ;;  %v2297_v9 = vadd.f32 %v10591_v36, %v2284_v34  ;;  %v8500_v36 = vor.u32 %v9968_v14, %v8499_v11  ;;  %v8611_v46 = vld [vmem:[#allocation11 + $0x7a8] sm:$0xf]  ;;  %v9947_v34 = vld [vmem:[#allocation11 + $0x638] sm:$0xf0]  ;;  %v8555_v11 = vld [vmem:[#allocation11 + $0x738] sm:$0xf]  ;;  %v8864_v14 = vor.u32 %v10059_v4, %v8863_v3 }
 0x19e   :  { %5476 = vmatpush.bf16.msra.mxu1 %v7968_v5  ;;  %5465 = vmatpush.bf16.msra.mxu0 %v7688_v6  ;;  %v7884_v5 = vor.u32 %v9814_v57, %v7883_v56  ;;  %v7401_v6 = vld [vmem:[#allocation8 + $0x638] sm:$0xf0]  ;;  %v8192_v57 = vor.u32 %v9891_v42, %v8191_v1  ;;  %v8612_v62 = vor.u32 %v9996_v48, %v8611_v46  ;;  %v7829_v1 = vld [vmem:[#allocation11 + $0x1a4] sm:$0xf0]  ;;  %v8331_v48 = vld [vmem:[#allocation11 + $0x578] sm:$0xf] }
 0x19f   :  { %2591 = vmatpush.bf16.msrb.mxu2 %v7212_v20  ;;  %v8667_v20 = vld [vmem:[#allocation11 + $0x818] sm:$0xf]  ;;  %v7404_v26 = vor.u32 %v9687_v17, %v7401_v6  ;;  %v2613_v31 = vmax.f32 %v2297_v9, 0.0  ;;  %v10066_v56 = vld [vmem:[#allocation11 + $0x9f0] sm:$0xf0]  ;;  %v8164_v17 = vor.u32 %v9884_v60, %v8163_v59 }
 0x1a0   :  { %v8668_v13 = vor.u32 %v10010_v21, %v8667_v20  ;;  %v8135_v6 = vld [vmem:[#allocation11 + $0x3f0] sm:$0xf]  ;;  %v8387_v9 = vld [vmem:[#allocation11 + $0x5e8] sm:$0xf]  ;;  %v9982_v21 = vld [vmem:[#allocation11 + $0x750] sm:$0xf0] }
 0x1a1   :  { %2603 = vmatpush.bf16.msrb.mxu3 %v7500_v23  ;;  %v8947_v23 = vld [vmem:[#allocation11 + $0xa48] sm:$0xf]  ;;  %v10615_v54 = vpack.c.bf16 %v2613_v31, %v2613_v31  ;;  %v9870_v31 = vld [vmem:[#allocation11 + $0x3d0] sm:$0xf0] }
 0x1a2   :  { %5477 = vmatpush.bf16.msra.mxu1 %v7940_v28  ;;  %5466 = vmatpush.bf16.msra.mxu0 %v7660_v45  ;;  %v8219_v28 = vld [vmem:[#allocation11 + $0x498] sm:$0xf]  ;;  %v9898_v45 = vld [vmem:[#allocation11 + $0x4b0] sm:$0xf0]  ;;  %v8948_v37 = vor.u32 %v10080_v24, %v8947_v23  ;;  %v8835_v23 = vld [vmem:[#allocation11 + $0x968] sm:$0xf] }
 0x1a3   :  { %2592 = vmatpush.bf16.msrb.mxu2 %v7180_v38  ;;  %v10003_v38 = vld [vmem:[#allocation11 + $0x7f8] sm:$0xf0]  ;;  %v8220_v41 = vor.u32 %v9898_v45, %v8219_v28  ;;  %v10052_v24 = vld [vmem:[#allocation11 + $0x980] sm:$0xf0] }
 0x1a5   :  { %2604 = vmatpush.bf16.msrb.mxu3 %v7468_v18  ;;  %v8472_v18 = vor.u32 %v9961_v33, %v8471_v30  ;;  %v8107_v30 = vld [vmem:[#allocation11 + $0x3b8] sm:$0xf]  ;;  %v9933_v33 = vld [vmem:[#allocation11 + $0x5c8] sm:$0xf0] }
 0x1a6   :  { %5478 = vmatpush.bf16.msra.mxu1 %v7912_v43  ;;  %5467 = vmatpush.bf16.msra.mxu0 %v7632_v44  ;;  %v8443_v43 = vld [vmem:[#allocation11 + $0x658] sm:$0xf]  ;;  %v9954_v44 = vld [vmem:[#allocation11 + $0x670] sm:$0xf0] }
 0x1a7   :  { %2593 = vmatpush.bf16.msrb.mxu2 %v7148_v61  ;;  %v8444_v49 = vor.u32 %v9954_v44, %v8443_v43  ;;  %v10620_v61 = vpop.f32.mrf.mxu0  ;;  %v8079_v43 = vld [vmem:[#allocation11 + $0x380] sm:$0xf]  ;;  %v9863_v44 = vld [vmem:[#allocation11 + $0x398] sm:$0xf0] }
 0x1a9   :  { %2605 = vmatpush.bf16.msrb.mxu3 %v7436_v2  ;;  %5468 = vmatmul.bf16.vlgmr.msra.gmra.mxu0 %v10611_v12  ;;  %v9989_v2 = vld [vmem:[#allocation11 + $0x788] sm:$0xf0] }
 0x1aa   :  { %5512 = vmatpush.bf16.msrb.mxu0 %v8724_v58  ;;  %5479 = vmatpush.bf16.msra.mxu1 %v7884_v5  ;;  %v902_v58 = vperm.slane %v10564_v40, 2  ;;  %v8416_v5 = vor.u32 %v9947_v34, %v8415_v63  ;;  %v7801_v63 = vld [vmem:[#allocation11 + $0x16c] sm:$0xf0]  ;;  %v9171_v34 = vld [vmem:[#allocation11 + $0xc08] sm:$0xf] }
 0x1ab   :  { %5486 = vmatpush.bf16.msra.mxu2 %v8276_v0  ;;  %v8892_v0 = vor.u32 %v10066_v56, %v8891_v29  ;;  %v9926_v29 = vld [vmem:[#allocation11 + $0x590] sm:$0xf0]  ;;  %v8808_v56 = vor.u32 %v10045_v50, %v8807_v39  ;;  %v9769_v39 = vld [vmem:[#allocation11 + $0xac] sm:$0xf]  ;;  %v7717_v50 = vld [vmem:[#allocation11 + $0xc4] sm:$0xf0] }
 0x1ac   :  { %2594 = vmatmul.bf16.vlgmr.msrb.gmra.mxu2 %v10544_v22  ;;  %v8640_v22 = vor.u32 %v10003_v38, %v8639_v35  ;;  %v2310_v20 = vadd.f32 %v10579_v52, %v902_v58  ;;  %v8359_v52 = vld [vmem:[#allocation11 + $0x5b0] sm:$0xf]  ;;  %v8527_v35 = vld [vmem:[#allocation11 + $0x700] sm:$0xf]  ;;  %v9975_v38 = vld [vmem:[#allocation11 + $0x718] sm:$0xf0] }
 0x1ad   :  { %2606 = vmatpush.bf16.msrb.mxu3 %v7404_v26  ;;  %v8779_v58 = vld [vmem:[#allocation11 + $0x8f8] sm:$0xf] }
 0x1ae   :  { %5513 = vmatpush.bf16.msrb.mxu0 %v8696_v10  ;;  %5480 = vmatpush.bf16.msra.mxu1 %v7856_v27  ;;  %v9940_v10 = vld [vmem:[#allocation11 + $0x600] sm:$0xf0]  ;;  %v10624_v27 = vpop.f32.mrf.mxu1  ;;  %v2323_v28 = vadd.f32 %v10583_v15, %v2310_v20  ;;  %v8108_v15 = vor.u32 %v9870_v31, %v8107_v30  ;;  %v9853_v20 = vld [vmem:[#allocation11 + $0x34c] sm:$0xf] }
 0x1af   :  { %5487 = vmatpush.bf16.msra.mxu2 %v8248_v25  ;;  %v903_v25 = vperm.slane %v10564_v40, 3  ;;  %v2387_v26 = vpop.f32.mrf.mxu2  ;;  %v8388_v45 = vor.u32 %v9940_v10, %v8387_v9  ;;  %v2415_v32 = vpop.f32.mrf.mxu0  ;;  %v10031_v9 = vld [vmem:[#allocation11 + $0x8d8] sm:$0xf0]  ;;  %v9143_v10 = vld [vmem:[#allocation11 + $0xbd0] sm:$0xf] }
 0x1b0   :  { %2607 = vmatmul.bf16.vlgmr.msrb.gmra.mxu3 %v10548_v51  ;;  %v8583_v51 = vld [vmem:[#allocation11 + $0x770] sm:$0xf]  ;;  %v2336_v40 = vadd.f32 %v10599_v19, %v2323_v28  ;;  %v8528_v19 = vor.u32 %v9975_v38, %v8527_v35  ;;  %v9776_v30 = vld [vmem:[#allocation11 + $0xe4] sm:$0xf]  ;;  %v9115_v32 = vld [vmem:[#allocation11 + $0xb98] sm:$0xf] }
 0x1b1   :  { %5499 = vmatpush.bf16.msra.mxu3 %v8500_v36  ;;  %5481 = vmatmul.bf16.vlgmr.msra.gmra.mxu1 %v10615_v54  ;;  %v8584_v8 = vor.u32 %v9989_v2, %v8583_v51  ;;  %v8136_v36 = vor.u32 %v9877_v7, %v8135_v6  ;;  %v10136_v51 = vld [vmem:[#allocation11 + $0xc20] sm:$0xf0]  ;;  %v8303_v2 = vld [vmem:[#allocation11 + $0x540] sm:$0xf]  ;;  %v8025_v35 = vld [vmem:[#allocation11 + $0x32c] sm:$0xf0] }
 0x1b2   :  { %5514 = vmatpush.bf16.msrb.mxu0 %v8668_v13  ;;  %5525 = vmatpush.bf16.msrb.mxu1 %v8948_v37  ;;  %v8556_v13 = vor.u32 %v9982_v21, %v8555_v11  ;;  %v8836_v37 = vor.u32 %v10052_v24, %v8835_v23  ;;  %v2349_v42 = vadd.f32 %v10607_v53, %v2336_v40  ;;  %v8751_v7 = vld [vmem:[#allocation11 + $0x8c0] sm:$0xf]  ;;  %v10129_v11 = vld [vmem:[#allocation11 + $0xbe8] sm:$0xf0]  ;;  %v8053_v21 = vld [vmem:[#allocation11 + $0x364] sm:$0xf0] }
 0x1b3   :  { %5488 = vmatpush.bf16.msra.mxu2 %v8220_v41  ;;  %v2362_v41 = vadd.f32 %v10595_v55, %v903_v25  ;;  %v9172_v3 = vor.u32 %v10136_v51, %v9171_v34  ;;  %v9144_v25 = vor.u32 %v10129_v11, %v9143_v10  ;;  %v8752_v28 = vor.u32 %v10031_v9, %v8751_v7  ;;  %v7941_v34 = vld [vmem:[#allocation11 + $0x284] sm:$0xf0]  ;;  %v9031_v51 = vld [vmem:[#allocation11 + $0xaf0] sm:$0xf]  ;;  %v7633_v7 = vld [vmem:[#allocation11 + $0x1c] sm:$0xf0] }
 0x1b4   :  { %v8056_v31 = vor.u32 %v9853_v20, %v8053_v21  ;;  %v9818_v9 = vld [vmem:[#allocation11 + $0x234] sm:$0xf]  ;;  %v7913_v11 = vld [vmem:[#allocation11 + $0x24c] sm:$0xf0] }
 0x1b5   :  { %5500 = vmatpush.bf16.msra.mxu3 %v8472_v18  ;;  %v9797_v18 = vld [vmem:[#allocation11 + $0x18c] sm:$0xf]  ;;  %v2375_v46 = vadd.f32 %v10597_v16, %v2362_v41  ;;  %v2614_v16 = vmax.f32 %v2349_v42, 0.0  ;;  %v10115_v42 = vld [vmem:[#allocation11 + $0xb78] sm:$0xf0] }
 0x1b6   :  { %5515 = vmatpush.bf16.msrb.mxu0 %v8640_v22  ;;  %5526 = vmatpush.bf16.msrb.mxu1 %v8920_v47  ;;  %v8360_v22 = vor.u32 %v9933_v33, %v8359_v52  ;;  %v2400_v47 = vpop.f32.mrf.mxu3  ;;  %v7832_v55 = vor.u32 %v9797_v18, %v7829_v1  ;;  %v2428_v60 = vpop.f32.mrf.mxu1  ;;  %v7745_v52 = vld [vmem:[#allocation11 + $0xfc] sm:$0xf0]  ;;  %v9846_v33 = vld [vmem:[#allocation11 + $0x314] sm:$0xf]  ;;  %v7997_v18 = vld [vmem:[#allocation11 + $0x2f4] sm:$0xf0] }
 0x1b7   :  { %5489 = vmatpush.bf16.msra.mxu2 %v8192_v57  ;;  %v9790_v57 = vld [vmem:[#allocation11 + $0x154] sm:$0xf]  ;;  %v2388_v59 = vadd.f32 %v2387_v26, %v2375_v46  ;;  %v2389_v53 = vpop.f32.mrf.mxu2  ;;  %v10631_v23 = vpack.c.bf16 %v2614_v16, %v2614_v16  ;;  %v7748_v38 = vor.u32 %v9776_v30, %v7745_v52  ;;  %v8028_v41 = vor.u32 %v9846_v33, %v8025_v35  ;;  %v9087_v1 = vld [vmem:[#allocation11 + $0xb60] sm:$0xf]  ;;  %v7661_v60 = vld [vmem:[#allocation11 + $0x54] sm:$0xf0] }
 0x1b8   :  { %v9762_v46 = vld [vmem:[#allocation11 + $0x74] sm:$0xf]  ;;  %v9755_v53 = vld [vmem:[#allocation11 + $0x3c] sm:$0xf]  ;;  %v10101_v16 = vld [vmem:[#allocation11 + $0xb08] sm:$0xf0] }
 0x1b9   :  { %5501 = vmatpush.bf16.msra.mxu3 %v8444_v49  ;;  %v10038_v49 = vld [vmem:[#allocation11 + $0x910] sm:$0xf0]  ;;  %v2401_v4 = vadd.f32 %v2400_v47, %v2388_v59  ;;  %v7689_v47 = vld [vmem:[#allocation11 + $0x8c] sm:$0xf0] }
 0x1ba   :  { %5516 = vmatpush.bf16.msrb.mxu0 %v8612_v62  ;;  %5527 = vmatpush.bf16.msrb.mxu1 %v8892_v0  ;;  %v8080_v62 = vor.u32 %v9863_v44, %v8079_v43  ;;  %v8332_v0 = vor.u32 %v9926_v29, %v8331_v48  ;;  %v8780_v6 = vor.u32 %v10038_v49, %v8779_v58  ;;  %v9832_v48 = vld [vmem:[#allocation11 + $0x2a4] sm:$0xf]  ;;  %v7969_v29 = vld [vmem:[#allocation11 + $0x2bc] sm:$0xf0]  ;;  %v10639_v58 = vld [vmem:[#allocation10] sm:$0xff] }
 0x1bb   :  { %5490 = vmatpush.bf16.msra.mxu2 %v8164_v17  ;;  %v9919_v17 = vld [vmem:[#allocation11 + $0x558] sm:$0xf0]  ;;  %v2615_v26 = vmax.f32 %v2401_v4, 0.0  ;;  %v7720_v44 = vor.u32 %v9769_v39, %v7717_v50  ;;  %v904_v49 = vperm.slane %v10639_v58, 4  ;;  %v7692_v59 = vor.u32 %v9762_v46, %v7689_v47  ;;  %v10094_v20 = vld [vmem:[#allocation11 + $0xad0] sm:$0xf0] }
 0x1bc   :  { %v8304_v24 = vor.u32 %v9919_v17, %v8303_v2  ;;  %v10014_v50 = vld [vmem:[#allocation11 + $0x854] sm:$0xf]  ;;  %v7857_v46 = vld [vmem:[#allocation11 + $0x1dc] sm:$0xf0] }
 0x1bd   :  { %5502 = vmatpush.bf16.msra.mxu3 %v8416_v5  ;;  %v9783_v5 = vld [vmem:[#allocation11 + $0x11c] sm:$0xf]  ;;  %v10634_v40 = vpack.c.bf16 %v2615_v26, %v2615_v26  ;;  %v2414_v2 = vadd.f32 %v10620_v61, %v904_v49  ;;  %v10021_v26 = vld [vmem:[#allocation11 + $0x88c] sm:$0xf] }
 0x1be   :  { %5517 = vmatpush.bf16.msrb.mxu0 %v8584_v8  ;;  %5528 = vmatpush.bf16.msrb.mxu1 %v8864_v14  ;;  %v7804_v8 = vor.u32 %v9790_v57, %v7801_v63  ;;  %v7773_v14 = vld [vmem:[#allocation11 + $0x134] sm:$0xf0]  ;;  %v9825_v63 = vld [vmem:[#allocation11 + $0x26c] sm:$0xf] }
 0x1bf   :  { %5491 = vmatpush.bf16.msra.mxu2 %v8136_v36  ;;  %v2402_v36 = vpop.f32.mrf.mxu3  ;;  %v2427_v10 = vadd.f32 %v10624_v27, %v2414_v2 }
 0x1c0   :  { %v8725_v36 = vld [vmem:[#allocation11 + $0x8a4] sm:$0xf0] }
 0x1c1   :  { %5503 = vmatpush.bf16.msra.mxu3 %v8388_v45  ;;  %v7776_v45 = vor.u32 %v9783_v5, %v7773_v14  ;;  %v7664_v5 = vor.u32 %v9755_v53, %v7661_v60  ;;  %v9003_v14 = vld [vmem:[#allocation11 + $0xab8] sm:$0xf]  ;;  %v8728_v39 = vor.u32 %v10021_v26, %v8725_v36  ;;  %v9881_v26 = vld [vmem:[#allocation11 + $0x42c] sm:$0xf] }
 0x1c2   :  { %5518 = vmatpush.bf16.msrb.mxu0 %v8556_v13  ;;  %5529 = vmatpush.bf16.msrb.mxu1 %v8836_v37  ;;  %v10122_v13 = vld [vmem:[#allocation11 + $0xbb0] sm:$0xf0]  ;;  %v9004_v21 = vor.u32 %v10094_v20, %v9003_v14  ;;  %v8669_v53 = vld [vmem:[#allocation11 + $0x834] sm:$0xf0] }
 0x1c3   :  { %5492 = vmatpush.bf16.msra.mxu2 %v8108_v15  ;;  %v9116_v37 = vor.u32 %v10122_v13, %v9115_v32  ;;  %v9839_v15 = vld [vmem:[#allocation11 + $0x2dc] sm:$0xf]  ;;  %v8975_v32 = vld [vmem:[#allocation11 + $0xa80] sm:$0xf] }
 0x1c4   :  { %v10087_v13 = vld [vmem:[#allocation11 + $0xa98] sm:$0xf0] }
 0x1c5   :  { %5504 = vmatpush.bf16.msra.mxu3 %v8360_v22  ;;  %v9088_v22 = vor.u32 %v10115_v42, %v9087_v1  ;;  %v8976_v27 = vor.u32 %v10087_v13, %v8975_v32  ;;  %v8277_v1 = vld [vmem:[#allocation11 + $0x524] sm:$0xf0]  ;;  %v9986_v32 = vld [vmem:[#allocation11 + $0x774] sm:$0xf]  ;;  %v8585_v13 = vld [vmem:[#allocation11 + $0x78c] sm:$0xf0] }
 0x1c6   :  { %5519 = vmatpush.bf16.msrb.mxu0 %v8528_v19  ;;  %5530 = vmatpush.bf16.msrb.mxu1 %v8808_v56  ;;  %v10637_v43 = vpop.f32.mrf.mxu0  ;;  %v8000_v19 = vor.u32 %v9839_v15, %v7997_v18  ;;  %v9059_v56 = vld [vmem:[#allocation11 + $0xb28] sm:$0xf]  ;;  %v9909_v18 = vld [vmem:[#allocation11 + $0x50c] sm:$0xf] }
 0x1c7   :  { %5493 = vmatpush.bf16.msra.mxu2 %v8080_v62  ;;  %v7972_v62 = vor.u32 %v9832_v48, %v7969_v29  ;;  %v8280_v47 = vor.u32 %v9909_v18, %v8277_v1  ;;  %v10185_v48 = vld [vmem:[#allocation11 + $0xda8] sm:$0xf0]  ;;  %v9902_v29 = vld [vmem:[#allocation11 + $0x4d4] sm:$0xf]  ;;  %v9979_v1 = vld [vmem:[#allocation11 + $0x73c] sm:$0xf] }
 0x1c9   :  { %5505 = vmatpush.bf16.msra.mxu3 %v8332_v0  ;;  %v9032_v0 = vor.u32 %v10101_v16, %v9031_v51  ;;  %v9895_v51 = vld [vmem:[#allocation11 + $0x49c] sm:$0xf] }
 0x1ca   :  { %5564 = vmatpush.bf16.msra.mxu0 %v7832_v55  ;;  %5531 = vmatpush.bf16.msrb.mxu1 %v8780_v6  ;;  %v10108_v55 = vld [vmem:[#allocation11 + $0xb40] sm:$0xf0] }
 0x1cb   :  { %5538 = vmatpush.bf16.msrb.mxu2 %v9172_v3  ;;  %v9060_v57 = vor.u32 %v10108_v55, %v9059_v56  ;;  %v9748_v6 = vld [vmem:[#allocation11 + $0x4] sm:$0xf]  ;;  %v8249_v55 = vld [vmem:[#allocation11 + $0x4ec] sm:$0xf0] }
 0x1cc   :  { %5494 = vmatmul.bf16.vlgmr.msra.gmra.mxu2 %v10631_v23 }
 0x1cd   :  { %5506 = vmatpush.bf16.msra.mxu3 %v8304_v24 }
 0x1ce   :  { %5565 = vmatpush.bf16.msra.mxu0 %v7804_v8  ;;  %5532 = vmatpush.bf16.msrb.mxu1 %v8752_v28  ;;  %v10643_v4 = vpop.f32.mrf.mxu1  ;;  %v2467_v17 = vpop.f32.mrf.mxu0  ;;  %v7944_v8 = vor.u32 %v9825_v63, %v7941_v34  ;;  %v7916_v28 = vor.u32 %v9818_v9, %v7913_v11  ;;  %v9339_v63 = vld [vmem:[#allocation11 + $0xd58] sm:$0xf]  ;;  %v10178_v34 = vld [vmem:[#allocation11 + $0xd70] sm:$0xf0] }
 0x1cf   :  { %5539 = vmatpush.bf16.msrb.mxu2 %v9144_v25  ;;  %v2439_v3 = vpop.f32.mrf.mxu2  ;;  %v7636_v25 = vor.u32 %v9748_v6, %v7633_v7  ;;  %v9340_v16 = vor.u32 %v10178_v34, %v9339_v63  ;;  %v10000_v17 = vld [vmem:[#allocation11 + $0x7e4] sm:$0xf]  ;;  %v9311_v6 = vld [vmem:[#allocation11 + $0xd20] sm:$0xf]  ;;  %v10171_v7 = vld [vmem:[#allocation11 + $0xd38] sm:$0xf0] }
 0x1d0   :  { %5507 = vmatmul.bf16.vlgmr.msra.gmra.mxu3 %v10634_v40  ;;  %v2440_v24 = vadd.f32 %v2439_v3, %v2427_v10  ;;  %v9312_v9 = vor.u32 %v10171_v7, %v9311_v6  ;;  %v8193_v10 = vld [vmem:[#allocation11 + $0x47c] sm:$0xf0]  ;;  %v9801_v63 = vld [vmem:[#allocation11 + $0x1a8] sm:$0xf0] }
 0x1d2   :  { %5566 = vmatpush.bf16.msra.mxu0 %v7776_v45  ;;  %5577 = vmatpush.bf16.msra.mxu1 %v8056_v31  ;;  %v9811_v45 = vld [vmem:[#allocation11 + $0x1fc] sm:$0xf]  ;;  %v7885_v31 = vld [vmem:[#allocation11 + $0x214] sm:$0xf0] }
 0x1d3   :  { %5540 = vmatpush.bf16.msrb.mxu2 %v9116_v37  ;;  %v2452_v61 = vpop.f32.mrf.mxu3  ;;  %v9395_v37 = vld [vmem:[#allocation11 + $0xdc8] sm:$0xf] }
 0x1d4   :  { %v2453_v30 = vadd.f32 %v2452_v61, %v2440_v24  ;;  %v8613_v24 = vld [vmem:[#allocation11 + $0x7c4] sm:$0xf0] }
 0x1d5   :  { %v9283_v61 = vld [vmem:[#allocation11 + $0xce8] sm:$0xf] }
 0x1d6   :  { %5567 = vmatpush.bf16.msra.mxu0 %v7748_v38  ;;  %5578 = vmatpush.bf16.msra.mxu1 %v8028_v41  ;;  %v2616_v52 = vmax.f32 %v2453_v30, 0.0  ;;  %v2480_v35 = vpop.f32.mrf.mxu1  ;;  %v10192_v38 = vld [vmem:[#allocation11 + $0xde0] sm:$0xf0]  ;;  %v7888_v41 = vor.u32 %v9811_v45, %v7885_v31  ;;  %v905_v45 = vperm.slane %v10639_v58, 5 }
 0x1d7   :  { %5541 = vmatpush.bf16.msrb.mxu2 %v9088_v22  ;;  %v2441_v33 = vpop.f32.mrf.mxu2  ;;  %v9396_v15 = vor.u32 %v10192_v38, %v9395_v37  ;;  %v8697_v22 = vld [vmem:[#allocation11 + $0x86c] sm:$0xf0] }
 0x1d8   :  { %v10646_v42 = vpack.c.bf16 %v2616_v52, %v2616_v52  ;;  %v8700_v49 = vor.u32 %v10014_v50, %v8697_v22  ;;  %v10157_v52 = vld [vmem:[#allocation11 + $0xcc8] sm:$0xf0]  ;;  %v9874_v33 = vld [vmem:[#allocation11 + $0x3f4] sm:$0xf]  ;;  %v8137_v37 = vld [vmem:[#allocation11 + $0x40c] sm:$0xf0]  ;;  %v2466_v38 = vadd.f32 %v10637_v43, %v905_v45 }
 0x1d9   :  { %5551 = vmatpush.bf16.msrb.mxu3 %v9396_v15  ;;  %v8140_v15 = vor.u32 %v9874_v33, %v8137_v37  ;;  %v8557_v22 = vld [vmem:[#allocation11 + $0x754] sm:$0xf0] }
 0x1da   :  { %5568 = vmatpush.bf16.msra.mxu0 %v7720_v44  ;;  %5579 = vmatpush.bf16.msra.mxu1 %v8000_v19  ;;  %v9804_v44 = vld [vmem:[#allocation11 + $0x1c4] sm:$0xf]  ;;  %v9367_v19 = vld [vmem:[#allocation11 + $0xd90] sm:$0xf]  ;;  %v8560_v43 = vor.u32 %v9979_v1, %v8557_v22  ;;  %v8445_v37 = vld [vmem:[#allocation11 + $0x674] sm:$0xf0] }
 0x1db   :  { %5542 = vmatpush.bf16.msrb.mxu2 %v9060_v57  ;;  %5520 = vmatmul.bf16.vlgmr.msrb.gmra.mxu0 %v10646_v42  ;;  %v9368_v56 = vor.u32 %v10185_v48, %v9367_v19  ;;  %v2454_v57 = vpop.f32.mrf.mxu3  ;;  %v7860_v60 = vor.u32 %v9804_v44, %v7857_v46  ;;  %v2479_v44 = vadd.f32 %v10643_v4, %v2466_v38  ;;  %v9227_v46 = vld [vmem:[#allocation11 + $0xc78] sm:$0xf]  ;;  %v9867_v19 = vld [vmem:[#allocation11 + $0x3bc] sm:$0xf]  ;;  %v9199_v4 = vld [vmem:[#allocation11 + $0xc40] sm:$0xf] }
 0x1dc   :  { %v8529_v57 = vld [vmem:[#allocation11 + $0x71c] sm:$0xf0]  ;;  %v9780_v1 = vld [vmem:[#allocation11 + $0x100] sm:$0xf0] }
 0x1dd   :  { %5552 = vmatpush.bf16.msrb.mxu3 %v9368_v56 }
 0x1de   :  { %5569 = vmatpush.bf16.msra.mxu0 %v7692_v59  ;;  %5580 = vmatpush.bf16.msra.mxu1 %v7972_v62  ;;  %v10007_v59 = vld [vmem:[#allocation11 + $0x81c] sm:$0xf]  ;;  %v8252_v62 = vor.u32 %v9902_v29, %v8249_v55  ;;  %v8109_v29 = vld [vmem:[#allocation11 + $0x3d4] sm:$0xf0]  ;;  %v9972_v55 = vld [vmem:[#allocation11 + $0x704] sm:$0xf] }
 0x1df   :  { %5543 = vmatpush.bf16.msrb.mxu2 %v9032_v0  ;;  %v8221_v0 = vld [vmem:[#allocation11 + $0x4b4] sm:$0xf0]  ;;  %v8672_v3 = vor.u32 %v10007_v59, %v8669_v53  ;;  %v8112_v59 = vor.u32 %v9867_v19, %v8109_v29  ;;  %v8532_v6 = vor.u32 %v9972_v55, %v8529_v57  ;;  %v9773_v55 = vld [vmem:[#allocation11 + $0xc8] sm:$0xf0] }
 0x1e0   :  { %v8224_v2 = vor.u32 %v9895_v51, %v8221_v0  ;;  %v10143_v51 = vld [vmem:[#allocation11 + $0xc58] sm:$0xf0] }
 0x1e1   :  { %5553 = vmatpush.bf16.msrb.mxu3 %v9340_v16  ;;  %v9860_v16 = vld [vmem:[#allocation11 + $0x384] sm:$0xf]  ;;  %v9200_v0 = vor.u32 %v10143_v51, %v9199_v4  ;;  %v7695_v4 = vld [vmem:[#allocation11 + $0x78] sm:$0xf]  ;;  %v9766_v51 = vld [vmem:[#allocation11 + $0x90] sm:$0xf0] }
 0x1e2   :  { %5570 = vmatpush.bf16.msra.mxu0 %v7664_v5  ;;  %5581 = vmatpush.bf16.msra.mxu1 %v7944_v8  ;;  %v8641_v5 = vld [vmem:[#allocation11 + $0x7fc] sm:$0xf0]  ;;  %v9888_v8 = vld [vmem:[#allocation11 + $0x464] sm:$0xf] }
 0x1e3   :  { %5544 = vmatpush.bf16.msrb.mxu2 %v9004_v21  ;;  %v8644_v11 = vor.u32 %v10000_v17, %v8641_v5  ;;  %v8196_v14 = vor.u32 %v9888_v8, %v8193_v10  ;;  %v9993_v21 = vld [vmem:[#allocation11 + $0x7ac] sm:$0xf]  ;;  %v10070_v10 = vld [vmem:[#allocation11 + $0xa14] sm:$0xf] }
 0x1e4   :  { %v8616_v30 = vor.u32 %v9993_v21, %v8613_v24  ;;  %v8921_v24 = vld [vmem:[#allocation11 + $0xa2c] sm:$0xf0] }
 0x1e5   :  { %5554 = vmatpush.bf16.msrb.mxu3 %v9312_v9 }
 0x1e6   :  { %5571 = vmatpush.bf16.msra.mxu0 %v7636_v25  ;;  %5582 = vmatpush.bf16.msra.mxu1 %v7916_v28  ;;  %v10649_v20 = vpop.f32.mrf.mxu0  ;;  %v10164_v25 = vld [vmem:[#allocation11 + $0xd00] sm:$0xf0]  ;;  %v8165_v28 = vld [vmem:[#allocation11 + $0x444] sm:$0xf0] }
 0x1e7   :  { %5545 = vmatpush.bf16.msrb.mxu2 %v8976_v27  ;;  %v9284_v36 = vor.u32 %v10164_v25, %v9283_v61  ;;  %v8168_v31 = vor.u32 %v9881_v26, %v8165_v28  ;;  %v9255_v27 = vld [vmem:[#allocation11 + $0xcb0] sm:$0xf]  ;;  %v7807_v61 = vld [vmem:[#allocation11 + $0x158] sm:$0xf]  ;;  %v9794_v25 = vld [vmem:[#allocation11 + $0x170] sm:$0xf0] }
 0x1e8   :  { %v9256_v35 = vor.u32 %v10157_v52, %v9255_v27  ;;  %v8473_v28 = vld [vmem:[#allocation11 + $0x6ac] sm:$0xf0]  ;;  %v7779_v27 = vld [vmem:[#allocation11 + $0x120] sm:$0xf]  ;;  %v9787_v52 = vld [vmem:[#allocation11 + $0x138] sm:$0xf0] }
 0x1e9   :  { %5555 = vmatpush.bf16.msrb.mxu3 %v9284_v36  ;;  %v9958_v36 = vld [vmem:[#allocation11 + $0x694] sm:$0xf] }
 0x1ea   :  { %5616 = vmatpush.bf16.msrb.mxu0 %v8728_v39  ;;  %5583 = vmatpush.bf16.msra.mxu1 %v7888_v41  ;;  %v8588_v41 = vor.u32 %v9986_v32, %v8585_v13  ;;  %v10063_v32 = vld [vmem:[#allocation11 + $0x9dc] sm:$0xf]  ;;  %v8893_v13 = vld [vmem:[#allocation11 + $0x9f4] sm:$0xf0]  ;;  %v8476_v33 = vor.u32 %v9958_v36, %v8473_v28 }
 0x1eb   :  { %5590 = vmatpush.bf16.msra.mxu2 %v8280_v47  ;;  %5572 = vmatmul.bf16.vlgmr.msra.gmra.mxu0 %v10611_v12  ;;  %v10150_v47 = vld [vmem:[#allocation11 + $0xc90] sm:$0xf0]  ;;  %v8896_v38 = vor.u32 %v10063_v32, %v8893_v13  ;;  %v7639_v32 = vld [vmem:[#allocation11 + $0x8] sm:$0xf]  ;;  %v9752_v13 = vld [vmem:[#allocation11 + $0x20] sm:$0xf0] }
 0x1ec   :  { %v9228_v48 = vor.u32 %v10150_v47, %v9227_v46  ;;  %v8417_v46 = vld [vmem:[#allocation11 + $0x63c] sm:$0xf0] }
 0x1ed   :  { %5556 = vmatpush.bf16.msrb.mxu3 %v9256_v35  ;;  %v9951_v35 = vld [vmem:[#allocation11 + $0x65c] sm:$0xf] }
 0x1ee   :  { %5617 = vmatpush.bf16.msrb.mxu0 %v8700_v49  ;;  %5584 = vmatpush.bf16.msra.mxu1 %v7860_v60  ;;  %v10654_v50 = vpop.f32.mrf.mxu1  ;;  %v2519_v18 = vpop.f32.mrf.mxu0  ;;  %v10077_v49 = vld [vmem:[#allocation11 + $0xa4c] sm:$0xf]  ;;  %v8949_v60 = vld [vmem:[#allocation11 + $0xa64] sm:$0xf0]  ;;  %v8448_v22 = vor.u32 %v9951_v35, %v8445_v37  ;;  %v8059_v35 = vld [vmem:[#allocation11 + $0x350] sm:$0xf] }
 0x1ef   :  { %5591 = vmatpush.bf16.msra.mxu2 %v8252_v62  ;;  %v2491_v39 = vpop.f32.mrf.mxu2  ;;  %v7835_v62 = vld [vmem:[#allocation11 + $0x190] sm:$0xf]  ;;  %v8952_v8 = vor.u32 %v10077_v49, %v8949_v60  ;;  %v7751_v18 = vld [vmem:[#allocation11 + $0xe8] sm:$0xf]  ;;  %v9937_v49 = vld [vmem:[#allocation11 + $0x5ec] sm:$0xf] }
 0x1f0   :  { %v2492_v56 = vadd.f32 %v2491_v39, %v2479_v44  ;;  %v7836_v9 = vor.u32 %v9801_v63, %v7835_v62  ;;  %v7780_v39 = vor.u32 %v9787_v52, %v7779_v27  ;;  %v9944_v44 = vld [vmem:[#allocation11 + $0x624] sm:$0xf]  ;;  %v7752_v19 = vor.u32 %v9780_v1, %v7751_v18  ;;  %v10042_v63 = vld [vmem:[#allocation11 + $0x934] sm:$0xf]  ;;  %v9857_v37 = vld [vmem:[#allocation11 + $0x368] sm:$0xf0] }
 0x1f1   :  { %5557 = vmatpush.bf16.msrb.mxu3 %v9228_v48  ;;  %v10049_v48 = vld [vmem:[#allocation11 + $0x96c] sm:$0xf]  ;;  %v8420_v57 = vor.u32 %v9944_v44, %v8417_v46  ;;  %v8060_v44 = vor.u32 %v9857_v37, %v8059_v35  ;;  %v9916_v46 = vld [vmem:[#allocation11 + $0x544] sm:$0xf] }
 0x1f2   :  { %5618 = vmatpush.bf16.msrb.mxu0 %v8672_v3 }
 0x1f3   :  { %5592 = vmatpush.bf16.msra.mxu2 %v8224_v2  ;;  %v2504_v53 = vpop.f32.mrf.mxu3  ;;  %v8081_v2 = vld [vmem:[#allocation11 + $0x39c] sm:$0xf0] }
 0x1f4   :  { %v2505_v34 = vadd.f32 %v2504_v53, %v2492_v56  ;;  %v8084_v7 = vor.u32 %v9860_v16, %v8081_v2  ;;  %v8837_v56 = vld [vmem:[#allocation11 + $0x984] sm:$0xf0]  ;;  %v906_v53 = vperm.slane %v10639_v58, 6  ;;  %v8361_v2 = vld [vmem:[#allocation11 + $0x5cc] sm:$0xf0] }
 0x1f5   :  { %5558 = vmatpush.bf16.msrb.mxu3 %v9200_v0  ;;  %v8840_v60 = vor.u32 %v10049_v48, %v8837_v56  ;;  %v9930_v0 = vld [vmem:[#allocation11 + $0x5b4] sm:$0xf] }
 0x1f6   :  { %5619 = vmatpush.bf16.msrb.mxu0 %v8644_v11  ;;  %v2617_v3 = vmax.f32 %v2505_v34, 0.0  ;;  %v2532_v5 = vpop.f32.mrf.mxu1  ;;  %v9965_v11 = vld [vmem:[#allocation11 + $0x6cc] sm:$0xf]  ;;  %v8809_v34 = vld [vmem:[#allocation11 + $0x94c] sm:$0xf0] }
 0x1f7   :  { %5593 = vmatpush.bf16.msra.mxu2 %v8196_v14  ;;  %v2493_v17 = vpop.f32.mrf.mxu2  ;;  %v8501_v14 = vld [vmem:[#allocation11 + $0x6e4] sm:$0xf0] }
 0x1f8   :  { %v10657_v21 = vpack.c.bf16 %v2617_v3, %v2617_v3  ;;  %v8504_v26 = vor.u32 %v9965_v11, %v8501_v14  ;;  %v2518_v3 = vadd.f32 %v10649_v20, %v906_v53  ;;  %v7667_v11 = vld [vmem:[#allocation11 + $0x40] sm:$0xf]  ;;  %v9759_v14 = vld [vmem:[#allocation11 + $0x58] sm:$0xf0]  ;;  %v10018_v53 = vld [vmem:[#allocation11 + $0x870] sm:$0xf0] }
 0x1f9   :  { %v7668_v28 = vor.u32 %v9759_v14, %v7667_v11  ;;  %v9836_v11 = vld [vmem:[#allocation11 + $0x2c0] sm:$0xf0]  ;;  %v9089_v14 = vld [vmem:[#allocation11 + $0xb7c] sm:$0xf0] }
 0x1fa   :  { %5620 = vmatpush.bf16.msrb.mxu0 %v8616_v30  ;;  %5533 = vmatmul.bf16.vlgmr.msrb.gmra.mxu1 %v10657_v21  ;;  %v8924_v30 = vor.u32 %v10070_v10, %v8921_v24  ;;  %v8781_v10 = vld [vmem:[#allocation11 + $0x914] sm:$0xf0]  ;;  %v8364_v24 = vor.u32 %v9930_v0, %v8361_v2  ;;  %v9843_v0 = vld [vmem:[#allocation11 + $0x2f8] sm:$0xf0] }
 0x1fb   :  { %5594 = vmatpush.bf16.msra.mxu2 %v8168_v31  ;;  %5629 = vmatpush.bf16.msrb.mxu1 %v8952_v8  ;;  %v2506_v45 = vpop.f32.mrf.mxu3  ;;  %v7808_v31 = vor.u32 %v9794_v25, %v7807_v61  ;;  %v10035_v8 = vld [vmem:[#allocation11 + $0x8fc] sm:$0xf]  ;;  %v2531_v61 = vadd.f32 %v10654_v50, %v2518_v3  ;;  %v8731_v50 = vld [vmem:[#allocation11 + $0x890] sm:$0xf]  ;;  %v9117_v2 = vld [vmem:[#allocation11 + $0xbb4] sm:$0xf0] }
 0x1fc   :  { %5603 = vmatpush.bf16.msra.mxu3 %v8504_v26  ;;  %v9923_v25 = vld [vmem:[#allocation11 + $0x57c] sm:$0xf]  ;;  %v8333_v26 = vld [vmem:[#allocation11 + $0x594] sm:$0xf0]  ;;  %v8784_v20 = vor.u32 %v10035_v8, %v8781_v10  ;;  %v10028_v45 = vld [vmem:[#allocation11 + $0x8c4] sm:$0xf] }
 0x1fd   :  { %v8336_v27 = vor.u32 %v9923_v25, %v8333_v26  ;;  %v8675_v3 = vld [vmem:[#allocation11 + $0x820] sm:$0xf]  ;;  %v7975_v10 = vld [vmem:[#allocation11 + $0x2a8] sm:$0xf] }
 0x1fe   :  { %5621 = vmatpush.bf16.msrb.mxu0 %v8588_v41  ;;  %v10056_v41 = vld [vmem:[#allocation11 + $0x9a4] sm:$0xf]  ;;  %v7976_v26 = vor.u32 %v9836_v11, %v7975_v10  ;;  %v8283_v10 = vld [vmem:[#allocation11 + $0x510] sm:$0xf]  ;;  %v9913_v11 = vld [vmem:[#allocation11 + $0x528] sm:$0xf0] }
 0x1ff   :  { %5595 = vmatpush.bf16.msra.mxu2 %v8140_v15  ;;  %5630 = vmatpush.bf16.msrb.mxu1 %v8924_v30  ;;  %v8865_v15 = vld [vmem:[#allocation11 + $0x9bc] sm:$0xf0] }
 0x200   :  { %5604 = vmatpush.bf16.msra.mxu3 %v8476_v33  ;;  %v8868_v47 = vor.u32 %v10056_v41, %v8865_v15  ;;  %v10133_v33 = vld [vmem:[#allocation11 + $0xc0c] sm:$0xf]  ;;  %v10674_v25 = vld [vmem:[#allocation13] sm:$0xff] }
 0x202   :  { %5622 = vmatpush.bf16.msrb.mxu0 %v8560_v43  ;;  %v7723_v43 = vld [vmem:[#allocation11 + $0xb0] sm:$0xf] }
 0x203   :  { %5596 = vmatpush.bf16.msra.mxu2 %v8112_v59  ;;  %5631 = vmatpush.bf16.msrb.mxu1 %v8896_v38  ;;  %v8389_v59 = vld [vmem:[#allocation11 + $0x604] sm:$0xf0]  ;;  %v7724_v62 = vor.u32 %v9773_v55, %v7723_v43  ;;  %v10126_v43 = vld [vmem:[#allocation11 + $0xbd4] sm:$0xf]  ;;  %v8031_v55 = vld [vmem:[#allocation11 + $0x318] sm:$0xf] }
 0x204   :  { %5605 = vmatpush.bf16.msra.mxu3 %v8448_v22  ;;  %v8392_v16 = vor.u32 %v9937_v49, %v8389_v59  ;;  %v9173_v38 = vld [vmem:[#allocation11 + $0xc24] sm:$0xf0]  ;;  %v7640_v22 = vor.u32 %v9752_v13, %v7639_v32  ;;  %v9145_v49 = vld [vmem:[#allocation11 + $0xbec] sm:$0xf0]  ;;  %v8703_v59 = vld [vmem:[#allocation11 + $0x858] sm:$0xf] }
 0x205   :  { %v9176_v48 = vor.u32 %v10133_v33, %v9173_v38  ;;  %v9061_v32 = vld [vmem:[#allocation11 + $0xb44] sm:$0xf0]  ;;  %v8619_v13 = vld [vmem:[#allocation11 + $0x7b0] sm:$0xf]  ;;  %v907_v33 = vperm.slane %v10639_v58, 7 }
 0x206   :  { %5623 = vmatpush.bf16.msrb.mxu0 %v8532_v6  ;;  %v10661_v29 = vpop.f32.mrf.mxu0  ;;  %v8812_v6 = vor.u32 %v10042_v63, %v8809_v34  ;;  %v9148_v34 = vor.u32 %v10126_v43, %v9145_v49  ;;  %v7891_v49 = vld [vmem:[#allocation11 + $0x200] sm:$0xf] }
 0x207   :  { %5597 = vmatpush.bf16.msra.mxu2 %v8084_v7  ;;  %5632 = vmatpush.bf16.msrb.mxu1 %v8868_v47  ;;  %v7696_v7 = vor.u32 %v9766_v51, %v7695_v4  ;;  %v8305_v47 = vld [vmem:[#allocation11 + $0x55c] sm:$0xf0]  ;;  %v8704_v4 = vor.u32 %v10018_v53, %v8703_v59  ;;  %v10119_v51 = vld [vmem:[#allocation11 + $0xb9c] sm:$0xf] }
 0x208   :  { %5606 = vmatpush.bf16.msra.mxu3 %v8420_v57  ;;  %v9850_v57 = vld [vmem:[#allocation11 + $0x330] sm:$0xf0]  ;;  %v9815_v59 = vld [vmem:[#allocation11 + $0x218] sm:$0xf0] }
 0x209   :  { %5624 = vmatmul.bf16.vlgmr.msrb.gmra.mxu0 %v10646_v42  ;;  %v8032_v63 = vor.u32 %v9850_v57, %v8031_v55  ;;  %v10091_v57 = vld [vmem:[#allocation11 + $0xabc] sm:$0xf] }
 0x20a   :  { %5668 = vmatpush.bf16.msra.mxu0 %v7836_v9  ;;  %5585 = vmatmul.bf16.vlgmr.msra.gmra.mxu1 %v10615_v54 }
 0x20b   :  { %5633 = vmatpush.bf16.msrb.mxu1 %v8840_v60  ;;  %v8308_v60 = vor.u32 %v9916_v46, %v8305_v47 }
 0x20c   :  { %5607 = vmatpush.bf16.msra.mxu3 %v8392_v16  ;;  %v8003_v16 = vld [vmem:[#allocation11 + $0x2e0] sm:$0xf] }
 0x20e   :  { %5669 = vmatpush.bf16.msra.mxu0 %v7808_v31  ;;  %v10666_v5 = vpop.f32.mrf.mxu1  ;;  %v2571_v9 = vpop.f32.mrf.mxu0  ;;  %v8753_v31 = vld [vmem:[#allocation11 + $0x8dc] sm:$0xf0] }
 0x20f   :  { %v2543_v17 = vpop.f32.mrf.mxu2  ;;  %5634 = vmatpush.bf16.msrb.mxu1 %v8812_v6  ;;  %v8756_v1 = vor.u32 %v10028_v45, %v8753_v31  ;;  %v8004_v6 = vor.u32 %v9843_v0, %v8003_v16  ;;  %v10112_v9 = vld [vmem:[#allocation11 + $0xb64] sm:$0xf]  ;;  %v10105_v45 = vld [vmem:[#allocation11 + $0xb2c] sm:$0xf]  ;;  %v7863_v16 = vld [vmem:[#allocation11 + $0x1c8] sm:$0xf] }
 0x210   :  { %v2544_v36 = vadd.f32 %v2543_v17, %v2531_v61  ;;  %5608 = vmatpush.bf16.msra.mxu3 %v8364_v24  ;;  %v10011_v17 = vld [vmem:[#allocation11 + $0x838] sm:$0xf0]  ;;  %v8647_v24 = vld [vmem:[#allocation11 + $0x7e8] sm:$0xf]  ;;  %v10004_v61 = vld [vmem:[#allocation11 + $0x800] sm:$0xf0]  ;;  %v9064_v37 = vor.u32 %v10105_v45, %v9061_v32 }
 0x211   :  { %v8676_v8 = vor.u32 %v10011_v17, %v8675_v3  ;;  %v9829_v31 = vld [vmem:[#allocation11 + $0x288] sm:$0xf0]  ;;  %v9808_v17 = vld [vmem:[#allocation11 + $0x1e0] sm:$0xf0]  ;;  %v7837_v45 = vld [vmem:[#allocation11 + $0x1ac] sm:$0xf0] }
 0x212   :  { %5670 = vmatpush.bf16.msra.mxu0 %v7780_v39  ;;  %v10025_v39 = vld [vmem:[#allocation11 + $0x8a8] sm:$0xf0] }
 0x213   :  { %v2556_v30 = vpop.f32.mrf.mxu3  ;;  %5635 = vmatpush.bf16.msrb.mxu1 %v8784_v20  ;;  %v8732_v56 = vor.u32 %v10025_v39, %v8731_v50  ;;  %v9092_v20 = vor.u32 %v10112_v9, %v9089_v14  ;;  %v10098_v50 = vld [vmem:[#allocation11 + $0xaf4] sm:$0xf]  ;;  %v7919_v39 = vld [vmem:[#allocation11 + $0x238] sm:$0xf]  ;;  %v10189_v9 = vld [vmem:[#allocation11 + $0xdcc] sm:$0xf] }
 0x214   :  { %v2557_v52 = vadd.f32 %v2556_v30, %v2544_v36  ;;  %5609 = vmatpush.bf16.msra.mxu3 %v8336_v27  ;;  %v7947_v30 = vld [vmem:[#allocation11 + $0x270] sm:$0xf]  ;;  %v9997_v27 = vld [vmem:[#allocation11 + $0x7c8] sm:$0xf0] }
 0x215   :  { %v7948_v35 = vor.u32 %v9829_v31, %v7947_v30  ;;  %v8620_v38 = vor.u32 %v9997_v27, %v8619_v13  ;;  %v8955_v14 = vld [vmem:[#allocation11 + $0xa50] sm:$0xf]  ;;  %v8284_v27 = vor.u32 %v9913_v11, %v8283_v10 }
 0x216   :  { %5671 = vmatpush.bf16.msra.mxu0 %v7752_v19  ;;  %v2618_v41 = vmax.f32 %v2557_v52, 0.0  ;;  %v2584_v18 = vpop.f32.mrf.mxu1  ;;  %v3142_v52 = vperm.slane %v10674_v25, 0  ;;  %v8171_v11 = vld [vmem:[#allocation11 + $0x430] sm:$0xf] }
 0x217   :  { %v2545_v15 = vpop.f32.mrf.mxu2  ;;  %5636 = vmatpush.bf16.msrb.mxu1 %v8756_v1  ;;  %v8591_v18 = vld [vmem:[#allocation11 + $0x778] sm:$0xf]  ;;  %v9990_v1 = vld [vmem:[#allocation11 + $0x790] sm:$0xf0] }
 0x218   :  { %v10669_v19 = vpack.c.bf16 %v2618_v41, %v2618_v41  ;;  %5610 = vmatpush.bf16.msra.mxu3 %v8308_v60  ;;  %v9822_v41 = vld [vmem:[#allocation11 + $0x250] sm:$0xf0]  ;;  %v9033_v15 = vld [vmem:[#allocation11 + $0xb0c] sm:$0xf0]  ;;  %v8592_v55 = vor.u32 %v9990_v1, %v8591_v18  ;;  %v9005_v60 = vld [vmem:[#allocation11 + $0xad4] sm:$0xf0] }
 0x219   :  { %v7920_v58 = vor.u32 %v9822_v41, %v7919_v39  ;;  %v9036_v43 = vor.u32 %v10098_v50, %v9033_v15  ;;  %v9906_v50 = vld [vmem:[#allocation11 + $0x4f0] sm:$0xf0]  ;;  %v8927_v39 = vld [vmem:[#allocation11 + $0xa18] sm:$0xf]  ;;  %v9791_v15 = vld [vmem:[#allocation11 + $0x15c] sm:$0xf] }
 0x21a   :  { %5672 = vmatpush.bf16.msra.mxu0 %v7724_v62  ;;  %5546 = vmatmul.bf16.vlgmr.msrb.gmra.mxu2 %v10669_v19  ;;  %v10074_v41 = vld [vmem:[#allocation11 + $0xa30] sm:$0xf0]  ;;  %v7809_v18 = vld [vmem:[#allocation11 + $0x174] sm:$0xf0] }
 0x21b   :  { %5681 = vmatpush.bf16.msra.mxu1 %v8060_v44  ;;  %v2558_v62 = vpop.f32.mrf.mxu3  ;;  %5642 = vmatpush.bf16.msrb.mxu2 %v9176_v48  ;;  %v2570_v44 = vadd.f32 %v10661_v29, %v907_v33  ;;  %v8563_v29 = vld [vmem:[#allocation11 + $0x740] sm:$0xf]  ;;  %v9369_v33 = vld [vmem:[#allocation11 + $0xdac] sm:$0xf0] }
 0x21c   :  { %5637 = vmatmul.bf16.vlgmr.msrb.gmra.mxu1 %v10657_v21  ;;  %v9983_v62 = vld [vmem:[#allocation11 + $0x758] sm:$0xf0] }
 0x21d   :  { %v2583_v53 = vadd.f32 %v10666_v5, %v2570_v44  ;;  %v8564_v3 = vor.u32 %v9983_v62, %v8563_v29  ;;  %v9397_v5 = vld [vmem:[#allocation11 + $0xde4] sm:$0xf0]  ;;  %v10168_v62 = vld [vmem:[#allocation11 + $0xd24] sm:$0xf] }
 0x21e   :  { %5673 = vmatpush.bf16.msra.mxu0 %v7696_v7  ;;  %v9120_v7 = vor.u32 %v10119_v51, %v9117_v2  ;;  %v8977_v51 = vld [vmem:[#allocation11 + $0xa9c] sm:$0xf0]  ;;  %v9008_v2 = vor.u32 %v10091_v57, %v9005_v60  ;;  %v9400_v13 = vor.u32 %v10189_v9, %v9397_v5  ;;  %v9285_v9 = vld [vmem:[#allocation11 + $0xd04] sm:$0xf0] }
 0x21f   :  { %5682 = vmatpush.bf16.msra.mxu1 %v8032_v63  ;;  %5643 = vmatpush.bf16.msrb.mxu2 %v9148_v34  ;;  %v7892_v34 = vor.u32 %v9815_v59, %v7891_v49  ;;  %v8899_v57 = vld [vmem:[#allocation11 + $0x9e0] sm:$0xf]  ;;  %v10067_v49 = vld [vmem:[#allocation11 + $0x9f8] sm:$0xf0]  ;;  %v9784_v59 = vld [vmem:[#allocation11 + $0x124] sm:$0xf] }
 0x222   :  { %5674 = vmatpush.bf16.msra.mxu0 %v7668_v28  ;;  %v8648_v28 = vor.u32 %v10004_v61, %v8647_v24  ;;  %v10081_v24 = vld [vmem:[#allocation11 + $0xa68] sm:$0xf0] }
 0x223   :  { %5683 = vmatpush.bf16.msra.mxu1 %v8004_v6  ;;  %5644 = vmatpush.bf16.msrb.mxu2 %v9120_v7  ;;  %v8535_v6 = vld [vmem:[#allocation11 + $0x708] sm:$0xf]  ;;  %v9976_v7 = vld [vmem:[#allocation11 + $0x720] sm:$0xf0] }
 0x224   :  { %v8536_v31 = vor.u32 %v9976_v7, %v8535_v6 }
 0x226   :  { %5675 = vmatpush.bf16.msra.mxu0 %v7640_v22  ;;  %v5469_v36 = vpop.f32.mrf.mxu0 }
 0x227   :  { %5684 = vmatpush.bf16.msra.mxu1 %v7976_v26  ;;  %5645 = vmatpush.bf16.msrb.mxu2 %v9092_v20  ;;  %v5470_v22 = vadd.f32 %v5469_v36, %v3142_v52  ;;  %v7864_v20 = vor.u32 %v9808_v17, %v7863_v16  ;;  %v10182_v52 = vld [vmem:[#allocation11 + $0xd94] sm:$0xf]  ;;  %v9892_v16 = vld [vmem:[#allocation11 + $0x480] sm:$0xf0]  ;;  %v7753_v17 = vld [vmem:[#allocation11 + $0x104] sm:$0xf0] }
 0x229   :  { %5676 = vmatmul.bf16.vlgmr.msra.gmra.mxu0 %v10611_v12 }
 0x22a   :  { %5720 = vmatpush.bf16.msrb.mxu0 %v8732_v56  ;;  %5598 = vmatmul.bf16.vlgmr.msra.gmra.mxu2 %v10631_v23 }
 0x22b   :  { %5685 = vmatpush.bf16.msra.mxu1 %v7948_v35  ;;  %5646 = vmatpush.bf16.msrb.mxu2 %v9064_v37  ;;  %v8956_v35 = vor.u32 %v10081_v24, %v8955_v14  ;;  %v9885_v14 = vld [vmem:[#allocation11 + $0x448] sm:$0xf0]  ;;  %v8843_v24 = vld [vmem:[#allocation11 + $0x970] sm:$0xf] }
 0x22e   :  { %5721 = vmatpush.bf16.msrb.mxu0 %v8704_v4  ;;  %v5482_v47 = vpop.f32.mrf.mxu1  ;;  %v5471_v56 = vpop.f32.mrf.mxu0  ;;  %v10084_v4 = vld [vmem:[#allocation11 + $0xa84] sm:$0xf] }
 0x22f   :  { %v2595_v46 = vpop.f32.mrf.mxu2  ;;  %v10680_v48 = vadd.f32 %v5482_v47, %v5470_v22  ;;  %5686 = vmatpush.bf16.msra.mxu1 %v7920_v58  ;;  %5647 = vmatpush.bf16.msrb.mxu2 %v9036_v43  ;;  %v8980_v30 = vor.u32 %v10084_v4, %v8977_v51  ;;  %v9372_v22 = vor.u32 %v10182_v52, %v9369_v33  ;;  %v9341_v47 = vld [vmem:[#allocation11 + $0xd74] sm:$0xf0]  ;;  %v8227_v43 = vld [vmem:[#allocation11 + $0x4a0] sm:$0xf]  ;;  %v8199_v51 = vld [vmem:[#allocation11 + $0x468] sm:$0xf] }
 0x230   :  { %v2596_v63 = vadd.f32 %v2595_v46, %v2583_v53  ;;  %v10175_v46 = vld [vmem:[#allocation11 + $0xd5c] sm:$0xf]  ;;  %v8928_v58 = vor.u32 %v10074_v41, %v8927_v39  ;;  %v7812_v56 = vor.u32 %v9791_v15, %v7809_v18  ;;  %v7781_v53 = vld [vmem:[#allocation11 + $0x13c] sm:$0xf0]  ;;  %v8200_v7 = vor.u32 %v9892_v16, %v8199_v51  ;;  %v9878_v52 = vld [vmem:[#allocation11 + $0x410] sm:$0xf0] }
 0x231   :  { %v9344_v60 = vor.u32 %v10175_v46, %v9341_v47  ;;  %v7784_v4 = vor.u32 %v9784_v59, %v7781_v53  ;;  %v8815_v33 = vld [vmem:[#allocation11 + $0x938] sm:$0xf]  ;;  %v10147_v18 = vld [vmem:[#allocation11 + $0xc7c] sm:$0xf]  ;;  %v8115_v46 = vld [vmem:[#allocation11 + $0x3c0] sm:$0xf] }
 0x232   :  { %5722 = vmatpush.bf16.msrb.mxu0 %v8676_v8  ;;  %v9871_v47 = vld [vmem:[#allocation11 + $0x3d8] sm:$0xf0]  ;;  %v9201_v53 = vld [vmem:[#allocation11 + $0xc5c] sm:$0xf0]  ;;  %v10032_v51 = vld [vmem:[#allocation11 + $0x8e0] sm:$0xf0] }
 0x233   :  { %v2608_v0 = vpop.f32.mrf.mxu3  ;;  %5687 = vmatpush.bf16.msra.mxu1 %v7892_v34  ;;  %5648 = vmatpush.bf16.msrb.mxu2 %v9008_v2  ;;  %v8900_v34 = vor.u32 %v10067_v49, %v8899_v57  ;;  %v10060_v2 = vld [vmem:[#allocation11 + $0x9c0] sm:$0xf0]  ;;  %v8116_v59 = vor.u32 %v9871_v47, %v8115_v46  ;;  %v9749_v16 = vld [vmem:[#allocation11 + $0xc] sm:$0xf]  ;;  %v8005_v46 = vld [vmem:[#allocation11 + $0x2fc] sm:$0xf0] }
 0x234   :  { %v2609_v8 = vadd.f32 %v2608_v0, %v2596_v63  ;;  %v9313_v63 = vld [vmem:[#allocation11 + $0xd3c] sm:$0xf0]  ;;  %v8871_v0 = vld [vmem:[#allocation11 + $0x9a8] sm:$0xf]  ;;  %v10140_v57 = vld [vmem:[#allocation11 + $0xc44] sm:$0xf] }
 0x235   :  { %v9316_v6 = vor.u32 %v10168_v62, %v9313_v63  ;;  %v8872_v5 = vor.u32 %v10060_v2, %v8871_v0  ;;  %v7641_v0 = vld [vmem:[#allocation11 + $0x24] sm:$0xf0]  ;;  %v8507_v2 = vld [vmem:[#allocation11 + $0x6d0] sm:$0xf]  ;;  %v10008_v47 = vld [vmem:[#allocation11 + $0x824] sm:$0xf] }
 0x236   :  { %5723 = vmatpush.bf16.msrb.mxu0 %v8648_v28  ;;  %v2619_v61 = vmax.f32 %v2609_v8, 0.0  ;;  %v5484_v36 = vpop.f32.mrf.mxu1  ;;  %v9798_v28 = vld [vmem:[#allocation11 + $0x194] sm:$0xf]  ;;  %v10161_v8 = vld [vmem:[#allocation11 + $0xcec] sm:$0xf] }
 0x237   :  { %v2597_v26 = vpop.f32.mrf.mxu2  ;;  %v7840_v37 = vor.u32 %v9798_v28, %v7837_v45  ;;  %5688 = vmatpush.bf16.msra.mxu1 %v7864_v20  ;;  %5649 = vmatpush.bf16.msrb.mxu2 %v8980_v30  ;;  %v7725_v36 = vld [vmem:[#allocation11 + $0xcc] sm:$0xf0]  ;;  %v9288_v20 = vor.u32 %v10161_v8, %v9285_v9  ;;  %v8172_v28 = vor.u32 %v9885_v14, %v8171_v11  ;;  %v10154_v45 = vld [vmem:[#allocation11 + $0xcb4] sm:$0xf] }
 0x238   :  { %v10683_v32 = vpack.c.bf16 %v2619_v61, %v2619_v61  ;;  %v10053_v61 = vld [vmem:[#allocation11 + $0x988] sm:$0xf0]  ;;  %v9770_v26 = vld [vmem:[#allocation11 + $0xb4] sm:$0xf]  ;;  %v9257_v30 = vld [vmem:[#allocation11 + $0xccc] sm:$0xf0]  ;;  %v9204_v9 = vor.u32 %v10140_v57, %v9201_v53 }
 0x239   :  { %v9260_v41 = vor.u32 %v10154_v45, %v9257_v30  ;;  %v9854_v8 = vld [vmem:[#allocation11 + $0x354] sm:$0xf]  ;;  %v8733_v14 = vld [vmem:[#allocation11 + $0x8ac] sm:$0xf0]  ;;  %v9948_v57 = vld [vmem:[#allocation11 + $0x640] sm:$0xf0] }
 0x23a   :  { %5724 = vmatpush.bf16.msrb.mxu0 %v8620_v38  ;;  %v8255_v38 = vld [vmem:[#allocation11 + $0x4d8] sm:$0xf]  ;;  %5559 = vmatmul.bf16.vlgmr.msrb.gmra.mxu3 %v10683_v32  ;;  %v10022_v11 = vld [vmem:[#allocation11 + $0x894] sm:$0xf]  ;;  %v10116_v53 = vld [vmem:[#allocation11 + $0xb80] sm:$0xf0] }
 0x23b   :  { %v2610_v1 = vpop.f32.mrf.mxu3  ;;  %5655 = vmatpush.bf16.msrb.mxu3 %v9400_v13  ;;  %5694 = vmatpush.bf16.msra.mxu2 %v8284_v27  ;;  %v8256_v44 = vor.u32 %v9906_v50, %v8255_v38  ;;  %v7728_v13 = vor.u32 %v9770_v26, %v7725_v36  ;;  %v8143_v27 = vld [vmem:[#allocation11 + $0x3f8] sm:$0xf]  ;;  %v8736_v30 = vor.u32 %v10022_v11, %v8733_v14  ;;  %v8621_v11 = vld [vmem:[#allocation11 + $0x7cc] sm:$0xf0] }
 0x23c   :  { %5733 = vmatpush.bf16.msrb.mxu1 %v8956_v35  ;;  %5650 = vmatmul.bf16.vlgmr.msrb.gmra.mxu2 %v10669_v19  ;;  %v10046_v35 = vld [vmem:[#allocation11 + $0x950] sm:$0xf0]  ;;  %v7697_v38 = vld [vmem:[#allocation11 + $0x94] sm:$0xf0]  ;;  %v8144_v15 = vor.u32 %v9878_v52, %v8143_v27  ;;  %v9847_v27 = vld [vmem:[#allocation11 + $0x31c] sm:$0xf] }
 0x23d   :  { %5689 = vmatmul.bf16.vlgmr.msra.gmra.mxu1 %v10615_v54  ;;  %v9229_v1 = vld [vmem:[#allocation11 + $0xc94] sm:$0xf0] }
 0x23e   :  { %5725 = vmatpush.bf16.msrb.mxu0 %v8592_v55  ;;  %v9899_v55 = vld [vmem:[#allocation11 + $0x4b8] sm:$0xf0]  ;;  %v9232_v49 = vor.u32 %v10147_v18, %v9229_v1  ;;  %v9123_v1 = vld [vmem:[#allocation11 + $0xba0] sm:$0xf] }
 0x23f   :  { %5656 = vmatpush.bf16.msrb.mxu3 %v9372_v22  ;;  %5695 = vmatpush.bf16.msra.mxu2 %v8256_v44  ;;  %v8228_v29 = vor.u32 %v9899_v55, %v8227_v43  ;;  %v8816_v22 = vor.u32 %v10046_v35, %v8815_v33  ;;  %v9756_v43 = vld [vmem:[#allocation11 + $0x44] sm:$0xf]  ;;  %v7669_v55 = vld [vmem:[#allocation11 + $0x5c] sm:$0xf0]  ;;  %v8033_v33 = vld [vmem:[#allocation11 + $0x334] sm:$0xf0] }
 0x240   :  { %5734 = vmatpush.bf16.msrb.mxu1 %v8928_v58  ;;  %v8787_v58 = vld [vmem:[#allocation11 + $0x900] sm:$0xf]  ;;  %v10015_v35 = vld [vmem:[#allocation11 + $0x85c] sm:$0xf] }
 0x242   :  { %5726 = vmatpush.bf16.msrb.mxu0 %v8564_v3  ;;  %v9777_v3 = vld [vmem:[#allocation11 + $0xec] sm:$0xf] }
 0x243   :  { %5657 = vmatpush.bf16.msrb.mxu3 %v9344_v60  ;;  %5696 = vmatpush.bf16.msra.mxu2 %v8228_v29  ;;  %v7756_v10 = vor.u32 %v9777_v3, %v7753_v17  ;;  %v8087_v60 = vld [vmem:[#allocation11 + $0x388] sm:$0xf]  ;;  %v9864_v29 = vld [vmem:[#allocation11 + $0x3a0] sm:$0xf0]  ;;  %v9969_v3 = vld [vmem:[#allocation11 + $0x6e8] sm:$0xf0] }
 0x244   :  { %5735 = vmatpush.bf16.msrb.mxu1 %v8900_v34  ;;  %v7672_v34 = vor.u32 %v9756_v43, %v7669_v55  ;;  %v8508_v26 = vor.u32 %v9969_v3, %v8507_v2  ;;  %v8423_v55 = vld [vmem:[#allocation11 + $0x628] sm:$0xf]  ;;  %v8395_v2 = vld [vmem:[#allocation11 + $0x5f0] sm:$0xf]  ;;  %v9941_v3 = vld [vmem:[#allocation11 + $0x608] sm:$0xf0] }
 0x246   :  { %5727 = vmatpush.bf16.msrb.mxu0 %v8536_v31  ;;  %v8844_v31 = vor.u32 %v10053_v61, %v8843_v24  ;;  %v7644_v61 = vor.u32 %v9749_v16, %v7641_v0  ;;  %v8424_v16 = vor.u32 %v9948_v57, %v8423_v55 }
 0x247   :  { %5658 = vmatpush.bf16.msrb.mxu3 %v9316_v6  ;;  %5697 = vmatpush.bf16.msra.mxu2 %v8200_v7  ;;  %v9179_v6 = vld [vmem:[#allocation11 + $0xc10] sm:$0xf]  ;;  %v10137_v7 = vld [vmem:[#allocation11 + $0xc28] sm:$0xf0] }
 0x248   :  { %5736 = vmatpush.bf16.msrb.mxu1 %v8872_v5  ;;  %v8088_v5 = vor.u32 %v9864_v29, %v8087_v60  ;;  %v9180_v36 = vor.u32 %v10137_v7, %v9179_v6  ;;  %v9833_v60 = vld [vmem:[#allocation11 + $0x2ac] sm:$0xf]  ;;  %v9067_v7 = vld [vmem:[#allocation11 + $0xb30] sm:$0xf] }
 0x249   :  { %5728 = vmatmul.bf16.vlgmr.msrb.gmra.mxu0 %v10646_v42 }
 0x24a   :  { %5772 = vmatpush.bf16.msra.mxu0 %v7840_v37  ;;  %5611 = vmatmul.bf16.vlgmr.msra.gmra.mxu3 %v10634_v40  ;;  %v9763_v37 = vld [vmem:[#allocation11 + $0x7c] sm:$0xf] }
 0x24b   :  { %5659 = vmatpush.bf16.msrb.mxu3 %v9288_v20  ;;  %5698 = vmatpush.bf16.msra.mxu2 %v8172_v28  ;;  %v7700_v44 = vor.u32 %v9763_v37, %v7697_v38  ;;  %v8479_v20 = vld [vmem:[#allocation11 + $0x698] sm:$0xf]  ;;  %v9962_v28 = vld [vmem:[#allocation11 + $0x6b0] sm:$0xf0] }
 0x24c   :  { %5737 = vmatpush.bf16.msrb.mxu1 %v8844_v31  ;;  %v9151_v31 = vld [vmem:[#allocation11 + $0xbd8] sm:$0xf]  ;;  %v8480_v38 = vor.u32 %v9962_v28, %v8479_v20  ;;  %v10102_v28 = vld [vmem:[#allocation11 + $0xb10] sm:$0xf0] }
 0x24d   :  { %v8705_v37 = vld [vmem:[#allocation11 + $0x874] sm:$0xf0] }
 0x24e   :  { %5773 = vmatpush.bf16.msra.mxu0 %v7812_v56  ;;  %v10039_v56 = vld [vmem:[#allocation11 + $0x918] sm:$0xf0]  ;;  %v8708_v18 = vor.u32 %v10015_v35, %v8705_v37  ;;  %v9039_v20 = vld [vmem:[#allocation11 + $0xaf8] sm:$0xf]  ;;  %v8339_v35 = vld [vmem:[#allocation11 + $0x580] sm:$0xf] }
 0x24f   :  { %v5495_v50 = vpop.f32.mrf.mxu2  ;;  %5660 = vmatpush.bf16.msrb.mxu3 %v9260_v41  ;;  %5699 = vmatpush.bf16.msra.mxu2 %v8144_v15  ;;  %v8788_v63 = vor.u32 %v10039_v56, %v8787_v58  ;;  %v9955_v41 = vld [vmem:[#allocation11 + $0x678] sm:$0xf0]  ;;  %v8036_v15 = vor.u32 %v9847_v27, %v8033_v33  ;;  %v8677_v58 = vld [vmem:[#allocation11 + $0x83c] sm:$0xf0]  ;;  %v8593_v27 = vld [vmem:[#allocation11 + $0x794] sm:$0xf0]  ;;  %v9040_v33 = vor.u32 %v10102_v28, %v9039_v20 }
 0x250   :  { %v5496_v39 = vadd.f32 %v5495_v50, %v10680_v48  ;;  %5738 = vmatpush.bf16.msrb.mxu1 %v8816_v22  ;;  %v10123_v22 = vld [vmem:[#allocation11 + $0xbb8] sm:$0xf0]  ;;  %v7815_v20 = vld [vmem:[#allocation11 + $0x160] sm:$0xf] }
 0x251   :  { %v9124_v43 = vor.u32 %v10123_v22, %v9123_v1  ;;  %v9927_v37 = vld [vmem:[#allocation11 + $0x598] sm:$0xf0]  ;;  %v9980_v1 = vld [vmem:[#allocation11 + $0x744] sm:$0xf]  ;;  %v8565_v22 = vld [vmem:[#allocation11 + $0x75c] sm:$0xf0] }
 0x252   :  { %5774 = vmatpush.bf16.msra.mxu0 %v7784_v4  ;;  %v8759_v4 = vld [vmem:[#allocation11 + $0x8c8] sm:$0xf]  ;;  %v8568_v57 = vor.u32 %v9980_v1, %v8565_v22  ;;  %v9795_v28 = vld [vmem:[#allocation11 + $0x178] sm:$0xf0]  ;;  %v10172_v22 = vld [vmem:[#allocation11 + $0xd40] sm:$0xf0] }
 0x253   :  { %v5508_v48 = vpop.f32.mrf.mxu3  ;;  %5661 = vmatpush.bf16.msrb.mxu3 %v9232_v49  ;;  %5700 = vmatpush.bf16.msra.mxu2 %v8116_v59  ;;  %v8760_v24 = vor.u32 %v10032_v51, %v8759_v4  ;;  %v8680_v49 = vor.u32 %v10008_v47, %v8677_v58  ;;  %v9095_v59 = vld [vmem:[#allocation11 + $0xb68] sm:$0xf]  ;;  %v9920_v58 = vld [vmem:[#allocation11 + $0x560] sm:$0xf0] }
 0x254   :  { %v10691_v62 = vadd.f32 %v5508_v48, %v5496_v39  ;;  %5739 = vmatpush.bf16.msrb.mxu1 %v8788_v63  ;;  %v8451_v39 = vld [vmem:[#allocation11 + $0x660] sm:$0xf]  ;;  %v7977_v63 = vld [vmem:[#allocation11 + $0x2c4] sm:$0xf0]  ;;  %v9096_v0 = vor.u32 %v10116_v53, %v9095_v59  ;;  %v9973_v59 = vld [vmem:[#allocation11 + $0x70c] sm:$0xf] }
 0x255   :  { %v8452_v56 = vor.u32 %v9955_v41, %v8451_v39  ;;  %v8649_v4 = vld [vmem:[#allocation11 + $0x804] sm:$0xf0]  ;;  %v9011_v39 = vld [vmem:[#allocation11 + $0xac0] sm:$0xf]  ;;  %v10095_v41 = vld [vmem:[#allocation11 + $0xad8] sm:$0xf0] }
 0x256   :  { %5775 = vmatpush.bf16.msra.mxu0 %v7756_v10  ;;  %v8061_v10 = vld [vmem:[#allocation11 + $0x36c] sm:$0xf0]  ;;  %v9012_v47 = vor.u32 %v10095_v41, %v9011_v39  ;;  %v7787_v39 = vld [vmem:[#allocation11 + $0x128] sm:$0xf]  ;;  %v9788_v41 = vld [vmem:[#allocation11 + $0x140] sm:$0xf0] }
 0x257   :  { %v5497_v17 = vpop.f32.mrf.mxu2  ;;  %v8064_v45 = vor.u32 %v9854_v8, %v8061_v10  ;;  %5662 = vmatpush.bf16.msrb.mxu3 %v9204_v9  ;;  %5701 = vmatpush.bf16.msra.mxu2 %v8088_v5  ;;  %v10109_v8 = vld [vmem:[#allocation11 + $0xb48] sm:$0xf0]  ;;  %v9826_v9 = vld [vmem:[#allocation11 + $0x274] sm:$0xf]  ;;  %v7949_v5 = vld [vmem:[#allocation11 + $0x28c] sm:$0xf0] }
 0x258   :  { %5740 = vmatpush.bf16.msrb.mxu1 %v8760_v24  ;;  %v5521_v29 = vpop.f32.mrf.mxu0  ;;  %v7980_v17 = vor.u32 %v9833_v60, %v7977_v63  ;;  %v9994_v10 = vld [vmem:[#allocation11 + $0x7b4] sm:$0xf]  ;;  %v9068_v14 = vor.u32 %v10109_v8, %v9067_v7  ;;  %v8367_v24 = vld [vmem:[#allocation11 + $0x5b8] sm:$0xf]  ;;  %v8537_v60 = vld [vmem:[#allocation11 + $0x724] sm:$0xf0] }
 0x259   :  { %v10698_v51 = vadd.f32 %v5521_v29, %v10691_v62  ;;  %v8396_v62 = vor.u32 %v9941_v3, %v8395_v2  ;;  %v9403_v29 = vld [vmem:[#allocation11 + $0xdd0] sm:$0xf]  ;;  %v10193_v63 = vld [vmem:[#allocation11 + $0xde8] sm:$0xf0]  ;;  %v8540_v8 = vor.u32 %v9973_v59, %v8537_v60  ;;  %v9319_v1 = vld [vmem:[#allocation11 + $0xd28] sm:$0xf] }
 0x25a   :  { %5776 = vmatpush.bf16.msra.mxu0 %v7728_v13  ;;  %v10130_v13 = vld [vmem:[#allocation11 + $0xbf0] sm:$0xf0]  ;;  %5702 = vmatmul.bf16.vlgmr.msra.gmra.mxu2 %v10631_v23  ;;  %v8957_v3 = vld [vmem:[#allocation11 + $0xa6c] sm:$0xf0]  ;;  %v9320_v60 = vor.u32 %v10172_v22, %v9319_v1  ;;  %v10144_v22 = vld [vmem:[#allocation11 + $0xc60] sm:$0xf0] }
 0x25b   :  { %v5510_v52 = vpop.f32.mrf.mxu3  ;;  %5707 = vmatpush.bf16.msra.mxu3 %v8508_v26  ;;  %5746 = vmatpush.bf16.msrb.mxu2 %v9180_v36  ;;  %v9152_v50 = vor.u32 %v10130_v13, %v9151_v31  ;;  %v7952_v26 = vor.u32 %v9826_v9, %v7949_v5  ;;  %v8624_v36 = vor.u32 %v9994_v10, %v8621_v11  ;;  %v7921_v31 = vld [vmem:[#allocation11 + $0x254] sm:$0xf0]  ;;  %v9987_v13 = vld [vmem:[#allocation11 + $0x77c] sm:$0xf]  ;;  %v10186_v11 = vld [vmem:[#allocation11 + $0xdb0] sm:$0xf0] }
 0x25c   :  { %5785 = vmatpush.bf16.msra.mxu1 %v8064_v45  ;;  %5663 = vmatmul.bf16.vlgmr.msrb.gmra.mxu3 %v10683_v32  ;;  %v9819_v45 = vld [vmem:[#allocation11 + $0x23c] sm:$0xf]  ;;  %v9404_v9 = vor.u32 %v10193_v63, %v9403_v29  ;;  %v9375_v10 = vld [vmem:[#allocation11 + $0xd98] sm:$0xf]  ;;  %v9291_v63 = vld [vmem:[#allocation11 + $0xcf0] sm:$0xf] }
 0x25d   :  { %5741 = vmatmul.bf16.vlgmr.msrb.gmra.mxu1 %v10657_v21 }
 0x25e   :  { %5777 = vmatpush.bf16.msra.mxu0 %v7700_v44  ;;  %v9840_v44 = vld [vmem:[#allocation11 + $0x2e4] sm:$0xf] }
 0x25f   :  { %5708 = vmatpush.bf16.msra.mxu3 %v8480_v38  ;;  %5747 = vmatpush.bf16.msrb.mxu2 %v9152_v50  ;;  %v8008_v48 = vor.u32 %v9840_v44, %v8005_v46  ;;  %v7924_v38 = vor.u32 %v9819_v45, %v7921_v31  ;;  %v8596_v50 = vor.u32 %v9987_v13, %v8593_v27  ;;  %v8311_v44 = vld [vmem:[#allocation11 + $0x548] sm:$0xf]  ;;  %v9347_v13 = vld [vmem:[#allocation11 + $0xd60] sm:$0xf]  ;;  %v10179_v27 = vld [vmem:[#allocation11 + $0xd78] sm:$0xf0] }
 0x260   :  { %5786 = vmatpush.bf16.msra.mxu1 %v8036_v15  ;;  %v9812_v15 = vld [vmem:[#allocation11 + $0x204] sm:$0xf]  ;;  %v8340_v46 = vor.u32 %v9927_v37, %v8339_v35  ;;  %v8229_v37 = vld [vmem:[#allocation11 + $0x4bc] sm:$0xf0] }
 0x261   :  { %v9896_v35 = vld [vmem:[#allocation11 + $0x4a4] sm:$0xf] }
 0x262   :  { %5778 = vmatpush.bf16.msra.mxu0 %v7672_v34  ;;  %v10001_v34 = vld [vmem:[#allocation11 + $0x7ec] sm:$0xf] }
 0x263   :  { %5709 = vmatpush.bf16.msra.mxu3 %v8452_v56  ;;  %5748 = vmatpush.bf16.msrb.mxu2 %v9124_v43  ;;  %v8652_v6 = vor.u32 %v10001_v34, %v8649_v4  ;;  %v8983_v56 = vld [vmem:[#allocation11 + $0xa88] sm:$0xf]  ;;  %v10088_v43 = vld [vmem:[#allocation11 + $0xaa0] sm:$0xf0]  ;;  %v9910_v34 = vld [vmem:[#allocation11 + $0x514] sm:$0xf] }
 0x264   :  { %5787 = vmatpush.bf16.msra.mxu1 %v8008_v48  ;;  %v9805_v48 = vld [vmem:[#allocation11 + $0x1cc] sm:$0xf]  ;;  %v8285_v4 = vld [vmem:[#allocation11 + $0x52c] sm:$0xf0]  ;;  %v8984_v2 = vor.u32 %v10088_v43, %v8983_v56  ;;  %v8201_v56 = vld [vmem:[#allocation11 + $0x484] sm:$0xf0] }
 0x265   :  { %v8288_v5 = vor.u32 %v9910_v34, %v8285_v4  ;;  %v10057_v43 = vld [vmem:[#allocation11 + $0x9ac] sm:$0xf] }
 0x266   :  { %5779 = vmatpush.bf16.msra.mxu0 %v7644_v61  ;;  %v9934_v61 = vld [vmem:[#allocation11 + $0x5d0] sm:$0xf0]  ;;  %v10165_v34 = vld [vmem:[#allocation11 + $0xd08] sm:$0xf0] }
 0x267   :  { %5710 = vmatpush.bf16.msra.mxu3 %v8424_v16  ;;  %5749 = vmatpush.bf16.msrb.mxu2 %v9096_v0  ;;  %v8368_v52 = vor.u32 %v9934_v61, %v8367_v24  ;;  %v10078_v16 = vld [vmem:[#allocation11 + $0xa54] sm:$0xf]  ;;  %v8312_v0 = vor.u32 %v9920_v58, %v8311_v44  ;;  %v9903_v24 = vld [vmem:[#allocation11 + $0x4dc] sm:$0xf]  ;;  %v8257_v61 = vld [vmem:[#allocation11 + $0x4f4] sm:$0xf0] }
 0x268   :  { %5788 = vmatpush.bf16.msra.mxu1 %v7980_v17  ;;  %v7843_v17 = vld [vmem:[#allocation11 + $0x198] sm:$0xf]  ;;  %v8260_v31 = vor.u32 %v9903_v24, %v8257_v61  ;;  %v9889_v58 = vld [vmem:[#allocation11 + $0x46c] sm:$0xf]  ;;  %v10043_v61 = vld [vmem:[#allocation11 + $0x93c] sm:$0xf] }
 0x269   :  { %5780 = vmatmul.bf16.vlgmr.msra.gmra.mxu0 %v10611_v12  ;;  %v8204_v29 = vor.u32 %v9889_v58, %v8201_v56  ;;  %v8145_v24 = vld [vmem:[#allocation11 + $0x414] sm:$0xf0] }
 0x26a   :  { %5824 = vmatpush.bf16.msrb.mxu0 %v8736_v30  ;;  %v5523_v30 = vpop.f32.mrf.mxu0 }
 0x26b   :  { %5711 = vmatpush.bf16.msra.mxu3 %v8396_v62  ;;  %5750 = vmatpush.bf16.msrb.mxu2 %v9068_v14  ;;  %v8960_v62 = vor.u32 %v10078_v16, %v8957_v3  ;;  %v9376_v30 = vor.u32 %v10186_v11, %v9375_v10  ;;  %v10050_v3 = vld [vmem:[#allocation11 + $0x974] sm:$0xf] }
 0x26c   :  { %5789 = vmatpush.bf16.msra.mxu1 %v7952_v26  ;;  %v10071_v26 = vld [vmem:[#allocation11 + $0xa1c] sm:$0xf] }
 0x26e   :  { %5825 = vmatpush.bf16.msrb.mxu0 %v8708_v18  ;;  %v7893_v18 = vld [vmem:[#allocation11 + $0x21c] sm:$0xf0] }
 0x26f   :  { %5712 = vmatpush.bf16.msra.mxu3 %v8368_v52  ;;  %5751 = vmatpush.bf16.msrb.mxu2 %v9040_v33  ;;  %v7896_v55 = vor.u32 %v9812_v15, %v7893_v18  ;;  %v7816_v33 = vor.u32 %v9795_v28, %v7815_v20  ;;  %v9348_v15 = vor.u32 %v10179_v27, %v9347_v13  ;;  %v9767_v20 = vld [vmem:[#allocation11 + $0x98] sm:$0xf0]  ;;  %v3143_v28 = vperm.slane %v10674_v25, 1  ;;  %v9235_v13 = vld [vmem:[#allocation11 + $0xc80] sm:$0xf] }
 0x270   :  { %5790 = vmatpush.bf16.msra.mxu1 %v7924_v38  ;;  %v10064_v38 = vld [vmem:[#allocation11 + $0x9e4] sm:$0xf]  ;;  %v8232_v18 = vor.u32 %v9896_v35, %v8229_v37  ;;  %v10151_v27 = vld [vmem:[#allocation11 + $0xc98] sm:$0xf0]  ;;  %v8117_v37 = vld [vmem:[#allocation11 + $0x3dc] sm:$0xf0] }
 0x271   :  { %v9868_v35 = vld [vmem:[#allocation11 + $0x3c4] sm:$0xf] }
 0x272   :  { %5826 = vmatpush.bf16.msrb.mxu0 %v8680_v49  ;;  %v7865_v49 = vld [vmem:[#allocation11 + $0x1e4] sm:$0xf0]  ;;  %v10700_v53 = vpop.f32.mrf.mxu0  ;;  %v8120_v1 = vor.u32 %v9868_v35, %v8117_v37  ;;  %v9844_v37 = vld [vmem:[#allocation11 + $0x300] sm:$0xf0] }
 0x273   :  { %5713 = vmatpush.bf16.msra.mxu3 %v8340_v46  ;;  %5752 = vmatpush.bf16.msrb.mxu2 %v9012_v47  ;;  %v7868_v7 = vor.u32 %v9805_v48, %v7865_v49  ;;  %v7788_v46 = vor.u32 %v9788_v41, %v7787_v39  ;;  %v7759_v48 = vld [vmem:[#allocation11 + $0xf0] sm:$0xf]  ;;  %v9781_v49 = vld [vmem:[#allocation11 + $0x108] sm:$0xf0]  ;;  %v7675_v39 = vld [vmem:[#allocation11 + $0x48] sm:$0xf]  ;;  %v5574_v25 = vadd.f32 %v10700_v53, %v3143_v28 }
 0x274   :  { %5791 = vmatpush.bf16.msra.mxu1 %v7896_v55  ;;  %v7760_v16 = vor.u32 %v9781_v49, %v7759_v48  ;;  %v9760_v41 = vld [vmem:[#allocation11 + $0x60] sm:$0xf0]  ;;  %v7647_v48 = vld [vmem:[#allocation11 + $0x10] sm:$0xf]  ;;  %v8011_v35 = vld [vmem:[#allocation11 + $0x2e8] sm:$0xf] }
 0x275   :  { %v7676_v58 = vor.u32 %v9760_v41, %v7675_v39  ;;  %v8509_v53 = vld [vmem:[#allocation11 + $0x6ec] sm:$0xf0] }
 0x276   :  { %5827 = vmatpush.bf16.msrb.mxu0 %v8652_v6  ;;  %v9802_v6 = vld [vmem:[#allocation11 + $0x1b0] sm:$0xf0] }
 0x277   :  { %v7844_v14 = vor.u32 %v9802_v6, %v7843_v17  ;;  %5714 = vmatpush.bf16.msra.mxu3 %v8312_v0  ;;  %5753 = vmatpush.bf16.msrb.mxu2 %v8984_v2  ;;  %v5534_v47 = vpop.f32.mrf.mxu1  ;;  %v9882_v0 = vld [vmem:[#allocation11 + $0x434] sm:$0xf]  ;;  %v8173_v2 = vld [vmem:[#allocation11 + $0x44c] sm:$0xf0]  ;;  %v7731_v17 = vld [vmem:[#allocation11 + $0xb8] sm:$0xf] }
 0x278   :  { %5792 = vmatpush.bf16.msra.mxu1 %v7868_v7  ;;  %v10707_v55 = vadd.f32 %v5534_v47, %v10698_v51  ;;  %v8845_v51 = vld [vmem:[#allocation11 + $0x98c] sm:$0xf0]  ;;  %v9774_v6 = vld [vmem:[#allocation11 + $0xd0] sm:$0xf0]  ;;  %v9292_v7 = vor.u32 %v10165_v34, %v9291_v63 }
 0x279   :  { %v8848_v10 = vor.u32 %v10050_v3, %v8845_v51  ;;  %v7732_v11 = vor.u32 %v9774_v6, %v7731_v17  ;;  %v10134_v63 = vld [vmem:[#allocation11 + $0xc14] sm:$0xf]  ;;  %v9181_v34 = vld [vmem:[#allocation11 + $0xc2c] sm:$0xf0]  ;;  %v8739_v3 = vld [vmem:[#allocation11 + $0x898] sm:$0xf] }
 0x27a   :  { %5828 = vmatpush.bf16.msrb.mxu0 %v8624_v36  ;;  %v8929_v36 = vld [vmem:[#allocation11 + $0xa34] sm:$0xf0]  ;;  %v5575_v45 = vpop.f32.mrf.mxu0  ;;  %5715 = vmatmul.bf16.vlgmr.msra.gmra.mxu3 %v10634_v40  ;;  %v10026_v51 = vld [vmem:[#allocation11 + $0x8b0] sm:$0xf0] }
 0x27b   :  { %5759 = vmatpush.bf16.msrb.mxu3 %v9404_v9  ;;  %5798 = vmatpush.bf16.msra.mxu2 %v8288_v5  ;;  %v8932_v52 = vor.u32 %v10071_v26, %v8929_v36  ;;  %v9263_v9 = vld [vmem:[#allocation11 + $0xcb8] sm:$0xf]  ;;  %v10158_v5 = vld [vmem:[#allocation11 + $0xcd0] sm:$0xf0]  ;;  %v7703_v36 = vld [vmem:[#allocation11 + $0x80] sm:$0xf] }
 0x27c   :  { %5837 = vmatpush.bf16.msrb.mxu1 %v8960_v62  ;;  %5754 = vmatmul.bf16.vlgmr.msrb.gmra.mxu2 %v10669_v19  ;;  %v8817_v26 = vld [vmem:[#allocation11 + $0x954] sm:$0xf0] }
 0x27d   :  { %5793 = vmatmul.bf16.vlgmr.msra.gmra.mxu1 %v10615_v54 }
 0x27e   :  { %5829 = vmatpush.bf16.msrb.mxu0 %v8596_v50  ;;  %v8901_v50 = vld [vmem:[#allocation11 + $0x9fc] sm:$0xf0] }
 0x27f   :  { %5760 = vmatpush.bf16.msrb.mxu3 %v9376_v30  ;;  %5799 = vmatpush.bf16.msra.mxu2 %v8260_v31  ;;  %v8904_v44 = vor.u32 %v10064_v38, %v8901_v50  ;;  %v5536_v62 = vpop.f32.mrf.mxu1  ;;  %v9264_v30 = vor.u32 %v10158_v5, %v9263_v9  ;;  %v10036_v38 = vld [vmem:[#allocation11 + $0x904] sm:$0xf]  ;;  %v8789_v50 = vld [vmem:[#allocation11 + $0x91c] sm:$0xf0]  ;;  %v9959_v9 = vld [vmem:[#allocation11 + $0x69c] sm:$0xf] }
 0x280   :  { %5838 = vmatpush.bf16.msrb.mxu1 %v8932_v52  ;;  %v8820_v52 = vor.u32 %v10043_v61, %v8817_v26  ;;  %v8792_v47 = vor.u32 %v10036_v38, %v8789_v50  ;;  %v8481_v5 = vld [vmem:[#allocation11 + $0x6b4] sm:$0xf0]  ;;  %v10127_v62 = vld [vmem:[#allocation11 + $0xbdc] sm:$0xf]  ;;  %v8711_v26 = vld [vmem:[#allocation11 + $0x860] sm:$0xf] }
 0x281   :  { %v9851_v61 = vld [vmem:[#allocation11 + $0x338] sm:$0xf0]  ;;  %v8484_v28 = vor.u32 %v9959_v9, %v8481_v5  ;;  %v8683_v38 = vld [vmem:[#allocation11 + $0x828] sm:$0xf]  ;;  %v10012_v50 = vld [vmem:[#allocation11 + $0x840] sm:$0xf0] }
 0x282   :  { %5830 = vmatpush.bf16.msrb.mxu0 %v8568_v57  ;;  %v8873_v57 = vld [vmem:[#allocation11 + $0x9c4] sm:$0xf0]  ;;  %v8369_v9 = vld [vmem:[#allocation11 + $0x5d4] sm:$0xf0] }
 0x283   :  { %5761 = vmatpush.bf16.msrb.mxu3 %v9348_v15  ;;  %5800 = vmatpush.bf16.msra.mxu2 %v8232_v18  ;;  %v8876_v4 = vor.u32 %v10057_v43, %v8873_v57  ;;  %v9207_v15 = vld [vmem:[#allocation11 + $0xc48] sm:$0xf]  ;;  %v9236_v18 = vor.u32 %v10151_v27, %v9235_v13  ;;  %v10029_v43 = vld [vmem:[#allocation11 + $0x8cc] sm:$0xf] }
 0x284   :  { %5839 = vmatpush.bf16.msrb.mxu1 %v8904_v44  ;;  %v9861_v44 = vld [vmem:[#allocation11 + $0x38c] sm:$0xf]  ;;  %v8761_v57 = vld [vmem:[#allocation11 + $0x8e4] sm:$0xf0] }
 0x285   :  { %v8764_v17 = vor.u32 %v10029_v43, %v8761_v57 }
 0x286   :  { %5831 = vmatpush.bf16.msrb.mxu0 %v8540_v8  ;;  %v10709_v59 = vpop.f32.mrf.mxu0  ;;  %v8176_v8 = vor.u32 %v9882_v0, %v8173_v2  ;;  %v9858_v2 = vld [vmem:[#allocation11 + $0x370] sm:$0xf0] }
 0x287   :  { %5762 = vmatpush.bf16.msrb.mxu3 %v9320_v60  ;;  %5801 = vmatpush.bf16.msra.mxu2 %v8204_v29  ;;  %v5586_v56 = vpop.f32.mrf.mxu1  ;;  %v9753_v60 = vld [vmem:[#allocation11 + $0x28] sm:$0xf0]  ;;  %v9966_v29 = vld [vmem:[#allocation11 + $0x6d4] sm:$0xf] }
 0x288   :  { %5840 = vmatpush.bf16.msrb.mxu1 %v8876_v4  ;;  %v10713_v49 = vadd.f32 %v5586_v56, %v5574_v25  ;;  %v8067_v4 = vld [vmem:[#allocation11 + $0x358] sm:$0xf]  ;;  %v7648_v6 = vor.u32 %v9753_v60, %v7647_v48  ;;  %v8425_v25 = vld [vmem:[#allocation11 + $0x644] sm:$0xf0]  ;;  %v10005_v56 = vld [vmem:[#allocation11 + $0x808] sm:$0xf0] }
 0x289   :  { %5832 = vmatmul.bf16.vlgmr.msrb.gmra.mxu0 %v10646_v42 }
 0x28a   :  { %5876 = vmatpush.bf16.msra.mxu0 %v7844_v14  ;;  %v9875_v14 = vld [vmem:[#allocation11 + $0x3fc] sm:$0xf] }
 0x28b   :  { %5763 = vmatpush.bf16.msrb.mxu3 %v9292_v7  ;;  %5802 = vmatpush.bf16.msra.mxu2 %v8176_v8  ;;  %v8148_v31 = vor.u32 %v9875_v14, %v8145_v24  ;;  %v8512_v7 = vor.u32 %v9966_v29, %v8509_v53  ;;  %v9184_v8 = vor.u32 %v10134_v63, %v9181_v34  ;;  %v9153_v14 = vld [vmem:[#allocation11 + $0xbf4] sm:$0xf0]  ;;  %v8039_v24 = vld [vmem:[#allocation11 + $0x320] sm:$0xf]  ;;  %v9938_v29 = vld [vmem:[#allocation11 + $0x5f4] sm:$0xf] }
 0x28c   :  { %5841 = vmatpush.bf16.msrb.mxu1 %v8848_v10  ;;  %v8068_v10 = vor.u32 %v9858_v2, %v8067_v4  ;;  %v8040_v13 = vor.u32 %v9851_v61, %v8039_v24  ;;  %v8397_v53 = vld [vmem:[#allocation11 + $0x60c] sm:$0xf0]  ;;  %v10106_v4 = vld [vmem:[#allocation11 + $0xb34] sm:$0xf]  ;;  %v9823_v24 = vld [vmem:[#allocation11 + $0x258] sm:$0xf0] }
 0x28d   :  { %v9830_v2 = vld [vmem:[#allocation11 + $0x290] sm:$0xf0]  ;;  %v8599_v61 = vld [vmem:[#allocation11 + $0x780] sm:$0xf] }
 0x28e   :  { %5877 = vmatpush.bf16.msra.mxu0 %v7816_v33  ;;  %v5627_v45 = vpop.f32.mrf.mxu0  ;;  %v7704_v33 = vor.u32 %v9767_v20, %v7703_v36  ;;  %v10019_v36 = vld [vmem:[#allocation11 + $0x878] sm:$0xf0] }
 0x28f   :  { %5764 = vmatpush.bf16.msrb.mxu3 %v9264_v30  ;;  %5803 = vmatpush.bf16.msra.mxu2 %v8148_v31  ;;  %v5588_v20 = vpop.f32.mrf.mxu1  ;;  %v9156_v45 = vor.u32 %v10127_v62, %v9153_v14  ;;  %v9952_v30 = vld [vmem:[#allocation11 + $0x664] sm:$0xf]  ;;  %v8453_v31 = vld [vmem:[#allocation11 + $0x67c] sm:$0xf0]  ;;  %v8712_v27 = vor.u32 %v10019_v36, %v8711_v26  ;;  %v9041_v62 = vld [vmem:[#allocation11 + $0xb14] sm:$0xf0] }
 0x290   :  { %5842 = vmatpush.bf16.msrb.mxu1 %v8820_v52  ;;  %v10120_v52 = vld [vmem:[#allocation11 + $0xba4] sm:$0xf]  ;;  %v8456_v39 = vor.u32 %v9952_v30, %v8453_v31  ;;  %v7927_v14 = vld [vmem:[#allocation11 + $0x240] sm:$0xf]  ;;  %v9991_v26 = vld [vmem:[#allocation11 + $0x798] sm:$0xf0] }
 0x291   :  { %v9924_v30 = vld [vmem:[#allocation11 + $0x584] sm:$0xf]  ;;  %v8341_v31 = vld [vmem:[#allocation11 + $0x59c] sm:$0xf0] }
 0x292   :  { %5878 = vmatpush.bf16.msra.mxu0 %v7788_v46  ;;  %v8089_v46 = vld [vmem:[#allocation11 + $0x3a4] sm:$0xf0] }
 0x293   :  { %5765 = vmatpush.bf16.msrb.mxu3 %v9236_v18  ;;  %5804 = vmatpush.bf16.msra.mxu2 %v8120_v1  ;;  %v8092_v0 = vor.u32 %v9861_v44, %v8089_v46  ;;  %v8012_v18 = vor.u32 %v9844_v37, %v8011_v35  ;;  %v8684_v1 = vor.u32 %v10012_v50, %v8683_v38  ;;  %v9097_v44 = vld [vmem:[#allocation11 + $0xb84] sm:$0xf0]  ;;  %v7983_v46 = vld [vmem:[#allocation11 + $0x2b0] sm:$0xf]  ;;  %v9816_v37 = vld [vmem:[#allocation11 + $0x220] sm:$0xf0] }
 0x294   :  { %5843 = vmatpush.bf16.msrb.mxu1 %v8792_v47  ;;  %v9837_v47 = vld [vmem:[#allocation11 + $0x2c8] sm:$0xf0]  ;;  %v7899_v35 = vld [vmem:[#allocation11 + $0x208] sm:$0xf]  ;;  %v9984_v50 = vld [vmem:[#allocation11 + $0x760] sm:$0xf0] }
 0x295   :  { %v7984_v63 = vor.u32 %v9837_v47, %v7983_v46  ;;  %v8571_v38 = vld [vmem:[#allocation11 + $0x748] sm:$0xf]  ;;  %v7871_v47 = vld [vmem:[#allocation11 + $0x1d0] sm:$0xf] }
 0x296   :  { %5879 = vmatpush.bf16.msra.mxu0 %v7760_v16  ;;  %v9208_v16 = vor.u32 %v10144_v22, %v9207_v15  ;;  %v9945_v15 = vld [vmem:[#allocation11 + $0x62c] sm:$0xf]  ;;  %v8572_v46 = vor.u32 %v9984_v50, %v8571_v38  ;;  %v8907_v38 = vld [vmem:[#allocation11 + $0x9e8] sm:$0xf]  ;;  %v10068_v50 = vld [vmem:[#allocation11 + $0xa00] sm:$0xf0] }
 0x297   :  { %5805 = vmatpush.bf16.msra.mxu2 %v8092_v0  ;;  %v10113_v22 = vld [vmem:[#allocation11 + $0xb6c] sm:$0xf]  ;;  %v8428_v48 = vor.u32 %v9945_v15, %v8425_v25  ;;  %v7955_v0 = vld [vmem:[#allocation11 + $0x278] sm:$0xf]  ;;  %v8344_v15 = vor.u32 %v9924_v30, %v8341_v31 }
 0x298   :  { %5766 = vmatpush.bf16.msrb.mxu3 %v9208_v16  ;;  %5844 = vmatpush.bf16.msrb.mxu1 %v8764_v17  ;;  %v9100_v60 = vor.u32 %v10113_v22, %v9097_v44  ;;  %v9069_v16 = vld [vmem:[#allocation11 + $0xb4c] sm:$0xf0]  ;;  %v7956_v5 = vor.u32 %v9830_v2, %v7955_v0  ;;  %v8985_v22 = vld [vmem:[#allocation11 + $0xaa4] sm:$0xf0]  ;;  %v7900_v44 = vor.u32 %v9816_v37, %v7899_v35  ;;  %v10082_v0 = vld [vmem:[#allocation11 + $0xa70] sm:$0xf0] }
 0x299   :  { %v10721_v57 = vpop.f32.mrf.mxu1  ;;  %v9799_v2 = vld [vmem:[#allocation11 + $0x19c] sm:$0xf]  ;;  %v8235_v35 = vld [vmem:[#allocation11 + $0x4a8] sm:$0xf]  ;;  %v9900_v37 = vld [vmem:[#allocation11 + $0x4c0] sm:$0xf0] }
 0x29a   :  { %5880 = vmatpush.bf16.msra.mxu0 %v7732_v11  ;;  %v8740_v11 = vor.u32 %v10026_v51, %v8739_v3  ;;  %5806 = vmatmul.bf16.vlgmr.msra.gmra.mxu2 %v10631_v23  ;;  %v8627_v3 = vld [vmem:[#allocation11 + $0x7b8] sm:$0xf]  ;;  %v9998_v51 = vld [vmem:[#allocation11 + $0x7d0] sm:$0xf0] }
 0x29b   :  { %5850 = vmatpush.bf16.msrb.mxu2 %v9184_v8  ;;  %5767 = vmatmul.bf16.vlgmr.msrb.gmra.mxu3 %v10683_v32  ;;  %v9931_v8 = vld [vmem:[#allocation11 + $0x5bc] sm:$0xf] }
 0x29c   :  { %5811 = vmatpush.bf16.msra.mxu3 %v8512_v7  ;;  %5889 = vmatpush.bf16.msra.mxu1 %v8068_v10  ;;  %v9072_v7 = vor.u32 %v10106_v4, %v9069_v16  ;;  %v8628_v10 = vor.u32 %v9998_v51, %v8627_v3  ;;  %v7845_v3 = vld [vmem:[#allocation11 + $0x1b4] sm:$0xf0] }
 0x29d   :  { %5845 = vmatmul.bf16.vlgmr.msrb.gmra.mxu1 %v10657_v21  ;;  %v10723_v17 = vpop.f32.mrf.mxu2 }
 0x29e   :  { %5881 = vmatpush.bf16.msra.mxu0 %v7704_v33  ;;  %v9125_v33 = vld [vmem:[#allocation11 + $0xbbc] sm:$0xf0] }
 0x29f   :  { %5851 = vmatpush.bf16.msrb.mxu2 %v9156_v45  ;;  %v9128_v41 = vor.u32 %v10120_v52, %v9125_v33  ;;  %v10092_v52 = vld [vmem:[#allocation11 + $0xac4] sm:$0xf]  ;;  %v9013_v33 = vld [vmem:[#allocation11 + $0xadc] sm:$0xf0] }
 0x2a0   :  { %5812 = vmatpush.bf16.msra.mxu3 %v8484_v28  ;;  %5890 = vmatpush.bf16.msra.mxu1 %v8040_v13  ;;  %v8372_v28 = vor.u32 %v9931_v8, %v8369_v9  ;;  %v7928_v13 = vor.u32 %v9823_v24, %v7927_v14  ;;  %v9016_v25 = vor.u32 %v10092_v52, %v9013_v33  ;;  %v10183_v9 = vld [vmem:[#allocation11 + $0xd9c] sm:$0xf]  ;;  %v8263_v14 = vld [vmem:[#allocation11 + $0x4e0] sm:$0xf] }
 0x2a1   :  { %v5640_v20 = vpop.f32.mrf.mxu1  ;;  %v9907_v24 = vld [vmem:[#allocation11 + $0x4f8] sm:$0xf0] }
 0x2a2   :  { %5882 = vmatpush.bf16.msra.mxu0 %v7676_v58  ;;  %v8655_v58 = vld [vmem:[#allocation11 + $0x7f0] sm:$0xf]  ;;  %v7817_v20 = vld [vmem:[#allocation11 + $0x17c] sm:$0xf0]  ;;  %v8264_v31 = vor.u32 %v9907_v24, %v8263_v14 }
 0x2a3   :  { %5852 = vmatpush.bf16.msrb.mxu2 %v9128_v41  ;;  %v8656_v34 = vor.u32 %v10005_v56, %v8655_v58  ;;  %v9917_v41 = vld [vmem:[#allocation11 + $0x54c] sm:$0xf]  ;;  %v8543_v56 = vld [vmem:[#allocation11 + $0x710] sm:$0xf] }
 0x2a4   :  { %5813 = vmatpush.bf16.msra.mxu3 %v8456_v39  ;;  %5891 = vmatpush.bf16.msra.mxu1 %v8012_v18  ;;  %v8313_v18 = vld [vmem:[#allocation11 + $0x564] sm:$0xf0]  ;;  %v9809_v58 = vld [vmem:[#allocation11 + $0x1e8] sm:$0xf0] }
 0x2a5   :  { %v5549_v39 = vpop.f32.mrf.mxu2  ;;  %v8316_v4 = vor.u32 %v9917_v41, %v8313_v18  ;;  %v7872_v51 = vor.u32 %v9809_v58, %v7871_v47  ;;  %v7789_v41 = vld [vmem:[#allocation11 + $0x144] sm:$0xf0]  ;;  %v10169_v18 = vld [vmem:[#allocation11 + $0xd2c] sm:$0xf]  ;;  %v8207_v47 = vld [vmem:[#allocation11 + $0x470] sm:$0xf] }
 0x2a6   :  { %5883 = vmatpush.bf16.msra.mxu0 %v7648_v6  ;;  %v10719_v43 = vpop.f32.mrf.mxu0  ;;  %v8400_v6 = vor.u32 %v9938_v29, %v8397_v53  ;;  %v9405_v29 = vld [vmem:[#allocation11 + $0xdec] sm:$0xf0]  ;;  %v8291_v53 = vld [vmem:[#allocation11 + $0x518] sm:$0xf]  ;;  %v9785_v39 = vld [vmem:[#allocation11 + $0x12c] sm:$0xf] }
 0x2a7   :  { %5853 = vmatpush.bf16.msrb.mxu2 %v9100_v60  ;;  %v10190_v60 = vld [vmem:[#allocation11 + $0xdd4] sm:$0xf]  ;;  %v9893_v58 = vld [vmem:[#allocation11 + $0x488] sm:$0xf0] }
 0x2a8   :  { %5814 = vmatpush.bf16.msra.mxu3 %v8428_v48  ;;  %5892 = vmatpush.bf16.msra.mxu1 %v7984_v63  ;;  %v9977_v48 = vld [vmem:[#allocation11 + $0x728] sm:$0xf0]  ;;  %v9914_v63 = vld [vmem:[#allocation11 + $0x530] sm:$0xf0] }
 0x2a9   :  { %5884 = vmatmul.bf16.vlgmr.msra.gmra.mxu0 %v10611_v12  ;;  %v8292_v8 = vor.u32 %v9914_v63, %v8291_v53  ;;  %v7761_v53 = vld [vmem:[#allocation11 + $0x10c] sm:$0xf0] }
 0x2aa   :  { %5928 = vmatpush.bf16.msrb.mxu0 %v8740_v11  ;;  %v10099_v11 = vld [vmem:[#allocation11 + $0xafc] sm:$0xf] }
 0x2ab   :  { %5854 = vmatpush.bf16.msrb.mxu2 %v9072_v7  ;;  %v9044_v45 = vor.u32 %v10099_v11, %v9041_v62  ;;  %v9408_v7 = vor.u32 %v10190_v60, %v9405_v29  ;;  %v7848_v11 = vor.u32 %v9799_v2, %v7845_v3  ;;  %v10061_v60 = vld [vmem:[#allocation11 + $0x9c8] sm:$0xf0]  ;;  %v9778_v29 = vld [vmem:[#allocation11 + $0xf4] sm:$0xf]  ;;  %v9293_v3 = vld [vmem:[#allocation11 + $0xd0c] sm:$0xf0] }
 0x2ac   :  { %5815 = vmatpush.bf16.msra.mxu3 %v8400_v6  ;;  %5893 = vmatpush.bf16.msra.mxu1 %v7956_v5  ;;  %v8544_v6 = vor.u32 %v9977_v48, %v8543_v56  ;;  %v9377_v5 = vld [vmem:[#allocation11 + $0xdb4] sm:$0xf0]  ;;  %v8879_v56 = vld [vmem:[#allocation11 + $0x9b0] sm:$0xf]  ;;  %v10162_v2 = vld [vmem:[#allocation11 + $0xcf4] sm:$0xf] }
 0x2ad   :  { %v10725_v62 = vpop.f32.mrf.mxu2  ;;  %v9380_v30 = vor.u32 %v10183_v9, %v9377_v5  ;;  %v8851_v9 = vld [vmem:[#allocation11 + $0x978] sm:$0xf]  ;;  %v10054_v5 = vld [vmem:[#allocation11 + $0x990] sm:$0xf0]  ;;  %v9296_v14 = vor.u32 %v10162_v2, %v9293_v3  ;;  %v8767_v2 = vld [vmem:[#allocation11 + $0x8d0] sm:$0xf] }
 0x2ae   :  { %5929 = vmatpush.bf16.msrb.mxu0 %v8712_v27  ;;  %v5679_v36 = vpop.f32.mrf.mxu0  ;;  %v8600_v27 = vor.u32 %v9991_v26, %v8599_v61  ;;  %v8935_v61 = vld [vmem:[#allocation11 + $0xa20] sm:$0xf]  ;;  %v10075_v26 = vld [vmem:[#allocation11 + $0xa38] sm:$0xf0]  ;;  %v10033_v3 = vld [vmem:[#allocation11 + $0x8e8] sm:$0xf0] }
 0x2af   :  { %5855 = vmatpush.bf16.msrb.mxu2 %v9044_v45  ;;  %v9792_v36 = vld [vmem:[#allocation11 + $0x164] sm:$0xf]  ;;  %v8936_v52 = vor.u32 %v10075_v26, %v8935_v61  ;;  %v10155_v61 = vld [vmem:[#allocation11 + $0xcbc] sm:$0xf]  ;;  %v9265_v26 = vld [vmem:[#allocation11 + $0xcd4] sm:$0xf0] }
 0x2b0   :  { %5816 = vmatpush.bf16.msra.mxu3 %v8372_v28  ;;  %5894 = vmatpush.bf16.msra.mxu1 %v7928_v13  ;;  %v10727_v28 = vld [vmem:[#allocation13] sm:$0xff]  ;;  %v7820_v33 = vor.u32 %v9792_v36, %v7817_v20  ;;  %v8852_v36 = vor.u32 %v10054_v5, %v8851_v9  ;;  %v9970_v9 = vld [vmem:[#allocation11 + $0x6f0] sm:$0xf0]  ;;  %v5548_v5 = vadd.f32 %v10723_v17, %v10707_v55 }
 0x2b1   :  { %v3144_v45 = vperm.slane %v10727_v28, 2  ;;  %v10176_v13 = vld [vmem:[#allocation11 + $0xd64] sm:$0xf] }
 0x2b2   :  { %5930 = vmatpush.bf16.msrb.mxu0 %v8684_v1  ;;  %v10085_v1 = vld [vmem:[#allocation11 + $0xa8c] sm:$0xf] }
 0x2b3   :  { %5856 = vmatpush.bf16.msrb.mxu2 %v9016_v25  ;;  %v8988_v16 = vor.u32 %v10085_v1, %v8985_v22  ;;  %v8236_v25 = vor.u32 %v9900_v37, %v8235_v35  ;;  %v9321_v1 = vld [vmem:[#allocation11 + $0xd44] sm:$0xf0]  ;;  %v8908_v22 = vor.u32 %v10068_v50, %v8907_v38  ;;  %v5678_v48 = vadd.f32 %v10719_v43, %v3144_v45  ;;  %v8179_v43 = vld [vmem:[#allocation11 + $0x438] sm:$0xf]  ;;  %v8151_v45 = vld [vmem:[#allocation11 + $0x400] sm:$0xf] }
 0x2b4   :  { %5817 = vmatpush.bf16.msra.mxu3 %v8344_v15  ;;  %5895 = vmatpush.bf16.msra.mxu1 %v7900_v44  ;;  %v7792_v44 = vor.u32 %v9785_v39, %v7789_v41  ;;  %v9268_v38 = vor.u32 %v10155_v61, %v9265_v26  ;;  %v10148_v39 = vld [vmem:[#allocation11 + $0xc84] sm:$0xf]  ;;  %v9237_v41 = vld [vmem:[#allocation11 + $0xc9c] sm:$0xf0] }
 0x2b6   :  { %5931 = vmatpush.bf16.msrb.mxu0 %v8656_v34  ;;  %v8963_v34 = vld [vmem:[#allocation11 + $0xa58] sm:$0xf] }
 0x2b7   :  { %5857 = vmatpush.bf16.msrb.mxu2 %v8988_v16  ;;  %v9324_v16 = vor.u32 %v10169_v18, %v9321_v1  ;;  %v8123_v1 = vld [vmem:[#allocation11 + $0x3c8] sm:$0xf] }
 0x2b8   :  { %5818 = vmatpush.bf16.msra.mxu3 %v8316_v4  ;;  %5896 = vmatpush.bf16.msra.mxu1 %v7872_v51  ;;  %v8880_v51 = vor.u32 %v10061_v60, %v8879_v56  ;;  %v10141_v56 = vld [vmem:[#allocation11 + $0xc4c] sm:$0xf] }
 0x2ba   :  { %5932 = vmatpush.bf16.msrb.mxu0 %v8628_v10  ;;  %v8964_v10 = vor.u32 %v10082_v0, %v8963_v34  ;;  %5858 = vmatmul.bf16.vlgmr.msrb.gmra.mxu2 %v10669_v19  ;;  %v5690_v63 = vpop.f32.mrf.mxu1  ;;  %v8208_v0 = vor.u32 %v9893_v58, %v8207_v47  ;;  %v9757_v47 = vld [vmem:[#allocation11 + $0x4c] sm:$0xf]  ;;  %v7677_v58 = vld [vmem:[#allocation11 + $0x64] sm:$0xf0] }
 0x2bb   :  { %5902 = vmatpush.bf16.msra.mxu2 %v8292_v8  ;;  %5819 = vmatmul.bf16.vlgmr.msra.gmra.mxu3 %v10634_v40  ;;  %v10737_v4 = vadd.f32 %v5690_v63, %v5678_v48  ;;  %v9886_v8 = vld [vmem:[#allocation11 + $0x450] sm:$0xf0]  ;;  %v9240_v48 = vor.u32 %v10148_v39, %v9237_v41  ;;  %v9865_v63 = vld [vmem:[#allocation11 + $0x3a8] sm:$0xf0]  ;;  %v9848_v39 = vld [vmem:[#allocation11 + $0x324] sm:$0xf] }
 0x2bc   :  { %5863 = vmatpush.bf16.msrb.mxu3 %v9408_v7  ;;  %5941 = vmatpush.bf16.msrb.mxu1 %v8964_v10  ;;  %v9771_v10 = vld [vmem:[#allocation11 + $0xbc] sm:$0xf]  ;;  %v8180_v24 = vor.u32 %v9886_v8, %v8179_v43  ;;  %v7649_v43 = vld [vmem:[#allocation11 + $0x2c] sm:$0xf0]  ;;  %v8515_v8 = vld [vmem:[#allocation11 + $0x6d8] sm:$0xf] }
 0x2bd   :  { %5897 = vmatmul.bf16.vlgmr.msra.gmra.mxu1 %v10615_v54  ;;  %v10739_v7 = vpop.f32.mrf.mxu3  ;;  %v8516_v17 = vor.u32 %v9970_v9, %v8515_v8  ;;  %v10117_v8 = vld [vmem:[#allocation11 + $0xb88] sm:$0xf0]  ;;  %v9834_v9 = vld [vmem:[#allocation11 + $0x2b4] sm:$0xf] }
 0x2be   :  { %5933 = vmatpush.bf16.msrb.mxu0 %v8600_v27  ;;  %v9349_v27 = vld [vmem:[#allocation11 + $0xd7c] sm:$0xf0] }
 0x2bf   :  { %5903 = vmatpush.bf16.msra.mxu2 %v8264_v31  ;;  %v9352_v15 = vor.u32 %v10176_v13, %v9349_v27  ;;  %v8823_v31 = vld [vmem:[#allocation11 + $0x940] sm:$0xf]  ;;  %v10047_v27 = vld [vmem:[#allocation11 + $0x958] sm:$0xf0] }
 0x2c0   :  { %5864 = vmatpush.bf16.msrb.mxu3 %v9380_v30  ;;  %5942 = vmatpush.bf16.msrb.mxu1 %v8936_v52  ;;  %v9879_v30 = vld [vmem:[#allocation11 + $0x418] sm:$0xf0]  ;;  %v9764_v52 = vld [vmem:[#allocation11 + $0x84] sm:$0xf] }
 0x2c1   :  { %v8152_v50 = vor.u32 %v9879_v30, %v8151_v45  ;;  %v8741_v45 = vld [vmem:[#allocation11 + $0x8b4] sm:$0xf0]  ;;  %v5561_v30 = vadd.f32 %v10739_v7, %v5548_v5  ;;  %v8041_v7 = vld [vmem:[#allocation11 + $0x33c] sm:$0xf0]  ;;  %v7985_v5 = vld [vmem:[#allocation11 + $0x2cc] sm:$0xf0] }
 0x2c2   :  { %5934 = vmatpush.bf16.msrb.mxu0 %v8572_v46  ;;  %v5601_v46 = vpop.f32.mrf.mxu2  ;;  %v5692_v35 = vpop.f32.mrf.mxu1 }
 0x2c3   :  { %5904 = vmatpush.bf16.msra.mxu2 %v8236_v25  ;;  %v10040_v46 = vld [vmem:[#allocation11 + $0x920] sm:$0xf0]  ;;  %v8487_v35 = vld [vmem:[#allocation11 + $0x6a0] sm:$0xf] }
 0x2c4   :  { %5865 = vmatpush.bf16.msrb.mxu3 %v9352_v15  ;;  %5943 = vmatpush.bf16.msrb.mxu1 %v8908_v22  ;;  %v8824_v15 = vor.u32 %v10047_v27, %v8823_v31  ;;  %v9872_v22 = vld [vmem:[#allocation11 + $0x3e0] sm:$0xf0]  ;;  %v8768_v31 = vor.u32 %v10033_v3, %v8767_v2  ;;  %v8431_v2 = vld [vmem:[#allocation11 + $0x630] sm:$0xf]  ;;  %v9949_v3 = vld [vmem:[#allocation11 + $0x648] sm:$0xf0] }
 0x2c5   :  { %v5562_v18 = vpop.f32.mrf.mxu3  ;;  %v8124_v60 = vor.u32 %v9872_v22, %v8123_v1 }
 0x2c6   :  { %5935 = vmatpush.bf16.msrb.mxu0 %v8544_v6  ;;  %v10735_v34 = vpop.f32.mrf.mxu0  ;;  %v7764_v6 = vor.u32 %v9778_v29, %v7761_v53  ;;  %v9209_v29 = vld [vmem:[#allocation11 + $0xc64] sm:$0xf0]  ;;  %v8095_v53 = vld [vmem:[#allocation11 + $0x390] sm:$0xf]  ;;  %v9421_v18 = vmul.f32 -1.442695, %v5561_v30  ;;  %v7988_v30 = vor.u32 %v9834_v9, %v7985_v5 }
 0x2c7   :  { %5905 = vmatpush.bf16.msra.mxu2 %v8208_v0  ;;  %v7680_v0 = vor.u32 %v9757_v47, %v7677_v58  ;;  %v9212_v61 = vor.u32 %v10141_v56, %v9209_v29  ;;  %v8096_v26 = vor.u32 %v9865_v63, %v8095_v53  ;;  %v8044_v58 = vor.u32 %v9848_v39, %v8041_v7  ;;  %v8013_v29 = vld [vmem:[#allocation11 + $0x304] sm:$0xf0]  ;;  %v10009_v53 = vld [vmem:[#allocation11 + $0x82c] sm:$0xf] }
 0x2c8   :  { %5866 = vmatpush.bf16.msrb.mxu3 %v9324_v16  ;;  %5944 = vmatpush.bf16.msrb.mxu1 %v8880_v51  ;;  %v9750_v51 = vld [vmem:[#allocation11 + $0x14] sm:$0xf]  ;;  %v8685_v63 = vld [vmem:[#allocation11 + $0x844] sm:$0xf0]  ;;  %10210 = vpow2.f32 %v9421_v18  ;;  %v10103_v18 = vld [vmem:[#allocation11 + $0xb18] sm:$0xf0] }
 0x2c9   :  { %5936 = vmatmul.bf16.vlgmr.msrb.gmra.mxu0 %v10646_v42  ;;  %v7652_v27 = vor.u32 %v9750_v51, %v7649_v43  ;;  %v9103_v43 = vld [vmem:[#allocation11 + $0xb70] sm:$0xf]  ;;  %v9921_v5 = vld [vmem:[#allocation11 + $0x568] sm:$0xf0] }
 0x2ca   :  { %5980 = vmatpush.bf16.msra.mxu0 %v7848_v11  ;;  %v7733_v11 = vld [vmem:[#allocation11 + $0xd4] sm:$0xf0]  ;;  %v10741_v13 = vpop.f32.mrf.mxu2 }
 0x2cb   :  { %v7736_v20 = vor.u32 %v9771_v10, %v7733_v11  ;;  %5906 = vmatpush.bf16.msra.mxu2 %v8180_v24  ;;  %v9187_v10 = vld [vmem:[#allocation11 + $0xc18] sm:$0xf]  ;;  %v10138_v11 = vld [vmem:[#allocation11 + $0xc30] sm:$0xf0]  ;;  %v5600_v24 = vadd.f32 %v10725_v62, %v10713_v49 }
 0x2cc   :  { %5867 = vmatpush.bf16.msrb.mxu3 %v9296_v14  ;;  %5945 = vmatpush.bf16.msrb.mxu1 %v8852_v36  ;;  %v9855_v14 = vld [vmem:[#allocation11 + $0x35c] sm:$0xf]  ;;  %v8069_v36 = vld [vmem:[#allocation11 + $0x374] sm:$0xf0] }
 0x2cd   :  { %v5612_v55 = vpop.f32.mrf.mxu3  ;;  %v8072_v49 = vor.u32 %v9855_v14, %v8069_v36  ;;  %v8403_v36 = vld [vmem:[#allocation11 + $0x5f8] sm:$0xf] }
 0x2ce   :  { %5981 = vmatpush.bf16.msra.mxu0 %v7820_v33  ;;  %v7705_v33 = vld [vmem:[#allocation11 + $0x9c] sm:$0xf0]  ;;  %v5731_v37 = vpop.f32.mrf.mxu0 }
 0x2cf   :  { %v7708_v25 = vor.u32 %v9764_v52, %v7705_v33  ;;  %5907 = vmatpush.bf16.msra.mxu2 %v8152_v50  ;;  %v9188_v52 = vor.u32 %v10138_v11, %v9187_v10  ;;  %v5613_v33 = vadd.f32 %v5612_v55, %v5600_v24  ;;  %v9963_v37 = vld [vmem:[#allocation11 + $0x6b8] sm:$0xf0]  ;;  %v10002_v10 = vld [vmem:[#allocation11 + $0x7f4] sm:$0xf]  ;;  %v8657_v11 = vld [vmem:[#allocation11 + $0x80c] sm:$0xf0] }
 0x2d0   :  { %5868 = vmatpush.bf16.msrb.mxu3 %v9268_v38  ;;  %5946 = vmatpush.bf16.msrb.mxu1 %v8824_v15  ;;  %v9159_v38 = vld [vmem:[#allocation11 + $0xbe0] sm:$0xf]  ;;  %v10131_v50 = vld [vmem:[#allocation11 + $0xbf8] sm:$0xf0]  ;;  %v10016_v15 = vld [vmem:[#allocation11 + $0x864] sm:$0xf]  ;;  %v8488_v1 = vor.u32 %v9963_v37, %v8487_v35 }
 0x2d1   :  { %v5626_v41 = vadd.f32 %v10709_v59, %v5613_v33  ;;  %v9160_v22 = vor.u32 %v10131_v50, %v9159_v38  ;;  %v9131_v59 = vld [vmem:[#allocation11 + $0xba8] sm:$0xf]  ;;  %v10110_v55 = vld [vmem:[#allocation11 + $0xb50] sm:$0xf0]  ;;  %v9995_v33 = vld [vmem:[#allocation11 + $0x7bc] sm:$0xf] }
 0x2d2   :  { %5982 = vmatpush.bf16.msra.mxu0 %v7792_v44  ;;  %v8795_v44 = vld [vmem:[#allocation11 + $0x908] sm:$0xf]  ;;  %v8629_v35 = vld [vmem:[#allocation11 + $0x7d4] sm:$0xf0]  ;;  %v8375_v38 = vld [vmem:[#allocation11 + $0x5c0] sm:$0xf] }
 0x2d3   :  { %v8796_v16 = vor.u32 %v10040_v46, %v8795_v44  ;;  %5908 = vmatpush.bf16.msra.mxu2 %v8124_v60  ;;  %v8459_v44 = vld [vmem:[#allocation11 + $0x668] sm:$0xf]  ;;  %v9956_v46 = vld [vmem:[#allocation11 + $0x680] sm:$0xf0]  ;;  %v10750_v47 = vadd.f32 %v10721_v57, %v5626_v41  ;;  %v9841_v60 = vld [vmem:[#allocation11 + $0x2ec] sm:$0xf]  ;;  %v8632_v41 = vor.u32 %v9995_v33, %v8629_v35 }
 0x2d4   :  { %5869 = vmatpush.bf16.msrb.mxu3 %v9240_v48  ;;  %v10124_v48 = vld [vmem:[#allocation11 + $0xbc0] sm:$0xf0]  ;;  %v8016_v51 = vor.u32 %v9841_v60, %v8013_v29  ;;  %v9935_v50 = vld [vmem:[#allocation11 + $0x5d8] sm:$0xf0]  ;;  %v8293_v35 = vld [vmem:[#allocation11 + $0x534] sm:$0xf0] }
 0x2d5   :  { %5947 = vmatpush.bf16.msrb.mxu1 %v8796_v16  ;;  %v5614_v57 = vpop.f32.mrf.mxu3  ;;  %v8460_v16 = vor.u32 %v9956_v46, %v8459_v44  ;;  %v7929_v46 = vld [vmem:[#allocation11 + $0x25c] sm:$0xf0]  ;;  %v8376_v29 = vor.u32 %v9935_v50, %v8375_v38  ;;  %v9911_v33 = vld [vmem:[#allocation11 + $0x51c] sm:$0xf]  ;;  %v8965_v50 = vld [vmem:[#allocation11 + $0xa74] sm:$0xf0] }
 0x2d6   :  { %5983 = vmatpush.bf16.msra.mxu0 %v7764_v6  ;;  %v5653_v6 = vpop.f32.mrf.mxu2 }
 0x2d7   :  { %5909 = vmatpush.bf16.msra.mxu2 %v8096_v26  ;;  %v8688_v6 = vor.u32 %v10009_v53, %v8685_v63  ;;  %v9104_v26 = vor.u32 %v10117_v8, %v9103_v43  ;;  %v9019_v63 = vld [vmem:[#allocation11 + $0xac8] sm:$0xf]  ;;  %v8319_v43 = vld [vmem:[#allocation11 + $0x550] sm:$0xf] }
 0x2d8   :  { %5870 = vmatpush.bf16.msrb.mxu3 %v9212_v61  ;;  %v8432_v61 = vor.u32 %v9949_v3, %v8431_v2  ;;  %v9813_v2 = vld [vmem:[#allocation11 + $0x20c] sm:$0xf]  ;;  %v7901_v3 = vld [vmem:[#allocation11 + $0x224] sm:$0xf0] }
 0x2d9   :  { %5948 = vmatpush.bf16.msrb.mxu1 %v8768_v31  ;;  %v8660_v31 = vor.u32 %v10002_v10, %v8657_v11  ;;  %v8991_v10 = vld [vmem:[#allocation11 + $0xa90] sm:$0xf]  ;;  %v10089_v11 = vld [vmem:[#allocation11 + $0xaa8] sm:$0xf0] }
 0x2da   :  { %5984 = vmatpush.bf16.msra.mxu0 %v7736_v20  ;;  %v10023_v20 = vld [vmem:[#allocation11 + $0x89c] sm:$0xf]  ;;  %5910 = vmatmul.bf16.vlgmr.msra.gmra.mxu2 %v10631_v23  ;;  %v10756_v14 = vpop.f32.mrf.mxu1  ;;  %v8992_v38 = vor.u32 %v10089_v11, %v8991_v10  ;;  %v9789_v10 = vld [vmem:[#allocation11 + $0x148] sm:$0xf0] }
 0x2db   :  { %v8744_v62 = vor.u32 %v10023_v20, %v8741_v45  ;;  %5954 = vmatpush.bf16.msrb.mxu2 %v9188_v52  ;;  %5871 = vmatmul.bf16.vlgmr.msrb.gmra.mxu3 %v10683_v32  ;;  %v9942_v20 = vld [vmem:[#allocation11 + $0x610] sm:$0xf0]  ;;  %v10211_v45 = vpop.eup %10210  ;;  %v7957_v52 = vld [vmem:[#allocation11 + $0x294] sm:$0xf0] }
 0x2dc   :  { %5915 = vmatpush.bf16.msra.mxu3 %v8516_v17  ;;  %5949 = vmatmul.bf16.vlgmr.msrb.gmra.mxu1 %v10657_v21  ;;  %v9827_v17 = vld [vmem:[#allocation11 + $0x27c] sm:$0xf]  ;;  %v10760_v37 = vadd.f32 1.0, %v10211_v45  ;;  %v7873_v45 = vld [vmem:[#allocation11 + $0x1ec] sm:$0xf0] }
 0x2dd   :  { %5993 = vmatpush.bf16.msra.mxu1 %v8072_v49  ;;  %v8404_v49 = vor.u32 %v9942_v20, %v8403_v36  ;;  %v7960_v39 = vor.u32 %v9827_v17, %v7957_v52  ;;  %v9806_v20 = vld [vmem:[#allocation11 + $0x1d4] sm:$0xf]  ;;  %v9411_v17 = vld [vmem:[#allocation11 + $0xdd8] sm:$0xf] }
 0x2de   :  { %5985 = vmatpush.bf16.msra.mxu0 %v7708_v25  ;;  %v8713_v25 = vld [vmem:[#allocation11 + $0x87c] sm:$0xf0]  ;;  %v5703_v7 = vpop.f32.mrf.mxu2  ;;  %10212 = vrcp.f32 %v10760_v37  ;;  %v10194_v52 = vld [vmem:[#allocation11 + $0xdf0] sm:$0xf0]  ;;  %vm6221_vm0 = vweird.f32 %v10760_v37 }
 0x2df   :  { %v8716_v56 = vor.u32 %v10016_v15, %v8713_v25  ;;  %5955 = vmatpush.bf16.msrb.mxu2 %v9160_v22  ;;  %v5652_v15 = vadd.f32 %v10741_v13, %v10750_v47  ;;  %v9047_v25 = vld [vmem:[#allocation11 + $0xb00] sm:$0xf]  ;;  %v10765_v22 = vadd.f32 %v5703_v7, %v10737_v4  ;;  %v5664_v44 = vpop.f32.mrf.mxu3  ;;  %v8347_v13 = vld [vmem:[#allocation11 + $0x588] sm:$0xf]  ;;  %v9928_v47 = vld [vmem:[#allocation11 + $0x5a0] sm:$0xf0] }
 0x2e0   :  { %5916 = vmatpush.bf16.msra.mxu3 %v8488_v1  ;;  %v9820_v1 = vld [vmem:[#allocation11 + $0x244] sm:$0xf]  ;;  %v9048_v53 = vor.u32 %v10103_v18, %v9047_v25  ;;  %v8348_v8 = vor.u32 %v9928_v47, %v8347_v13  ;;  %v7876_v25 = vor.u32 %v9806_v20, %v7873_v45  ;;  %v8937_v13 = vld [vmem:[#allocation11 + $0xa3c] sm:$0xf0]  ;;  %v7823_v47 = vld [vmem:[#allocation11 + $0x168] sm:$0xf] }
 0x2e1   :  { %5994 = vmatpush.bf16.msra.mxu1 %v8044_v58  ;;  %v9988_v58 = vld [vmem:[#allocation11 + $0x784] sm:$0xf]  ;;  %v7932_v57 = vor.u32 %v9820_v1, %v7929_v46  ;;  %v8296_v46 = vor.u32 %v9911_v33, %v8293_v35  ;;  %v8881_v35 = vld [vmem:[#allocation11 + $0x9cc] sm:$0xf0] }
 0x2e2   :  { %5986 = vmatpush.bf16.msra.mxu0 %v7680_v0  ;;  %v9132_v0 = vor.u32 %v10124_v48, %v9131_v59  ;;  %v5665_v59 = vadd.f32 %v5664_v44, %v5652_v15  ;;  %v5744_v48 = vpop.f32.mrf.mxu1  ;;  %v9412_v44 = vor.u32 %v10194_v52, %v9411_v17  ;;  %v10058_v17 = vld [vmem:[#allocation11 + $0x9b4] sm:$0xf] }
 0x2e4   :  { %5917 = vmatpush.bf16.msra.mxu3 %v8460_v16  ;;  %5956 = vmatpush.bf16.msrb.mxu2 %v9132_v0  ;;  %v9422_v4 = vmul.f32 -1.442695, %v5665_v59  ;;  %v10096_v0 = vld [vmem:[#allocation11 + $0xae0] sm:$0xf0] }
 0x2e5   :  { %5995 = vmatpush.bf16.msra.mxu1 %v8016_v51  ;;  %v9981_v51 = vld [vmem:[#allocation11 + $0x74c] sm:$0xf]  ;;  %v9020_v9 = vor.u32 %v10096_v0, %v9019_v63  ;;  %v9796_v63 = vld [vmem:[#allocation11 + $0x180] sm:$0xf0]  ;;  %v9355_v0 = vld [vmem:[#allocation11 + $0xd68] sm:$0xf] }
 0x2e6   :  { %5987 = vmatpush.bf16.msra.mxu0 %v7652_v27  ;;  %v10758_v24 = vpop.f32.mrf.mxu0  ;;  %v9075_v27 = vld [vmem:[#allocation11 + $0xb38] sm:$0xf]  ;;  %10214 = vpow2.f32 %v9422_v4  ;;  %v5705_v36 = vpop.f32.mrf.mxu2 }
 0x2e7   :  { %v10173_v36 = vld [vmem:[#allocation11 + $0xd48] sm:$0xf0] }
 0x2e8   :  { %5918 = vmatpush.bf16.msra.mxu3 %v8432_v61  ;;  %5957 = vmatpush.bf16.msrb.mxu2 %v9104_v26  ;;  %v7904_v61 = vor.u32 %v9813_v2, %v7901_v3  ;;  %v10180_v2 = vld [vmem:[#allocation11 + $0xd80] sm:$0xf0] }
 0x2e9   :  { %5988 = vmatmul.bf16.vlgmr.msra.gmra.mxu0 %v10611_v12  ;;  %5996 = vmatpush.bf16.msra.mxu1 %v7988_v30  ;;  %v9974_v30 = vld [vmem:[#allocation11 + $0x714] sm:$0xf]  ;;  %v9356_v45 = vor.u32 %v10180_v2, %v9355_v0  ;;  %v9271_v2 = vld [vmem:[#allocation11 + $0xcc0] sm:$0xf] }
 0x2ea   :  { %6032 = vmatpush.bf16.msrb.mxu0 %v8744_v62  ;;  %v9076_v62 = vor.u32 %v10110_v55, %v9075_v27  ;;  %v5666_v27 = vpop.f32.mrf.mxu3  ;;  %v8545_v55 = vld [vmem:[#allocation11 + $0x72c] sm:$0xf0] }
 0x2eb   :  { %v8548_v18 = vor.u32 %v9974_v30, %v8545_v55  ;;  %v9890_v27 = vld [vmem:[#allocation11 + $0x474] sm:$0xf]  ;;  %v8209_v55 = vld [vmem:[#allocation11 + $0x48c] sm:$0xf0] }
 0x2ec   :  { %5919 = vmatpush.bf16.msra.mxu3 %v8404_v49  ;;  %5958 = vmatpush.bf16.msrb.mxu2 %v9076_v62  ;;  %v10079_v49 = vld [vmem:[#allocation11 + $0xa5c] sm:$0xf]  ;;  %v8320_v62 = vor.u32 %v9921_v5, %v8319_v43  ;;  %v8237_v43 = vld [vmem:[#allocation11 + $0x4c4] sm:$0xf0]  ;;  %v7795_v5 = vld [vmem:[#allocation11 + $0x130] sm:$0xf] }
 0x2ed   :  { %5997 = vmatpush.bf16.msra.mxu1 %v7960_v39  ;;  %v7851_v39 = vld [vmem:[#allocation11 + $0x1a0] sm:$0xf]  ;;  %v8968_v59 = vor.u32 %v10079_v49, %v8965_v50  ;;  %v7796_v33 = vor.u32 %v9789_v10, %v7795_v5  ;;  %v7767_v49 = vld [vmem:[#allocation11 + $0xf8] sm:$0xf]  ;;  %v6227_v50 = vand.u32 2147483648, %v10760_v37 }
 0x2ee   :  { %6033 = vmatpush.bf16.msrb.mxu0 %v8716_v56  ;;  %v8601_v56 = vld [vmem:[#allocation11 + $0x79c] sm:$0xf0]  ;;  %v5783_v60 = vpop.f32.mrf.mxu0  ;;  %v10159_v5 = vld [vmem:[#allocation11 + $0xcd8] sm:$0xf0]  ;;  %v9876_v10 = vld [vmem:[#allocation11 + $0x404] sm:$0xf] }
 0x2ef   :  { %v8604_v16 = vor.u32 %v9988_v58, %v8601_v56  ;;  %v9383_v58 = vld [vmem:[#allocation11 + $0xda0] sm:$0xf]  ;;  %v10187_v56 = vld [vmem:[#allocation11 + $0xdb8] sm:$0xf0]  ;;  %v9904_v60 = vld [vmem:[#allocation11 + $0x4e4] sm:$0xf] }
 0x2f0   :  { %5920 = vmatpush.bf16.msra.mxu3 %v8376_v29  ;;  %5959 = vmatpush.bf16.msrb.mxu2 %v9048_v53  ;;  %v8265_v29 = vld [vmem:[#allocation11 + $0x4fc] sm:$0xf0]  ;;  %v10072_v53 = vld [vmem:[#allocation11 + $0xa24] sm:$0xf] }
 0x2f1   :  { %5998 = vmatpush.bf16.msra.mxu1 %v7932_v57  ;;  %v9384_v57 = vor.u32 %v10187_v56, %v9383_v58  ;;  %v8940_v3 = vor.u32 %v10072_v53, %v8937_v13  ;;  %v8212_v58 = vor.u32 %v9890_v27, %v8209_v55  ;;  %v8884_v56 = vor.u32 %v10058_v17, %v8881_v35  ;;  %v8825_v27 = vld [vmem:[#allocation11 + $0x95c] sm:$0xf0]  ;;  %v7711_v55 = vld [vmem:[#allocation11 + $0x88] sm:$0xf]  ;;  %v9768_v17 = vld [vmem:[#allocation11 + $0xa0] sm:$0xf0] }
 0x2f2   :  { %6034 = vmatpush.bf16.msrb.mxu0 %v8688_v6  ;;  %v8573_v6 = vld [vmem:[#allocation11 + $0x764] sm:$0xf0] }
 0x2f3   :  { %v8576_v26 = vor.u32 %v9981_v51, %v8573_v6  ;;  %v7824_v51 = vor.u32 %v9796_v63, %v7823_v47  ;;  %v9897_v6 = vld [vmem:[#allocation11 + $0x4ac] sm:$0xf]  ;;  %v8181_v47 = vld [vmem:[#allocation11 + $0x454] sm:$0xf0]  ;;  %v10051_v63 = vld [vmem:[#allocation11 + $0x97c] sm:$0xf] }
 0x2f4   :  { %5921 = vmatpush.bf16.msra.mxu3 %v8348_v8  ;;  %5960 = vmatpush.bf16.msrb.mxu2 %v9020_v9  ;;  %v10065_v8 = vld [vmem:[#allocation11 + $0x9ec] sm:$0xf]  ;;  %v8909_v9 = vld [vmem:[#allocation11 + $0xa04] sm:$0xf0]  ;;  %v8240_v30 = vor.u32 %v9897_v6, %v8237_v43  ;;  %v9189_v6 = vld [vmem:[#allocation11 + $0xc34] sm:$0xf0] }
 0x2f5   :  { %5999 = vmatpush.bf16.msra.mxu1 %v7904_v61  ;;  %v3145_v61 = vperm.slane %v10727_v28, 3  ;;  %v8912_v28 = vor.u32 %v10065_v8, %v8909_v9 }
 0x2f6   :  { %6035 = vmatpush.bf16.msrb.mxu0 %v8660_v31  ;;  %v10768_v31 = vpop.eup %10212 }
 0x2f7   :  { %v10215_v7 = vpop.eup %10214  ;;  %v6217_v15 = vmul.f32 %v10768_v31, %v10760_v37  ;;  %vm6222_vm1 = vweird.f32 %v10768_v31 }
 0x2f8   :  { %v10772_v1 = vadd.f32 1.0, %v10215_v7  ;;  %5922 = vmatpush.bf16.msra.mxu3 %v8320_v62  ;;  %5961 = vmatpush.bf16.msrb.mxu2 %v8992_v38  ;;  %v9782_v62 = vld [vmem:[#allocation11 + $0x110] sm:$0xf0]  ;;  %v6225_v38 = vand.u32 2147483647, %v10760_v37  ;;  %vm10798_vm2 = vmor %vm6221_vm0, %vm6222_vm1 }
 0x2f9   :  { %v6218_v4 = vsub.f32 1.0, %v6217_v15  ;;  %6000 = vmatpush.bf16.msra.mxu1 %v7876_v25  ;;  %v9299_v25 = vld [vmem:[#allocation11 + $0xcf8] sm:$0xf] }
 0x2fa   :  { %6036 = vmatpush.bf16.msrb.mxu0 %v8632_v41  ;;  %v9803_v41 = vld [vmem:[#allocation11 + $0x1b8] sm:$0xf0]  ;;  %10216 = vrcp.f32 %v10772_v1  ;;  %v6240_v53 = vand.u32 2147483647, %v10772_v1  ;;  %vm10807_vm4 = vcmp.eq.f32.partialorder %v6225_v38, 8.507059e+37  ;;  %vm6236_vm5 = vweird.f32 %v10772_v1 }
 0x2fb   :  { %v7852_v48 = vor.u32 %v9803_v41, %v7851_v39  ;;  %5923 = vmatmul.bf16.vlgmr.msra.gmra.mxu3 %v10634_v40  ;;  %5962 = vmatmul.bf16.vlgmr.msrb.gmra.mxu2 %v10669_v19  ;;  %v6219_v11 = vmul.f32 %v10768_v31, %v6218_v4  ;;  %v5782_v41 = vadd.f32 %v10758_v24, %v3145_v61  ;;  %v8853_v4 = vld [vmem:[#allocation11 + $0x994] sm:$0xf0]  ;;  %v10145_v24 = vld [vmem:[#allocation11 + $0xc68] sm:$0xf0] }
 0x2fc   :  { %5967 = vmatpush.bf16.msrb.mxu3 %v9412_v44  ;;  %6006 = vmatpush.bf16.msra.mxu2 %v8296_v46  ;;  %v5794_v44 = vpop.f32.mrf.mxu1  ;;  %vm6241_vm7 = vcmp.eq.f32.partialorder %v6240_v53, 8.507059e+37  ;;  %v9272_v38 = vor.u32 %v10159_v5, %v9271_v2  ;;  %v8097_v53 = vld [vmem:[#allocation11 + $0x3ac] sm:$0xf0]  ;;  %v7655_v37 = vld [vmem:[#allocation11 + $0x18] sm:$0xf] }
 0x2fd   :  { %6045 = vmatpush.bf16.msrb.mxu1 %v8968_v59  ;;  %v6220_v39 = vadd.f32 %v10768_v31, %v6219_v11  ;;  %v7768_v59 = vor.u32 %v9782_v62, %v7767_v49  ;;  %v10805_v13 = vadd.f32 %v5794_v44, %v5782_v41  ;;  %v9869_v41 = vld [vmem:[#allocation11 + $0x3cc] sm:$0xf]  ;;  %v9967_v2 = vld [vmem:[#allocation11 + $0x6dc] sm:$0xf] }
 0x2fe   :  { %6037 = vmatpush.bf16.msrb.mxu0 %v8604_v16  ;;  %v8268_v16 = vor.u32 %v9904_v60, %v8265_v29  ;;  %6001 = vmatmul.bf16.vlgmr.msra.gmra.mxu1 %v10615_v54  ;;  %v9883_v60 = vld [vmem:[#allocation11 + $0x43c] sm:$0xf] }
 0x2ff   :  { %v8184_v9 = vor.u32 %v9883_v60, %v8181_v47  ;;  %v5755_v61 = vpop.f32.mrf.mxu2  ;;  %v9859_v5 = vld [vmem:[#allocation11 + $0x378] sm:$0xf0] }
 0x300   :  { %v10781_v20 = vpop.eup %10216  ;;  %5968 = vmatpush.bf16.msrb.mxu3 %v9384_v57  ;;  %6007 = vmatpush.bf16.msra.mxu2 %v8268_v16  ;;  %v7739_v57 = vld [vmem:[#allocation11 + $0xc0] sm:$0xf]  ;;  %v9775_v16 = vld [vmem:[#allocation11 + $0xd8] sm:$0xf0] }
 0x301   :  { %v6232_v52 = vmul.f32 %v10781_v20, %v10772_v1  ;;  %6046 = vmatpush.bf16.msrb.mxu1 %v8940_v3  ;;  %vm6237_vm3 = vweird.f32 %v10781_v20  ;;  %v6224_v3 = vsel %vm10798_vm2, %v10768_v31, %v6220_v39  ;;  %v7740_v11 = vor.u32 %v9775_v16, %v7739_v57  ;;  %v5716_v31 = vpop.f32.mrf.mxu3  ;;  %v9243_v39 = vld [vmem:[#allocation11 + $0xc88] sm:$0xf]  ;;  %v8769_v16 = vld [vmem:[#allocation11 + $0x8ec] sm:$0xf0] }
 0x302   :  { %6038 = vmatpush.bf16.msrb.mxu0 %v8576_v26  ;;  %v9327_v26 = vld [vmem:[#allocation11 + $0xd30] sm:$0xf]  ;;  %vm10818_vm6 = vmor %vm6236_vm5, %vm6237_vm3 }
 0x303   :  { %v6233_v7 = vsub.f32 1.0, %v6232_v52  ;;  %v9328_v15 = vor.u32 %v10173_v36, %v9327_v26  ;;  %v8153_v26 = vld [vmem:[#allocation11 + $0x41c] sm:$0xf0]  ;;  %v10044_v36 = vld [vmem:[#allocation11 + $0x944] sm:$0xf] }
 0x304   :  { %5969 = vmatpush.bf16.msrb.mxu3 %v9356_v45  ;;  %6008 = vmatpush.bf16.msra.mxu2 %v8240_v30  ;;  %v5717_v30 = vadd.f32 %v5716_v31, %v10765_v22  ;;  %v5796_v49 = vpop.f32.mrf.mxu1  ;;  %v8828_v22 = vor.u32 %v10044_v36, %v8825_v27  ;;  %v9960_v36 = vld [vmem:[#allocation11 + $0x6a4] sm:$0xf] }
 0x305   :  { %v6234_v29 = vmul.f32 %v10781_v20, %v6233_v7  ;;  %6047 = vmatpush.bf16.msrb.mxu1 %v8912_v28  ;;  %v7712_v7 = vor.u32 %v9768_v17, %v7711_v55  ;;  %v10128_v55 = vld [vmem:[#allocation11 + $0xbe4] sm:$0xf]  ;;  %v9161_v17 = vld [vmem:[#allocation11 + $0xbfc] sm:$0xf0] }
 0x306   :  { %6039 = vmatpush.bf16.msrb.mxu0 %v8548_v18  ;;  %v6242_v18 = vand.u32 2147483648, %v10772_v1  ;;  %v10792_v46 = vpop.f32.mrf.mxu0  ;;  %v8856_v1 = vor.u32 %v10051_v63, %v8853_v4  ;;  %v5730_v35 = vadd.f32 %v10735_v34, %v5717_v30  ;;  %v9215_v34 = vld [vmem:[#allocation11 + $0xc50] sm:$0xf] }
 0x307   :  { %v6235_v0 = vadd.f32 %v10781_v20, %v6234_v29  ;;  %v9862_v29 = vld [vmem:[#allocation11 + $0x394] sm:$0xf]  ;;  %v5757_v57 = vpop.f32.mrf.mxu2 }
 0x308   :  { %v6243_v43 = vor.u32 1.1754944e-38, %v6242_v18  ;;  %5970 = vmatpush.bf16.msrb.mxu3 %v9328_v15  ;;  %6009 = vmatpush.bf16.msra.mxu2 %v8212_v58  ;;  %v8125_v15 = vld [vmem:[#allocation11 + $0x3e4] sm:$0xf0]  ;;  %v5743_v44 = vadd.f32 %v10756_v14, %v5730_v35  ;;  %v7683_v58 = vld [vmem:[#allocation11 + $0x50] sm:$0xf] }
 0x309   :  { %6040 = vmatmul.bf16.vlgmr.msrb.gmra.mxu0 %v10646_v42  ;;  %6048 = vmatpush.bf16.msrb.mxu1 %v8884_v56  ;;  %v6239_v45 = vsel %vm10818_vm6, %v10781_v20, %v6235_v0  ;;  %v10152_v20 = vld [vmem:[#allocation11 + $0xca0] sm:$0xf0]  ;;  %v8797_v18 = vld [vmem:[#allocation11 + $0x924] sm:$0xf0]  ;;  %v9761_v56 = vld [vmem:[#allocation11 + $0x68] sm:$0xf0]  ;;  %v8128_v60 = vor.u32 %v9869_v41, %v8125_v15  ;;  %v5718_v4 = vpop.f32.mrf.mxu3 }
 0x30a   :  { %6084 = vmatpush.bf16.msra.mxu0 %v7852_v48  ;;  %v10166_v48 = vld [vmem:[#allocation11 + $0xd10] sm:$0xf0]  ;;  %v6244_v28 = vsel %vm6241_vm7, %v6243_v43, %v6239_v45  ;;  %v7684_v63 = vor.u32 %v9761_v56, %v7683_v58  ;;  %v8075_v43 = vld [vmem:[#allocation11 + $0x360] sm:$0xf]  ;;  %v10020_v35 = vld [vmem:[#allocation11 + $0x880] sm:$0xf0] }
 0x30b   :  { %v9300_v8 = vor.u32 %v10166_v48, %v9299_v25  ;;  %v10037_v25 = vld [vmem:[#allocation11 + $0x90c] sm:$0xf]  ;;  %v9244_v48 = vor.u32 %v10152_v20, %v9243_v39  ;;  %v10030_v14 = vld [vmem:[#allocation11 + $0x8d4] sm:$0xf]  ;;  %v8489_v45 = vld [vmem:[#allocation11 + $0x6bc] sm:$0xf0]  ;;  %v8076_v30 = vor.u32 %v9859_v5, %v8075_v43 }
 0x30c   :  { %6010 = vmatpush.bf16.msra.mxu2 %v8184_v9  ;;  %v8800_v47 = vor.u32 %v10037_v25, %v8797_v18  ;;  %v9754_v0 = vld [vmem:[#allocation11 + $0x30] sm:$0xf0]  ;;  %v8100_v9 = vor.u32 %v9862_v29, %v8097_v53  ;;  %v8492_v49 = vor.u32 %v9960_v36, %v8489_v45  ;;  %v10121_v41 = vld [vmem:[#allocation11 + $0xbac] sm:$0xf]  ;;  %v8691_v25 = vld [vmem:[#allocation11 + $0x830] sm:$0xf] }
 0x30d   :  { %5971 = vmatpush.bf16.msrb.mxu3 %v9300_v8  ;;  %6049 = vmatpush.bf16.msrb.mxu1 %v8856_v1  ;;  %v9216_v8 = vor.u32 %v10145_v24, %v9215_v34  ;;  %v10027_v1 = vld [vmem:[#allocation11 + $0x8b8] sm:$0xf0]  ;;  %v7656_v31 = vor.u32 %v9754_v0, %v7655_v37  ;;  %v9845_v15 = vld [vmem:[#allocation11 + $0x308] sm:$0xf0]  ;;  %v9946_v56 = vld [vmem:[#allocation11 + $0x634] sm:$0xf] }
 0x30e   :  { %6085 = vmatpush.bf16.msra.mxu0 %v7824_v51  ;;  %v6228_v51 = vor.u32 1.1754944e-38, %v6227_v50  ;;  %v5835_v62 = vpop.f32.mrf.mxu0  ;;  %v8156_v50 = vor.u32 %v9876_v10, %v8153_v26  ;;  %v8747_v10 = vld [vmem:[#allocation11 + $0x8a0] sm:$0xf]  ;;  %v10013_v18 = vld [vmem:[#allocation11 + $0x848] sm:$0xf0] }
 0x30f   :  { %v8748_v27 = vor.u32 %v10027_v1, %v8747_v10  ;;  %v9164_v62 = vor.u32 %v10128_v55, %v9161_v17  ;;  %v8433_v34 = vld [vmem:[#allocation11 + $0x64c] sm:$0xf0]  ;;  %v10114_v24 = vld [vmem:[#allocation11 + $0xb74] sm:$0xf]  ;;  %v7991_v53 = vld [vmem:[#allocation11 + $0x2b8] sm:$0xf] }
 0x310   :  { %v6229_v52 = vsel %vm10807_vm4, %v6228_v51, %v6224_v3  ;;  %6011 = vmatpush.bf16.msra.mxu2 %v8156_v50  ;;  %v8517_v3 = vld [vmem:[#allocation11 + $0x6f4] sm:$0xf0]  ;;  %v10135_v51 = vld [vmem:[#allocation11 + $0xc1c] sm:$0xf]  ;;  %v8461_v50 = vld [vmem:[#allocation11 + $0x684] sm:$0xf0] }
 0x311   :  { %5972 = vmatpush.bf16.msrb.mxu3 %v9272_v38  ;;  %6050 = vmatpush.bf16.msrb.mxu1 %v8828_v22  ;;  %v9192_v26 = vor.u32 %v10135_v51, %v9189_v6  ;;  %v9953_v38 = vld [vmem:[#allocation11 + $0x66c] sm:$0xf]  ;;  %v9133_v22 = vld [vmem:[#allocation11 + $0xbc4] sm:$0xf0]  ;;  %v9105_v29 = vld [vmem:[#allocation11 + $0xb8c] sm:$0xf0] }
 0x312   :  { %6086 = vmatpush.bf16.msra.mxu0 %v7796_v33  ;;  %v6321_v33 = vpack.c.bf16 %v6244_v28, %v6229_v52  ;;  %v8047_v52 = vld [vmem:[#allocation11 + $0x328] sm:$0xf]  ;;  %v9852_v28 = vld [vmem:[#allocation11 + $0x340] sm:$0xf0]  ;;  %v9136_v58 = vor.u32 %v10121_v41, %v9133_v22  ;;  %v10006_v4 = vld [vmem:[#allocation11 + $0x810] sm:$0xf0] }
 0x313   :  { %v8048_v39 = vor.u32 %v9852_v28, %v8047_v52  ;;  %v9939_v37 = vld [vmem:[#allocation11 + $0x5fc] sm:$0xf]  ;;  %v8405_v0 = vld [vmem:[#allocation11 + $0x614] sm:$0xf0]  ;;  %v7963_v43 = vld [vmem:[#allocation11 + $0x280] sm:$0xf] }
 0x314   :  { %6325 = vst [vmem:[#allocation14] sm:$0xff] %v6321_v33  ;;  %6012 = vmatpush.bf16.msra.mxu2 %v8128_v60  ;;  %v8719_v33 = vld [vmem:[#allocation11 + $0x868] sm:$0xf]  ;;  %v8692_v60 = vor.u32 %v10013_v18, %v8691_v25  ;;  %v10107_v51 = vld [vmem:[#allocation11 + $0xb3c] sm:$0xf]  ;;  %v8408_v10 = vor.u32 %v9939_v37, %v8405_v0 }
 0x315   :  { %5973 = vmatpush.bf16.msrb.mxu3 %v9244_v48  ;;  %6051 = vmatpush.bf16.msrb.mxu1 %v8800_v47  ;;  %v8720_v20 = vor.u32 %v10020_v35, %v8719_v33  ;;  %v9838_v47 = vld [vmem:[#allocation11 + $0x2d0] sm:$0xf0]  ;;  %v9077_v6 = vld [vmem:[#allocation11 + $0xb54] sm:$0xf0]  ;;  %v9999_v5 = vld [vmem:[#allocation11 + $0x7d8] sm:$0xf0] }
 0x316   :  { %6087 = vmatpush.bf16.msra.mxu0 %v7768_v59  ;;  %v10830_v59 = vadd.f32 %v5755_v61, %v5743_v44  ;;  %v8520_v61 = vor.u32 %v9967_v2, %v8517_v3  ;;  %v8464_v44 = vor.u32 %v9953_v38, %v8461_v50  ;;  %v7992_v2 = vor.u32 %v9838_v47, %v7991_v53  ;;  %v7935_v55 = vld [vmem:[#allocation11 + $0x248] sm:$0xf]  ;;  %v9824_v17 = vld [vmem:[#allocation11 + $0x260] sm:$0xf0]  ;;  %v9925_v38 = vld [vmem:[#allocation11 + $0x58c] sm:$0xf] }
 0x317   :  { %v9080_v1 = vor.u32 %v10107_v51, %v9077_v6  ;;  %v8607_v52 = vld [vmem:[#allocation11 + $0x788] sm:$0xf]  ;;  %v9992_v28 = vld [vmem:[#allocation11 + $0x7a0] sm:$0xf0]  ;;  %v10093_v41 = vld [vmem:[#allocation11 + $0xacc] sm:$0xf] }
 0x318   :  { %6013 = vmatpush.bf16.msra.mxu2 %v8100_v9  ;;  %v8635_v9 = vld [vmem:[#allocation11 + $0x7c0] sm:$0xf]  ;;  %v8349_v50 = vld [vmem:[#allocation11 + $0x5a4] sm:$0xf0]  ;;  %v8579_v25 = vld [vmem:[#allocation11 + $0x750] sm:$0xf] }
 0x319   :  { %5974 = vmatpush.bf16.msrb.mxu3 %v9216_v8  ;;  %v9831_v8 = vld [vmem:[#allocation11 + $0x298] sm:$0xf0]  ;;  %v9021_v22 = vld [vmem:[#allocation11 + $0xae4] sm:$0xf0]  ;;  %v9985_v18 = vld [vmem:[#allocation11 + $0x768] sm:$0xf0] }
 0x31a   :  { %6088 = vmatpush.bf16.msra.mxu0 %v7740_v11  ;;  %v8772_v11 = vor.u32 %v10030_v14, %v8769_v16  ;;  %v10836_v57 = vpop.f32.mrf.mxu1  ;;  %v8436_v14 = vor.u32 %v9946_v56, %v8433_v34  ;;  %v9108_v16 = vor.u32 %v10114_v24, %v9105_v29  ;;  %v9918_v56 = vld [vmem:[#allocation11 + $0x554] sm:$0xf]  ;;  %v8321_v34 = vld [vmem:[#allocation11 + $0x56c] sm:$0xf0]  ;;  %v8580_v24 = vor.u32 %v9985_v18, %v8579_v25  ;;  %v10191_v37 = vld [vmem:[#allocation11 + $0xddc] sm:$0xf] }
 0x31b   :  { %6014 = vmatmul.bf16.vlgmr.msra.gmra.mxu2 %v10631_v23  ;;  %v8993_v47 = vld [vmem:[#allocation11 + $0xaac] sm:$0xf0]  ;;  %v9413_v0 = vld [vmem:[#allocation11 + $0xdf4] sm:$0xf0]  ;;  %v8324_v51 = vor.u32 %v9918_v56, %v8321_v34 }
 0x31c   :  { %6052 = vmatpush.bf16.msrb.mxu1 %v8772_v11  ;;  %6058 = vmatpush.bf16.msrb.mxu2 %v9192_v26  ;;  %v9932_v11 = vld [vmem:[#allocation11 + $0x5c4] sm:$0xf]  ;;  %v8636_v26 = vor.u32 %v9999_v5, %v8635_v9  ;;  %v9329_v25 = vld [vmem:[#allocation11 + $0xd4c] sm:$0xf0]  ;;  %v8215_v18 = vld [vmem:[#allocation11 + $0x478] sm:$0xf] }
 0x31d   :  { %6019 = vmatpush.bf16.msra.mxu3 %v8520_v61  ;;  %v7964_v61 = vor.u32 %v9831_v8, %v7963_v43  ;;  %v10842_v45 = vpop.f32.mrf.mxu2  ;;  %v8971_v43 = vld [vmem:[#allocation11 + $0xa60] sm:$0xf]  ;;  %v10083_v8 = vld [vmem:[#allocation11 + $0xa78] sm:$0xf0] }
 0x31e   :  { %6089 = vmatpush.bf16.msra.mxu0 %v7712_v7  ;;  %v8019_v7 = vld [vmem:[#allocation11 + $0x2f0] sm:$0xf]  ;;  %5975 = vmatmul.bf16.vlgmr.msrb.gmra.mxu3 %v10683_v32  ;;  %v10840_v36 = vpop.f32.mrf.mxu3 }
 0x31f   :  { %6053 = vmatmul.bf16.vlgmr.msrb.gmra.mxu1 %v10657_v21  ;;  %v8020_v48 = vor.u32 %v9845_v15, %v8019_v7  ;;  %v7907_v7 = vld [vmem:[#allocation11 + $0x210] sm:$0xf]  ;;  %v9817_v15 = vld [vmem:[#allocation11 + $0x228] sm:$0xf0] }
 0x320   :  { %6097 = vmatpush.bf16.msra.mxu1 %v8076_v30  ;;  %6059 = vmatpush.bf16.msrb.mxu2 %v9164_v62  ;;  %v10100_v30 = vld [vmem:[#allocation11 + $0xb04] sm:$0xf] }
 0x321   :  { %6020 = vmatpush.bf16.msra.mxu3 %v8492_v49 }
 0x322   :  { %6090 = vmatpush.bf16.msra.mxu0 %v7684_v63  ;;  %v8663_v63 = vld [vmem:[#allocation11 + $0x7f8] sm:$0xf]  ;;  %v5848_v33 = vpop.f32.mrf.mxu1 }
 0x323   :  { %v8664_v3 = vor.u32 %v10006_v4, %v8663_v63  ;;  %v7879_v63 = vld [vmem:[#allocation11 + $0x1d8] sm:$0xf]  ;;  %v9810_v4 = vld [vmem:[#allocation11 + $0x1f0] sm:$0xf0] }
 0x324   :  { %6098 = vmatpush.bf16.msra.mxu1 %v8048_v39  ;;  %6060 = vmatpush.bf16.msrb.mxu2 %v9136_v58  ;;  %v7936_v39 = vor.u32 %v9824_v17, %v7935_v55  ;;  %v9024_v58 = vor.u32 %v10093_v41, %v9021_v22  ;;  %v7880_v9 = vor.u32 %v9810_v4, %v7879_v63  ;;  %v10076_v55 = vld [vmem:[#allocation11 + $0xa40] sm:$0xf0]  ;;  %v8187_v63 = vld [vmem:[#allocation11 + $0x440] sm:$0xf]  ;;  %v9887_v4 = vld [vmem:[#allocation11 + $0x458] sm:$0xf0] }
 0x325   :  { %6021 = vmatpush.bf16.msra.mxu3 %v8464_v44  ;;  %v8352_v44 = vor.u32 %v9925_v38, %v8349_v50  ;;  %v5809_v53 = vpop.f32.mrf.mxu2  ;;  %v8915_v38 = vld [vmem:[#allocation11 + $0x9f0] sm:$0xf]  ;;  %v10069_v50 = vld [vmem:[#allocation11 + $0xa08] sm:$0xf0] }
 0x326   :  { %6091 = vmatpush.bf16.msra.mxu0 %v7656_v31  ;;  %v8377_v31 = vld [vmem:[#allocation11 + $0x5dc] sm:$0xf0]  ;;  %v5770_v29 = vpop.f32.mrf.mxu3 }
 0x327   :  { %v8380_v49 = vor.u32 %v9932_v11, %v8377_v31  ;;  %v10184_v11 = vld [vmem:[#allocation11 + $0xda4] sm:$0xf]  ;;  %v8972_v31 = vor.u32 %v10083_v8, %v8971_v43  ;;  %v9273_v43 = vld [vmem:[#allocation11 + $0xcdc] sm:$0xf0]  ;;  %v8159_v8 = vld [vmem:[#allocation11 + $0x408] sm:$0xf] }
 0x328   :  { %6099 = vmatpush.bf16.msra.mxu1 %v8020_v48  ;;  %6061 = vmatpush.bf16.msrb.mxu2 %v9108_v16  ;;  %v10086_v48 = vld [vmem:[#allocation11 + $0xa94] sm:$0xf] }
 0x329   :  { %6092 = vmatmul.bf16.vlgmr.msra.gmra.mxu0 %v10611_v12  ;;  %v10838_v12 = vpop.f32.mrf.mxu0  ;;  %6022 = vmatpush.bf16.msra.mxu3 %v8436_v14  ;;  %v8551_v14 = vld [vmem:[#allocation11 + $0x718] sm:$0xf]  ;;  %v9978_v16 = vld [vmem:[#allocation11 + $0x730] sm:$0xf0]  ;;  %v8996_v6 = vor.u32 %v10086_v48, %v8993_v47 }
 0x32a   :  { %6136 = vmatpush.bf16.msrb.mxu0 %v8748_v27  ;;  %v9049_v27 = vld [vmem:[#allocation11 + $0xb1c] sm:$0xf0]  ;;  %v8552_v5 = vor.u32 %v9978_v16, %v8551_v14  ;;  %v9301_v47 = vld [vmem:[#allocation11 + $0xd14] sm:$0xf0]  ;;  %v10055_v16 = vld [vmem:[#allocation11 + $0x998] sm:$0xf0] }
 0x32b   :  { %v9052_v62 = vor.u32 %v10100_v30, %v9049_v27  ;;  %v9908_v30 = vld [vmem:[#allocation11 + $0x500] sm:$0xf0]  ;;  %v8943_v27 = vld [vmem:[#allocation11 + $0xa28] sm:$0xf]  ;;  %v8859_v14 = vld [vmem:[#allocation11 + $0x980] sm:$0xf] }
 0x32c   :  { %6100 = vmatpush.bf16.msra.mxu1 %v7992_v2  ;;  %6062 = vmatpush.bf16.msrb.mxu2 %v9080_v1  ;;  %v8299_v2 = vld [vmem:[#allocation11 + $0x520] sm:$0xf]  ;;  %v8944_v33 = vor.u32 %v10076_v55, %v8943_v27  ;;  %v9245_v27 = vld [vmem:[#allocation11 + $0xca4] sm:$0xf0]  ;;  %v8131_v55 = vld [vmem:[#allocation11 + $0x3d0] sm:$0xf] }
 0x32d   :  { %6023 = vmatpush.bf16.msra.mxu3 %v8408_v10  ;;  %v9416_v10 = vor.u32 %v10191_v37, %v9413_v0  ;;  %v8188_v0 = vor.u32 %v9887_v4, %v8187_v63  ;;  %v10132_v63 = vld [vmem:[#allocation11 + $0xc00] sm:$0xf0] }
 0x32e   :  { %6137 = vmatpush.bf16.msrb.mxu0 %v8720_v20  ;;  %v8608_v20 = vor.u32 %v9992_v28, %v8607_v52  ;;  %v10177_v28 = vld [vmem:[#allocation11 + $0xd6c] sm:$0xf] }
 0x330   :  { %6101 = vmatpush.bf16.msra.mxu1 %v7964_v61  ;;  %6063 = vmatpush.bf16.msrb.mxu2 %v9052_v62  ;;  %v9385_v61 = vld [vmem:[#allocation11 + $0xdbc] sm:$0xf0]  ;;  %v9901_v62 = vld [vmem:[#allocation11 + $0x4c8] sm:$0xf0] }
 0x331   :  { %v5887_v35 = vpop.f32.mrf.mxu0  ;;  %6024 = vmatpush.bf16.msra.mxu3 %v8380_v49  ;;  %v9388_v17 = vor.u32 %v10184_v11, %v9385_v61  ;;  %v8243_v49 = vld [vmem:[#allocation11 + $0x4b0] sm:$0xf] }
 0x332   :  { %6138 = vmatpush.bf16.msrb.mxu0 %v8692_v60  ;;  %v7908_v60 = vor.u32 %v9817_v15, %v7907_v7  ;;  %v9357_v35 = vld [vmem:[#allocation11 + $0xd84] sm:$0xf0]  ;;  %v8244_v22 = vor.u32 %v9901_v62, %v8243_v49  ;;  %v10170_v7 = vld [vmem:[#allocation11 + $0xd34] sm:$0xf]  ;;  %v8916_v15 = vor.u32 %v10069_v50, %v8915_v38  ;;  %v9217_v62 = vld [vmem:[#allocation11 + $0xc6c] sm:$0xf0] }
 0x333   :  { %v9360_v41 = vor.u32 %v10177_v28, %v9357_v35  ;;  %v10041_v28 = vld [vmem:[#allocation11 + $0x928] sm:$0xf0]  ;;  %v10142_v49 = vld [vmem:[#allocation11 + $0xc54] sm:$0xf] }
 0x334   :  { %6102 = vmatpush.bf16.msra.mxu1 %v7936_v39  ;;  %6064 = vmatpush.bf16.msrb.mxu2 %v9024_v58  ;;  %v10847_v39 = vld [vmem:[#allocation13] sm:$0xff]  ;;  %v8887_v58 = vld [vmem:[#allocation11 + $0x9b8] sm:$0xf] }
 0x335   :  { %6025 = vmatpush.bf16.msra.mxu3 %v8352_v44  ;;  %v9894_v44 = vld [vmem:[#allocation11 + $0x490] sm:$0xf0] }
 0x336   :  { %6139 = vmatpush.bf16.msrb.mxu0 %v8664_v3  ;;  %v9915_v3 = vld [vmem:[#allocation11 + $0x538] sm:$0xf0] }
 0x337   :  { %v8300_v1 = vor.u32 %v9915_v3, %v8299_v2  ;;  %v10156_v2 = vld [vmem:[#allocation11 + $0xcc4] sm:$0xf]  ;;  %v8860_v3 = vor.u32 %v10055_v16, %v8859_v14  ;;  %v9957_v16 = vld [vmem:[#allocation11 + $0x688] sm:$0xf0] }
 0x338   :  { %6103 = vmatpush.bf16.msra.mxu1 %v7908_v60  ;;  %6065 = vmatpush.bf16.msrb.mxu2 %v8996_v6  ;;  %v8216_v60 = vor.u32 %v9894_v44, %v8215_v18  ;;  %v9195_v18 = vld [vmem:[#allocation11 + $0xc20] sm:$0xf]  ;;  %v10139_v44 = vld [vmem:[#allocation11 + $0xc38] sm:$0xf0] }
 0x339   :  { %6026 = vmatpush.bf16.msra.mxu3 %v8324_v51 }
 0x33a   :  { %6140 = vmatpush.bf16.msrb.mxu0 %v8636_v26  ;;  %v8271_v26 = vld [vmem:[#allocation11 + $0x4e8] sm:$0xf]  ;;  %v5898_v34 = vpop.f32.mrf.mxu1 }
 0x33b   :  { %v8272_v52 = vor.u32 %v9908_v30, %v8271_v26  ;;  %6066 = vmatmul.bf16.vlgmr.msrb.gmra.mxu2 %v10669_v19  ;;  %v10149_v26 = vld [vmem:[#allocation11 + $0xc8c] sm:$0xf] }
 0x33c   :  { %6104 = vmatpush.bf16.msra.mxu1 %v7880_v9  ;;  %6110 = vmatpush.bf16.msra.mxu2 %v8300_v1  ;;  %v9880_v9 = vld [vmem:[#allocation11 + $0x420] sm:$0xf0] }
 0x33d   :  { %6071 = vmatpush.bf16.msrb.mxu3 %v9416_v10  ;;  %v10858_v6 = vpop.f32.mrf.mxu2  ;;  %v8831_v10 = vld [vmem:[#allocation11 + $0x948] sm:$0xf]  ;;  %v10048_v1 = vld [vmem:[#allocation11 + $0x960] sm:$0xf0]  ;;  %v8160_v61 = vor.u32 %v9880_v9, %v8159_v8  ;;  %v10118_v8 = vld [vmem:[#allocation11 + $0xb90] sm:$0xf0] }
 0x33e   :  { %6141 = vmatpush.bf16.msrb.mxu0 %v8608_v20  ;;  %6027 = vmatmul.bf16.vlgmr.msra.gmra.mxu3 %v10634_v40  ;;  %v3146_v20 = vperm.slane %v10847_v39, 4  ;;  %v5820_v51 = vpop.f32.mrf.mxu3  ;;  %v8832_v30 = vor.u32 %v10048_v1, %v8831_v10 }
 0x33f   :  { %6105 = vmatmul.bf16.vlgmr.msra.gmra.mxu1 %v10615_v54  ;;  %v10062_v54 = vld [vmem:[#allocation11 + $0x9d0] sm:$0xf0] }
 0x340   :  { %6149 = vmatpush.bf16.msrb.mxu1 %v8972_v31  ;;  %6111 = vmatpush.bf16.msra.mxu2 %v8272_v52  ;;  %v5886_v56 = vadd.f32 %v10838_v12, %v3146_v20  ;;  %v8888_v53 = vor.u32 %v10062_v54, %v8887_v58  ;;  %v5808_v12 = vadd.f32 %v10842_v45, %v10805_v13  ;;  %v8803_v52 = vld [vmem:[#allocation11 + $0x910] sm:$0xf]  ;;  %v8103_v20 = vld [vmem:[#allocation11 + $0x398] sm:$0xf] }
 0x341   :  { %6072 = vmatpush.bf16.msrb.mxu3 %v9388_v17  ;;  %v9276_v31 = vor.u32 %v10156_v2, %v9273_v43  ;;  %v9873_v17 = vld [vmem:[#allocation11 + $0x3e8] sm:$0xf0]  ;;  %v5769_v58 = vadd.f32 %v10840_v36, %v10830_v59  ;;  %v9220_v54 = vor.u32 %v10142_v49, %v9217_v62  ;;  %v8467_v36 = vld [vmem:[#allocation11 + $0x670] sm:$0xf]  ;;  %v9111_v43 = vld [vmem:[#allocation11 + $0xb78] sm:$0xf] }
 0x342   :  { %6142 = vmatpush.bf16.msrb.mxu0 %v8580_v24  ;;  %v10163_v24 = vld [vmem:[#allocation11 + $0xcfc] sm:$0xf]  ;;  %v10854_v29 = vadd.f32 %v5898_v34, %v5886_v56  ;;  %v5900_v45 = vpop.f32.mrf.mxu1  ;;  %v8132_v35 = vor.u32 %v9873_v17, %v8131_v55  ;;  %v8383_v17 = vld [vmem:[#allocation11 + $0x5c8] sm:$0xf] }
 0x343   :  { %v9304_v37 = vor.u32 %v10163_v24, %v9301_v47  ;;  %v8495_v24 = vld [vmem:[#allocation11 + $0x6a8] sm:$0xf]  ;;  %v9423_v4 = vmul.f32 -1.442695, %v5769_v58  ;;  %v8411_v45 = vld [vmem:[#allocation11 + $0x600] sm:$0xf] }
 0x344   :  { %6150 = vmatpush.bf16.msrb.mxu1 %v8944_v33  ;;  %6112 = vmatpush.bf16.msra.mxu2 %v8244_v22  ;;  %v9248_v33 = vor.u32 %v10149_v26, %v9245_v27  ;;  %v8775_v22 = vld [vmem:[#allocation11 + $0x8d8] sm:$0xf]  ;;  %v9167_v47 = vld [vmem:[#allocation11 + $0xbe8] sm:$0xf] }
 0x345   :  { %6073 = vmatpush.bf16.msrb.mxu3 %v9360_v41  ;;  %v5861_v50 = vpop.f32.mrf.mxu2  ;;  %v9866_v41 = vld [vmem:[#allocation11 + $0x3b0] sm:$0xf0]  ;;  %v9168_v59 = vor.u32 %v10132_v63, %v9167_v47  ;;  %10218 = vpow2.f32 %v9423_v4 }
 0x346   :  { %6143 = vmatpush.bf16.msrb.mxu0 %v8552_v5  ;;  %v10852_v48 = vpop.f32.mrf.mxu0  ;;  %v5821_v5 = vadd.f32 %v5820_v51, %v5808_v12  ;;  %v5822_v38 = vpop.f32.mrf.mxu3  ;;  %v8104_v56 = vor.u32 %v9866_v41, %v8103_v20  ;;  %v9139_v12 = vld [vmem:[#allocation11 + $0xbb0] sm:$0xf]  ;;  %v9950_v51 = vld [vmem:[#allocation11 + $0x650] sm:$0xf0]  ;;  %v9929_v41 = vld [vmem:[#allocation11 + $0x5a8] sm:$0xf0] }
 0x347   :  { %v8355_v20 = vld [vmem:[#allocation11 + $0x590] sm:$0xf] }
 0x348   :  { %6151 = vmatpush.bf16.msrb.mxu1 %v8916_v15  ;;  %6113 = vmatpush.bf16.msra.mxu2 %v8216_v60  ;;  %v10861_v13 = vadd.f32 %v10792_v46, %v5821_v5  ;;  %v8804_v46 = vor.u32 %v10041_v28, %v8803_v52  ;;  %v8523_v15 = vld [vmem:[#allocation11 + $0x6e0] sm:$0xf]  ;;  %v9196_v60 = vor.u32 %v10139_v44, %v9195_v18  ;;  %v9055_v28 = vld [vmem:[#allocation11 + $0xb08] sm:$0xf]  ;;  %v9922_v18 = vld [vmem:[#allocation11 + $0x570] sm:$0xf0] }
 0x349   :  { %6144 = vmatmul.bf16.vlgmr.msrb.gmra.mxu0 %v10646_v42  ;;  %v9332_v42 = vor.u32 %v10170_v7, %v9329_v25  ;;  %v10034_v7 = vld [vmem:[#allocation11 + $0x8f0] sm:$0xf0]  ;;  %v9971_v25 = vld [vmem:[#allocation11 + $0x6f8] sm:$0xf0]  ;;  %v8999_v44 = vld [vmem:[#allocation11 + $0xa98] sm:$0xf] }
 0x34a   :  { %v8776_v34 = vor.u32 %v10034_v7, %v8775_v22  ;;  %v5847_v10 = vadd.f32 %v10836_v57, %v10861_v13  ;;  %v9936_v57 = vld [vmem:[#allocation11 + $0x5e0] sm:$0xf0]  ;;  %v9027_v22 = vld [vmem:[#allocation11 + $0xad0] sm:$0xf]  ;;  %v10097_v7 = vld [vmem:[#allocation11 + $0xae8] sm:$0xf0] }
 0x34b   :  { %6074 = vmatpush.bf16.msrb.mxu3 %v9332_v42  ;;  %v8524_v42 = vor.u32 %v9971_v25, %v8523_v15  ;;  %v10219_v5 = vpop.eup %10218  ;;  %v8384_v62 = vor.u32 %v9936_v57, %v8383_v17  ;;  %v8356_v15 = vor.u32 %v9929_v41, %v8355_v20  ;;  %v9028_v25 = vor.u32 %v10097_v7, %v9027_v22 }
 0x34c   :  { %6152 = vmatpush.bf16.msrb.mxu1 %v8888_v53  ;;  %6114 = vmatpush.bf16.msra.mxu2 %v8188_v0  ;;  %v9964_v53 = vld [vmem:[#allocation11 + $0x6c0] sm:$0xf0]  ;;  %v8468_v0 = vor.u32 %v9957_v16, %v8467_v36  ;;  %v10874_v26 = vadd.f32 1.0, %v10219_v5  ;;  %v5860_v27 = vadd.f32 %v10858_v6, %v5847_v10 }
 0x34d   :  { %v8496_v14 = vor.u32 %v9964_v53, %v8495_v24  ;;  %v10188_v36 = vld [vmem:[#allocation11 + $0xdc0] sm:$0xf0] }
 0x34e   :  { %v5939_v11 = vpop.f32.mrf.mxu0  ;;  %10220 = vrcp.f32 %v10874_v26  ;;  %vm6251_vm9 = vweird.f32 %v10874_v26 }
 0x34f   :  { %6075 = vmatpush.bf16.msrb.mxu3 %v9304_v37  ;;  %v10125_v37 = vld [vmem:[#allocation11 + $0xbc8] sm:$0xf0]  ;;  %v9943_v11 = vld [vmem:[#allocation11 + $0x618] sm:$0xf0] }
 0x350   :  { %6153 = vmatpush.bf16.msrb.mxu1 %v8860_v3  ;;  %6115 = vmatpush.bf16.msra.mxu2 %v8160_v61  ;;  %v9140_v2 = vor.u32 %v10125_v37, %v9139_v12  ;;  %v8439_v3 = vld [vmem:[#allocation11 + $0x638] sm:$0xf]  ;;  %v10111_v61 = vld [vmem:[#allocation11 + $0xb58] sm:$0xf0]  ;;  %v9363_v37 = vld [vmem:[#allocation11 + $0xd70] sm:$0xf] }
 0x351   :  { %v8440_v9 = vor.u32 %v9950_v51, %v8439_v3 }
 0x353   :  { %6076 = vmatpush.bf16.msrb.mxu3 %v9276_v31  ;;  %v9083_v31 = vld [vmem:[#allocation11 + $0xb40] sm:$0xf] }
 0x354   :  { %6154 = vmatpush.bf16.msrb.mxu1 %v8832_v30  ;;  %6116 = vmatpush.bf16.msra.mxu2 %v8132_v35  ;;  %v8412_v30 = vor.u32 %v9943_v11, %v8411_v45  ;;  %v9084_v55 = vor.u32 %v10111_v61, %v9083_v31  ;;  %v10881_v58 = vpop.eup %10220  ;;  %v9307_v31 = vld [vmem:[#allocation11 + $0xd00] sm:$0xf]  ;;  %v10167_v61 = vld [vmem:[#allocation11 + $0xd18] sm:$0xf0] }
 0x355   :  { %v6247_v47 = vmul.f32 %v10881_v58, %v10874_v26  ;;  %vm6252_vm8 = vweird.f32 %v10881_v58 }
 0x356   :  { %vm10897_vm11 = vmor %vm6251_vm9, %vm6252_vm8 }
 0x357   :  { %6077 = vmatpush.bf16.msrb.mxu3 %v9248_v33  ;;  %v10104_v33 = vld [vmem:[#allocation11 + $0xb20] sm:$0xf0]  ;;  %v6248_v16 = vsub.f32 1.0, %v6247_v47 }
 0x358   :  { %6155 = vmatpush.bf16.msrb.mxu1 %v8804_v46  ;;  %6117 = vmatpush.bf16.msra.mxu2 %v8104_v56  ;;  %v9056_v50 = vor.u32 %v10104_v33, %v9055_v28 }
 0x35b   :  { %6078 = vmatpush.bf16.msrb.mxu3 %v9220_v54  ;;  %6118 = vmatmul.bf16.vlgmr.msra.gmra.mxu2 %v10631_v23  ;;  %v10870_v23 = vpop.f32.mrf.mxu1 }
 0x35c   :  { %6156 = vmatpush.bf16.msrb.mxu1 %v8776_v34  ;;  %6162 = vmatpush.bf16.msrb.mxu2 %v9196_v60  ;;  %v10090_v34 = vld [vmem:[#allocation11 + $0xab0] sm:$0xf0]  ;;  %v10195_v60 = vld [vmem:[#allocation11 + $0xdf8] sm:$0xf0] }
 0x35d   :  { %v5911_v52 = vpop.f32.mrf.mxu2  ;;  %v9000_v63 = vor.u32 %v10090_v34, %v8999_v44  ;;  %v9223_v34 = vld [vmem:[#allocation11 + $0xc58] sm:$0xf] }
 0x35e   :  { %6079 = vmatmul.bf16.vlgmr.msrb.gmra.mxu3 %v10683_v32  ;;  %v5872_v13 = vpop.f32.mrf.mxu3  ;;  %v10878_v49 = vadd.f32 %v5911_v52, %v10854_v29  ;;  %v8327_v29 = vld [vmem:[#allocation11 + $0x558] sm:$0xf] }
 0x35f   :  { %6123 = vmatpush.bf16.msra.mxu3 %v8524_v42  ;;  %6157 = vmatmul.bf16.vlgmr.msrb.gmra.mxu1 %v10657_v21  ;;  %v9112_v21 = vor.u32 %v10118_v8, %v9111_v43  ;;  %v5873_v35 = vadd.f32 %v5872_v13, %v5860_v27  ;;  %v9419_v42 = vld [vmem:[#allocation11 + $0xde0] sm:$0xf]  ;;  %v8328_v24 = vor.u32 %v9922_v18, %v8327_v29  ;;  %v3147_v43 = vperm.slane %v10847_v39, 5  ;;  %v9335_v8 = vld [vmem:[#allocation11 + $0xd38] sm:$0xf] }
 0x360   :  { %6163 = vmatpush.bf16.msrb.mxu2 %v9168_v59  ;;  %v9420_v4 = vor.u32 %v10195_v60, %v9419_v42  ;;  %v9391_v59 = vld [vmem:[#allocation11 + $0xda8] sm:$0xf]  ;;  %v10153_v29 = vld [vmem:[#allocation11 + $0xca8] sm:$0xf0]  ;;  %v10146_v42 = vld [vmem:[#allocation11 + $0xc70] sm:$0xf0] }
 0x361   :  { %v9424_v46 = vmul.f32 -1.442695, %v5873_v35  ;;  %v9392_v12 = vor.u32 %v10188_v36, %v9391_v59 }
 0x363   :  { %6124 = vmatpush.bf16.msra.mxu3 %v8496_v14  ;;  %v5952_v38 = vpop.f32.mrf.mxu1  ;;  %10222 = vpow2.f32 %v9424_v46  ;;  %v10160_v46 = vld [vmem:[#allocation11 + $0xce0] sm:$0xf0] }
 0x364   :  { %6164 = vmatpush.bf16.msrb.mxu2 %v9140_v2  ;;  %v6249_v2 = vmul.f32 %v10881_v58, %v6248_v16  ;;  %v3148_v16 = vperm.slane %v10847_v39, 6 }
 0x365   :  { %v5913_v56 = vpop.f32.mrf.mxu2 }
 0x366   :  { %v10872_v1 = vpop.f32.mrf.mxu0  ;;  %v5874_v54 = vpop.f32.mrf.mxu3  ;;  %v6250_v10 = vadd.f32 %v10881_v58, %v6249_v2 }
 0x367   :  { %6125 = vmatpush.bf16.msra.mxu3 %v8468_v0  ;;  %v10181_v0 = vld [vmem:[#allocation11 + $0xd88] sm:$0xf0] }
 0x368   :  { %6165 = vmatpush.bf16.msrb.mxu2 %v9112_v21  ;;  %v9364_v3 = vor.u32 %v10181_v0, %v9363_v37 }
 0x369   :  { %v10223_v53 = vpop.eup %10222 }
 0x36a   :  { %v6212_v14 = vadd.f32 1.0, %v10223_v53 }
 0x36b   :  { %6126 = vmatpush.bf16.msra.mxu3 %v8440_v9  ;;  %v10174_v9 = vld [vmem:[#allocation11 + $0xd50] sm:$0xf0] }
 0x36c   :  { %6166 = vmatpush.bf16.msrb.mxu2 %v9084_v55  ;;  %10224 = vrcp.f32 %v6212_v14  ;;  %v9336_v45 = vor.u32 %v10174_v9, %v9335_v8  ;;  %v6272_v11 = vand.u32 2147483648, %v6212_v14  ;;  %v6270_v55 = vand.u32 2147483647, %v6212_v14 }
 0x36d   :  { %vm6266_vm12 = vweird.f32 %v6212_v14 }
 0x36e   :  { %v5991_v6 = vpop.f32.mrf.mxu0  ;;  %v6273_v35 = vor.u32 1.1754944e-38, %v6272_v11  ;;  %vm6271_vm15 = vcmp.eq.f32.partialorder %v6270_v55, 8.507059e+37 }
 0x36f   :  { %6127 = vmatpush.bf16.msra.mxu3 %v8412_v30  ;;  %v6255_v30 = vand.u32 2147483647, %v10874_v26 }
 0x370   :  { %6167 = vmatpush.bf16.msrb.mxu2 %v9056_v50 }
 0x371   :  { %vm6256_vm14 = vcmp.eq.f32.partialorder %v6255_v30, 8.507059e+37 }
 0x372   :  { %v10225_v51 = vpop.eup %10224 }
 0x373   :  { %6128 = vmatpush.bf16.msra.mxu3 %v8384_v62  ;;  %v6262_v5 = vmul.f32 %v10225_v51, %v6212_v14  ;;  %vm6267_vm10 = vweird.f32 %v10225_v51  ;;  %v9279_v62 = vld [vmem:[#allocation11 + $0xcc8] sm:$0xf] }
 0x374   :  { %6168 = vmatpush.bf16.msrb.mxu2 %v9028_v25  ;;  %vm6268_vm13 = vmor %vm6266_vm12, %vm6267_vm10  ;;  %v9280_v7 = vor.u32 %v10160_v46, %v9279_v62  ;;  %v9251_v25 = vld [vmem:[#allocation11 + $0xc90] sm:$0xf] }
 0x375   :  { %v6263_v21 = vsub.f32 1.0, %v6262_v5  ;;  %v9252_v56 = vor.u32 %v10153_v29, %v9251_v25 }
 0x377   :  { %6129 = vmatpush.bf16.msra.mxu3 %v8356_v15  ;;  %v6264_v27 = vmul.f32 %v10225_v51, %v6263_v21 }
 0x378   :  { %6169 = vmatpush.bf16.msrb.mxu2 %v9000_v63 }
 0x379   :  { %v6265_v28 = vadd.f32 %v10225_v51, %v6264_v27 }
 0x37b   :  { %6130 = vmatpush.bf16.msra.mxu3 %v8328_v24  ;;  %6170 = vmatmul.bf16.vlgmr.msrb.gmra.mxu2 %v10669_v19  ;;  %v5990_v19 = vadd.f32 %v10872_v1, %v3147_v43  ;;  %v6002_v17 = vpop.f32.mrf.mxu1  ;;  %v9308_v1 = vor.u32 %v10167_v61, %v9307_v31  ;;  %v6269_v38 = vsel %vm6268_vm13, %v10225_v51, %v6265_v28 }
 0x37c   :  { %v6274_v41 = vsel %vm6271_vm15, %v6273_v35, %v6269_v38 }
 0x37d   :  { %v6003_v52 = vadd.f32 %v6002_v17, %v5990_v19 }
 0x37e   :  { %6131 = vmatmul.bf16.vlgmr.msra.gmra.mxu3 %v10634_v40  ;;  %v6257_v40 = vand.u32 2147483648, %v10874_v26  ;;  %v6254_v26 = vsel %vm10897_vm11, %v10881_v58, %v6250_v10  ;;  %v5924_v6 = vpop.f32.mrf.mxu3  ;;  %v5963_v50 = vpop.f32.mrf.mxu2 }
 0x37f   :  { %6175 = vmatpush.bf16.msrb.mxu3 %v9420_v4  ;;  %v5925_v22 = vadd.f32 %v5924_v6, %v10878_v49  ;;  %v9224_v49 = vor.u32 %v10146_v42, %v9223_v34 }
 0x380   :  { %v6258_v33 = vor.u32 1.1754944e-38, %v6257_v40 }
 0x381   :  { %v5938_v18 = vadd.f32 %v10852_v48, %v5925_v22 }
 0x382   :  { %v6259_v20 = vsel %vm6256_vm14, %v6258_v33, %v6254_v26 }
 0x383   :  { %6176 = vmatpush.bf16.msrb.mxu3 %v9392_v12  ;;  %v6322_v15 = vpack.c.bf16 %v6274_v41, %v6259_v20  ;;  %v6004_v44 = vpop.f32.mrf.mxu1  ;;  %v5951_v54 = vadd.f32 %v10870_v23, %v5938_v18 }
 0x385   :  { %6326 = vst [vmem:[#allocation14 + $0x8] sm:$0xff] %v6322_v15  ;;  %v5964_v60 = vadd.f32 %v5963_v50, %v5951_v54 }
 0x386   :  { %v6041_v57 = vpop.f32.mrf.mxu0  ;;  %v5926_v24 = vpop.f32.mrf.mxu3 }
 0x387   :  { %6177 = vmatpush.bf16.msrb.mxu3 %v9364_v3  ;;  %v5965_v53 = vpop.f32.mrf.mxu2 }
 0x38b   :  { %6178 = vmatpush.bf16.msrb.mxu3 %v9336_v45 }
 0x38e   :  { %v6043_v58 = vpop.f32.mrf.mxu0 }
 0x38f   :  { %6179 = vmatpush.bf16.msrb.mxu3 %v9308_v1 }
 0x393   :  { %6180 = vmatpush.bf16.msrb.mxu3 %v9280_v7 }
 0x397   :  { %6181 = vmatpush.bf16.msrb.mxu3 %v9252_v56 }
 0x39b   :  { %6182 = vmatpush.bf16.msrb.mxu3 %v9224_v49 }
 0x39c   :  { %v6054_v47 = vpop.f32.mrf.mxu1 }
 0x39e   :  { %6183 = vmatmul.bf16.vlgmr.msrb.gmra.mxu3 %v10683_v32  ;;  %v6015_v4 = vpop.f32.mrf.mxu2 }
 0x39f   :  { %v6016_v3 = vadd.f32 %v6015_v4, %v6003_v52 }
 0x3a1   :  { %v5976_v48 = vpop.f32.mrf.mxu3 }
 0x3a2   :  { %v5977_v45 = vadd.f32 %v5976_v48, %v5964_v60 }
 0x3a4   :  { %v6056_v14 = vpop.f32.mrf.mxu1  ;;  %v9425_v40 = vmul.f32 -1.442695, %v5977_v45 }
 0x3a6   :  { %v6093_v63 = vpop.f32.mrf.mxu0  ;;  %v6017_v23 = vpop.f32.mrf.mxu2  ;;  %10226 = vpow2.f32 %v9425_v40 }
 0x3a7   :  { %v6094_v12 = vadd.f32 %v6093_v63, %v3148_v16 }
 0x3a9   :  { %v5978_v36 = vpop.f32.mrf.mxu3 }
 0x3ac   :  { %v10227_v19 = vpop.eup %10226 }
 0x3ad   :  { %v6213_v31 = vadd.f32 1.0, %v10227_v19 }
 0x3ae   :  { %v6095_v59 = vpop.f32.mrf.mxu0 }
 0x3af   :  { %10228 = vrcp.f32 %v6213_v31  ;;  %vm6281_vm1 = vweird.f32 %v6213_v31  ;;  %v6287_v20 = vand.u32 2147483648, %v6213_v31  ;;  %v6285_v22 = vand.u32 2147483647, %v6213_v31 }
 0x3b1   :  { %v6288_v18 = vor.u32 1.1754944e-38, %v6287_v20  ;;  %vm6286_vm6 = vcmp.eq.f32.partialorder %v6285_v22, 8.507059e+37 }
 0x3bc   :  { %v6106_v37 = vpop.f32.mrf.mxu1 }
 0x3bd   :  { %v6107_v0 = vadd.f32 %v6106_v37, %v6094_v12 }
 0x3be   :  { %v6067_v8 = vpop.f32.mrf.mxu2 }
 0x3c1   :  { %v6028_v51 = vpop.f32.mrf.mxu3 }
 0x3c2   :  { %v6029_v43 = vadd.f32 %v6028_v51, %v6016_v3 }
 0x3c4   :  { %v6042_v32 = vadd.f32 %v6041_v57, %v6029_v43  ;;  %v6108_v9 = vpop.f32.mrf.mxu1  ;;  %v10229_v57 = vpop.eup %10228 }
 0x3c5   :  { %v6277_v26 = vmul.f32 %v10229_v57, %v6213_v31  ;;  %vm6282_vm0 = vweird.f32 %v10229_v57 }
 0x3c6   :  { %v10909_v2 = vpop.f32.mrf.mxu0  ;;  %v6069_v21 = vpop.f32.mrf.mxu2  ;;  %v6055_v11 = vadd.f32 %v6054_v47, %v6042_v32  ;;  %vm6283_vm3 = vmor %vm6281_vm1, %vm6282_vm0 }
 0x3c7   :  { %v6278_v35 = vsub.f32 1.0, %v6277_v26 }
 0x3c8   :  { %v6068_v61 = vadd.f32 %v6067_v8, %v6055_v11 }
 0x3c9   :  { %v6030_v10 = vpop.f32.mrf.mxu3  ;;  %v6279_v62 = vmul.f32 %v10229_v57, %v6278_v35 }
 0x3cb   :  { %v6280_v6 = vadd.f32 %v10229_v57, %v6279_v62 }
 0x3cd   :  { %v6284_v29 = vsel %vm6283_vm3, %v10229_v57, %v6280_v6 }
 0x3ce   :  { %v6147_v5 = vpop.f32.mrf.mxu0  ;;  %v6289_v60 = vsel %vm6286_vm6, %v6288_v18, %v6284_v29 }
 0x3dc   :  { %v6158_v39 = vpop.f32.mrf.mxu1 }
 0x3de   :  { %v6119_v27 = vpop.f32.mrf.mxu2 }
 0x3df   :  { %v6120_v58 = vadd.f32 %v6119_v27, %v6107_v0 }
 0x3e1   :  { %v6080_v30 = vpop.f32.mrf.mxu3 }
 0x3e2   :  { %v6081_v55 = vadd.f32 %v6080_v30, %v6068_v61 }
 0x3e4   :  { %v9426_v17 = vmul.f32 -1.442695, %v6081_v55  ;;  %v6160_v13 = vpop.f32.mrf.mxu1 }
 0x3e6   :  { %10230 = vpow2.f32 %v9426_v17  ;;  %v6121_v28 = vpop.f32.mrf.mxu2 }
 0x3e9   :  { %v6082_v52 = vpop.f32.mrf.mxu3 }
 0x3ec   :  { %v10231_v1 = vpop.eup %10230 }
 0x3ed   :  { %v6214_v33 = vadd.f32 1.0, %v10231_v1 }
 0x3ef   :  { %10232 = vrcp.f32 %v6214_v33  ;;  %v6302_v41 = vand.u32 2147483648, %v6214_v33  ;;  %v6300_v15 = vand.u32 2147483647, %v6214_v33  ;;  %vm6296_vm4 = vweird.f32 %v6214_v33 }
 0x3f1   :  { %v6303_v44 = vor.u32 1.1754944e-38, %v6302_v41  ;;  %vm6301_vm7 = vcmp.eq.f32.partialorder %v6300_v15, 8.507059e+37 }
 0x3f5   :  { %v10233_v46 = vpop.eup %10232 }
 0x3f6   :  { %v6292_v38 = vmul.f32 %v10233_v46, %v6214_v33  ;;  %vm6297_vm2 = vweird.f32 %v10233_v46 }
 0x3f7   :  { %vm6298_vm5 = vmor %vm6296_vm4, %vm6297_vm2 }
 0x3f8   :  { %v6293_v50 = vsub.f32 1.0, %v6292_v38 }
 0x3fa   :  { %v6294_v7 = vmul.f32 %v10233_v46, %v6293_v50 }
 0x3fc   :  { %v6295_v25 = vadd.f32 %v10233_v46, %v6294_v7 }
 0x3fe   :  { %v6299_v56 = vsel %vm6298_vm5, %v10233_v46, %v6295_v25  ;;  %v6171_v42 = vpop.f32.mrf.mxu2 }
 0x3ff   :  { %v6304_v24 = vsel %vm6301_vm7, %v6303_v44, %v6299_v56 }
 0x400   :  { %v6323_v53 = vpack.c.bf16 %v6304_v24, %v6289_v60 }
 0x401   :  { %v6132_v54 = vpop.f32.mrf.mxu3 }
 0x402   :  { %v6133_v34 = vadd.f32 %v6132_v54, %v6120_v58  ;;  %6327 = vst [vmem:[#allocation14 + $0x10] sm:$0xff] %v6323_v53 }
 0x404   :  { %v6146_v49 = vadd.f32 %v10909_v2, %v6133_v34 }
 0x406   :  { %v6173_v63 = vpop.f32.mrf.mxu2  ;;  %v6159_v48 = vadd.f32 %v6158_v39, %v6146_v49 }
 0x408   :  { %v6172_v4 = vadd.f32 %v6171_v42, %v6159_v48 }
 0x409   :  { %v6134_v47 = vpop.f32.mrf.mxu3 }
 0x421   :  { %v6184_v14 = vpop.f32.mrf.mxu3 }
 0x422   :  { %v6185_v59 = vadd.f32 %v6184_v14, %v6172_v4 }
 0x424   :  { %v9427_v36 = vmul.f32 -1.442695, %v6185_v59 }
 0x426   :  { %10234 = vpow2.f32 %v9427_v36 }
 0x429   :  { %v6186_v23 = vpop.f32.mrf.mxu3 }
 0x42c   :  { %v10235_v16 = vpop.eup %10234 }
 0x42d   :  { %v6215_v12 = vadd.f32 1.0, %v10235_v16 }
 0x42f   :  { %10236 = vrcp.f32 %v6215_v12  ;;  %v6317_v51 = vand.u32 2147483648, %v6215_v12  ;;  %v6315_v2 = vand.u32 2147483647, %v6215_v12  ;;  %vm6311_vm9 = vweird.f32 %v6215_v12 }
 0x431   :  { %v6318_v32 = vor.u32 1.1754944e-38, %v6317_v51  ;;  %vm6316_vm11 = vcmp.eq.f32.partialorder %v6315_v2, 8.507059e+37 }
 0x435   :  { %v10237_v37 = vpop.eup %10236 }
 0x436   :  { %v6307_v0 = vmul.f32 %v10237_v37, %v6215_v12  ;;  %vm6312_vm8 = vweird.f32 %v10237_v37 }
 0x437   :  { %vm6313_vm10 = vmor %vm6311_vm9, %vm6312_vm8 }
 0x438   :  { %v6308_v3 = vsub.f32 1.0, %v6307_v0 }
 0x43a   :  { %v6309_v43 = vmul.f32 %v10237_v37, %v6308_v3 }
 0x43c   :  { %v6310_v8 = vadd.f32 %v10237_v37, %v6309_v43 }
 0x43e   :  { %v6314_v9 = vsel %vm6313_vm10, %v10237_v37, %v6310_v8 }
 0x43f   :  { %v6319_v5 = vsel %vm6316_vm11, %v6318_v32, %v6314_v9 }
 0x440   :  { %v6324_v10 = vpack.c.bf16 %v6319_v5, %v6319_v5 }
 0x442   :  { %6328 = vst [vmem:[#allocation14 + $0x18] sm:$0xf] %v6324_v10 }
 0x443   :  { %6339 = dma.vmem_to_hbm [thread:$0]  %s6335_s6, 448, %s6337_s15, [#allocation4]  }
 0x444   :  { %10441 = dma.done.wait [#allocation4], 448  }
 0x445   :  { %10442 = vsyncadd [#allocation4], 4294966848 }
 0x446   :  { %6344 = vsyncpa [#allocation3], 1 }
 0x447   :  { %6345 = vsyncpa [#allocation6], 1 }
 0x448   :  { %6346 = vsyncpa [#allocation9], 1 }
 0x449   :  { %6347 = vsyncpa [#allocation12], 1 }
 0x44a   :  { %6348 = vsyncpa [#allocation4], 1 }

// kernel: tpu_custom_call.1
= control target key start
LH: loop header
LB: loop body
LE: loop exit
PB: predicated region body
PF: predicated region fallthrough
CT: control target
= control target key end

     0   :  { %12 = vsyncpa [#allocation3], 0  ;;  %s10915_s0 = inlined_call_operand.hbm [shape: bf16[8,256], index: 0, kind: input, shape index: {}]   ;;  %s10916_s1 = inlined_call_operand.hbm [shape: bf16[256,512], index: 1, kind: input, shape index: {}]   ;;  %s10917_s2 = inlined_call_operand.hbm [shape: f32[1,512], index: 2, kind: input, shape index: {}]   ;;  %s10918_s3 = inlined_call_operand.hbm [shape: bf16[512,1024], index: 3, kind: input, shape index: {}]   ;;  %s10919_s4 = inlined_call_operand.hbm [shape: f32[1,1024], index: 4, kind: input, shape index: {}]   ;;  %s10920_s5 = inlined_call_operand.hbm [shape: bf16[1024,896], index: 5, kind: input, shape index: {}]   ;;  %s10921_s6 = inlined_call_operand.hbm [shape: f32[1,896], index: 6, kind: input, shape index: {}]   ;;  %s10922_s7 = inlined_call_operand.hbm [shape: bf16[8,896], index: 7, kind: output, shape index: {}]  }
   0x1   :  { %13 = vsyncpa [#allocation6], 0 }
   0x2   :  { %14 = vsyncpa [#allocation9], 0 }
   0x3   :  { %15 = vsyncpa [#allocation12], 0  ;;  %s32_s26 = sshll.u32 %s10916_s1, 4  ;;  %s33_s26 = int_to_ptr.hbm [resolvable:$true] %s32_s26 }
   0x4   :  { %16 = vsyncpa [#allocation4], 0  ;;  %s10443_s27 = smov [#allocation5]   ;;  %s56_s8 = sshll.u32 %s10918_s3, 4  ;;  %s57_s8 = int_to_ptr.hbm [resolvable:$true] %s56_s8 }
   0x5   :  { %s34_s28 = sshll.u32 %s10443_s27, 4  ;;  %s10444_s9 = smov 256   ;;  %s35_s28 = int_to_ptr.vmem [resolvable:$true] %s34_s28 }
   0x6   :  { %s10445_s10 = smov 16   ;;  %s10446_s11 = smov [#allocation8]  }
   0x7   :  { %40 = dma.hbm_to_vmem [thread:$0]  %s33_s26, 8192, %s35_s28, [#allocation6], %s10444_s9, %s10444_s9, %s10445_s10  }
   0x8   :  { %s58_s12 = sshll.u32 %s10446_s11, 4  ;;  %s10447_s13 = smov 512   ;;  %s59_s12 = int_to_ptr.vmem [resolvable:$true] %s58_s12 }
   0x9   :  { %s10448_s14 = smov 32   ;;  %s80_s16 = sshll.u32 %s10920_s5, 4  ;;  %s81_s16 = int_to_ptr.hbm [resolvable:$true] %s80_s16 }
   0xa   :  { %64 = dma.hbm_to_vmem [thread:$0]  %s57_s8, 32768, %s59_s12, [#allocation9], %s10447_s13, %s10447_s13, %s10448_s14  }
   0xb   :  { %s10449_s17 = smov [#allocation11]   ;;  %s22_s20 = sshll.u32 %s10915_s0, 4  ;;  %s23_s20 = int_to_ptr.hbm [resolvable:$true] %s22_s20 }
   0xc   :  { %s82_s18 = sshll.u32 %s10449_s17, 4  ;;  %s10450_s21 = smov 448   ;;  %s83_s18 = int_to_ptr.vmem [resolvable:$true] %s82_s18 }
   0xd   :  { %s10451_s22 = smov 28   ;;  %s10452_s23 = smov [#allocation2]  }
   0xe   :  { %88 = dma.hbm_to_vmem [thread:$0]  %s81_s16, 57344, %s83_s18, [#allocation12], %s10450_s21, %s10450_s21, %s10451_s22  }
   0xf   :  { %s24_s24 = sshll.u32 %s10452_s23, 4  ;;  %s46_s27 = sshll.u32 %s10917_s2, 4  ;;  %s25_s24 = int_to_ptr.vmem [resolvable:$true] %s24_s24  ;;  %s47_s27 = int_to_ptr.hbm [resolvable:$true] %s46_s27 }
  0x10   :  { %27 = dma.hbm_to_vmem [thread:$0]  %s23_s20, 128, %s25_s24, [#allocation3]  }
  0x11   :  { %s70_s29 = sshll.u32 %s10919_s4, 4  ;;  %s10453_s30 = smov [#allocation7]   ;;  %s71_s29 = int_to_ptr.hbm [resolvable:$true] %s70_s29 }
  0x12   :  { %s48_s8 = sshll.u32 %s10453_s30, 4  ;;  %s10454_s0 = smov [#allocation10]   ;;  %s49_s8 = int_to_ptr.vmem [resolvable:$true] %s48_s8 }
  0x13   :  { %51 = dma.hbm_to_vmem [thread:$0]  %s47_s27, 64, %s49_s8, [#allocation6]  }
  0x14   :  { %s72_s9 = sshll.u32 %s10454_s0, 4  ;;  %s94_s12 = sshll.u32 %s10921_s6, 4  ;;  %s73_s9 = int_to_ptr.vmem [resolvable:$true] %s72_s9  ;;  %s95_s12 = int_to_ptr.hbm [resolvable:$true] %s94_s12 }
  0x15   :  { %75 = dma.hbm_to_vmem [thread:$0]  %s71_s29, 128, %s73_s9, [#allocation9]  }
  0x16   :  { %s10455_s2 = smov [#allocation13]  }
  0x17   :  { %s96_s13 = sshll.u32 %s10455_s2, 4  ;;  %s97_s13 = int_to_ptr.vmem [resolvable:$true] %s96_s13 }
  0x18   :  { %99 = dma.hbm_to_vmem [thread:$0]  %s95_s12, 112, %s97_s13, [#allocation12]  }
  0x19   :  { %10433 = dma.done.wait [#allocation3], 128  }
  0x1a   :  { %10434 = vsyncadd [#allocation3], 4294967168 }
  0x1b   :  { %10435 = dma.done.wait [#allocation6], 8256  }
  0x1c   :  { %10436 = vsyncadd [#allocation6], 4294959040 }
  0x1d   :  { %10437 = dma.done.wait [#allocation9], 32896  }
  0x1e   :  { %10438 = vsyncadd [#allocation9], 4294934400 }
  0x1f   :  { %10439 = dma.done.wait [#allocation12], 57456  }
  0x20   :  { %10440 = vsyncadd [#allocation12], 4294909840  ;;  %v6463_v0 = vld [vmem:[#allocation5 + $0xe0] sm:$0xf]  ;;  %v9458_v1 = vld [vmem:[#allocation5 + $0xec] sm:$0xf0] }
  0x21   :  { %v6591_v2 = vld [vmem:[#allocation5 + $0x1e0] sm:$0xf]  ;;  %v6464_v3 = vor.u32 %v9458_v1, %v6463_v0  ;;  %v9490_v4 = vld [vmem:[#allocation5 + $0x1ec] sm:$0xf0]  ;;  %v9456_v5 = vld [vmem:[#allocation5 + $0xe4] sm:$0xf] }
  0x22   :  { %v6465_v6 = vld [vmem:[#allocation5 + $0xf0] sm:$0xf0]  ;;  %v6592_v7 = vor.u32 %v9490_v4, %v6591_v2  ;;  %v9488_v9 = vld [vmem:[#allocation5 + $0x1e4] sm:$0xf]  ;;  %v6447_v11 = vld [vmem:[#allocation5 + $0xc0] sm:$0xf] }
  0x23   :  { %v6468_v8 = vor.u32 %v9456_v5, %v6465_v6  ;;  %v6593_v10 = vld [vmem:[#allocation5 + $0x1f0] sm:$0xf0]  ;;  %530 = vmatpush.bf16.msra.mxu0 %v6464_v3  ;;  %v9454_v13 = vld [vmem:[#allocation5 + $0xcc] sm:$0xf0]  ;;  %v6575_v14 = vld [vmem:[#allocation5 + $0x1c0] sm:$0xf] }
  0x24   :  { %v6596_v12 = vor.u32 %v9488_v9, %v6593_v10  ;;  %v9486_v15 = vld [vmem:[#allocation5 + $0x1cc] sm:$0xf0]  ;;  %543 = vmatpush.bf16.msra.mxu1 %v6592_v7  ;;  %v6448_v16 = vor.u32 %v9454_v13, %v6447_v11  ;;  %v9452_v18 = vld [vmem:[#allocation5 + $0xc4] sm:$0xf]  ;;  %v6449_v19 = vld [vmem:[#allocation5 + $0xd0] sm:$0xf0] }
  0x25   :  { %556 = vmatpush.bf16.msra.mxu2 %v6468_v8  ;;  %v6576_v17 = vor.u32 %v9486_v15, %v6575_v14  ;;  %v9484_v20 = vld [vmem:[#allocation5 + $0x1c4] sm:$0xf]  ;;  %v6452_v21 = vor.u32 %v9452_v18, %v6449_v19  ;;  %v6577_v22 = vld [vmem:[#allocation5 + $0x1d0] sm:$0xf0]  ;;  %v6431_v23 = vld [vmem:[#allocation5 + $0xa0] sm:$0xf] }
  0x26   :  { %569 = vmatpush.bf16.msra.mxu3 %v6596_v12  ;;  %v9450_v24 = vld [vmem:[#allocation5 + $0xac] sm:$0xf0]  ;;  %v6580_v25 = vor.u32 %v9484_v20, %v6577_v22  ;;  %v6559_v26 = vld [vmem:[#allocation5 + $0x1a0] sm:$0xf]  ;;  %v9448_v28 = vld [vmem:[#allocation5 + $0xa4] sm:$0xf] }
  0x27   :  { %v9482_v27 = vld [vmem:[#allocation5 + $0x1ac] sm:$0xf0]  ;;  %531 = vmatpush.bf16.msra.mxu0 %v6448_v16  ;;  %v6432_v29 = vor.u32 %v9450_v24, %v6431_v23  ;;  %v6433_v30 = vld [vmem:[#allocation5 + $0xb0] sm:$0xf0]  ;;  %v9480_v31 = vld [vmem:[#allocation5 + $0x1a4] sm:$0xf] }
  0x28   :  { %v6561_v32 = vld [vmem:[#allocation5 + $0x1b0] sm:$0xf0]  ;;  %544 = vmatpush.bf16.msra.mxu1 %v6576_v17  ;;  %v6560_v33 = vor.u32 %v9482_v27, %v6559_v26  ;;  %v6436_v34 = vor.u32 %v9448_v28, %v6433_v30  ;;  %v6415_v35 = vld [vmem:[#allocation5 + $0x80] sm:$0xf]  ;;  %v9446_v36 = vld [vmem:[#allocation5 + $0x8c] sm:$0xf0] }
  0x29   :  { %557 = vmatpush.bf16.msra.mxu2 %v6452_v21  ;;  %v6543_v37 = vld [vmem:[#allocation5 + $0x180] sm:$0xf]  ;;  %v6564_v38 = vor.u32 %v9480_v31, %v6561_v32  ;;  %v9478_v39 = vld [vmem:[#allocation5 + $0x18c] sm:$0xf0]  ;;  %v9444_v40 = vld [vmem:[#allocation5 + $0x84] sm:$0xf]  ;;  %v6416_v44 = vor.u32 %v9446_v36, %v6415_v35 }
  0x2a   :  { %570 = vmatpush.bf16.msra.mxu3 %v6580_v25  ;;  %v6417_v41 = vld [vmem:[#allocation5 + $0x90] sm:$0xf0]  ;;  %v9476_v42 = vld [vmem:[#allocation5 + $0x184] sm:$0xf]  ;;  %v6544_v45 = vor.u32 %v9478_v39, %v6543_v37  ;;  %v6399_v47 = vld [vmem:[#allocation5 + $0x60] sm:$0xf] }
  0x2b   :  { %v6545_v43 = vld [vmem:[#allocation5 + $0x190] sm:$0xf0]  ;;  %532 = vmatpush.bf16.msra.mxu0 %v6432_v29  ;;  %v6420_v46 = vor.u32 %v9444_v40, %v6417_v41  ;;  %v9442_v48 = vld [vmem:[#allocation5 + $0x6c] sm:$0xf0]  ;;  %v6527_v49 = vld [vmem:[#allocation5 + $0x160] sm:$0xf] }
  0x2c   :  { %545 = vmatpush.bf16.msra.mxu1 %v6560_v33  ;;  %v6548_v50 = vor.u32 %v9476_v42, %v6545_v43  ;;  %v9474_v51 = vld [vmem:[#allocation5 + $0x16c] sm:$0xf0]  ;;  %v9440_v52 = vld [vmem:[#allocation5 + $0x64] sm:$0xf]  ;;  %v6401_v53 = vld [vmem:[#allocation5 + $0x70] sm:$0xf0]  ;;  %v6400_v56 = vor.u32 %v9442_v48, %v6399_v47 }
  0x2d   :  { %558 = vmatpush.bf16.msra.mxu2 %v6436_v34  ;;  %v9472_v54 = vld [vmem:[#allocation5 + $0x164] sm:$0xf]  ;;  %v6529_v55 = vld [vmem:[#allocation5 + $0x170] sm:$0xf0]  ;;  %v6528_v57 = vor.u32 %v9474_v51, %v6527_v49  ;;  %v6404_v58 = vor.u32 %v9440_v52, %v6401_v53  ;;  %v6383_v59 = vld [vmem:[#allocation5 + $0x40] sm:$0xf] }
  0x2e   :  { %571 = vmatpush.bf16.msra.mxu3 %v6564_v38  ;;  %v9438_v60 = vld [vmem:[#allocation5 + $0x4c] sm:$0xf0]  ;;  %v6511_v61 = vld [vmem:[#allocation5 + $0x140] sm:$0xf]  ;;  %v6532_v62 = vor.u32 %v9472_v54, %v6529_v55  ;;  %v9436_v0 = vld [vmem:[#allocation5 + $0x44] sm:$0xf] }
  0x2f   :  { %533 = vmatpush.bf16.msra.mxu0 %v6416_v44  ;;  %v9470_v63 = vld [vmem:[#allocation5 + $0x14c] sm:$0xf0]  ;;  %v6385_v1 = vld [vmem:[#allocation5 + $0x50] sm:$0xf0]  ;;  %v9468_v2 = vld [vmem:[#allocation5 + $0x144] sm:$0xf]  ;;  %v6384_v4 = vor.u32 %v9438_v60, %v6383_v59 }
  0x30   :  { %546 = vmatpush.bf16.msra.mxu1 %v6544_v45  ;;  %v6513_v3 = vld [vmem:[#allocation5 + $0x150] sm:$0xf0]  ;;  %v6512_v5 = vor.u32 %v9470_v63, %v6511_v61  ;;  %v6388_v6 = vor.u32 %v9436_v0, %v6385_v1  ;;  %v6367_v7 = vld [vmem:[#allocation5 + $0x20] sm:$0xf]  ;;  %v9434_v8 = vld [vmem:[#allocation5 + $0x2c] sm:$0xf0] }
  0x31   :  { %559 = vmatpush.bf16.msra.mxu2 %v6420_v46  ;;  %v6495_v9 = vld [vmem:[#allocation5 + $0x120] sm:$0xf]  ;;  %v6516_v10 = vor.u32 %v9468_v2, %v6513_v3  ;;  %v9466_v11 = vld [vmem:[#allocation5 + $0x12c] sm:$0xf0]  ;;  %v9432_v12 = vld [vmem:[#allocation5 + $0x24] sm:$0xf]  ;;  %v6368_v16 = vor.u32 %v9434_v8, %v6367_v7 }
  0x32   :  { %572 = vmatpush.bf16.msra.mxu3 %v6548_v50  ;;  %v6369_v13 = vld [vmem:[#allocation5 + $0x30] sm:$0xf0]  ;;  %v9464_v14 = vld [vmem:[#allocation5 + $0x124] sm:$0xf]  ;;  %v6351_v17 = vld [vmem:[#allocation5] sm:$0xf]  ;;  %v6496_v20 = vor.u32 %v9466_v11, %v6495_v9 }
  0x33   :  { %534 = vmatpush.bf16.msra.mxu0 %v6400_v56  ;;  %v6497_v15 = vld [vmem:[#allocation5 + $0x130] sm:$0xf0]  ;;  %v9430_v18 = vld [vmem:[#allocation5 + $0xc] sm:$0xf0]  ;;  %v6479_v19 = vld [vmem:[#allocation5 + $0x100] sm:$0xf]  ;;  %v6372_v21 = vor.u32 %v9432_v12, %v6369_v13 }
  0x34   :  { %547 = vmatpush.bf16.msra.mxu1 %v6528_v57  ;;  %v9462_v22 = vld [vmem:[#allocation5 + $0x10c] sm:$0xf0]  ;;  %v9428_v23 = vld [vmem:[#allocation5 + $0x4] sm:$0xf]  ;;  %v128_v24 = vld [vmem:[#allocation2] sm:$0xff]  ;;  %v6500_v25 = vor.u32 %v9464_v14, %v6497_v15  ;;  %v6352_v32 = vor.u32 %v9430_v18, %v6351_v17  ;;  %s10456_s4 = smov [#allocation14]  }
  0x35   :  { %560 = vmatpush.bf16.msra.mxu2 %v6404_v58  ;;  %v6353_v26 = vld [vmem:[#allocation5 + $0x10] sm:$0xf0]  ;;  %v9460_v27 = vld [vmem:[#allocation5 + $0x104] sm:$0xf]  ;;  %v6471_v29 = vld [vmem:[#allocation5 + $0xe8] sm:$0xf]  ;;  %v204_v36 = vunpack.c.l.b16 %v128_v24  ;;  %v6480_v37 = vor.u32 %v9462_v22, %v6479_v19  ;;  %v205_v41 = vunpack.c.h.b16 %v128_v24 }
  0x36   :  { %573 = vmatpush.bf16.msra.mxu3 %v6532_v62  ;;  %v6481_v28 = vld [vmem:[#allocation5 + $0x110] sm:$0xf0]  ;;  %v9459_v30 = vld [vmem:[#allocation5 + $0xf4] sm:$0xf0]  ;;  %v6599_v31 = vld [vmem:[#allocation5 + $0x1e8] sm:$0xf]  ;;  %v6356_v38 = vor.u32 %v9428_v23, %v6353_v26 }
  0x37   :  { %535 = vmatpush.bf16.msra.mxu0 %v6384_v4  ;;  %v9491_v33 = vld [vmem:[#allocation5 + $0x1f4] sm:$0xf0]  ;;  %v9457_v34 = vld [vmem:[#allocation5 + $0xec] sm:$0xf]  ;;  %v6473_v35 = vld [vmem:[#allocation5 + $0xf8] sm:$0xf0]  ;;  %v6484_v42 = vor.u32 %v9460_v27, %v6481_v28  ;;  %v6472_v43 = vor.u32 %v9459_v30, %v6471_v29  ;;  %v10518_v50 = vpack.c.b16 %v204_v36, %v204_v36  ;;  %v10520_v54 = vpack.c.b16 %v205_v41, %v205_v41 }
  0x38   :  { %548 = vmatpush.bf16.msra.mxu1 %v6512_v5  ;;  %v9489_v39 = vld [vmem:[#allocation5 + $0x1ec] sm:$0xf]  ;;  %v6601_v40 = vld [vmem:[#allocation5 + $0x1f8] sm:$0xf0]  ;;  %v6600_v44 = vor.u32 %v9491_v33, %v6599_v31  ;;  %v6476_v45 = vor.u32 %v9457_v34, %v6473_v35  ;;  %v6455_v46 = vld [vmem:[#allocation5 + $0xc8] sm:$0xf] }
  0x39   :  { %561 = vmatpush.bf16.msra.mxu2 %v6388_v6  ;;  %v9455_v47 = vld [vmem:[#allocation5 + $0xd4] sm:$0xf0]  ;;  %v6583_v48 = vld [vmem:[#allocation5 + $0x1c8] sm:$0xf]  ;;  %v6604_v49 = vor.u32 %v9489_v39, %v6601_v40  ;;  %v9453_v52 = vld [vmem:[#allocation5 + $0xcc] sm:$0xf] }
  0x3a   :  { %574 = vmatpush.bf16.msra.mxu3 %v6516_v10  ;;  %v9487_v51 = vld [vmem:[#allocation5 + $0x1d4] sm:$0xf0]  ;;  %v6457_v53 = vld [vmem:[#allocation5 + $0xd8] sm:$0xf0]  ;;  %v9485_v55 = vld [vmem:[#allocation5 + $0x1cc] sm:$0xf]  ;;  %v6456_v57 = vor.u32 %v9455_v47, %v6455_v46 }
  0x3b   :  { %536 = vmatpush.bf16.msra.mxu0 %v6368_v16  ;;  %v6585_v56 = vld [vmem:[#allocation5 + $0x1d8] sm:$0xf0]  ;;  %v6584_v58 = vor.u32 %v9487_v51, %v6583_v48  ;;  %v6460_v59 = vor.u32 %v9453_v52, %v6457_v53  ;;  %v6439_v60 = vld [vmem:[#allocation5 + $0xa8] sm:$0xf]  ;;  %v9451_v61 = vld [vmem:[#allocation5 + $0xb4] sm:$0xf0] }
  0x3c   :  { %549 = vmatpush.bf16.msra.mxu1 %v6496_v20  ;;  %v6567_v62 = vld [vmem:[#allocation5 + $0x1a8] sm:$0xf]  ;;  %v6588_v63 = vor.u32 %v9485_v55, %v6585_v56  ;;  %v9483_v0 = vld [vmem:[#allocation5 + $0x1b4] sm:$0xf0]  ;;  %v9449_v1 = vld [vmem:[#allocation5 + $0xac] sm:$0xf]  ;;  %v6440_v5 = vor.u32 %v9451_v61, %v6439_v60 }
  0x3d   :  { %562 = vmatpush.bf16.msra.mxu2 %v6372_v21  ;;  %v6441_v2 = vld [vmem:[#allocation5 + $0xb8] sm:$0xf0]  ;;  %v9481_v3 = vld [vmem:[#allocation5 + $0x1ac] sm:$0xf]  ;;  %v6568_v6 = vor.u32 %v9483_v0, %v6567_v62  ;;  %v6423_v8 = vld [vmem:[#allocation5 + $0x88] sm:$0xf] }
  0x3e   :  { %575 = vmatpush.bf16.msra.mxu3 %v6500_v25  ;;  %v6569_v4 = vld [vmem:[#allocation5 + $0x1b8] sm:$0xf0]  ;;  %v6444_v7 = vor.u32 %v9449_v1, %v6441_v2  ;;  %v9447_v9 = vld [vmem:[#allocation5 + $0x94] sm:$0xf0]  ;;  %v6551_v10 = vld [vmem:[#allocation5 + $0x188] sm:$0xf] }
  0x3f   :  { %537 = vmatpush.bf16.msra.mxu0 %v6352_v32  ;;  %v6572_v11 = vor.u32 %v9481_v3, %v6569_v4  ;;  %v9479_v12 = vld [vmem:[#allocation5 + $0x194] sm:$0xf0]  ;;  %v9445_v13 = vld [vmem:[#allocation5 + $0x8c] sm:$0xf]  ;;  %v6425_v14 = vld [vmem:[#allocation5 + $0x98] sm:$0xf0]  ;;  %v6424_v17 = vor.u32 %v9447_v9, %v6423_v8 }
  0x40   :  { %550 = vmatpush.bf16.msra.mxu1 %v6480_v37  ;;  %v9477_v15 = vld [vmem:[#allocation5 + $0x18c] sm:$0xf]  ;;  %v6553_v16 = vld [vmem:[#allocation5 + $0x198] sm:$0xf0]  ;;  %v6552_v18 = vor.u32 %v9479_v12, %v6551_v10  ;;  %v6428_v19 = vor.u32 %v9445_v13, %v6425_v14  ;;  %v6407_v20 = vld [vmem:[#allocation5 + $0x68] sm:$0xf] }
  0x41   :  { %563 = vmatpush.bf16.msra.mxu2 %v6356_v38  ;;  %v9443_v21 = vld [vmem:[#allocation5 + $0x74] sm:$0xf0]  ;;  %v6535_v22 = vld [vmem:[#allocation5 + $0x168] sm:$0xf]  ;;  %v6556_v23 = vor.u32 %v9477_v15, %v6553_v16  ;;  %v9441_v25 = vld [vmem:[#allocation5 + $0x6c] sm:$0xf] }
  0x42   :  { %576 = vmatpush.bf16.msra.mxu3 %v6484_v42  ;;  %538 = vmatmul.bf16.vlgmr.msra.gmra.mxu0 %v10518_v50  ;;  %v9475_v24 = vld [vmem:[#allocation5 + $0x174] sm:$0xf0]  ;;  %v6409_v26 = vld [vmem:[#allocation5 + $0x78] sm:$0xf0]  ;;  %v9473_v27 = vld [vmem:[#allocation5 + $0x16c] sm:$0xf]  ;;  %v6408_v29 = vor.u32 %v9443_v21, %v6407_v20 }
  0x43   :  { %582 = vmatpush.bf16.msrb.mxu0 %v6472_v43  ;;  %551 = vmatmul.bf16.vlgmr.msra.gmra.mxu1 %v10520_v54  ;;  %v6537_v28 = vld [vmem:[#allocation5 + $0x178] sm:$0xf0]  ;;  %v6536_v30 = vor.u32 %v9475_v24, %v6535_v22  ;;  %v6412_v31 = vor.u32 %v9441_v25, %v6409_v26  ;;  %v6391_v32 = vld [vmem:[#allocation5 + $0x48] sm:$0xf]  ;;  %v9439_v33 = vld [vmem:[#allocation5 + $0x54] sm:$0xf0] }
  0x44   :  { %595 = vmatpush.bf16.msrb.mxu1 %v6600_v44  ;;  %564 = vmatmul.bf16.vlgmr.msra.gmra.mxu2 %v10518_v50  ;;  %v6519_v34 = vld [vmem:[#allocation5 + $0x148] sm:$0xf]  ;;  %v6540_v35 = vor.u32 %v9473_v27, %v6537_v28  ;;  %v9471_v36 = vld [vmem:[#allocation5 + $0x154] sm:$0xf0]  ;;  %v9437_v37 = vld [vmem:[#allocation5 + $0x4c] sm:$0xf]  ;;  %v6392_v41 = vor.u32 %v9439_v33, %v6391_v32 }
  0x45   :  { %608 = vmatpush.bf16.msrb.mxu2 %v6476_v45  ;;  %577 = vmatmul.bf16.vlgmr.msra.gmra.mxu3 %v10520_v54  ;;  %v6393_v38 = vld [vmem:[#allocation5 + $0x58] sm:$0xf0]  ;;  %v9469_v39 = vld [vmem:[#allocation5 + $0x14c] sm:$0xf]  ;;  %v6520_v42 = vor.u32 %v9471_v36, %v6519_v34  ;;  %v6375_v44 = vld [vmem:[#allocation5 + $0x28] sm:$0xf] }
  0x46   :  { %621 = vmatpush.bf16.msrb.mxu3 %v6604_v49  ;;  %v6521_v40 = vld [vmem:[#allocation5 + $0x158] sm:$0xf0]  ;;  %v6396_v43 = vor.u32 %v9437_v37, %v6393_v38  ;;  %v9435_v45 = vld [vmem:[#allocation5 + $0x34] sm:$0xf0]  ;;  %v6503_v46 = vld [vmem:[#allocation5 + $0x128] sm:$0xf] }
  0x47   :  { %583 = vmatpush.bf16.msrb.mxu0 %v6456_v57  ;;  %v6524_v47 = vor.u32 %v9469_v39, %v6521_v40  ;;  %v9467_v48 = vld [vmem:[#allocation5 + $0x134] sm:$0xf0]  ;;  %v9433_v49 = vld [vmem:[#allocation5 + $0x2c] sm:$0xf]  ;;  %v6377_v51 = vld [vmem:[#allocation5 + $0x38] sm:$0xf0]  ;;  %v6376_v55 = vor.u32 %v9435_v45, %v6375_v44 }
  0x48   :  { %596 = vmatpush.bf16.msrb.mxu1 %v6584_v58  ;;  %v9465_v52 = vld [vmem:[#allocation5 + $0x12c] sm:$0xf]  ;;  %v6505_v53 = vld [vmem:[#allocation5 + $0x138] sm:$0xf0]  ;;  %v6359_v56 = vld [vmem:[#allocation5 + $0x8] sm:$0xf]  ;;  %v6504_v57 = vor.u32 %v9467_v48, %v6503_v46  ;;  %v6380_v58 = vor.u32 %v9433_v49, %v6377_v51 }
  0x49   :  { %609 = vmatpush.bf16.msrb.mxu2 %v6460_v59  ;;  %v9431_v59 = vld [vmem:[#allocation5 + $0x14] sm:$0xf0]  ;;  %v6487_v60 = vld [vmem:[#allocation5 + $0x108] sm:$0xf]  ;;  %v6508_v62 = vor.u32 %v9465_v52, %v6505_v53  ;;  %v6361_v0 = vld [vmem:[#allocation5 + $0x18] sm:$0xf0] }
  0x4a   :  { %622 = vmatpush.bf16.msrb.mxu3 %v6588_v63  ;;  %v9463_v61 = vld [vmem:[#allocation5 + $0x114] sm:$0xf0]  ;;  %v9429_v63 = vld [vmem:[#allocation5 + $0xc] sm:$0xf]  ;;  %v6489_v2 = vld [vmem:[#allocation5 + $0x118] sm:$0xf0] }
  0x4b   :  { %584 = vmatpush.bf16.msrb.mxu0 %v6440_v5  ;;  %v9461_v1 = vld [vmem:[#allocation5 + $0x10c] sm:$0xf]  ;;  %v6831_v3 = vld [vmem:[#allocation8 + $0x1c0] sm:$0xf]  ;;  %v6360_v5 = vor.u32 %v9431_v59, %v6359_v56  ;;  %v6488_v8 = vor.u32 %v9463_v61, %v6487_v60  ;;  %v6364_v9 = vor.u32 %v9429_v63, %v6361_v0  ;;  %s6334_s6 = sshll.u32 %s10456_s4, 4  ;;  %s6336_s15 = sshll.u32 %s10922_s7, 4  ;;  %s6335_s6 = int_to_ptr.vmem [resolvable:$true] %s6334_s6  ;;  %s6337_s15 = int_to_ptr.hbm [resolvable:$true] %s6336_s15 }
  0x4c   :  { %597 = vmatpush.bf16.msrb.mxu1 %v6568_v6  ;;  %v9552_v4 = vld [vmem:[#allocation8 + $0x1dc] sm:$0xf0]  ;;  %v6492_v10 = vor.u32 %v9461_v1, %v6489_v2 }
  0x4d   :  { %610 = vmatpush.bf16.msrb.mxu2 %v6444_v7  ;;  %v7087_v6 = vld [vmem:[#allocation8 + $0x3c0] sm:$0xf] }
  0x4e   :  { %623 = vmatpush.bf16.msrb.mxu3 %v6572_v11  ;;  %v9616_v7 = vld [vmem:[#allocation8 + $0x3dc] sm:$0xf0]  ;;  %v6832_v11 = vor.u32 %v9552_v4, %v6831_v3 }
  0x4f   :  { %585 = vmatpush.bf16.msrb.mxu0 %v6424_v17  ;;  %v7343_v12 = vld [vmem:[#allocation8 + $0x5c0] sm:$0xf]  ;;  %v7088_v16 = vor.u32 %v9616_v7, %v7087_v6 }
  0x50   :  { %598 = vmatpush.bf16.msrb.mxu1 %v6552_v18  ;;  %v9680_v13 = vld [vmem:[#allocation8 + $0x5dc] sm:$0xf0] }
  0x51   :  { %611 = vmatpush.bf16.msrb.mxu2 %v6428_v19  ;;  %v6799_v14 = vld [vmem:[#allocation8 + $0x180] sm:$0xf]  ;;  %v7344_v19 = vor.u32 %v9680_v13, %v7343_v12  ;;  %v9548_v13 = vld [vmem:[#allocation8 + $0x1c4] sm:$0xf] }
  0x52   :  { %624 = vmatpush.bf16.msrb.mxu3 %v6556_v23  ;;  %v9544_v15 = vld [vmem:[#allocation8 + $0x19c] sm:$0xf0] }
  0x53   :  { %586 = vmatpush.bf16.msrb.mxu0 %v6408_v29  ;;  %v7055_v17 = vld [vmem:[#allocation8 + $0x380] sm:$0xf]  ;;  %v6800_v20 = vor.u32 %v9544_v15, %v6799_v14  ;;  %v6833_v15 = vld [vmem:[#allocation8 + $0x1e0] sm:$0xf0] }
  0x54   :  { %599 = vmatpush.bf16.msrb.mxu1 %v6536_v30  ;;  %v9608_v18 = vld [vmem:[#allocation8 + $0x39c] sm:$0xf0] }
  0x55   :  { %612 = vmatpush.bf16.msrb.mxu2 %v6412_v31  ;;  %v7311_v21 = vld [vmem:[#allocation8 + $0x580] sm:$0xf]  ;;  %v7056_v25 = vor.u32 %v9608_v18, %v7055_v17  ;;  %v9612_v18 = vld [vmem:[#allocation8 + $0x3c4] sm:$0xf] }
  0x56   :  { %625 = vmatpush.bf16.msrb.mxu3 %v6540_v35  ;;  %v9672_v22 = vld [vmem:[#allocation8 + $0x59c] sm:$0xf0] }
  0x57   :  { %587 = vmatpush.bf16.msrb.mxu0 %v6392_v41  ;;  %v6767_v23 = vld [vmem:[#allocation8 + $0x140] sm:$0xf]  ;;  %v7312_v30 = vor.u32 %v9672_v22, %v7311_v21  ;;  %v6836_v21 = vor.u32 %v9548_v13, %v6833_v15 }
  0x58   :  { %600 = vmatpush.bf16.msrb.mxu1 %v6520_v42  ;;  %v9536_v24 = vld [vmem:[#allocation8 + $0x15c] sm:$0xf0] }
  0x59   :  { %613 = vmatpush.bf16.msrb.mxu2 %v6396_v43  ;;  %v7599_v26 = vld [vmem:[#allocation8 + $0x7c0] sm:$0xf]  ;;  %v6768_v32 = vor.u32 %v9536_v24, %v6767_v23  ;;  %v9540_v23 = vld [vmem:[#allocation8 + $0x184] sm:$0xf] }
  0x5a   :  { %626 = vmatpush.bf16.msrb.mxu3 %v6524_v47  ;;  %v7023_v27 = vld [vmem:[#allocation8 + $0x340] sm:$0xf]  ;;  %v6801_v24 = vld [vmem:[#allocation8 + $0x1a0] sm:$0xf0] }
  0x5b   :  { %588 = vmatpush.bf16.msrb.mxu0 %v6376_v55  ;;  %v9600_v28 = vld [vmem:[#allocation8 + $0x35c] sm:$0xf0] }
  0x5c   :  { %601 = vmatpush.bf16.msrb.mxu1 %v6504_v57  ;;  %v9744_v29 = vld [vmem:[#allocation8 + $0x7dc] sm:$0xf0]  ;;  %v7024_v37 = vor.u32 %v9600_v28, %v7023_v27  ;;  %v7057_v27 = vld [vmem:[#allocation8 + $0x3a0] sm:$0xf0]  ;;  %v6804_v28 = vor.u32 %v9540_v23, %v6801_v24 }
  0x5d   :  { %614 = vmatpush.bf16.msrb.mxu2 %v6380_v58  ;;  %v7600_v31 = vor.u32 %v9744_v29, %v7599_v26  ;;  %v6735_v33 = vld [vmem:[#allocation8 + $0x100] sm:$0xf]  ;;  %v9604_v26 = vld [vmem:[#allocation8 + $0x384] sm:$0xf] }
  0x5e   :  { %627 = vmatpush.bf16.msrb.mxu3 %v6508_v62  ;;  %v7279_v34 = vld [vmem:[#allocation8 + $0x540] sm:$0xf]  ;;  %v9532_v29 = vld [vmem:[#allocation8 + $0x144] sm:$0xf] }
  0x5f   :  { %589 = vmatpush.bf16.msrb.mxu0 %v6360_v5  ;;  %v9664_v35 = vld [vmem:[#allocation8 + $0x55c] sm:$0xf0] }
  0x60   :  { %602 = vmatpush.bf16.msrb.mxu1 %v6488_v8  ;;  %v9528_v36 = vld [vmem:[#allocation8 + $0x11c] sm:$0xf0]  ;;  %v7280_v42 = vor.u32 %v9664_v35, %v7279_v34  ;;  %v9524_v35 = vld [vmem:[#allocation8 + $0x104] sm:$0xf] }
  0x61   :  { %615 = vmatpush.bf16.msrb.mxu2 %v6364_v9  ;;  %v7567_v38 = vld [vmem:[#allocation8 + $0x780] sm:$0xf] }
  0x62   :  { %628 = vmatpush.bf16.msrb.mxu3 %v6492_v10  ;;  %590 = vmatmul.bf16.vlgmr.msrb.gmra.mxu0 %v10518_v50  ;;  %v9736_v39 = vld [vmem:[#allocation8 + $0x79c] sm:$0xf0] }
  0x63   :  { %2196 = vmatpush.bf16.msra.mxu0 %v6832_v11  ;;  %603 = vmatmul.bf16.vlgmr.msrb.gmra.mxu1 %v10520_v54  ;;  %v9592_v40 = vld [vmem:[#allocation8 + $0x31c] sm:$0xf0]  ;;  %v7568_v41 = vor.u32 %v9736_v39, %v7567_v38  ;;  %v9588_v38 = vld [vmem:[#allocation8 + $0x304] sm:$0xf] }
  0x64   :  { %2209 = vmatpush.bf16.msra.mxu1 %v7088_v16  ;;  %616 = vmatmul.bf16.vlgmr.msrb.gmra.mxu2 %v10518_v50  ;;  %v6991_v50 = vld [vmem:[#allocation8 + $0x300] sm:$0xf]  ;;  %v6993_v39 = vld [vmem:[#allocation8 + $0x320] sm:$0xf0] }
  0x65   :  { %629 = vmatmul.bf16.vlgmr.msrb.gmra.mxu3 %v10520_v54  ;;  %2222 = vmatpush.bf16.msra.mxu2 %v7344_v19  ;;  %v6736_v54 = vor.u32 %v9528_v36, %v6735_v33  ;;  %v6703_v43 = vld [vmem:[#allocation8 + $0xc0] sm:$0xf]  ;;  %v6992_v47 = vor.u32 %v9592_v40, %v6991_v50  ;;  %v7089_v19 = vld [vmem:[#allocation8 + $0x3e0] sm:$0xf0] }
  0x66   :  { %2235 = vmatpush.bf16.msra.mxu3 %v7600_v31  ;;  %v7247_v44 = vld [vmem:[#allocation8 + $0x500] sm:$0xf]  ;;  %v7060_v31 = vor.u32 %v9604_v26, %v7057_v27  ;;  %v7025_v33 = vld [vmem:[#allocation8 + $0x360] sm:$0xf0] }
  0x67   :  { %2197 = vmatpush.bf16.msra.mxu0 %v6800_v20  ;;  %v9656_v45 = vld [vmem:[#allocation8 + $0x51c] sm:$0xf0]  ;;  %v6737_v36 = vld [vmem:[#allocation8 + $0x120] sm:$0xf0] }
  0x68   :  { %2210 = vmatpush.bf16.msra.mxu1 %v7056_v25  ;;  %v9520_v46 = vld [vmem:[#allocation8 + $0xdc] sm:$0xf0]  ;;  %v7248_v55 = vor.u32 %v9656_v45, %v7247_v44  ;;  %v7092_v25 = vor.u32 %v9612_v18, %v7089_v19  ;;  %v6740_v50 = vor.u32 %v9524_v35, %v6737_v36  ;;  %v9516_v40 = vld [vmem:[#allocation8 + $0xc4] sm:$0xf] }
  0x69   :  { %2223 = vmatpush.bf16.msra.mxu2 %v7312_v30  ;;  %v7535_v48 = vld [vmem:[#allocation8 + $0x740] sm:$0xf]  ;;  %v6704_v56 = vor.u32 %v9520_v46, %v6703_v43  ;;  %v6769_v30 = vld [vmem:[#allocation8 + $0x160] sm:$0xf0] }
  0x6a   :  { %2236 = vmatpush.bf16.msra.mxu3 %v7568_v41  ;;  %v9728_v49 = vld [vmem:[#allocation8 + $0x75c] sm:$0xf0]  ;;  %v6772_v34 = vor.u32 %v9532_v29, %v6769_v30  ;;  %v6705_v41 = vld [vmem:[#allocation8 + $0xe0] sm:$0xf0] }
  0x6b   :  { %2198 = vmatpush.bf16.msra.mxu0 %v6768_v32  ;;  %v6959_v51 = vld [vmem:[#allocation8 + $0x2c0] sm:$0xf]  ;;  %v7536_v53 = vor.u32 %v9728_v49, %v7535_v48  ;;  %v9596_v32 = vld [vmem:[#allocation8 + $0x344] sm:$0xf] }
  0x6c   :  { %2211 = vmatpush.bf16.msra.mxu1 %v7024_v37  ;;  %v9584_v52 = vld [vmem:[#allocation8 + $0x2dc] sm:$0xf0]  ;;  %v7028_v37 = vor.u32 %v9596_v32, %v7025_v33  ;;  %v9508_v45 = vld [vmem:[#allocation8 + $0x84] sm:$0xf] }
  0x6d   :  { %2224 = vmatpush.bf16.msra.mxu2 %v7280_v42  ;;  %v6671_v57 = vld [vmem:[#allocation8 + $0x80] sm:$0xf]  ;;  %v6960_v61 = vor.u32 %v9584_v52, %v6959_v51  ;;  %v6996_v42 = vor.u32 %v9588_v38, %v6993_v39  ;;  %v9580_v52 = vld [vmem:[#allocation8 + $0x2c4] sm:$0xf] }
  0x6e   :  { %v7215_v58 = vld [vmem:[#allocation8 + $0x4c0] sm:$0xf]  ;;  %2237 = vmatpush.bf16.msra.mxu3 %v7536_v53  ;;  %v6897_v18 = vld [vmem:[#allocation8 + $0x260] sm:$0xf0] }
  0x6f   :  { %2199 = vmatpush.bf16.msra.mxu0 %v6736_v54  ;;  %v9648_v59 = vld [vmem:[#allocation8 + $0x4dc] sm:$0xf0]  ;;  %v6708_v54 = vor.u32 %v9516_v40, %v6705_v41  ;;  %v9556_v26 = vld [vmem:[#allocation8 + $0x204] sm:$0xf] }
  0x70   :  { %2212 = vmatpush.bf16.msra.mxu1 %v6992_v47  ;;  %v9512_v60 = vld [vmem:[#allocation8 + $0x9c] sm:$0xf0]  ;;  %v7216_v3 = vor.u32 %v9648_v59, %v7215_v58  ;;  %v6673_v47 = vld [vmem:[#allocation8 + $0xa0] sm:$0xf0] }
  0x71   :  { %v7503_v62 = vld [vmem:[#allocation8 + $0x700] sm:$0xf]  ;;  %2225 = vmatpush.bf16.msra.mxu2 %v7248_v55  ;;  %v6672_v4 = vor.u32 %v9512_v60, %v6671_v57  ;;  %v6676_v48 = vor.u32 %v9508_v45, %v6673_v47  ;;  %v6961_v55 = vld [vmem:[#allocation8 + $0x2e0] sm:$0xf0]  ;;  %v10530_v45 = vld [vmem:[#allocation7] sm:$0xf] }
  0x72   :  { %v9720_v63 = vld [vmem:[#allocation8 + $0x71c] sm:$0xf0]  ;;  %v9500_v59 = vld [vmem:[#allocation8 + $0x44] sm:$0xf] }
  0x73   :  { %v6927_v0 = vld [vmem:[#allocation8 + $0x280] sm:$0xf]  ;;  %v7504_v2 = vor.u32 %v9720_v63, %v7503_v62  ;;  %2200 = vmatpush.bf16.msra.mxu0 %v6704_v56  ;;  %v6964_v56 = vor.u32 %v9580_v52, %v6961_v55  ;;  %v6865_v27 = vld [vmem:[#allocation8 + $0x220] sm:$0xf0]  ;;  %v195_v52 = vperm.slane %v10530_v45, 0 }
  0x74   :  { %v9576_v1 = vld [vmem:[#allocation8 + $0x29c] sm:$0xf0]  ;;  %2213 = vmatpush.bf16.msra.mxu1 %v6960_v61  ;;  %v6641_v61 = vld [vmem:[#allocation8 + $0x60] sm:$0xf0]  ;;  %v6868_v29 = vor.u32 %v9556_v26, %v6865_v27  ;;  %v9617_v26 = vld [vmem:[#allocation8 + $0x3e4] sm:$0xf0] }
  0x75   :  { %v6639_v5 = vld [vmem:[#allocation8 + $0x40] sm:$0xf]  ;;  %v6928_v7 = vor.u32 %v9576_v1, %v6927_v0  ;;  %2238 = vmatpush.bf16.msra.mxu3 %v7504_v2  ;;  %2226 = vmatpush.bf16.msra.mxu2 %v7216_v3  ;;  %v6644_v62 = vor.u32 %v9500_v59, %v6641_v61  ;;  %v9572_v1 = vld [vmem:[#allocation8 + $0x284] sm:$0xf] }
  0x76   :  { %v9504_v6 = vld [vmem:[#allocation8 + $0x5c] sm:$0xf0]  ;;  %v6929_v3 = vld [vmem:[#allocation8 + $0x2a0] sm:$0xf0] }
  0x77   :  { %v6895_v8 = vld [vmem:[#allocation8 + $0x240] sm:$0xf]  ;;  %2201 = vmatpush.bf16.msra.mxu0 %v6672_v4  ;;  %v6640_v10 = vor.u32 %v9504_v6, %v6639_v5  ;;  %v6932_v4 = vor.u32 %v9572_v1, %v6929_v3  ;;  %v7601_v30 = vld [vmem:[#allocation8 + $0x7e0] sm:$0xf0]  ;;  %v6839_v3 = vld [vmem:[#allocation8 + $0x1c8] sm:$0xf] }
  0x78   :  { %v9568_v9 = vld [vmem:[#allocation8 + $0x25c] sm:$0xf0]  ;;  %2214 = vmatpush.bf16.msra.mxu1 %v6928_v7  ;;  %v9660_v32 = vld [vmem:[#allocation8 + $0x544] sm:$0xf] }
  0x79   :  { %v6607_v11 = vld [vmem:[#allocation8] sm:$0xf]  ;;  %v6896_v14 = vor.u32 %v9568_v9, %v6895_v8  ;;  %v9492_v8 = vld [vmem:[#allocation8 + $0x4] sm:$0xf] }
  0x7a   :  { %v9496_v12 = vld [vmem:[#allocation8 + $0x1c] sm:$0xf0]  ;;  %v6609_v9 = vld [vmem:[#allocation8 + $0x20] sm:$0xf0] }
  0x7b   :  { %v6863_v16 = vld [vmem:[#allocation8 + $0x200] sm:$0xf]  ;;  %2202 = vmatpush.bf16.msra.mxu0 %v6640_v10  ;;  %v6608_v20 = vor.u32 %v9496_v12, %v6607_v11  ;;  %v9676_v10 = vld [vmem:[#allocation8 + $0x5c4] sm:$0xf]  ;;  %v6612_v11 = vor.u32 %v9492_v8, %v6609_v9 }
  0x7c   :  { %v9560_v17 = vld [vmem:[#allocation8 + $0x21c] sm:$0xf0]  ;;  %2215 = vmatpush.bf16.msra.mxu1 %v6896_v14  ;;  %v7345_v12 = vld [vmem:[#allocation8 + $0x5e0] sm:$0xf0] }
  0x7d   :  { %v6864_v22 = vor.u32 %v9560_v17, %v6863_v16  ;;  %v7183_v43 = vld [vmem:[#allocation8 + $0x480] sm:$0xf]  ;;  %v7348_v13 = vor.u32 %v9676_v10, %v7345_v12  ;;  %v9564_v16 = vld [vmem:[#allocation8 + $0x244] sm:$0xf]  ;;  %v6807_v12 = vld [vmem:[#allocation8 + $0x188] sm:$0xf] }
  0x7e   :  { %v9640_v44 = vld [vmem:[#allocation8 + $0x49c] sm:$0xf0]  ;;  %v6900_v19 = vor.u32 %v9564_v16, %v6897_v18  ;;  %v7281_v33 = vld [vmem:[#allocation8 + $0x560] sm:$0xf0] }
  0x7f   :  { %2203 = vmatpush.bf16.msra.mxu0 %v6608_v20  ;;  %v7184_v46 = vor.u32 %v9640_v44, %v7183_v43  ;;  %v7471_v49 = vld [vmem:[#allocation8 + $0x6c0] sm:$0xf]  ;;  %v9668_v20 = vld [vmem:[#allocation8 + $0x584] sm:$0xf] }
  0x80   :  { %2216 = vmatpush.bf16.msra.mxu1 %v6864_v22  ;;  %v9712_v51 = vld [vmem:[#allocation8 + $0x6dc] sm:$0xf0]  ;;  %v9732_v35 = vld [vmem:[#allocation8 + $0x784] sm:$0xf] }
  0x81   :  { %2227 = vmatpush.bf16.msra.mxu2 %v7184_v46  ;;  %v7472_v53 = vor.u32 %v9712_v51, %v7471_v49  ;;  %v7151_v57 = vld [vmem:[#allocation8 + $0x440] sm:$0xf]  ;;  %v7569_v36 = vld [vmem:[#allocation8 + $0x7a0] sm:$0xf0] }
  0x82   :  { %v9632_v58 = vld [vmem:[#allocation8 + $0x45c] sm:$0xf0]  ;;  %v9652_v38 = vld [vmem:[#allocation8 + $0x504] sm:$0xf] }
  0x83   :  { %2248 = vmatpush.bf16.msrb.mxu0 %v6836_v21  ;;  %2239 = vmatpush.bf16.msra.mxu3 %v7472_v53  ;;  %v7152_v60 = vor.u32 %v9632_v58, %v7151_v57  ;;  %v7439_v63 = vld [vmem:[#allocation8 + $0x680] sm:$0xf]  ;;  %v7313_v21 = vld [vmem:[#allocation8 + $0x5a0] sm:$0xf0] }
  0x84   :  { %2261 = vmatpush.bf16.msrb.mxu1 %v7092_v25  ;;  %v9704_v0 = vld [vmem:[#allocation8 + $0x69c] sm:$0xf0]  ;;  %v7316_v22 = vor.u32 %v9668_v20, %v7313_v21  ;;  %v7249_v39 = vld [vmem:[#allocation8 + $0x520] sm:$0xf0] }
  0x85   :  { %2228 = vmatpush.bf16.msra.mxu2 %v7152_v60  ;;  %v7440_v2 = vor.u32 %v9704_v0, %v7439_v63  ;;  %v7119_v5 = vld [vmem:[#allocation8 + $0x400] sm:$0xf]  ;;  %v9724_v40 = vld [vmem:[#allocation8 + $0x744] sm:$0xf] }
  0x86   :  { %v9624_v6 = vld [vmem:[#allocation8 + $0x41c] sm:$0xf0]  ;;  %v7537_v41 = vld [vmem:[#allocation8 + $0x760] sm:$0xf0] }
  0x87   :  { %2249 = vmatpush.bf16.msrb.mxu0 %v6804_v28  ;;  %2240 = vmatpush.bf16.msra.mxu3 %v7440_v2  ;;  %v7120_v7 = vor.u32 %v9624_v6, %v7119_v5  ;;  %v7407_v14 = vld [vmem:[#allocation8 + $0x640] sm:$0xf]  ;;  %v9740_v28 = vld [vmem:[#allocation8 + $0x7c4] sm:$0xf]  ;;  %v196_v6 = vperm.slane %v10530_v45, 1 }
  0x88   :  { %2262 = vmatpush.bf16.msrb.mxu1 %v7060_v31  ;;  %v9696_v15 = vld [vmem:[#allocation8 + $0x65c] sm:$0xf0]  ;;  %v7604_v31 = vor.u32 %v9740_v28, %v7601_v30  ;;  %v7217_v43 = vld [vmem:[#allocation8 + $0x4e0] sm:$0xf0]  ;;  %v9537_v30 = vld [vmem:[#allocation8 + $0x164] sm:$0xf0] }
  0x89   :  { %2229 = vmatpush.bf16.msra.mxu2 %v7120_v7  ;;  %v7408_v17 = vor.u32 %v9696_v15, %v7407_v14  ;;  %v7375_v23 = vld [vmem:[#allocation8 + $0x600] sm:$0xf]  ;;  %v9716_v46 = vld [vmem:[#allocation8 + $0x704] sm:$0xf]  ;;  %v9545_v15 = vld [vmem:[#allocation8 + $0x1a4] sm:$0xf0] }
  0x8a   :  { %v9688_v24 = vld [vmem:[#allocation8 + $0x61c] sm:$0xf0]  ;;  %v7505_v47 = vld [vmem:[#allocation8 + $0x720] sm:$0xf0] }
  0x8b   :  { %2250 = vmatpush.bf16.msrb.mxu0 %v6772_v34  ;;  %2241 = vmatpush.bf16.msra.mxu3 %v7408_v17  ;;  %v7376_v25 = vor.u32 %v9688_v24, %v7375_v23  ;;  %v7284_v34 = vor.u32 %v9660_v32, %v7281_v33  ;;  %v9636_v49 = vld [vmem:[#allocation8 + $0x484] sm:$0xf] }
  0x8c   :  { %2263 = vmatpush.bf16.msrb.mxu1 %v7028_v37  ;;  %v7572_v37 = vor.u32 %v9732_v35, %v7569_v36  ;;  %v7185_v51 = vld [vmem:[#allocation8 + $0x4a0] sm:$0xf0]  ;;  %v7063_v36 = vld [vmem:[#allocation8 + $0x388] sm:$0xf] }
  0x8d   :  { %2274 = vmatpush.bf16.msrb.mxu2 %v7348_v13  ;;  %v7188_v53 = vor.u32 %v9636_v49, %v7185_v51  ;;  %v9708_v55 = vld [vmem:[#allocation8 + $0x6c4] sm:$0xf]  ;;  %v6999_v49 = vld [vmem:[#allocation8 + $0x308] sm:$0xf] }
  0x8e   :  { %v9628_v59 = vld [vmem:[#allocation8 + $0x444] sm:$0xf]  ;;  %v9593_v51 = vld [vmem:[#allocation8 + $0x324] sm:$0xf0] }
  0x8f   :  { %2251 = vmatpush.bf16.msrb.mxu0 %v6740_v50  ;;  %2242 = vmatpush.bf16.msra.mxu3 %v7376_v25  ;;  %v7252_v50 = vor.u32 %v9652_v38, %v7249_v39  ;;  %v7153_v60 = vld [vmem:[#allocation8 + $0x460] sm:$0xf0]  ;;  %v6808_v25 = vor.u32 %v9545_v15, %v6807_v12  ;;  %v6743_v39 = vld [vmem:[#allocation8 + $0x108] sm:$0xf]  ;;  %v198_v12 = vperm.slane %v10530_v45, 3 }
  0x90   :  { %2264 = vmatpush.bf16.msrb.mxu1 %v6996_v42  ;;  %v7540_v42 = vor.u32 %v9724_v40, %v7537_v41  ;;  %v7156_v63 = vor.u32 %v9628_v59, %v7153_v60  ;;  %v9700_v0 = vld [vmem:[#allocation8 + $0x684] sm:$0xf]  ;;  %v9585_v59 = vld [vmem:[#allocation8 + $0x2e4] sm:$0xf0] }
  0x91   :  { %2275 = vmatpush.bf16.msrb.mxu2 %v7316_v22  ;;  %v7441_v1 = vld [vmem:[#allocation8 + $0x6a0] sm:$0xf0]  ;;  %v7095_v22 = vld [vmem:[#allocation8 + $0x3c8] sm:$0xf] }
  0x92   :  { %v7444_v5 = vor.u32 %v9700_v0, %v7441_v1  ;;  %v9620_v7 = vld [vmem:[#allocation8 + $0x404] sm:$0xf]  ;;  %v7096_v33 = vor.u32 %v9617_v26, %v7095_v22  ;;  %v6647_v60 = vld [vmem:[#allocation8 + $0x48] sm:$0xf]  ;;  %v6809_v26 = vld [vmem:[#allocation8 + $0x1a8] sm:$0xf0] }
  0x93   :  { %2252 = vmatpush.bf16.msrb.mxu0 %v6708_v54  ;;  %2287 = vmatpush.bf16.msrb.mxu3 %v7604_v31  ;;  %v9644_v54 = vld [vmem:[#allocation8 + $0x4c4] sm:$0xf] }
  0x94   :  { %2265 = vmatpush.bf16.msrb.mxu1 %v6964_v56  ;;  %v7220_v44 = vor.u32 %v9644_v54, %v7217_v43  ;;  %v7473_v56 = vld [vmem:[#allocation8 + $0x6e0] sm:$0xf0]  ;;  %v7031_v54 = vld [vmem:[#allocation8 + $0x348] sm:$0xf] }
  0x95   :  { %2276 = vmatpush.bf16.msrb.mxu2 %v7284_v34  ;;  %v7476_v57 = vor.u32 %v9708_v55, %v7473_v56  ;;  %v7121_v8 = vld [vmem:[#allocation8 + $0x420] sm:$0xf0]  ;;  %v9601_v43 = vld [vmem:[#allocation8 + $0x364] sm:$0xf0]  ;;  %v7000_v55 = vor.u32 %v9593_v51, %v6999_v49  ;;  %v197_v56 = vperm.slane %v10530_v45, 2 }
  0x96   :  { %v7124_v10 = vor.u32 %v9620_v7, %v7121_v8  ;;  %v9692_v16 = vld [vmem:[#allocation8 + $0x644] sm:$0xf]  ;;  %v7351_v7 = vld [vmem:[#allocation8 + $0x5c8] sm:$0xf] }
  0x97   :  { %2253 = vmatpush.bf16.msrb.mxu0 %v6676_v48  ;;  %2288 = vmatpush.bf16.msrb.mxu3 %v7572_v37  ;;  %v7508_v48 = vor.u32 %v9716_v46, %v7505_v47  ;;  %v7409_v17 = vld [vmem:[#allocation8 + $0x660] sm:$0xf0]  ;;  %v9609_v37 = vld [vmem:[#allocation8 + $0x3a4] sm:$0xf0]  ;;  %v7032_v47 = vor.u32 %v9601_v43, %v7031_v54  ;;  %v6777_v54 = vld [vmem:[#allocation8 + $0x168] sm:$0xf0] }
  0x98   :  { %2266 = vmatpush.bf16.msrb.mxu1 %v6932_v4  ;;  %v9553_v4 = vld [vmem:[#allocation8 + $0x1e4] sm:$0xf0]  ;;  %v7412_v21 = vor.u32 %v9692_v16, %v7409_v17  ;;  %v9684_v27 = vld [vmem:[#allocation8 + $0x604] sm:$0xf]  ;;  %v7064_v41 = vor.u32 %v9609_v37, %v7063_v36 }
  0x99   :  { %2277 = vmatpush.bf16.msrb.mxu2 %v7252_v50  ;;  %v7377_v28 = vld [vmem:[#allocation8 + $0x620] sm:$0xf0]  ;;  %v9529_v50 = vld [vmem:[#allocation8 + $0x124] sm:$0xf0] }
  0x9a   :  { %v7380_v31 = vor.u32 %v9684_v27, %v7377_v28  ;;  %v9521_v46 = vld [vmem:[#allocation8 + $0xe4] sm:$0xf0] }
  0x9b   :  { %2254 = vmatpush.bf16.msrb.mxu0 %v6644_v62  ;;  %2289 = vmatpush.bf16.msrb.mxu3 %v7540_v42  ;;  %v6744_v42 = vor.u32 %v9529_v50, %v6743_v39  ;;  %v6903_v17 = vld [vmem:[#allocation8 + $0x248] sm:$0xf]  ;;  %v9613_v39 = vld [vmem:[#allocation8 + $0x3cc] sm:$0xf] }
  0x9c   :  { %2267 = vmatpush.bf16.msrb.mxu1 %v6900_v19  ;;  %v7097_v50 = vld [vmem:[#allocation8 + $0x3e8] sm:$0xf0]  ;;  %v9737_v49 = vld [vmem:[#allocation8 + $0x7a4] sm:$0xf0] }
  0x9d   :  { %2278 = vmatpush.bf16.msrb.mxu2 %v7220_v44  ;;  %v6711_v44 = vld [vmem:[#allocation8 + $0xc8] sm:$0xf] }
  0x9f   :  { %2255 = vmatpush.bf16.msrb.mxu0 %v6612_v11  ;;  %2290 = vmatpush.bf16.msrb.mxu3 %v7508_v48  ;;  %v6840_v11 = vor.u32 %v9553_v4, %v6839_v3  ;;  %v6712_v48 = vor.u32 %v9521_v46, %v6711_v44  ;;  %v6935_v3 = vld [vmem:[#allocation8 + $0x288] sm:$0xf] }
  0xa0   :  { %2268 = vmatpush.bf16.msrb.mxu1 %v6868_v29  ;;  %v6775_v29 = vld [vmem:[#allocation8 + $0x148] sm:$0xf] }
  0xa1   :  { %2279 = vmatpush.bf16.msrb.mxu2 %v7188_v53  ;;  %v6776_v35 = vor.u32 %v9537_v30, %v6775_v29  ;;  %v9513_v53 = vld [vmem:[#allocation8 + $0xa4] sm:$0xf0] }
  0xa2   :  { %v9577_v4 = vld [vmem:[#allocation8 + $0x2a4] sm:$0xf0] }
  0xa3   :  { %2291 = vmatpush.bf16.msrb.mxu3 %v7476_v57  ;;  %v6871_v30 = vld [vmem:[#allocation8 + $0x208] sm:$0xf] }
  0xa5   :  { %2280 = vmatpush.bf16.msrb.mxu2 %v7156_v63 }
  0xa7   :  { %2292 = vmatpush.bf16.msrb.mxu3 %v7444_v5  ;;  %v6615_v5 = vld [vmem:[#allocation8 + $0x8] sm:$0xf] }
  0xa9   :  { %2281 = vmatpush.bf16.msrb.mxu2 %v7124_v10  ;;  %v9549_v10 = vld [vmem:[#allocation8 + $0x1cc] sm:$0xf] }
  0xab   :  { %2293 = vmatpush.bf16.msrb.mxu3 %v7412_v21  ;;  %v7319_v21 = vld [vmem:[#allocation8 + $0x588] sm:$0xf] }
  0xaf   :  { %2294 = vmatpush.bf16.msrb.mxu3 %v7380_v31 }
  0xbf   :  { %v539_v58 = vpop.f32.mrf.mxu0 }
  0xc0   :  { %v540_v61 = vadd.f32 %v539_v58, %v195_v52  ;;  %v552_v62 = vpop.f32.mrf.mxu1  ;;  %v6679_v52 = vld [vmem:[#allocation8 + $0x88] sm:$0xf] }
  0xc1   :  { %v6680_v57 = vor.u32 %v9513_v53, %v6679_v52  ;;  %v6967_v58 = vld [vmem:[#allocation8 + $0x2c8] sm:$0xf] }
  0xc2   :  { %v553_v2 = vadd.f32 %v552_v62, %v540_v61  ;;  %v9505_v61 = vld [vmem:[#allocation8 + $0x64] sm:$0xf0]  ;;  %v6968_v63 = vor.u32 %v9585_v59, %v6967_v58 }
  0xc3   :  { %v9657_v59 = vld [vmem:[#allocation8 + $0x524] sm:$0xf0] }
  0xc4   :  { %v634_v9 = vmax.f32 %v553_v2, 0.0  ;;  %v6648_v2 = vor.u32 %v9505_v61, %v6647_v60  ;;  %v9525_v60 = vld [vmem:[#allocation8 + $0x10c] sm:$0xf] }
  0xc5   :  { %v6745_v61 = vld [vmem:[#allocation8 + $0x128] sm:$0xf0] }
  0xc6   :  { %v10534_v13 = vpack.c.bf16 %v634_v9, %v634_v9  ;;  %v9681_v9 = vld [vmem:[#allocation8 + $0x5e4] sm:$0xf0] }
  0xc7   :  { %v565_v14 = vpop.f32.mrf.mxu2  ;;  %v541_v20 = vpop.f32.mrf.mxu0 }
  0xc8   :  { %v566_v18 = vadd.f32 %v565_v14, %v196_v6  ;;  %v578_v19 = vpop.f32.mrf.mxu3  ;;  %2204 = vmatmul.bf16.vlgmr.msra.gmra.mxu0 %v10534_v13  ;;  %v554_v23 = vpop.f32.mrf.mxu1  ;;  %v9497_v6 = vld [vmem:[#allocation8 + $0x24] sm:$0xf0]  ;;  %v6936_v14 = vor.u32 %v9577_v4, %v6935_v3  ;;  %v6748_v3 = vor.u32 %v9525_v60, %v6745_v61  ;;  %v9565_v60 = vld [vmem:[#allocation8 + $0x24c] sm:$0xf] }
  0xc9   :  { %2300 = vmatpush.bf16.msra.mxu0 %v6840_v11  ;;  %v6841_v11 = vld [vmem:[#allocation8 + $0x1e8] sm:$0xf0]  ;;  %v6616_v16 = vor.u32 %v9497_v6, %v6615_v5  ;;  %v9729_v4 = vld [vmem:[#allocation8 + $0x764] sm:$0xf0] }
  0xca   :  { %v579_v24 = vadd.f32 %v578_v19, %v566_v18  ;;  %v9569_v18 = vld [vmem:[#allocation8 + $0x264] sm:$0xf0]  ;;  %v7352_v19 = vor.u32 %v9681_v9, %v7351_v7  ;;  %v6844_v20 = vor.u32 %v9549_v10, %v6841_v11  ;;  %v9597_v5 = vld [vmem:[#allocation8 + $0x34c] sm:$0xf] }
  0xcb   :  { %v6904_v45 = vor.u32 %v9569_v18, %v6903_v17  ;;  %v7033_v6 = vld [vmem:[#allocation8 + $0x368] sm:$0xf0]  ;;  %v7223_v9 = vld [vmem:[#allocation8 + $0x4c8] sm:$0xf] }
  0xcc   :  { %v635_v32 = vmax.f32 %v579_v24, 0.0  ;;  %v9673_v24 = vld [vmem:[#allocation8 + $0x5a4] sm:$0xf0]  ;;  %v9517_v7 = vld [vmem:[#allocation8 + $0xcc] sm:$0xf] }
  0xcd   :  { %2301 = vmatpush.bf16.msra.mxu0 %v6808_v25  ;;  %v9541_v25 = vld [vmem:[#allocation8 + $0x18c] sm:$0xf]  ;;  %v7320_v37 = vor.u32 %v9673_v24, %v7319_v21  ;;  %v9649_v10 = vld [vmem:[#allocation8 + $0x4e4] sm:$0xf0] }
  0xce   :  { %v10537_v34 = vpack.c.bf16 %v635_v32, %v635_v32  ;;  %v9561_v32 = vld [vmem:[#allocation8 + $0x224] sm:$0xf0]  ;;  %v9589_v17 = vld [vmem:[#allocation8 + $0x30c] sm:$0xf] }
  0xcf   :  { %v567_v38 = vpop.f32.mrf.mxu2  ;;  %v6872_v44 = vor.u32 %v9561_v32, %v6871_v30  ;;  %v7001_v18 = vld [vmem:[#allocation8 + $0x328] sm:$0xf0]  ;;  %v9641_v24 = vld [vmem:[#allocation8 + $0x4a4] sm:$0xf0] }
  0xd0   :  { %2217 = vmatmul.bf16.vlgmr.msra.gmra.mxu1 %v10537_v34  ;;  %v580_v40 = vpop.f32.mrf.mxu3  ;;  %v6812_v38 = vor.u32 %v9541_v25, %v6809_v26  ;;  %v6681_v21 = vld [vmem:[#allocation8 + $0xa8] sm:$0xf0]  ;;  %v7004_v26 = vor.u32 %v9589_v17, %v7001_v18  ;;  %v6783_v18 = vld [vmem:[#allocation8 + $0x150] sm:$0xf] }
  0xd1   :  { %2313 = vmatpush.bf16.msra.mxu1 %v7096_v33  ;;  %2302 = vmatpush.bf16.msra.mxu0 %v6776_v35  ;;  %v7607_v33 = vld [vmem:[#allocation8 + $0x7c8] sm:$0xf]  ;;  %v6969_v30 = vld [vmem:[#allocation8 + $0x2e8] sm:$0xf0] }
  0xd2   :  { %v9745_v35 = vld [vmem:[#allocation8 + $0x7e4] sm:$0xf0]  ;;  %v9501_v32 = vld [vmem:[#allocation8 + $0x4c] sm:$0xf] }
  0xd3   :  { %v7287_v40 = vld [vmem:[#allocation8 + $0x548] sm:$0xf]  ;;  %v7608_v46 = vor.u32 %v9745_v35, %v7607_v33  ;;  %v6649_v33 = vld [vmem:[#allocation8 + $0x68] sm:$0xf0] }
  0xd4   :  { %v7159_v35 = vld [vmem:[#allocation8 + $0x448] sm:$0xf]  ;;  %v6905_v61 = vld [vmem:[#allocation8 + $0x268] sm:$0xf0] }
  0xd5   :  { %2314 = vmatpush.bf16.msra.mxu1 %v7064_v41  ;;  %2303 = vmatpush.bf16.msra.mxu0 %v6744_v42  ;;  %v9665_v41 = vld [vmem:[#allocation8 + $0x564] sm:$0xf0]  ;;  %v9533_v42 = vld [vmem:[#allocation8 + $0x14c] sm:$0xf] }
  0xd6   :  { %v7288_v52 = vor.u32 %v9665_v41, %v7287_v40  ;;  %v6780_v53 = vor.u32 %v9533_v42, %v6777_v54  ;;  %v9705_v40 = vld [vmem:[#allocation8 + $0x6a4] sm:$0xf0]  ;;  %v9573_v41 = vld [vmem:[#allocation8 + $0x28c] sm:$0xf] }
  0xd7   :  { %v6937_v42 = vld [vmem:[#allocation8 + $0x2a8] sm:$0xf0] }
  0xd8   :  { %2256 = vmatmul.bf16.vlgmr.msrb.gmra.mxu0 %v10534_v13 }
  0xd9   :  { %2315 = vmatpush.bf16.msra.mxu1 %v7032_v47  ;;  %2304 = vmatpush.bf16.msra.mxu0 %v6712_v48  ;;  %v7100_v47 = vor.u32 %v9613_v39, %v7097_v50  ;;  %v7575_v48 = vld [vmem:[#allocation8 + $0x788] sm:$0xf]  ;;  %v6652_v50 = vor.u32 %v9501_v32, %v6649_v33  ;;  %v6751_v32 = vld [vmem:[#allocation8 + $0x110] sm:$0xf] }
  0xda   :  { %v7447_v39 = vld [vmem:[#allocation8 + $0x688] sm:$0xf]  ;;  %v9530_v33 = vld [vmem:[#allocation8 + $0x12c] sm:$0xf0] }
  0xdd   :  { %2316 = vmatpush.bf16.msra.mxu1 %v7000_v55  ;;  %2305 = vmatpush.bf16.msra.mxu0 %v6680_v57  ;;  %v9605_v55 = vld [vmem:[#allocation8 + $0x38c] sm:$0xf]  ;;  %v7255_v57 = vld [vmem:[#allocation8 + $0x508] sm:$0xf] }
  0xdf   :  { %v591_v62 = vpop.f32.mrf.mxu0 }
  0xe0   :  { %v592_v0 = vadd.f32 %v591_v62, %v197_v56  ;;  %v604_v1 = vpop.f32.mrf.mxu1  ;;  %2269 = vmatmul.bf16.vlgmr.msrb.gmra.mxu1 %v10537_v34  ;;  %v7065_v56 = vld [vmem:[#allocation8 + $0x3a8] sm:$0xf0] }
  0xe1   :  { %2317 = vmatpush.bf16.msra.mxu1 %v6968_v63  ;;  %2306 = vmatpush.bf16.msra.mxu0 %v6648_v2  ;;  %v7576_v63 = vor.u32 %v9737_v49, %v7575_v48  ;;  %v7256_v2 = vor.u32 %v9657_v59, %v7255_v57  ;;  %v6847_v48 = vld [vmem:[#allocation8 + $0x1d0] sm:$0xf]  ;;  %v7415_v57 = vld [vmem:[#allocation8 + $0x648] sm:$0xf] }
  0xe2   :  { %v605_v8 = vadd.f32 %v604_v1, %v592_v0  ;;  %v7068_v0 = vor.u32 %v9605_v55, %v7065_v56  ;;  %v7543_v1 = vld [vmem:[#allocation8 + $0x748] sm:$0xf]  ;;  %v9554_v49 = vld [vmem:[#allocation8 + $0x1ec] sm:$0xf0]  ;;  %v9677_v55 = vld [vmem:[#allocation8 + $0x5cc] sm:$0xf] }
  0xe3   :  { %v7544_v11 = vor.u32 %v9729_v4, %v7543_v1  ;;  %v7353_v56 = vld [vmem:[#allocation8 + $0x5e8] sm:$0xf0]  ;;  %v9697_v59 = vld [vmem:[#allocation8 + $0x664] sm:$0xf0] }
  0xe4   :  { %v636_v15 = vmax.f32 %v605_v8, 0.0  ;;  %v6713_v8 = vld [vmem:[#allocation8 + $0xe8] sm:$0xf0]  ;;  %v7416_v4 = vor.u32 %v9697_v59, %v7415_v57  ;;  %v9594_v57 = vld [vmem:[#allocation8 + $0x32c] sm:$0xf0] }
  0xe5   :  { %2318 = vmatpush.bf16.msra.mxu1 %v6936_v14  ;;  %2307 = vmatpush.bf16.msra.mxu0 %v6616_v16  ;;  %v7511_v14 = vld [vmem:[#allocation8 + $0x708] sm:$0xf]  ;;  %v9669_v1 = vld [vmem:[#allocation8 + $0x58c] sm:$0xf]  ;;  %v6687_v59 = vld [vmem:[#allocation8 + $0x90] sm:$0xf] }
  0xe6   :  { %v10544_v22 = vpack.c.bf16 %v636_v15, %v636_v15  ;;  %v6716_v15 = vor.u32 %v9517_v7, %v6713_v8  ;;  %v9721_v16 = vld [vmem:[#allocation8 + $0x724] sm:$0xf0] }
  0xe7   :  { %v617_v23 = vpop.f32.mrf.mxu2  ;;  %v593_v29 = vpop.f32.mrf.mxu0  ;;  %v7512_v25 = vor.u32 %v9721_v16, %v7511_v14  ;;  %v7383_v7 = vld [vmem:[#allocation8 + $0x608] sm:$0xf]  ;;  %v7609_v14 = vld [vmem:[#allocation8 + $0x7e8] sm:$0xf0]  ;;  %v9618_v16 = vld [vmem:[#allocation8 + $0x3ec] sm:$0xf0] }
  0xe8   :  { %v618_v27 = vadd.f32 %v617_v23, %v198_v12  ;;  %v630_v28 = vpop.f32.mrf.mxu3  ;;  %v606_v31 = vpop.f32.mrf.mxu1  ;;  %2230 = vmatmul.bf16.vlgmr.msra.gmra.mxu2 %v10544_v22  ;;  %2308 = vmatmul.bf16.vlgmr.msra.gmra.mxu0 %v10534_v13  ;;  %v7036_v12 = vor.u32 %v9597_v5, %v7033_v6  ;;  %v7191_v23 = vld [vmem:[#allocation8 + $0x488] sm:$0xf]  ;;  %v6908_v5 = vor.u32 %v9565_v60, %v6905_v61  ;;  %v7321_v6 = vld [vmem:[#allocation8 + $0x5a8] sm:$0xf0]  ;;  %v9514_v60 = vld [vmem:[#allocation8 + $0xac] sm:$0xf0] }
  0xe9   :  { %2326 = vmatpush.bf16.msra.mxu2 %v7352_v19  ;;  %2352 = vmatpush.bf16.msrb.mxu0 %v6844_v20  ;;  %v7224_v19 = vor.u32 %v9649_v10, %v7223_v9  ;;  %v9509_v20 = vld [vmem:[#allocation8 + $0x8c] sm:$0xf]  ;;  %v9713_v29 = vld [vmem:[#allocation8 + $0x6e4] sm:$0xf0]  ;;  %v7192_v31 = vor.u32 %v9641_v24, %v7191_v23  ;;  %v7324_v17 = vor.u32 %v9669_v1, %v7321_v6 }
  0xea   :  { %v631_v36 = vadd.f32 %v630_v28, %v618_v27  ;;  %2319 = vmatpush.bf16.msra.mxu1 %v6904_v45  ;;  %v7479_v27 = vld [vmem:[#allocation8 + $0x6c8] sm:$0xf]  ;;  %v6684_v28 = vor.u32 %v9509_v20, %v6681_v21  ;;  %v9581_v45 = vld [vmem:[#allocation8 + $0x2cc] sm:$0xf] }
  0xeb   :  { %v9689_v8 = vld [vmem:[#allocation8 + $0x624] sm:$0xf0]  ;;  %v9557_v9 = vld [vmem:[#allocation8 + $0x20c] sm:$0xf] }
  0xec   :  { %v637_v43 = vmax.f32 %v631_v36, 0.0  ;;  %v9633_v36 = vld [vmem:[#allocation8 + $0x464] sm:$0xf0]  ;;  %v6873_v10 = vld [vmem:[#allocation8 + $0x228] sm:$0xf0]  ;;  %v7384_v20 = vor.u32 %v9689_v8, %v7383_v7 }
  0xed   :  { %2327 = vmatpush.bf16.msra.mxu2 %v7320_v37  ;;  %2353 = vmatpush.bf16.msrb.mxu0 %v6812_v38  ;;  %v7480_v37 = vor.u32 %v9713_v29, %v7479_v27  ;;  %v6972_v38 = vor.u32 %v9581_v45, %v6969_v30  ;;  %v7160_v54 = vor.u32 %v9633_v36, %v7159_v35  ;;  %v9661_v23 = vld [vmem:[#allocation8 + $0x54c] sm:$0xf]  ;;  %v7071_v45 = vld [vmem:[#allocation8 + $0x390] sm:$0xf] }
  0xee   :  { %v10548_v51 = vpack.c.bf16 %v637_v43, %v637_v43  ;;  %2320 = vmatpush.bf16.msra.mxu1 %v6872_v44  ;;  %v7127_v43 = vld [vmem:[#allocation8 + $0x408] sm:$0xf]  ;;  %v9493_v44 = vld [vmem:[#allocation8 + $0xc] sm:$0xf]  ;;  %v6876_v21 = vor.u32 %v9557_v9, %v6873_v10  ;;  %v9610_v30 = vld [vmem:[#allocation8 + $0x3ac] sm:$0xf0] }
  0xef   :  { %v619_v58 = vpop.f32.mrf.mxu2  ;;  %v7289_v24 = vld [vmem:[#allocation8 + $0x568] sm:$0xf0]  ;;  %v6655_v7 = vld [vmem:[#allocation8 + $0x50] sm:$0xf] }
  0xf0   :  { %v632_v62 = vpop.f32.mrf.mxu3  ;;  %2243 = vmatmul.bf16.vlgmr.msra.gmra.mxu3 %v10548_v51  ;;  %v9733_v27 = vld [vmem:[#allocation8 + $0x78c] sm:$0xf]  ;;  %v9506_v8 = vld [vmem:[#allocation8 + $0x6c] sm:$0xf0] }
  0xf1   :  { %2339 = vmatpush.bf16.msra.mxu3 %v7608_v46  ;;  %2328 = vmatpush.bf16.msra.mxu2 %v7288_v52  ;;  %v6617_v46 = vld [vmem:[#allocation8 + $0x28] sm:$0xf0]  ;;  %v7448_v52 = vor.u32 %v9705_v40, %v7447_v39 }
  0xf2   :  { %2365 = vmatpush.bf16.msrb.mxu1 %v7100_v47  ;;  %2354 = vmatpush.bf16.msrb.mxu0 %v6780_v53  ;;  %v9625_v47 = vld [vmem:[#allocation8 + $0x424] sm:$0xf0]  ;;  %v6940_v53 = vor.u32 %v9573_v41, %v6937_v42  ;;  %v6620_v58 = vor.u32 %v9493_v44, %v6617_v46  ;;  %v7577_v29 = vld [vmem:[#allocation8 + $0x7a8] sm:$0xf0]  ;;  %v7039_v41 = vld [vmem:[#allocation8 + $0x350] sm:$0xf] }
  0xf3   :  { %2321 = vmatmul.bf16.vlgmr.msra.gmra.mxu1 %v10537_v34  ;;  %v7128_v62 = vor.u32 %v9625_v47, %v7127_v43  ;;  %v9653_v35 = vld [vmem:[#allocation8 + $0x50c] sm:$0xf]  ;;  %v9602_v42 = vld [vmem:[#allocation8 + $0x36c] sm:$0xf0] }
  0xf4   :  { %v7257_v36 = vld [vmem:[#allocation8 + $0x528] sm:$0xf0]  ;;  %v6719_v43 = vld [vmem:[#allocation8 + $0xd0] sm:$0xf] }
  0xf5   :  { %2340 = vmatpush.bf16.msra.mxu3 %v7576_v63  ;;  %2329 = vmatpush.bf16.msra.mxu2 %v7256_v2  ;;  %v6848_v63 = vor.u32 %v9554_v49, %v6847_v48  ;;  %v6815_v2 = vld [vmem:[#allocation8 + $0x190] sm:$0xf]  ;;  %v9725_v39 = vld [vmem:[#allocation8 + $0x74c] sm:$0xf]  ;;  %v7040_v49 = vor.u32 %v9602_v42, %v7039_v41 }
  0xf6   :  { %2366 = vmatpush.bf16.msrb.mxu1 %v7068_v0  ;;  %2355 = vmatpush.bf16.msrb.mxu0 %v6748_v3  ;;  %v7356_v0 = vor.u32 %v9677_v55, %v7353_v56  ;;  %v9546_v3 = vld [vmem:[#allocation8 + $0x1ac] sm:$0xf0]  ;;  %v7545_v40 = vld [vmem:[#allocation8 + $0x768] sm:$0xf0] }
  0xf7   :  { %v9522_v44 = vld [vmem:[#allocation8 + $0xec] sm:$0xf0]  ;;  %v9645_v46 = vld [vmem:[#allocation8 + $0x4cc] sm:$0xf]  ;;  %v7548_v48 = vor.u32 %v9725_v39, %v7545_v40  ;;  %v6817_v40 = vld [vmem:[#allocation8 + $0x1b0] sm:$0xf0] }
  0xf8   :  { %2282 = vmatmul.bf16.vlgmr.msrb.gmra.mxu2 %v10544_v22  ;;  %v7225_v47 = vld [vmem:[#allocation8 + $0x4e8] sm:$0xf0]  ;;  %v7007_v56 = vld [vmem:[#allocation8 + $0x310] sm:$0xf] }
  0xf9   :  { %2341 = vmatpush.bf16.msra.mxu3 %v7544_v11  ;;  %2330 = vmatpush.bf16.msra.mxu2 %v7224_v19  ;;  %v9741_v11 = vld [vmem:[#allocation8 + $0x7cc] sm:$0xf]  ;;  %v9538_v19 = vld [vmem:[#allocation8 + $0x16c] sm:$0xf0] }
  0xfa   :  { %2367 = vmatpush.bf16.msrb.mxu1 %v7036_v12  ;;  %2356 = vmatpush.bf16.msrb.mxu0 %v6716_v15  ;;  %v6816_v12 = vor.u32 %v9546_v3, %v6815_v2  ;;  %v7103_v15 = vld [vmem:[#allocation8 + $0x3d0] sm:$0xf]  ;;  %v7513_v55 = vld [vmem:[#allocation8 + $0x728] sm:$0xf0]  ;;  %v6688_v2 = vor.u32 %v9514_v60, %v6687_v59 }
  0xfb   :  { %v9637_v61 = vld [vmem:[#allocation8 + $0x48c] sm:$0xf]  ;;  %v7327_v39 = vld [vmem:[#allocation8 + $0x590] sm:$0xf] }
  0xfc   :  { %v9709_v1 = vld [vmem:[#allocation8 + $0x6cc] sm:$0xf] }
  0xfd   :  { %2342 = vmatpush.bf16.msra.mxu3 %v7512_v25  ;;  %2331 = vmatpush.bf16.msra.mxu2 %v7192_v31  ;;  %v7612_v25 = vor.u32 %v9741_v11, %v7609_v14  ;;  %v7292_v31 = vor.u32 %v9661_v23, %v7289_v24  ;;  %v7481_v3 = vld [vmem:[#allocation8 + $0x6e8] sm:$0xf0]  ;;  %v9498_v23 = vld [vmem:[#allocation8 + $0x2c] sm:$0xf0] }
  0xfe   :  { %2368 = vmatpush.bf16.msrb.mxu1 %v7004_v26  ;;  %2357 = vmatpush.bf16.msrb.mxu0 %v6684_v28  ;;  %v7104_v26 = vor.u32 %v9618_v16, %v7103_v15  ;;  %v6784_v28 = vor.u32 %v9538_v19, %v6783_v18  ;;  %v9629_v9 = vld [vmem:[#allocation8 + $0x44c] sm:$0xf]  ;;  %v7484_v11 = vor.u32 %v9709_v1, %v7481_v3  ;;  %v9578_v18 = vld [vmem:[#allocation8 + $0x2ac] sm:$0xf0] }
  0xff   :  { %v7161_v10 = vld [vmem:[#allocation8 + $0x468] sm:$0xf0]  ;;  %v6656_v15 = vor.u32 %v9506_v8, %v6655_v7  ;;  %v7583_v1 = vld [vmem:[#allocation8 + $0x790] sm:$0xf]  ;;  %v6753_v7 = vld [vmem:[#allocation8 + $0x130] sm:$0xf0] }
 0x100   :  { %2295 = vmatmul.bf16.vlgmr.msrb.gmra.mxu3 %v10548_v51  ;;  %v9701_v14 = vld [vmem:[#allocation8 + $0x68c] sm:$0xf]  ;;  %v7164_v19 = vor.u32 %v9629_v9, %v7161_v10  ;;  %v9738_v3 = vld [vmem:[#allocation8 + $0x7ac] sm:$0xf0] }
 0x101   :  { %2343 = vmatpush.bf16.msra.mxu3 %v7480_v37  ;;  %2332 = vmatpush.bf16.msra.mxu2 %v7160_v54  ;;  %v7580_v37 = vor.u32 %v9733_v27, %v7577_v29  ;;  %v7260_v54 = vor.u32 %v9653_v35, %v7257_v36  ;;  %v7449_v16 = vld [vmem:[#allocation8 + $0x6a8] sm:$0xf0]  ;;  %v7359_v29 = vld [vmem:[#allocation8 + $0x5d0] sm:$0xf]  ;;  %v7584_v9 = vor.u32 %v9738_v3, %v7583_v1  ;;  %v9678_v3 = vld [vmem:[#allocation8 + $0x5d4] sm:$0xf] }
 0x102   :  { %2369 = vmatpush.bf16.msrb.mxu1 %v6972_v38  ;;  %2358 = vmatpush.bf16.msrb.mxu0 %v6652_v50  ;;  %v7072_v38 = vor.u32 %v9610_v30, %v7071_v45  ;;  %v6752_v50 = vor.u32 %v9530_v33, %v6751_v32  ;;  %v7129_v24 = vld [vmem:[#allocation8 + $0x428] sm:$0xf0]  ;;  %v7452_v27 = vor.u32 %v9701_v14, %v7449_v16  ;;  %v9682_v45 = vld [vmem:[#allocation8 + $0x5ec] sm:$0xf0] }
 0x103   :  { %v9693_v30 = vld [vmem:[#allocation8 + $0x64c] sm:$0xf]  ;;  %v6911_v33 = vld [vmem:[#allocation8 + $0x250] sm:$0xf] }
 0x104   :  { %v7417_v32 = vld [vmem:[#allocation8 + $0x668] sm:$0xf0]  ;;  %v9570_v35 = vld [vmem:[#allocation8 + $0x26c] sm:$0xf0] }
 0x105   :  { %2344 = vmatpush.bf16.msra.mxu3 %v7448_v52  ;;  %2333 = vmatpush.bf16.msra.mxu2 %v7128_v62  ;;  %v9717_v52 = vld [vmem:[#allocation8 + $0x70c] sm:$0xf]  ;;  %v7420_v41 = vor.u32 %v9693_v30, %v7417_v32  ;;  %v6912_v42 = vor.u32 %v9570_v35, %v6911_v33  ;;  %v7551_v14 = vld [vmem:[#allocation8 + $0x750] sm:$0xf]  ;;  %v7009_v30 = vld [vmem:[#allocation8 + $0x330] sm:$0xf0] }
 0x106   :  { %2370 = vmatpush.bf16.msrb.mxu1 %v6940_v53  ;;  %2359 = vmatpush.bf16.msrb.mxu0 %v6620_v58  ;;  %v6720_v53 = vor.u32 %v9522_v44, %v6719_v43  ;;  %v7228_v58 = vor.u32 %v9645_v46, %v7225_v47  ;;  %v7193_v62 = vld [vmem:[#allocation8 + $0x4a8] sm:$0xf0]  ;;  %v6879_v46 = vld [vmem:[#allocation8 + $0x210] sm:$0xf]  ;;  %v6689_v32 = vld [vmem:[#allocation8 + $0xb0] sm:$0xf0] }
 0x107   :  { %v7196_v6 = vor.u32 %v9637_v61, %v7193_v62  ;;  %v9685_v43 = vld [vmem:[#allocation8 + $0x60c] sm:$0xf]  ;;  %v9562_v47 = vld [vmem:[#allocation8 + $0x22c] sm:$0xf0] }
 0x108   :  { %2334 = vmatmul.bf16.vlgmr.msra.gmra.mxu2 %v10544_v22  ;;  %v7385_v44 = vld [vmem:[#allocation8 + $0x628] sm:$0xf0]  ;;  %v6880_v60 = vor.u32 %v9562_v47, %v6879_v46  ;;  %v9730_v16 = vld [vmem:[#allocation8 + $0x76c] sm:$0xf0] }
 0x109   :  { %2378 = vmatpush.bf16.msrb.mxu2 %v7356_v0  ;;  %2345 = vmatpush.bf16.msra.mxu3 %v7416_v4  ;;  %v7008_v0 = vor.u32 %v9594_v57, %v7007_v56  ;;  %v6975_v4 = vld [vmem:[#allocation8 + $0x2d0] sm:$0xf]  ;;  %v9534_v57 = vld [vmem:[#allocation8 + $0x154] sm:$0xf]  ;;  %v7388_v59 = vor.u32 %v9685_v43, %v7385_v44 }
 0x10a   :  { %2404 = vmatpush.bf16.msra.mxu0 %v6848_v63  ;;  %2371 = vmatpush.bf16.msrb.mxu1 %v6908_v5  ;;  %v7516_v63 = vor.u32 %v9717_v52, %v7513_v55  ;;  %v9586_v5 = vld [vmem:[#allocation8 + $0x2ec] sm:$0xf0]  ;;  %v7105_v55 = vld [vmem:[#allocation8 + $0x3f0] sm:$0xf0] }
 0x10b   :  { %2360 = vmatmul.bf16.vlgmr.msrb.gmra.mxu0 %v10534_v13  ;;  %v9746_v52 = vld [vmem:[#allocation8 + $0x7ec] sm:$0xf0]  ;;  %v6657_v43 = vld [vmem:[#allocation8 + $0x70] sm:$0xf0] }
 0x10c   :  { %v7135_v1 = vld [vmem:[#allocation8 + $0x410] sm:$0xf] }
 0x10d   :  { %2379 = vmatpush.bf16.msrb.mxu2 %v7324_v17  ;;  %2346 = vmatpush.bf16.msra.mxu3 %v7384_v20  ;;  %v6943_v17 = vld [vmem:[#allocation8 + $0x290] sm:$0xf]  ;;  %v9621_v20 = vld [vmem:[#allocation8 + $0x40c] sm:$0xf] }
 0x10e   :  { %2405 = vmatpush.bf16.msra.mxu0 %v6816_v12  ;;  %2372 = vmatpush.bf16.msrb.mxu1 %v6876_v21  ;;  %v6976_v12 = vor.u32 %v9586_v5, %v6975_v4  ;;  %v6623_v21 = vld [vmem:[#allocation8 + $0x10] sm:$0xf]  ;;  %v7132_v36 = vor.u32 %v9621_v20, %v7129_v24  ;;  %v9606_v4 = vld [vmem:[#allocation8 + $0x394] sm:$0xf] }
 0x10f   :  { %v7073_v5 = vld [vmem:[#allocation8 + $0x3b0] sm:$0xf0] }
 0x110   :  { %2347 = vmatmul.bf16.vlgmr.msra.gmra.mxu3 %v10548_v51  ;;  %v7076_v10 = vor.u32 %v9606_v4, %v7073_v5  ;;  %v6721_v20 = vld [vmem:[#allocation8 + $0xf0] sm:$0xf0] }
 0x111   :  { %2391 = vmatpush.bf16.msrb.mxu3 %v7612_v25  ;;  %2373 = vmatmul.bf16.vlgmr.msrb.gmra.mxu1 %v10537_v34  ;;  %v9550_v25 = vld [vmem:[#allocation8 + $0x1d4] sm:$0xf] }
 0x112   :  { %2417 = vmatpush.bf16.msra.mxu1 %v7104_v26  ;;  %2406 = vmatpush.bf16.msra.mxu0 %v6784_v28  ;;  %v6849_v26 = vld [vmem:[#allocation8 + $0x1f0] sm:$0xf0]  ;;  %v6944_v28 = vor.u32 %v9578_v18, %v6943_v17 }
 0x113   :  { %2380 = vmatpush.bf16.msrb.mxu2 %v7292_v31  ;;  %v6624_v31 = vor.u32 %v9498_v23, %v6623_v21  ;;  %v9598_v17 = vld [vmem:[#allocation8 + $0x354] sm:$0xf]  ;;  %v7552_v23 = vor.u32 %v9730_v16, %v7551_v14  ;;  %v9547_v14 = vld [vmem:[#allocation8 + $0x1b4] sm:$0xf0] }
 0x114   :  { %v7041_v18 = vld [vmem:[#allocation8 + $0x370] sm:$0xf0] }
 0x115   :  { %2392 = vmatpush.bf16.msrb.mxu3 %v7580_v37  ;;  %v6852_v37 = vor.u32 %v9550_v25, %v6849_v26  ;;  %v7044_v24 = vor.u32 %v9598_v17, %v7041_v18  ;;  %v7231_v25 = vld [vmem:[#allocation8 + $0x4d0] sm:$0xf]  ;;  %v7361_v5 = vld [vmem:[#allocation8 + $0x5f0] sm:$0xf0] }
 0x116   :  { %2418 = vmatpush.bf16.msra.mxu1 %v7072_v38  ;;  %2407 = vmatpush.bf16.msra.mxu0 %v6752_v50  ;;  %v7360_v38 = vor.u32 %v9682_v45, %v7359_v29  ;;  %v9542_v50 = vld [vmem:[#allocation8 + $0x194] sm:$0xf]  ;;  %v9650_v26 = vld [vmem:[#allocation8 + $0x4ec] sm:$0xf0] }
 0x117   :  { %2381 = vmatpush.bf16.msrb.mxu2 %v7260_v54  ;;  %v9674_v54 = vld [vmem:[#allocation8 + $0x5ac] sm:$0xf0]  ;;  %v9590_v45 = vld [vmem:[#allocation8 + $0x314] sm:$0xf]  ;;  %v7232_v33 = vor.u32 %v9650_v26, %v7231_v25 }
 0x118   :  { %v7328_v56 = vor.u32 %v9674_v54, %v7327_v39  ;;  %v9722_v29 = vld [vmem:[#allocation8 + $0x72c] sm:$0xf0]  ;;  %v9502_v54 = vld [vmem:[#allocation8 + $0x54] sm:$0xf] }
 0x119   :  { %2393 = vmatpush.bf16.msrb.mxu3 %v7548_v48  ;;  %v7615_v48 = vld [vmem:[#allocation8 + $0x7d0] sm:$0xf]  ;;  %v9670_v17 = vld [vmem:[#allocation8 + $0x594] sm:$0xf] }
 0x11a   :  { %2419 = vmatpush.bf16.msra.mxu1 %v7040_v49  ;;  %2408 = vmatpush.bf16.msra.mxu0 %v6720_v53  ;;  %v6820_v49 = vor.u32 %v9542_v50, %v6817_v40  ;;  %v9614_v53 = vld [vmem:[#allocation8 + $0x3d4] sm:$0xf]  ;;  %v7616_v61 = vor.u32 %v9746_v52, %v7615_v48  ;;  %v7487_v39 = vld [vmem:[#allocation8 + $0x6d0] sm:$0xf] }
 0x11b   :  { %2382 = vmatpush.bf16.msrb.mxu2 %v7228_v58  ;;  %v6785_v58 = vld [vmem:[#allocation8 + $0x170] sm:$0xf0]  ;;  %v7108_v62 = vor.u32 %v9614_v53, %v7105_v55  ;;  %v9714_v40 = vld [vmem:[#allocation8 + $0x6ec] sm:$0xf0]  ;;  %v6660_v53 = vor.u32 %v9502_v54, %v6657_v43  ;;  %v9611_v54 = vld [vmem:[#allocation8 + $0x3b4] sm:$0xf0] }
 0x11c   :  { %v7488_v46 = vor.u32 %v9714_v40, %v7487_v39  ;;  %v7167_v48 = vld [vmem:[#allocation8 + $0x450] sm:$0xf]  ;;  %v7329_v18 = vld [vmem:[#allocation8 + $0x5b0] sm:$0xf0]  ;;  %v10564_v40 = vld [vmem:[#allocation10] sm:$0xff] }
 0x11d   :  { %2394 = vmatpush.bf16.msrb.mxu3 %v7516_v63  ;;  %v7295_v63 = vld [vmem:[#allocation8 + $0x550] sm:$0xf]  ;;  %v9742_v26 = vld [vmem:[#allocation8 + $0x7d4] sm:$0xf]  ;;  %v6759_v43 = vld [vmem:[#allocation8 + $0x118] sm:$0xf] }
 0x11e   :  { %2420 = vmatpush.bf16.msra.mxu1 %v7008_v0  ;;  %2409 = vmatpush.bf16.msra.mxu0 %v6688_v2  ;;  %v9666_v0 = vld [vmem:[#allocation8 + $0x56c] sm:$0xf0]  ;;  %v6788_v2 = vor.u32 %v9534_v57, %v6785_v58  ;;  %v6945_v57 = vld [vmem:[#allocation8 + $0x2b0] sm:$0xf0] }
 0x11f   :  { %2383 = vmatpush.bf16.msrb.mxu2 %v7196_v6  ;;  %v9526_v6 = vld [vmem:[#allocation8 + $0x114] sm:$0xf]  ;;  %v7296_v8 = vor.u32 %v9666_v0, %v7295_v63  ;;  %v7455_v52 = vld [vmem:[#allocation8 + $0x690] sm:$0xf] }
 0x120   :  { %v9706_v55 = vld [vmem:[#allocation8 + $0x6ac] sm:$0xf0]  ;;  %v9494_v58 = vld [vmem:[#allocation8 + $0x14] sm:$0xf] }
 0x121   :  { %2395 = vmatpush.bf16.msrb.mxu3 %v7484_v11  ;;  %v7263_v11 = vld [vmem:[#allocation8 + $0x510] sm:$0xf]  ;;  %v7456_v63 = vor.u32 %v9706_v55, %v7455_v52  ;;  %v7265_v52 = vld [vmem:[#allocation8 + $0x530] sm:$0xf0] }
 0x122   :  { %2421 = vmatpush.bf16.msra.mxu1 %v6976_v12  ;;  %2410 = vmatpush.bf16.msra.mxu0 %v6656_v15  ;;  %v9658_v12 = vld [vmem:[#allocation8 + $0x52c] sm:$0xf0]  ;;  %v6756_v15 = vor.u32 %v9526_v6, %v6753_v7 }
 0x123   :  { %2384 = vmatpush.bf16.msrb.mxu2 %v7164_v19  ;;  %v9518_v19 = vld [vmem:[#allocation8 + $0xd4] sm:$0xf]  ;;  %v7264_v21 = vor.u32 %v9658_v12, %v7263_v11  ;;  %v7423_v6 = vld [vmem:[#allocation8 + $0x650] sm:$0xf]  ;;  %v6823_v12 = vld [vmem:[#allocation8 + $0x198] sm:$0xf] }
 0x124   :  { %v9698_v7 = vld [vmem:[#allocation8 + $0x66c] sm:$0xf0]  ;;  %v6824_v25 = vor.u32 %v9547_v14, %v6823_v12 }
 0x125   :  { %2396 = vmatpush.bf16.msrb.mxu3 %v7452_v27  ;;  %v7519_v27 = vld [vmem:[#allocation8 + $0x710] sm:$0xf]  ;;  %v7424_v16 = vor.u32 %v9698_v7, %v7423_v6  ;;  %v9718_v6 = vld [vmem:[#allocation8 + $0x714] sm:$0xf] }
 0x126   :  { %2422 = vmatpush.bf16.msra.mxu1 %v6944_v28  ;;  %2411 = vmatpush.bf16.msra.mxu0 %v6624_v31  ;;  %v6724_v28 = vor.u32 %v9518_v19, %v6721_v20  ;;  %v9510_v31 = vld [vmem:[#allocation8 + $0x94] sm:$0xf]  ;;  %v7520_v35 = vor.u32 %v9722_v29, %v7519_v27  ;;  %v7391_v19 = vld [vmem:[#allocation8 + $0x610] sm:$0xf]  ;;  %v9619_v29 = vld [vmem:[#allocation8 + $0x3f4] sm:$0xf0] }
 0x127   :  { %2385 = vmatpush.bf16.msrb.mxu2 %v7132_v36  ;;  %v7012_v36 = vor.u32 %v9590_v45, %v7009_v30  ;;  %v6692_v50 = vor.u32 %v9510_v31, %v6689_v32  ;;  %v7617_v27 = vld [vmem:[#allocation8 + $0x7f0] sm:$0xf0]  ;;  %v6791_v45 = vld [vmem:[#allocation8 + $0x158] sm:$0xf]  ;;  %v7332_v31 = vor.u32 %v9670_v17, %v7329_v18 }
 0x128   :  { %v9539_v30 = vld [vmem:[#allocation8 + $0x174] sm:$0xf0]  ;;  %v7521_v7 = vld [vmem:[#allocation8 + $0x730] sm:$0xf0] }
 0x129   :  { %2397 = vmatpush.bf16.msrb.mxu3 %v7420_v41  ;;  %2412 = vmatmul.bf16.vlgmr.msra.gmra.mxu0 %v10534_v13  ;;  %v9582_v41 = vld [vmem:[#allocation8 + $0x2d4] sm:$0xf] }
 0x12a   :  { %2456 = vmatpush.bf16.msrb.mxu0 %v6852_v37  ;;  %2423 = vmatpush.bf16.msra.mxu1 %v6912_v42  ;;  %v7199_v37 = vld [vmem:[#allocation8 + $0x490] sm:$0xf]  ;;  %v6977_v42 = vld [vmem:[#allocation8 + $0x2f0] sm:$0xf0] }
 0x12b   :  { %2430 = vmatpush.bf16.msra.mxu2 %v7360_v38  ;;  %v9642_v38 = vld [vmem:[#allocation8 + $0x4ac] sm:$0xf0]  ;;  %v6980_v47 = vor.u32 %v9582_v41, %v6977_v42  ;;  %v7585_v41 = vld [vmem:[#allocation8 + $0x7b0] sm:$0xf0]  ;;  %v7079_v42 = vld [vmem:[#allocation8 + $0x398] sm:$0xf] }
 0x12c   :  { %2386 = vmatmul.bf16.vlgmr.msrb.gmra.mxu2 %v10544_v22  ;;  %v7200_v44 = vor.u32 %v9642_v38, %v7199_v37  ;;  %v7297_v37 = vld [vmem:[#allocation8 + $0x570] sm:$0xf0]  ;;  %v7080_v55 = vor.u32 %v9611_v54, %v7079_v42  ;;  %v9551_v42 = vld [vmem:[#allocation8 + $0x1dc] sm:$0xf] }
 0x12d   :  { %2398 = vmatpush.bf16.msrb.mxu3 %v7388_v59  ;;  %v6625_v59 = vld [vmem:[#allocation8 + $0x30] sm:$0xf0]  ;;  %v6857_v54 = vld [vmem:[#allocation8 + $0x1f8] sm:$0xf0] }
 0x12e   :  { %2457 = vmatpush.bf16.msrb.mxu0 %v6820_v49  ;;  %2424 = vmatpush.bf16.msra.mxu1 %v6880_v60  ;;  %v9634_v49 = vld [vmem:[#allocation8 + $0x46c] sm:$0xf0]  ;;  %v6628_v4 = vor.u32 %v9494_v58, %v6625_v59  ;;  %v9734_v38 = vld [vmem:[#allocation8 + $0x794] sm:$0xf]  ;;  %v7047_v59 = vld [vmem:[#allocation8 + $0x358] sm:$0xf] }
 0x12f   :  { %2431 = vmatpush.bf16.msra.mxu2 %v7328_v56  ;;  %v9574_v56 = vld [vmem:[#allocation8 + $0x294] sm:$0xf]  ;;  %v7168_v60 = vor.u32 %v9634_v49, %v7167_v48  ;;  %v7588_v48 = vor.u32 %v9734_v38, %v7585_v41  ;;  %v9579_v38 = vld [vmem:[#allocation8 + $0x2b4] sm:$0xf0] }
 0x130   :  { %2399 = vmatmul.bf16.vlgmr.msrb.gmra.mxu3 %v10548_v51  ;;  %v6948_v0 = vor.u32 %v9574_v56, %v6945_v57  ;;  %v9654_v49 = vld [vmem:[#allocation8 + $0x514] sm:$0xf] }
 0x131   :  { %2443 = vmatpush.bf16.msra.mxu3 %v7616_v61  ;;  %2425 = vmatmul.bf16.vlgmr.msra.gmra.mxu1 %v10537_v34  ;;  %v6855_v61 = vld [vmem:[#allocation8 + $0x1d8] sm:$0xf]  ;;  %v9726_v57 = vld [vmem:[#allocation8 + $0x754] sm:$0xf] }
 0x132   :  { %2469 = vmatpush.bf16.msrb.mxu1 %v7108_v62  ;;  %2458 = vmatpush.bf16.msrb.mxu0 %v6788_v2  ;;  %v9555_v62 = vld [vmem:[#allocation8 + $0x1f4] sm:$0xf0]  ;;  %v9626_v2 = vld [vmem:[#allocation8 + $0x42c] sm:$0xf0]  ;;  %v7553_v58 = vld [vmem:[#allocation8 + $0x770] sm:$0xf0] }
 0x133   :  { %2432 = vmatpush.bf16.msra.mxu2 %v7296_v8  ;;  %v6856_v8 = vor.u32 %v9555_v62, %v6855_v61  ;;  %v7136_v11 = vor.u32 %v9626_v2, %v7135_v1  ;;  %v6727_v61 = vld [vmem:[#allocation8 + $0xd8] sm:$0xf]  ;;  %v9646_v1 = vld [vmem:[#allocation8 + $0x4d4] sm:$0xf] }
 0x134   :  { %v9523_v62 = vld [vmem:[#allocation8 + $0xf4] sm:$0xf0]  ;;  %v7233_v2 = vld [vmem:[#allocation8 + $0x4f0] sm:$0xf0] }
 0x135   :  { %2444 = vmatpush.bf16.msra.mxu3 %v7584_v9  ;;  %v9566_v9 = vld [vmem:[#allocation8 + $0x254] sm:$0xf]  ;;  %v7236_v12 = vor.u32 %v9646_v1, %v7233_v2  ;;  %v7335_v2 = vld [vmem:[#allocation8 + $0x598] sm:$0xf] }
 0x136   :  { %2470 = vmatpush.bf16.msrb.mxu1 %v7076_v10  ;;  %2459 = vmatpush.bf16.msrb.mxu0 %v6756_v15  ;;  %v6913_v10 = vld [vmem:[#allocation8 + $0x270] sm:$0xf0]  ;;  %v7364_v15 = vor.u32 %v9678_v3, %v7361_v5  ;;  %v6728_v5 = vor.u32 %v9523_v62, %v6727_v61  ;;  %v9543_v62 = vld [vmem:[#allocation8 + $0x19c] sm:$0xf] }
 0x137   :  { %2433 = vmatpush.bf16.msra.mxu2 %v7264_v21  ;;  %v6916_v20 = vor.u32 %v9566_v9, %v6913_v10  ;;  %v9690_v21 = vld [vmem:[#allocation8 + $0x62c] sm:$0xf0]  ;;  %v9595_v9 = vld [vmem:[#allocation8 + $0x334] sm:$0xf0]  ;;  %v7201_v17 = vld [vmem:[#allocation8 + $0x4b0] sm:$0xf0] }
 0x138   :  { %v7392_v32 = vor.u32 %v9690_v21, %v7391_v19  ;;  %v6695_v10 = vld [vmem:[#allocation8 + $0x98] sm:$0xf] }
 0x139   :  { %2445 = vmatpush.bf16.msra.mxu3 %v7552_v23  ;;  %v9558_v23 = vld [vmem:[#allocation8 + $0x214] sm:$0xf] }
 0x13a   :  { %2471 = vmatpush.bf16.msrb.mxu1 %v7044_v24  ;;  %2460 = vmatpush.bf16.msrb.mxu0 %v6724_v28  ;;  %v6881_v24 = vld [vmem:[#allocation8 + $0x230] sm:$0xf0]  ;;  %v7111_v28 = vld [vmem:[#allocation8 + $0x3d8] sm:$0xf] }
 0x13b   :  { %2434 = vmatpush.bf16.msra.mxu2 %v7232_v33  ;;  %v6884_v33 = vor.u32 %v9558_v23, %v6881_v24  ;;  %v7112_v39 = vor.u32 %v9619_v29, %v7111_v28  ;;  %v9710_v23 = vld [vmem:[#allocation8 + $0x6d4] sm:$0xf]  ;;  %v9507_v28 = vld [vmem:[#allocation8 + $0x74] sm:$0xf0] }
 0x13c   :  { %v7489_v24 = vld [vmem:[#allocation8 + $0x6f0] sm:$0xf0] }
 0x13d   :  { %2446 = vmatpush.bf16.msra.mxu3 %v7520_v35  ;;  %v7620_v35 = vor.u32 %v9742_v26, %v7617_v27  ;;  %v9587_v26 = vld [vmem:[#allocation8 + $0x2f4] sm:$0xf0] }
 0x13e   :  { %2472 = vmatpush.bf16.msrb.mxu1 %v7012_v36  ;;  %2461 = vmatpush.bf16.msrb.mxu0 %v6692_v50  ;;  %v9662_v36 = vld [vmem:[#allocation8 + $0x554] sm:$0xf]  ;;  %v6792_v50 = vor.u32 %v9539_v30, %v6791_v45  ;;  %v6663_v27 = vld [vmem:[#allocation8 + $0x58] sm:$0xf]  ;;  %v7492_v45 = vor.u32 %v9710_v23, %v7489_v24 }
 0x13f   :  { %2435 = vmatpush.bf16.msra.mxu2 %v7200_v44  ;;  %v9531_v44 = vld [vmem:[#allocation8 + $0x134] sm:$0xf0]  ;;  %v9630_v30 = vld [vmem:[#allocation8 + $0x454] sm:$0xf] }
 0x140   :  { %v6760_v56 = vor.u32 %v9531_v44, %v6759_v43 }
 0x141   :  { %2447 = vmatpush.bf16.msra.mxu3 %v7488_v46  ;;  %v7300_v46 = vor.u32 %v9662_v36, %v7297_v37  ;;  %v7457_v36 = vld [vmem:[#allocation8 + $0x6b0] sm:$0xf0]  ;;  %v6951_v37 = vld [vmem:[#allocation8 + $0x298] sm:$0xf] }
 0x142   :  { %2473 = vmatpush.bf16.msrb.mxu1 %v6980_v47  ;;  %2462 = vmatpush.bf16.msrb.mxu0 %v6660_v53  ;;  %v900_v47 = vperm.slane %v10564_v40, 0 }
 0x143   :  { %2436 = vmatpush.bf16.msra.mxu2 %v7168_v60  ;;  %v9603_v60 = vld [vmem:[#allocation8 + $0x374] sm:$0xf0] }
 0x145   :  { %2448 = vmatpush.bf16.msra.mxu3 %v7456_v63  ;;  %v2205_v53 = vpop.f32.mrf.mxu0  ;;  %v7268_v63 = vor.u32 %v9654_v49, %v7265_v52  ;;  %v6952_v52 = vor.u32 %v9579_v38, %v6951_v37  ;;  %v7271_v37 = vld [vmem:[#allocation8 + $0x518] sm:$0xf] }
 0x146   :  { %2474 = vmatpush.bf16.msrb.mxu1 %v6948_v0  ;;  %2463 = vmatpush.bf16.msrb.mxu0 %v6628_v4  ;;  %v7556_v0 = vor.u32 %v9726_v57, %v7553_v58  ;;  %v2206_v3 = vadd.f32 %v2205_v53, %v900_v47  ;;  %v7048_v4 = vor.u32 %v9603_v60, %v7047_v59  ;;  %v7137_v47 = vld [vmem:[#allocation8 + $0x430] sm:$0xf0]  ;;  %v6919_v59 = vld [vmem:[#allocation8 + $0x258] sm:$0xf] }
 0x147   :  { %2437 = vmatpush.bf16.msra.mxu2 %v7136_v11  ;;  %v9515_v11 = vld [vmem:[#allocation8 + $0xb4] sm:$0xf0]  ;;  %v7425_v57 = vld [vmem:[#allocation8 + $0x670] sm:$0xf0]  ;;  %v6860_v58 = vor.u32 %v9551_v42, %v6857_v54  ;;  %v9599_v54 = vld [vmem:[#allocation8 + $0x35c] sm:$0xf] }
 0x148   :  { %v6696_v21 = vor.u32 %v9515_v11, %v6695_v10  ;;  %v9571_v60 = vld [vmem:[#allocation8 + $0x274] sm:$0xf0] }
 0x149   :  { %2449 = vmatpush.bf16.msra.mxu3 %v7424_v16  ;;  %2464 = vmatmul.bf16.vlgmr.msrb.gmra.mxu0 %v10534_v13  ;;  %v9638_v16 = vld [vmem:[#allocation8 + $0x494] sm:$0xf]  ;;  %v7623_v10 = vld [vmem:[#allocation8 + $0x7d8] sm:$0xf] }
 0x14a   :  { %2508 = vmatpush.bf16.msra.mxu0 %v6856_v8  ;;  %2475 = vmatpush.bf16.msrb.mxu1 %v6916_v20  ;;  %v7015_v8 = vld [vmem:[#allocation8 + $0x318] sm:$0xf]  ;;  %v7204_v29 = vor.u32 %v9638_v16, %v7201_v17  ;;  %v6793_v16 = vld [vmem:[#allocation8 + $0x178] sm:$0xf0] }
 0x14b   :  { %2482 = vmatpush.bf16.msrb.mxu2 %v7364_v15  ;;  %v7524_v15 = vor.u32 %v9718_v6, %v7521_v7  ;;  %v7016_v20 = vor.u32 %v9595_v9, %v7015_v8  ;;  %v7393_v6 = vld [vmem:[#allocation8 + $0x630] sm:$0xf0]  ;;  %v6887_v7 = vld [vmem:[#allocation8 + $0x218] sm:$0xf] }
 0x14c   :  { %2438 = vmatmul.bf16.vlgmr.msra.gmra.mxu2 %v10544_v22  ;;  %v9563_v8 = vld [vmem:[#allocation8 + $0x234] sm:$0xf0] }
 0x14d   :  { %2450 = vmatpush.bf16.msra.mxu3 %v7392_v32  ;;  %v2218_v14 = vpop.f32.mrf.mxu1  ;;  %v2207_v19 = vpop.f32.mrf.mxu0  ;;  %v9747_v11 = vld [vmem:[#allocation8 + $0x7f4] sm:$0xf0]  ;;  %v6888_v23 = vor.u32 %v9563_v8, %v6887_v7 }
 0x14e   :  { %2509 = vmatpush.bf16.msra.mxu0 %v6824_v25  ;;  %2476 = vmatpush.bf16.msrb.mxu1 %v6884_v33  ;;  %v10569_v18 = vadd.f32 %v2218_v14, %v2206_v3  ;;  %v6983_v25 = vld [vmem:[#allocation8 + $0x2d8] sm:$0xf]  ;;  %v6664_v33 = vor.u32 %v9507_v28, %v6663_v27  ;;  %v7113_v14 = vld [vmem:[#allocation8 + $0x3f8] sm:$0xf0]  ;;  %v7624_v24 = vor.u32 %v9747_v11, %v7623_v10 }
 0x14f   :  { %2483 = vmatpush.bf16.msrb.mxu2 %v7332_v31  ;;  %v7169_v31 = vld [vmem:[#allocation8 + $0x470] sm:$0xf0]  ;;  %v6984_v32 = vor.u32 %v9587_v26, %v6983_v25  ;;  %v9675_v3 = vld [vmem:[#allocation8 + $0x5b4] sm:$0xf0]  ;;  %v9583_v10 = vld [vmem:[#allocation8 + $0x2dc] sm:$0xf] }
 0x150   :  { %2451 = vmatmul.bf16.vlgmr.msra.gmra.mxu3 %v10548_v51  ;;  %v7172_v41 = vor.u32 %v9630_v30, %v7169_v31  ;;  %v7336_v19 = vor.u32 %v9675_v3, %v7335_v2  ;;  %v7303_v25 = vld [vmem:[#allocation8 + $0x558] sm:$0xf]  ;;  %v9607_v30 = vld [vmem:[#allocation8 + $0x39c] sm:$0xf] }
 0x151   :  { %2495 = vmatpush.bf16.msrb.mxu3 %v7620_v35  ;;  %2477 = vmatmul.bf16.vlgmr.msrb.gmra.mxu1 %v10537_v34  ;;  %v9702_v35 = vld [vmem:[#allocation8 + $0x694] sm:$0xf]  ;;  %v9667_v26 = vld [vmem:[#allocation8 + $0x574] sm:$0xf0]  ;;  %v7081_v31 = vld [vmem:[#allocation8 + $0x3b8] sm:$0xf0] }
 0x152   :  { %2521 = vmatpush.bf16.msra.mxu1 %v7112_v39  ;;  %2510 = vmatpush.bf16.msra.mxu0 %v6792_v50  ;;  %v6631_v39 = vld [vmem:[#allocation8 + $0x18] sm:$0xf]  ;;  %v7460_v44 = vor.u32 %v9702_v35, %v7457_v36  ;;  %v7304_v35 = vor.u32 %v9667_v26, %v7303_v25  ;;  %v6985_v11 = vld [vmem:[#allocation8 + $0x2f8] sm:$0xf0] }
 0x153   :  { %2484 = vmatpush.bf16.msrb.mxu2 %v7300_v46  ;;  %v9499_v50 = vld [vmem:[#allocation8 + $0x34] sm:$0xf0]  ;;  %v9622_v46 = vld [vmem:[#allocation8 + $0x414] sm:$0xf] }
 0x154   :  { %v6632_v53 = vor.u32 %v9499_v50, %v6631_v39  ;;  %v7140_v61 = vor.u32 %v9622_v46, %v7137_v47  ;;  %v9659_v38 = vld [vmem:[#allocation8 + $0x534] sm:$0xf0]  ;;  %v7084_v39 = vor.u32 %v9607_v30, %v7081_v31  ;;  %v6729_v46 = vld [vmem:[#allocation8 + $0xf8] sm:$0xf0] }
 0x155   :  { %2496 = vmatpush.bf16.msrb.mxu3 %v7588_v48  ;;  %v2220_v43 = vpop.f32.mrf.mxu1  ;;  %v7367_v48 = vld [vmem:[#allocation8 + $0x5d8] sm:$0xf]  ;;  %v10571_v49 = vpop.f32.mrf.mxu0  ;;  %v9495_v30 = vld [vmem:[#allocation8 + $0x1c] sm:$0xf] }
 0x156   :  { %2522 = vmatpush.bf16.msra.mxu1 %v7080_v55  ;;  %2511 = vmatpush.bf16.msra.mxu0 %v6760_v56  ;;  %v9683_v55 = vld [vmem:[#allocation8 + $0x5f4] sm:$0xf0]  ;;  %v9694_v56 = vld [vmem:[#allocation8 + $0x654] sm:$0xf]  ;;  %v7049_v43 = vld [vmem:[#allocation8 + $0x378] sm:$0xf0] }
 0x157   :  { %2485 = vmatpush.bf16.msrb.mxu2 %v7268_v63  ;;  %v6825_v63 = vld [vmem:[#allocation8 + $0x1b8] sm:$0xf0]  ;;  %v7428_v1 = vor.u32 %v9694_v56, %v7425_v57  ;;  %v9731_v42 = vld [vmem:[#allocation8 + $0x774] sm:$0xf0]  ;;  %v7052_v57 = vor.u32 %v9599_v54, %v7049_v43 }
 0x158   :  { %v6828_v9 = vor.u32 %v9543_v62, %v6825_v63  ;;  %v9651_v56 = vld [vmem:[#allocation8 + $0x4f4] sm:$0xf0]  ;;  %v7017_v62 = vld [vmem:[#allocation8 + $0x338] sm:$0xf0] }
 0x159   :  { %2497 = vmatpush.bf16.msrb.mxu3 %v7556_v0  ;;  %v7368_v0 = vor.u32 %v9683_v55, %v7367_v48  ;;  %v7272_v48 = vor.u32 %v9659_v38, %v7271_v37  ;;  %v7239_v55 = vld [vmem:[#allocation8 + $0x4d8] sm:$0xf]  ;;  %v9511_v63 = vld [vmem:[#allocation8 + $0x9c] sm:$0xf] }
 0x15a   :  { %2523 = vmatpush.bf16.msra.mxu1 %v7048_v4  ;;  %2512 = vmatpush.bf16.msra.mxu0 %v6728_v5  ;;  %v9686_v4 = vld [vmem:[#allocation8 + $0x614] sm:$0xf]  ;;  %v6920_v5 = vor.u32 %v9571_v60, %v6919_v59  ;;  %v7527_v59 = vld [vmem:[#allocation8 + $0x718] sm:$0xf]  ;;  %v7240_v2 = vor.u32 %v9651_v56, %v7239_v55  ;;  %v6633_v31 = vld [vmem:[#allocation8 + $0x38] sm:$0xf0] }
 0x15b   :  { %2486 = vmatpush.bf16.msrb.mxu2 %v7236_v12  ;;  %v9615_v12 = vld [vmem:[#allocation8 + $0x3dc] sm:$0xf]  ;;  %v9723_v60 = vld [vmem:[#allocation8 + $0x734] sm:$0xf0] }
 0x15c   :  { %v7116_v27 = vor.u32 %v9615_v12, %v7113_v14  ;;  %v7528_v3 = vor.u32 %v9723_v60, %v7527_v59  ;;  %v7495_v8 = vld [vmem:[#allocation8 + $0x6d8] sm:$0xf]  ;;  %v9503_v12 = vld [vmem:[#allocation8 + $0x5c] sm:$0xf] }
 0x15d   :  { %2498 = vmatpush.bf16.msrb.mxu3 %v7524_v15  ;;  %v9535_v15 = vld [vmem:[#allocation8 + $0x15c] sm:$0xf]  ;;  %v10573_v17 = vpop.f32.mrf.mxu1  ;;  %v7463_v26 = vld [vmem:[#allocation8 + $0x698] sm:$0xf] }
 0x15e   :  { %2524 = vmatpush.bf16.msra.mxu1 %v7016_v20  ;;  %2513 = vmatpush.bf16.msra.mxu0 %v6696_v21  ;;  %v7396_v20 = vor.u32 %v9686_v4, %v7393_v6  ;;  %v2259_v21 = vpop.f32.mrf.mxu0  ;;  %v6796_v28 = vor.u32 %v9535_v15, %v6793_v16  ;;  %v7207_v4 = vld [vmem:[#allocation8 + $0x498] sm:$0xf]  ;;  %v6665_v14 = vld [vmem:[#allocation8 + $0x78] sm:$0xf0] }
 0x15f   :  { %2487 = vmatpush.bf16.msrb.mxu2 %v7204_v29  ;;  %v7591_v29 = vld [vmem:[#allocation8 + $0x798] sm:$0xf]  ;;  %v6668_v25 = vor.u32 %v9503_v12, %v6665_v14  ;;  %v7369_v54 = vld [vmem:[#allocation8 + $0x5f8] sm:$0xf0] }
 0x160   :  { %v7175_v21 = vld [vmem:[#allocation8 + $0x458] sm:$0xf]  ;;  %v9671_v60 = vld [vmem:[#allocation8 + $0x59c] sm:$0xf] }
 0x161   :  { %2499 = vmatpush.bf16.msrb.mxu3 %v7492_v45  ;;  %v9739_v45 = vld [vmem:[#allocation8 + $0x7b4] sm:$0xf0] }
 0x162   :  { %2525 = vmatpush.bf16.msra.mxu1 %v6984_v32  ;;  %2514 = vmatpush.bf16.msra.mxu0 %v6664_v33  ;;  %v9527_v32 = vld [vmem:[#allocation8 + $0x11c] sm:$0xf]  ;;  %v7592_v36 = vor.u32 %v9739_v45, %v7591_v29  ;;  %v7143_v38 = vld [vmem:[#allocation8 + $0x418] sm:$0xf] }
 0x163   :  { %2488 = vmatpush.bf16.msrb.mxu2 %v7172_v41  ;;  %v6761_v33 = vld [vmem:[#allocation8 + $0x138] sm:$0xf0]  ;;  %v7559_v41 = vld [vmem:[#allocation8 + $0x758] sm:$0xf] }
 0x164   :  { %v6764_v50 = vor.u32 %v9527_v32, %v6761_v33  ;;  %v6953_v45 = vld [vmem:[#allocation8 + $0x2b8] sm:$0xf0]  ;;  %v7431_v43 = vld [vmem:[#allocation8 + $0x658] sm:$0xf] }
 0x165   :  { %2500 = vmatpush.bf16.msrb.mxu3 %v7460_v44  ;;  %v9519_v44 = vld [vmem:[#allocation8 + $0xdc] sm:$0xf]  ;;  %v2272_v47 = vpop.f32.mrf.mxu1  ;;  %v7799_v56 = vld [vmem:[#allocation11 + $0x150] sm:$0xf] }
 0x166   :  { %2526 = vmatpush.bf16.msra.mxu1 %v6952_v52  ;;  %2515 = vmatpush.bf16.msra.mxu0 %v6632_v53  ;;  %v10579_v52 = vpop.f32.mrf.mxu0  ;;  %v7560_v53 = vor.u32 %v9731_v42, %v7559_v41  ;;  %v6636_v42 = vor.u32 %v9495_v30, %v6633_v31  ;;  %v9567_v47 = vld [vmem:[#allocation8 + $0x25c] sm:$0xf]  ;;  %v7743_v30 = vld [vmem:[#allocation11 + $0xe0] sm:$0xf]  ;;  %v9779_v31 = vld [vmem:[#allocation11 + $0xf8] sm:$0xf0] }
 0x167   :  { %2489 = vmatpush.bf16.msrb.mxu2 %v7140_v61  ;;  %v9591_v61 = vld [vmem:[#allocation8 + $0x31c] sm:$0xf] }
 0x168   :  { %v7020_v6 = vor.u32 %v9591_v61, %v7017_v62  ;;  %v7337_v61 = vld [vmem:[#allocation8 + $0x5b8] sm:$0xf0]  ;;  %v7399_v62 = vld [vmem:[#allocation8 + $0x618] sm:$0xf] }
 0x169   :  { %2501 = vmatpush.bf16.msrb.mxu3 %v7428_v1  ;;  %2516 = vmatmul.bf16.vlgmr.msra.gmra.mxu0 %v10534_v13  ;;  %v7340_v14 = vor.u32 %v9671_v60, %v7337_v61  ;;  %v7967_v60 = vld [vmem:[#allocation11 + $0x2a0] sm:$0xf]  ;;  %v9835_v61 = vld [vmem:[#allocation11 + $0x2b8] sm:$0xf0] }
 0x16a   :  { %2560 = vmatpush.bf16.msrb.mxu0 %v6860_v58  ;;  %2527 = vmatpush.bf16.msra.mxu1 %v6920_v5  ;;  %v6732_v58 = vor.u32 %v9519_v44, %v6729_v46  ;;  %v9643_v5 = vld [vmem:[#allocation8 + $0x4b4] sm:$0xf0] }
 0x16b   :  { %2534 = vmatpush.bf16.msra.mxu2 %v7368_v0  ;;  %v6697_v0 = vld [vmem:[#allocation8 + $0xb8] sm:$0xf0]  ;;  %v10581_v1 = vpop.f32.mrf.mxu2  ;;  %v7208_v16 = vor.u32 %v9643_v5, %v7207_v4  ;;  %v9699_v44 = vld [vmem:[#allocation8 + $0x674] sm:$0xf0] }
 0x16c   :  { %2490 = vmatmul.bf16.vlgmr.msrb.gmra.mxu2 %v10544_v22  ;;  %v6700_v7 = vor.u32 %v9511_v63, %v6697_v0  ;;  %v7432_v59 = vor.u32 %v9699_v44, %v7431_v43  ;;  %v9691_v0 = vld [vmem:[#allocation8 + $0x634] sm:$0xf0]  ;;  %v9772_v43 = vld [vmem:[#allocation11 + $0xc0] sm:$0xf0] }
 0x16d   :  { %2502 = vmatpush.bf16.msrb.mxu3 %v7396_v20 }
 0x16e   :  { %2561 = vmatpush.bf16.msrb.mxu0 %v6828_v9  ;;  %2528 = vmatpush.bf16.msra.mxu1 %v6888_v23  ;;  %v9715_v9 = vld [vmem:[#allocation8 + $0x6f4] sm:$0xf0] }
 0x16f   :  { %2535 = vmatpush.bf16.msra.mxu2 %v7336_v19  ;;  %v2311_v19 = vpop.f32.mrf.mxu0  ;;  %v7496_v20 = vor.u32 %v9715_v9, %v7495_v8  ;;  %v9635_v23 = vld [vmem:[#allocation8 + $0x474] sm:$0xf0]  ;;  %v8051_v8 = vld [vmem:[#allocation11 + $0x348] sm:$0xf]  ;;  %v9856_v9 = vld [vmem:[#allocation11 + $0x360] sm:$0xf0] }
 0x170   :  { %2503 = vmatmul.bf16.vlgmr.msrb.gmra.mxu3 %v10548_v51  ;;  %v10583_v15 = vpop.f32.mrf.mxu1  ;;  %v7176_v33 = vor.u32 %v9635_v23, %v7175_v21  ;;  %v9663_v21 = vld [vmem:[#allocation8 + $0x55c] sm:$0xf] }
 0x171   :  { %2547 = vmatpush.bf16.msra.mxu3 %v7624_v24  ;;  %2529 = vmatmul.bf16.vlgmr.msra.gmra.mxu1 %v10537_v34  ;;  %v6988_v24 = vor.u32 %v9583_v10, %v6985_v11  ;;  %v7771_v10 = vld [vmem:[#allocation11 + $0x118] sm:$0xf]  ;;  %v9786_v11 = vld [vmem:[#allocation11 + $0x130] sm:$0xf0] }
 0x172   :  { %2573 = vmatpush.bf16.msrb.mxu1 %v7116_v27  ;;  %2562 = vmatpush.bf16.msrb.mxu0 %v6796_v28  ;;  %v9707_v27 = vld [vmem:[#allocation8 + $0x6b4] sm:$0xf0]  ;;  %v9575_v28 = vld [vmem:[#allocation8 + $0x29c] sm:$0xf] }
 0x173   :  { %2536 = vmatpush.bf16.msra.mxu2 %v7304_v35  ;;  %v10585_v29 = vpop.f32.mrf.mxu3  ;;  %v2233_v32 = vpop.f32.mrf.mxu2  ;;  %v7827_v35 = vld [vmem:[#allocation11 + $0x188] sm:$0xf]  ;;  %v7464_v37 = vor.u32 %v9707_v27, %v7463_v26  ;;  %v6956_v41 = vor.u32 %v9575_v28, %v6953_v45  ;;  %v7305_v23 = vld [vmem:[#allocation8 + $0x578] sm:$0xf0]  ;;  %v8023_v28 = vld [vmem:[#allocation11 + $0x310] sm:$0xf] }
 0x174   :  { %v9735_v26 = vld [vmem:[#allocation8 + $0x79c] sm:$0xf]  ;;  %v9849_v45 = vld [vmem:[#allocation11 + $0x328] sm:$0xf0]  ;;  %v7308_v32 = vor.u32 %v9663_v21, %v7305_v23  ;;  %v901_v21 = vperm.slane %v10564_v40, 1 }
 0x175   :  { %2548 = vmatpush.bf16.msra.mxu3 %v7592_v36  ;;  %v9800_v36 = vld [vmem:[#allocation11 + $0x1a0] sm:$0xf0]  ;;  %v7593_v27 = vld [vmem:[#allocation8 + $0x7b8] sm:$0xf0] }
 0x176   :  { %2574 = vmatpush.bf16.msrb.mxu1 %v7084_v39  ;;  %2563 = vmatpush.bf16.msrb.mxu0 %v6764_v50  ;;  %v9627_v39 = vld [vmem:[#allocation8 + $0x434] sm:$0xf0]  ;;  %v9679_v50 = vld [vmem:[#allocation8 + $0x5dc] sm:$0xf]  ;;  %v7828_v46 = vor.u32 %v9800_v36, %v7827_v35 }
 0x177   :  { %2537 = vmatpush.bf16.msra.mxu2 %v7272_v48  ;;  %v6921_v48 = vld [vmem:[#allocation8 + $0x278] sm:$0xf0]  ;;  %v7144_v55 = vor.u32 %v9627_v39, %v7143_v38  ;;  %v7744_v38 = vor.u32 %v9779_v31, %v7743_v30 }
 0x178   :  { %v6924_v63 = vor.u32 %v9567_v47, %v6921_v48  ;;  %v7273_v35 = vld [vmem:[#allocation8 + $0x538] sm:$0xf0] }
 0x179   :  { %2549 = vmatpush.bf16.msra.mxu3 %v7560_v53  ;;  %v2324_v53 = vpop.f32.mrf.mxu1  ;;  %v9727_v39 = vld [vmem:[#allocation8 + $0x75c] sm:$0xf] }
 0x17a   :  { %2575 = vmatpush.bf16.msrb.mxu1 %v7052_v57  ;;  %2564 = vmatpush.bf16.msrb.mxu0 %v6732_v58  ;;  %v9793_v57 = vld [vmem:[#allocation11 + $0x168] sm:$0xf0]  ;;  %v7372_v58 = vor.u32 %v9679_v50, %v7369_v54  ;;  %v7561_v50 = vld [vmem:[#allocation8 + $0x778] sm:$0xf0]  ;;  %v7715_v54 = vld [vmem:[#allocation11 + $0xa8] sm:$0xf] }
 0x17b   :  { %2538 = vmatpush.bf16.msra.mxu2 %v7240_v2  ;;  %v9559_v2 = vld [vmem:[#allocation8 + $0x21c] sm:$0xf]  ;;  %v2246_v4 = vpop.f32.mrf.mxu3  ;;  %v7800_v5 = vor.u32 %v9793_v57, %v7799_v56  ;;  %v10587_v12 = vpop.f32.mrf.mxu2  ;;  %v7564_v47 = vor.u32 %v9727_v39, %v7561_v50  ;;  %v7716_v57 = vor.u32 %v9772_v43, %v7715_v54  ;;  %v8723_v39 = vld [vmem:[#allocation11 + $0x888] sm:$0xf]  ;;  %v10024_v50 = vld [vmem:[#allocation11 + $0x8a0] sm:$0xf0] }
 0x17c   :  { %v9647_v48 = vld [vmem:[#allocation8 + $0x4dc] sm:$0xf]  ;;  %v8275_v54 = vld [vmem:[#allocation11 + $0x508] sm:$0xf] }
 0x17d   :  { %2550 = vmatpush.bf16.msra.mxu3 %v7528_v3  ;;  %v6889_v3 = vld [vmem:[#allocation8 + $0x238] sm:$0xf0] }
 0x17e   :  { %2576 = vmatpush.bf16.msrb.mxu1 %v7020_v6  ;;  %2565 = vmatpush.bf16.msrb.mxu0 %v6700_v7  ;;  %v9743_v6 = vld [vmem:[#allocation8 + $0x7dc] sm:$0xf]  ;;  %v6892_v19 = vor.u32 %v9559_v2, %v6889_v3 }
 0x17f   :  { %2539 = vmatpush.bf16.msra.mxu2 %v7208_v16  ;;  %v7625_v7 = vld [vmem:[#allocation8 + $0x7f8] sm:$0xf0]  ;;  %v7400_v16 = vor.u32 %v9691_v0, %v7399_v62  ;;  %v7687_v62 = vld [vmem:[#allocation11 + $0x70] sm:$0xf] }
 0x180   :  { %v7241_v53 = vld [vmem:[#allocation8 + $0x4f8] sm:$0xf0] }
 0x181   :  { %2551 = vmatpush.bf16.msra.mxu3 %v7496_v20  ;;  %v7628_v20 = vor.u32 %v9743_v6, %v7625_v7  ;;  %v9639_v2 = vld [vmem:[#allocation8 + $0x49c] sm:$0xf] }
 0x182   :  { %2577 = vmatpush.bf16.msrb.mxu1 %v6988_v24  ;;  %2566 = vmatpush.bf16.msrb.mxu0 %v6668_v25  ;;  %v8052_v24 = vor.u32 %v9856_v9, %v8051_v8  ;;  %v7772_v25 = vor.u32 %v9786_v11, %v7771_v10  ;;  %v7209_v3 = vld [vmem:[#allocation8 + $0x4b8] sm:$0xf0]  ;;  %v7939_v9 = vld [vmem:[#allocation11 + $0x268] sm:$0xf]  ;;  %v9828_v10 = vld [vmem:[#allocation11 + $0x280] sm:$0xf0] }
 0x183   :  { %2540 = vmatpush.bf16.msra.mxu2 %v7176_v33  ;;  %v9655_v33 = vld [vmem:[#allocation8 + $0x51c] sm:$0xf]  ;;  %v10591_v36 = vpop.f32.mrf.mxu3  ;;  %v2285_v44 = vpop.f32.mrf.mxu2  ;;  %v7659_v11 = vld [vmem:[#allocation11 + $0x38] sm:$0xf] }
 0x184   :  { %v9711_v7 = vld [vmem:[#allocation8 + $0x6dc] sm:$0xf] }
 0x185   :  { %2552 = vmatpush.bf16.msra.mxu3 %v7464_v37  ;;  %v8024_v37 = vor.u32 %v9849_v45, %v8023_v28  ;;  %v7497_v8 = vld [vmem:[#allocation8 + $0x6f8] sm:$0xf0]  ;;  %v7940_v28 = vor.u32 %v9828_v10, %v7939_v9 }
 0x186   :  { %2578 = vmatpush.bf16.msrb.mxu1 %v6956_v41  ;;  %2567 = vmatpush.bf16.msrb.mxu0 %v6636_v42  ;;  %v7995_v41 = vld [vmem:[#allocation11 + $0x2d8] sm:$0xf]  ;;  %v9842_v42 = vld [vmem:[#allocation11 + $0x2f0] sm:$0xf0]  ;;  %v7500_v23 = vor.u32 %v9711_v7, %v7497_v8  ;;  %v7855_v7 = vld [vmem:[#allocation11 + $0x1c0] sm:$0xf] }
 0x187   :  { %2541 = vmatpush.bf16.msra.mxu2 %v7144_v55  ;;  %v7996_v56 = vor.u32 %v9842_v42, %v7995_v41  ;;  %v9703_v30 = vld [vmem:[#allocation8 + $0x69c] sm:$0xf]  ;;  %v2258_v41 = vadd.f32 %v10571_v49, %v901_v21  ;;  %v9807_v8 = vld [vmem:[#allocation11 + $0x1d8] sm:$0xf0] }
 0x188   :  { %v10595_v55 = vpop.f32.mrf.mxu0  ;;  %v7465_v31 = vld [vmem:[#allocation8 + $0x6b8] sm:$0xf0] }
 0x189   :  { %2553 = vmatpush.bf16.msra.mxu3 %v7432_v59  ;;  %2568 = vmatmul.bf16.vlgmr.msrb.gmra.mxu0 %v10534_v13  ;;  %v7596_v13 = vor.u32 %v9735_v26, %v7593_v27  ;;  %v7529_v59 = vld [vmem:[#allocation8 + $0x738] sm:$0xf0]  ;;  %v2232_v26 = vadd.f32 %v10581_v1, %v10569_v18  ;;  %v7468_v18 = vor.u32 %v9703_v30, %v7465_v31  ;;  %v8471_v30 = vld [vmem:[#allocation11 + $0x690] sm:$0xf] }
 0x18a   :  { %5460 = vmatpush.bf16.msra.mxu0 %v7828_v46  ;;  %2579 = vmatpush.bf16.msrb.mxu1 %v6924_v63  ;;  %v7276_v46 = vor.u32 %v9655_v33, %v7273_v35  ;;  %v9765_v63 = vld [vmem:[#allocation11 + $0x88] sm:$0xf0]  ;;  %v7631_v33 = vld [vmem:[#allocation11] sm:$0xf]  ;;  %v9751_v35 = vld [vmem:[#allocation11 + $0x18] sm:$0xf0] }
 0x18b   :  { %2586 = vmatpush.bf16.msrb.mxu2 %v7372_v58  ;;  %v9719_v58 = vld [vmem:[#allocation8 + $0x71c] sm:$0xf]  ;;  %v2298_v4 = vpop.f32.mrf.mxu3  ;;  %v7688_v6 = vor.u32 %v9765_v63, %v7687_v62  ;;  %v7632_v44 = vor.u32 %v9751_v35, %v7631_v33  ;;  %v8695_v62 = vld [vmem:[#allocation11 + $0x850] sm:$0xf]  ;;  %v10017_v63 = vld [vmem:[#allocation11 + $0x868] sm:$0xf0] }
 0x18c   :  { %2542 = vmatmul.bf16.vlgmr.msra.gmra.mxu2 %v10544_v22  ;;  %v7532_v0 = vor.u32 %v9719_v58, %v7529_v59  ;;  %v9623_v1 = vld [vmem:[#allocation8 + $0x41c] sm:$0xf]  ;;  %v8724_v58 = vor.u32 %v10024_v50, %v8723_v39  ;;  %v9905_v4 = vld [vmem:[#allocation11 + $0x4e8] sm:$0xf0]  ;;  %v8696_v10 = vor.u32 %v10017_v63, %v8695_v62  ;;  %v8639_v35 = vld [vmem:[#allocation11 + $0x7e0] sm:$0xf] }
 0x18d   :  { %2554 = vmatpush.bf16.msra.mxu3 %v7400_v16  ;;  %v7145_v42 = vld [vmem:[#allocation8 + $0x438] sm:$0xf0]  ;;  %v9961_v33 = vld [vmem:[#allocation11 + $0x6a8] sm:$0xf0]  ;;  %v8919_v39 = vld [vmem:[#allocation11 + $0xa10] sm:$0xf] }
 0x18e   :  { %5461 = vmatpush.bf16.msra.mxu0 %v7800_v5  ;;  %2580 = vmatpush.bf16.msrb.mxu1 %v6892_v19  ;;  %v7968_v5 = vor.u32 %v9835_v61, %v7967_v60  ;;  %v10597_v16 = vpop.f32.mrf.mxu1  ;;  %v10599_v19 = vpop.f32.mrf.mxu2  ;;  %v7148_v61 = vor.u32 %v9623_v1, %v7145_v42  ;;  %v10010_v21 = vld [vmem:[#allocation11 + $0x830] sm:$0xf0]  ;;  %v10073_v50 = vld [vmem:[#allocation11 + $0xa28] sm:$0xf0]  ;;  %v8191_v1 = vld [vmem:[#allocation11 + $0x460] sm:$0xf] }
 0x18f   :  { %2587 = vmatpush.bf16.msrb.mxu2 %v7340_v14  ;;  %v9758_v14 = vld [vmem:[#allocation11 + $0x50] sm:$0xf0]  ;;  %v9891_v42 = vld [vmem:[#allocation11 + $0x478] sm:$0xf0]  ;;  %v8415_v63 = vld [vmem:[#allocation11 + $0x620] sm:$0xf] }
 0x190   :  { %2555 = vmatmul.bf16.vlgmr.msra.gmra.mxu3 %v10548_v51  ;;  %v2363_v27 = vpop.f32.mrf.mxu0  ;;  %v7660_v45 = vor.u32 %v9758_v14, %v7659_v11  ;;  %v8499_v11 = vld [vmem:[#allocation11 + $0x6c8] sm:$0xf]  ;;  %v9968_v14 = vld [vmem:[#allocation11 + $0x6e0] sm:$0xf0] }
 0x191   :  { %2599 = vmatpush.bf16.msrb.mxu3 %v7628_v20  ;;  %2581 = vmatmul.bf16.vlgmr.msrb.gmra.mxu1 %v10537_v34  ;;  %v7244_v34 = vor.u32 %v9647_v48, %v7241_v53  ;;  %v7212_v20 = vor.u32 %v9639_v2, %v7209_v3  ;;  %v7433_v48 = vld [vmem:[#allocation8 + $0x678] sm:$0xf0]  ;;  %v8247_v3 = vld [vmem:[#allocation11 + $0x4d0] sm:$0xf]  ;;  %v7856_v27 = vor.u32 %v9807_v8, %v7855_v7  ;;  %v9877_v7 = vld [vmem:[#allocation11 + $0x408] sm:$0xf0] }
 0x192   :  { %5473 = vmatpush.bf16.msra.mxu1 %v8052_v24  ;;  %5462 = vmatpush.bf16.msra.mxu0 %v7772_v25  ;;  %v9631_v24 = vld [vmem:[#allocation8 + $0x45c] sm:$0xf] }
 0x193   :  { %2588 = vmatpush.bf16.msrb.mxu2 %v7308_v32  ;;  %v7177_v25 = vld [vmem:[#allocation8 + $0x478] sm:$0xf0]  ;;  %v7911_v32 = vld [vmem:[#allocation11 + $0x230] sm:$0xf]  ;;  %v10607_v53 = vpop.f32.mrf.mxu3 }
 0x195   :  { %2600 = vmatpush.bf16.msrb.mxu3 %v7596_v13  ;;  %v9821_v13 = vld [vmem:[#allocation11 + $0x248] sm:$0xf0] }
 0x196   :  { %5474 = vmatpush.bf16.msra.mxu1 %v8024_v37  ;;  %5463 = vmatpush.bf16.msra.mxu0 %v7744_v38  ;;  %v2245_v37 = vadd.f32 %v10585_v29, %v2232_v26  ;;  %v7180_v38 = vor.u32 %v9631_v24, %v7177_v25  ;;  %v7912_v43 = vor.u32 %v9821_v13, %v7911_v32  ;;  %v2376_v59 = vpop.f32.mrf.mxu1  ;;  %v2337_v60 = vpop.f32.mrf.mxu2  ;;  %v10080_v24 = vld [vmem:[#allocation11 + $0xa60] sm:$0xf0] }
 0x197   :  { %2589 = vmatpush.bf16.msrb.mxu2 %v7276_v46  ;;  %v9912_v46 = vld [vmem:[#allocation11 + $0x520] sm:$0xf0]  ;;  %v2271_v29 = vadd.f32 %v10573_v17, %v2258_v41  ;;  %v9687_v17 = vld [vmem:[#allocation8 + $0x61c] sm:$0xf]  ;;  %v8248_v25 = vor.u32 %v9905_v4, %v8247_v3  ;;  %v8163_v59 = vld [vmem:[#allocation11 + $0x428] sm:$0xf] }
 0x198   :  { %v2612_v49 = vmax.f32 %v2245_v37, 0.0  ;;  %v9884_v60 = vld [vmem:[#allocation11 + $0x440] sm:$0xf0]  ;;  %v8863_v3 = vld [vmem:[#allocation11 + $0x9a0] sm:$0xf] }
 0x199   :  { %2601 = vmatpush.bf16.msrb.mxu3 %v7564_v47  ;;  %v9695_v47 = vld [vmem:[#allocation8 + $0x65c] sm:$0xf]  ;;  %v10059_v4 = vld [vmem:[#allocation11 + $0x9b8] sm:$0xf0] }
 0x19a   :  { %5475 = vmatpush.bf16.msra.mxu1 %v7996_v56  ;;  %5464 = vmatpush.bf16.msra.mxu0 %v7716_v57  ;;  %v7883_v56 = vld [vmem:[#allocation11 + $0x1f8] sm:$0xf]  ;;  %v9814_v57 = vld [vmem:[#allocation11 + $0x210] sm:$0xf0]  ;;  %v7436_v2 = vor.u32 %v9695_v47, %v7433_v48  ;;  %v8920_v47 = vor.u32 %v10073_v50, %v8919_v39  ;;  %v9996_v48 = vld [vmem:[#allocation11 + $0x7c0] sm:$0xf0] }
 0x19b   :  { %2590 = vmatpush.bf16.msrb.mxu2 %v7244_v34  ;;  %v2284_v34 = vadd.f32 %v10587_v12, %v2271_v29  ;;  %v10611_v12 = vpack.c.bf16 %v2612_v49, %v2612_v49  ;;  %v2350_v32 = vpop.f32.mrf.mxu3  ;;  %v8891_v29 = vld [vmem:[#allocation11 + $0x9d8] sm:$0xf]  ;;  %v8807_v39 = vld [vmem:[#allocation11 + $0x930] sm:$0xf]  ;;  %v10045_v50 = vld [vmem:[#allocation11 + $0x948] sm:$0xf0] }
 0x19d   :  { %2602 = vmatpush.bf16.msrb.mxu3 %v7532_v0  ;;  %v8276_v0 = vor.u32 %v9912_v46, %v8275_v54  ;;  %v2297_v9 = vadd.f32 %v10591_v36, %v2284_v34  ;;  %v8500_v36 = vor.u32 %v9968_v14, %v8499_v11  ;;  %v8611_v46 = vld [vmem:[#allocation11 + $0x7a8] sm:$0xf]  ;;  %v9947_v34 = vld [vmem:[#allocation11 + $0x638] sm:$0xf0]  ;;  %v8555_v11 = vld [vmem:[#allocation11 + $0x738] sm:$0xf]  ;;  %v8864_v14 = vor.u32 %v10059_v4, %v8863_v3 }
 0x19e   :  { %5476 = vmatpush.bf16.msra.mxu1 %v7968_v5  ;;  %5465 = vmatpush.bf16.msra.mxu0 %v7688_v6  ;;  %v7884_v5 = vor.u32 %v9814_v57, %v7883_v56  ;;  %v7401_v6 = vld [vmem:[#allocation8 + $0x638] sm:$0xf0]  ;;  %v8192_v57 = vor.u32 %v9891_v42, %v8191_v1  ;;  %v8612_v62 = vor.u32 %v9996_v48, %v8611_v46  ;;  %v7829_v1 = vld [vmem:[#allocation11 + $0x1a4] sm:$0xf0]  ;;  %v8331_v48 = vld [vmem:[#allocation11 + $0x578] sm:$0xf] }
 0x19f   :  { %2591 = vmatpush.bf16.msrb.mxu2 %v7212_v20  ;;  %v8667_v20 = vld [vmem:[#allocation11 + $0x818] sm:$0xf]  ;;  %v7404_v26 = vor.u32 %v9687_v17, %v7401_v6  ;;  %v2613_v31 = vmax.f32 %v2297_v9, 0.0  ;;  %v10066_v56 = vld [vmem:[#allocation11 + $0x9f0] sm:$0xf0]  ;;  %v8164_v17 = vor.u32 %v9884_v60, %v8163_v59 }
 0x1a0   :  { %v8668_v13 = vor.u32 %v10010_v21, %v8667_v20  ;;  %v8135_v6 = vld [vmem:[#allocation11 + $0x3f0] sm:$0xf]  ;;  %v8387_v9 = vld [vmem:[#allocation11 + $0x5e8] sm:$0xf]  ;;  %v9982_v21 = vld [vmem:[#allocation11 + $0x750] sm:$0xf0] }
 0x1a1   :  { %2603 = vmatpush.bf16.msrb.mxu3 %v7500_v23  ;;  %v8947_v23 = vld [vmem:[#allocation11 + $0xa48] sm:$0xf]  ;;  %v10615_v54 = vpack.c.bf16 %v2613_v31, %v2613_v31  ;;  %v9870_v31 = vld [vmem:[#allocation11 + $0x3d0] sm:$0xf0] }
 0x1a2   :  { %5477 = vmatpush.bf16.msra.mxu1 %v7940_v28  ;;  %5466 = vmatpush.bf16.msra.mxu0 %v7660_v45  ;;  %v8219_v28 = vld [vmem:[#allocation11 + $0x498] sm:$0xf]  ;;  %v9898_v45 = vld [vmem:[#allocation11 + $0x4b0] sm:$0xf0]  ;;  %v8948_v37 = vor.u32 %v10080_v24, %v8947_v23  ;;  %v8835_v23 = vld [vmem:[#allocation11 + $0x968] sm:$0xf] }
 0x1a3   :  { %2592 = vmatpush.bf16.msrb.mxu2 %v7180_v38  ;;  %v10003_v38 = vld [vmem:[#allocation11 + $0x7f8] sm:$0xf0]  ;;  %v8220_v41 = vor.u32 %v9898_v45, %v8219_v28  ;;  %v10052_v24 = vld [vmem:[#allocation11 + $0x980] sm:$0xf0] }
 0x1a5   :  { %2604 = vmatpush.bf16.msrb.mxu3 %v7468_v18  ;;  %v8472_v18 = vor.u32 %v9961_v33, %v8471_v30  ;;  %v8107_v30 = vld [vmem:[#allocation11 + $0x3b8] sm:$0xf]  ;;  %v9933_v33 = vld [vmem:[#allocation11 + $0x5c8] sm:$0xf0] }
 0x1a6   :  { %5478 = vmatpush.bf16.msra.mxu1 %v7912_v43  ;;  %5467 = vmatpush.bf16.msra.mxu0 %v7632_v44  ;;  %v8443_v43 = vld [vmem:[#allocation11 + $0x658] sm:$0xf]  ;;  %v9954_v44 = vld [vmem:[#allocation11 + $0x670] sm:$0xf0] }
 0x1a7   :  { %2593 = vmatpush.bf16.msrb.mxu2 %v7148_v61  ;;  %v8444_v49 = vor.u32 %v9954_v44, %v8443_v43  ;;  %v10620_v61 = vpop.f32.mrf.mxu0  ;;  %v8079_v43 = vld [vmem:[#allocation11 + $0x380] sm:$0xf]  ;;  %v9863_v44 = vld [vmem:[#allocation11 + $0x398] sm:$0xf0] }
 0x1a9   :  { %2605 = vmatpush.bf16.msrb.mxu3 %v7436_v2  ;;  %5468 = vmatmul.bf16.vlgmr.msra.gmra.mxu0 %v10611_v12  ;;  %v9989_v2 = vld [vmem:[#allocation11 + $0x788] sm:$0xf0] }
 0x1aa   :  { %5512 = vmatpush.bf16.msrb.mxu0 %v8724_v58  ;;  %5479 = vmatpush.bf16.msra.mxu1 %v7884_v5  ;;  %v902_v58 = vperm.slane %v10564_v40, 2  ;;  %v8416_v5 = vor.u32 %v9947_v34, %v8415_v63  ;;  %v7801_v63 = vld [vmem:[#allocation11 + $0x16c] sm:$0xf0]  ;;  %v9171_v34 = vld [vmem:[#allocation11 + $0xc08] sm:$0xf] }
 0x1ab   :  { %5486 = vmatpush.bf16.msra.mxu2 %v8276_v0  ;;  %v8892_v0 = vor.u32 %v10066_v56, %v8891_v29  ;;  %v9926_v29 = vld [vmem:[#allocation11 + $0x590] sm:$0xf0]  ;;  %v8808_v56 = vor.u32 %v10045_v50, %v8807_v39  ;;  %v9769_v39 = vld [vmem:[#allocation11 + $0xac] sm:$0xf]  ;;  %v7717_v50 = vld [vmem:[#allocation11 + $0xc4] sm:$0xf0] }
 0x1ac   :  { %2594 = vmatmul.bf16.vlgmr.msrb.gmra.mxu2 %v10544_v22  ;;  %v8640_v22 = vor.u32 %v10003_v38, %v8639_v35  ;;  %v2310_v20 = vadd.f32 %v10579_v52, %v902_v58  ;;  %v8359_v52 = vld [vmem:[#allocation11 + $0x5b0] sm:$0xf]  ;;  %v8527_v35 = vld [vmem:[#allocation11 + $0x700] sm:$0xf]  ;;  %v9975_v38 = vld [vmem:[#allocation11 + $0x718] sm:$0xf0] }
 0x1ad   :  { %2606 = vmatpush.bf16.msrb.mxu3 %v7404_v26  ;;  %v8779_v58 = vld [vmem:[#allocation11 + $0x8f8] sm:$0xf] }
 0x1ae   :  { %5513 = vmatpush.bf16.msrb.mxu0 %v8696_v10  ;;  %5480 = vmatpush.bf16.msra.mxu1 %v7856_v27  ;;  %v9940_v10 = vld [vmem:[#allocation11 + $0x600] sm:$0xf0]  ;;  %v10624_v27 = vpop.f32.mrf.mxu1  ;;  %v2323_v28 = vadd.f32 %v10583_v15, %v2310_v20  ;;  %v8108_v15 = vor.u32 %v9870_v31, %v8107_v30  ;;  %v9853_v20 = vld [vmem:[#allocation11 + $0x34c] sm:$0xf] }
 0x1af   :  { %5487 = vmatpush.bf16.msra.mxu2 %v8248_v25  ;;  %v903_v25 = vperm.slane %v10564_v40, 3  ;;  %v2387_v26 = vpop.f32.mrf.mxu2  ;;  %v8388_v45 = vor.u32 %v9940_v10, %v8387_v9  ;;  %v2415_v32 = vpop.f32.mrf.mxu0  ;;  %v10031_v9 = vld [vmem:[#allocation11 + $0x8d8] sm:$0xf0]  ;;  %v9143_v10 = vld [vmem:[#allocation11 + $0xbd0] sm:$0xf] }
 0x1b0   :  { %2607 = vmatmul.bf16.vlgmr.msrb.gmra.mxu3 %v10548_v51  ;;  %v8583_v51 = vld [vmem:[#allocation11 + $0x770] sm:$0xf]  ;;  %v2336_v40 = vadd.f32 %v10599_v19, %v2323_v28  ;;  %v8528_v19 = vor.u32 %v9975_v38, %v8527_v35  ;;  %v9776_v30 = vld [vmem:[#allocation11 + $0xe4] sm:$0xf]  ;;  %v9115_v32 = vld [vmem:[#allocation11 + $0xb98] sm:$0xf] }
 0x1b1   :  { %5499 = vmatpush.bf16.msra.mxu3 %v8500_v36  ;;  %5481 = vmatmul.bf16.vlgmr.msra.gmra.mxu1 %v10615_v54  ;;  %v8584_v8 = vor.u32 %v9989_v2, %v8583_v51  ;;  %v8136_v36 = vor.u32 %v9877_v7, %v8135_v6  ;;  %v10136_v51 = vld [vmem:[#allocation11 + $0xc20] sm:$0xf0]  ;;  %v8303_v2 = vld [vmem:[#allocation11 + $0x540] sm:$0xf]  ;;  %v8025_v35 = vld [vmem:[#allocation11 + $0x32c] sm:$0xf0] }
 0x1b2   :  { %5514 = vmatpush.bf16.msrb.mxu0 %v8668_v13  ;;  %5525 = vmatpush.bf16.msrb.mxu1 %v8948_v37  ;;  %v8556_v13 = vor.u32 %v9982_v21, %v8555_v11  ;;  %v8836_v37 = vor.u32 %v10052_v24, %v8835_v23  ;;  %v2349_v42 = vadd.f32 %v10607_v53, %v2336_v40  ;;  %v8751_v7 = vld [vmem:[#allocation11 + $0x8c0] sm:$0xf]  ;;  %v10129_v11 = vld [vmem:[#allocation11 + $0xbe8] sm:$0xf0]  ;;  %v8053_v21 = vld [vmem:[#allocation11 + $0x364] sm:$0xf0] }
 0x1b3   :  { %5488 = vmatpush.bf16.msra.mxu2 %v8220_v41  ;;  %v2362_v41 = vadd.f32 %v10595_v55, %v903_v25  ;;  %v9172_v3 = vor.u32 %v10136_v51, %v9171_v34  ;;  %v9144_v25 = vor.u32 %v10129_v11, %v9143_v10  ;;  %v8752_v28 = vor.u32 %v10031_v9, %v8751_v7  ;;  %v7941_v34 = vld [vmem:[#allocation11 + $0x284] sm:$0xf0]  ;;  %v9031_v51 = vld [vmem:[#allocation11 + $0xaf0] sm:$0xf]  ;;  %v7633_v7 = vld [vmem:[#allocation11 + $0x1c] sm:$0xf0] }
 0x1b4   :  { %v8056_v31 = vor.u32 %v9853_v20, %v8053_v21  ;;  %v9818_v9 = vld [vmem:[#allocation11 + $0x234] sm:$0xf]  ;;  %v7913_v11 = vld [vmem:[#allocation11 + $0x24c] sm:$0xf0] }
 0x1b5   :  { %5500 = vmatpush.bf16.msra.mxu3 %v8472_v18  ;;  %v9797_v18 = vld [vmem:[#allocation11 + $0x18c] sm:$0xf]  ;;  %v2375_v46 = vadd.f32 %v10597_v16, %v2362_v41  ;;  %v2614_v16 = vmax.f32 %v2349_v42, 0.0  ;;  %v10115_v42 = vld [vmem:[#allocation11 + $0xb78] sm:$0xf0] }
 0x1b6   :  { %5515 = vmatpush.bf16.msrb.mxu0 %v8640_v22  ;;  %5526 = vmatpush.bf16.msrb.mxu1 %v8920_v47  ;;  %v8360_v22 = vor.u32 %v9933_v33, %v8359_v52  ;;  %v2400_v47 = vpop.f32.mrf.mxu3  ;;  %v7832_v55 = vor.u32 %v9797_v18, %v7829_v1  ;;  %v2428_v60 = vpop.f32.mrf.mxu1  ;;  %v7745_v52 = vld [vmem:[#allocation11 + $0xfc] sm:$0xf0]  ;;  %v9846_v33 = vld [vmem:[#allocation11 + $0x314] sm:$0xf]  ;;  %v7997_v18 = vld [vmem:[#allocation11 + $0x2f4] sm:$0xf0] }
 0x1b7   :  { %5489 = vmatpush.bf16.msra.mxu2 %v8192_v57  ;;  %v9790_v57 = vld [vmem:[#allocation11 + $0x154] sm:$0xf]  ;;  %v2388_v59 = vadd.f32 %v2387_v26, %v2375_v46  ;;  %v2389_v53 = vpop.f32.mrf.mxu2  ;;  %v10631_v23 = vpack.c.bf16 %v2614_v16, %v2614_v16  ;;  %v7748_v38 = vor.u32 %v9776_v30, %v7745_v52  ;;  %v8028_v41 = vor.u32 %v9846_v33, %v8025_v35  ;;  %v9087_v1 = vld [vmem:[#allocation11 + $0xb60] sm:$0xf]  ;;  %v7661_v60 = vld [vmem:[#allocation11 + $0x54] sm:$0xf0] }
 0x1b8   :  { %v9762_v46 = vld [vmem:[#allocation11 + $0x74] sm:$0xf]  ;;  %v9755_v53 = vld [vmem:[#allocation11 + $0x3c] sm:$0xf]  ;;  %v10101_v16 = vld [vmem:[#allocation11 + $0xb08] sm:$0xf0] }
 0x1b9   :  { %5501 = vmatpush.bf16.msra.mxu3 %v8444_v49  ;;  %v10038_v49 = vld [vmem:[#allocation11 + $0x910] sm:$0xf0]  ;;  %v2401_v4 = vadd.f32 %v2400_v47, %v2388_v59  ;;  %v7689_v47 = vld [vmem:[#allocation11 + $0x8c] sm:$0xf0] }
 0x1ba   :  { %5516 = vmatpush.bf16.msrb.mxu0 %v8612_v62  ;;  %5527 = vmatpush.bf16.msrb.mxu1 %v8892_v0  ;;  %v8080_v62 = vor.u32 %v9863_v44, %v8079_v43  ;;  %v8332_v0 = vor.u32 %v9926_v29, %v8331_v48  ;;  %v8780_v6 = vor.u32 %v10038_v49, %v8779_v58  ;;  %v9832_v48 = vld [vmem:[#allocation11 + $0x2a4] sm:$0xf]  ;;  %v7969_v29 = vld [vmem:[#allocation11 + $0x2bc] sm:$0xf0]  ;;  %v10639_v58 = vld [vmem:[#allocation10] sm:$0xff] }
 0x1bb   :  { %5490 = vmatpush.bf16.msra.mxu2 %v8164_v17  ;;  %v9919_v17 = vld [vmem:[#allocation11 + $0x558] sm:$0xf0]  ;;  %v2615_v26 = vmax.f32 %v2401_v4, 0.0  ;;  %v7720_v44 = vor.u32 %v9769_v39, %v7717_v50  ;;  %v904_v49 = vperm.slane %v10639_v58, 4  ;;  %v7692_v59 = vor.u32 %v9762_v46, %v7689_v47  ;;  %v10094_v20 = vld [vmem:[#allocation11 + $0xad0] sm:$0xf0] }
 0x1bc   :  { %v8304_v24 = vor.u32 %v9919_v17, %v8303_v2  ;;  %v10014_v50 = vld [vmem:[#allocation11 + $0x854] sm:$0xf]  ;;  %v7857_v46 = vld [vmem:[#allocation11 + $0x1dc] sm:$0xf0] }
 0x1bd   :  { %5502 = vmatpush.bf16.msra.mxu3 %v8416_v5  ;;  %v9783_v5 = vld [vmem:[#allocation11 + $0x11c] sm:$0xf]  ;;  %v10634_v40 = vpack.c.bf16 %v2615_v26, %v2615_v26  ;;  %v2414_v2 = vadd.f32 %v10620_v61, %v904_v49  ;;  %v10021_v26 = vld [vmem:[#allocation11 + $0x88c] sm:$0xf] }
 0x1be   :  { %5517 = vmatpush.bf16.msrb.mxu0 %v8584_v8  ;;  %5528 = vmatpush.bf16.msrb.mxu1 %v8864_v14  ;;  %v7804_v8 = vor.u32 %v9790_v57, %v7801_v63  ;;  %v7773_v14 = vld [vmem:[#allocation11 + $0x134] sm:$0xf0]  ;;  %v9825_v63 = vld [vmem:[#allocation11 + $0x26c] sm:$0xf] }
 0x1bf   :  { %5491 = vmatpush.bf16.msra.mxu2 %v8136_v36  ;;  %v2402_v36 = vpop.f32.mrf.mxu3  ;;  %v2427_v10 = vadd.f32 %v10624_v27, %v2414_v2 }
 0x1c0   :  { %v8725_v36 = vld [vmem:[#allocation11 + $0x8a4] sm:$0xf0] }
 0x1c1   :  { %5503 = vmatpush.bf16.msra.mxu3 %v8388_v45  ;;  %v7776_v45 = vor.u32 %v9783_v5, %v7773_v14  ;;  %v7664_v5 = vor.u32 %v9755_v53, %v7661_v60  ;;  %v9003_v14 = vld [vmem:[#allocation11 + $0xab8] sm:$0xf]  ;;  %v8728_v39 = vor.u32 %v10021_v26, %v8725_v36  ;;  %v9881_v26 = vld [vmem:[#allocation11 + $0x42c] sm:$0xf] }
 0x1c2   :  { %5518 = vmatpush.bf16.msrb.mxu0 %v8556_v13  ;;  %5529 = vmatpush.bf16.msrb.mxu1 %v8836_v37  ;;  %v10122_v13 = vld [vmem:[#allocation11 + $0xbb0] sm:$0xf0]  ;;  %v9004_v21 = vor.u32 %v10094_v20, %v9003_v14  ;;  %v8669_v53 = vld [vmem:[#allocation11 + $0x834] sm:$0xf0] }
 0x1c3   :  { %5492 = vmatpush.bf16.msra.mxu2 %v8108_v15  ;;  %v9116_v37 = vor.u32 %v10122_v13, %v9115_v32  ;;  %v9839_v15 = vld [vmem:[#allocation11 + $0x2dc] sm:$0xf]  ;;  %v8975_v32 = vld [vmem:[#allocation11 + $0xa80] sm:$0xf] }
 0x1c4   :  { %v10087_v13 = vld [vmem:[#allocation11 + $0xa98] sm:$0xf0] }
 0x1c5   :  { %5504 = vmatpush.bf16.msra.mxu3 %v8360_v22  ;;  %v9088_v22 = vor.u32 %v10115_v42, %v9087_v1  ;;  %v8976_v27 = vor.u32 %v10087_v13, %v8975_v32  ;;  %v8277_v1 = vld [vmem:[#allocation11 + $0x524] sm:$0xf0]  ;;  %v9986_v32 = vld [vmem:[#allocation11 + $0x774] sm:$0xf]  ;;  %v8585_v13 = vld [vmem:[#allocation11 + $0x78c] sm:$0xf0] }
 0x1c6   :  { %5519 = vmatpush.bf16.msrb.mxu0 %v8528_v19  ;;  %5530 = vmatpush.bf16.msrb.mxu1 %v8808_v56  ;;  %v10637_v43 = vpop.f32.mrf.mxu0  ;;  %v8000_v19 = vor.u32 %v9839_v15, %v7997_v18  ;;  %v9059_v56 = vld [vmem:[#allocation11 + $0xb28] sm:$0xf]  ;;  %v9909_v18 = vld [vmem:[#allocation11 + $0x50c] sm:$0xf] }
 0x1c7   :  { %5493 = vmatpush.bf16.msra.mxu2 %v8080_v62  ;;  %v7972_v62 = vor.u32 %v9832_v48, %v7969_v29  ;;  %v8280_v47 = vor.u32 %v9909_v18, %v8277_v1  ;;  %v10185_v48 = vld [vmem:[#allocation11 + $0xda8] sm:$0xf0]  ;;  %v9902_v29 = vld [vmem:[#allocation11 + $0x4d4] sm:$0xf]  ;;  %v9979_v1 = vld [vmem:[#allocation11 + $0x73c] sm:$0xf] }
 0x1c9   :  { %5505 = vmatpush.bf16.msra.mxu3 %v8332_v0  ;;  %v9032_v0 = vor.u32 %v10101_v16, %v9031_v51  ;;  %v9895_v51 = vld [vmem:[#allocation11 + $0x49c] sm:$0xf] }
 0x1ca   :  { %5564 = vmatpush.bf16.msra.mxu0 %v7832_v55  ;;  %5531 = vmatpush.bf16.msrb.mxu1 %v8780_v6  ;;  %v10108_v55 = vld [vmem:[#allocation11 + $0xb40] sm:$0xf0] }
 0x1cb   :  { %5538 = vmatpush.bf16.msrb.mxu2 %v9172_v3  ;;  %v9060_v57 = vor.u32 %v10108_v55, %v9059_v56  ;;  %v9748_v6 = vld [vmem:[#allocation11 + $0x4] sm:$0xf]  ;;  %v8249_v55 = vld [vmem:[#allocation11 + $0x4ec] sm:$0xf0] }
 0x1cc   :  { %5494 = vmatmul.bf16.vlgmr.msra.gmra.mxu2 %v10631_v23 }
 0x1cd   :  { %5506 = vmatpush.bf16.msra.mxu3 %v8304_v24 }
 0x1ce   :  { %5565 = vmatpush.bf16.msra.mxu0 %v7804_v8  ;;  %5532 = vmatpush.bf16.msrb.mxu1 %v8752_v28  ;;  %v10643_v4 = vpop.f32.mrf.mxu1  ;;  %v2467_v17 = vpop.f32.mrf.mxu0  ;;  %v7944_v8 = vor.u32 %v9825_v63, %v7941_v34  ;;  %v7916_v28 = vor.u32 %v9818_v9, %v7913_v11  ;;  %v9339_v63 = vld [vmem:[#allocation11 + $0xd58] sm:$0xf]  ;;  %v10178_v34 = vld [vmem:[#allocation11 + $0xd70] sm:$0xf0] }
 0x1cf   :  { %5539 = vmatpush.bf16.msrb.mxu2 %v9144_v25  ;;  %v2439_v3 = vpop.f32.mrf.mxu2  ;;  %v7636_v25 = vor.u32 %v9748_v6, %v7633_v7  ;;  %v9340_v16 = vor.u32 %v10178_v34, %v9339_v63  ;;  %v10000_v17 = vld [vmem:[#allocation11 + $0x7e4] sm:$0xf]  ;;  %v9311_v6 = vld [vmem:[#allocation11 + $0xd20] sm:$0xf]  ;;  %v10171_v7 = vld [vmem:[#allocation11 + $0xd38] sm:$0xf0] }
 0x1d0   :  { %5507 = vmatmul.bf16.vlgmr.msra.gmra.mxu3 %v10634_v40  ;;  %v2440_v24 = vadd.f32 %v2439_v3, %v2427_v10  ;;  %v9312_v9 = vor.u32 %v10171_v7, %v9311_v6  ;;  %v8193_v10 = vld [vmem:[#allocation11 + $0x47c] sm:$0xf0]  ;;  %v9801_v63 = vld [vmem:[#allocation11 + $0x1a8] sm:$0xf0] }
 0x1d2   :  { %5566 = vmatpush.bf16.msra.mxu0 %v7776_v45  ;;  %5577 = vmatpush.bf16.msra.mxu1 %v8056_v31  ;;  %v9811_v45 = vld [vmem:[#allocation11 + $0x1fc] sm:$0xf]  ;;  %v7885_v31 = vld [vmem:[#allocation11 + $0x214] sm:$0xf0] }
 0x1d3   :  { %5540 = vmatpush.bf16.msrb.mxu2 %v9116_v37  ;;  %v2452_v61 = vpop.f32.mrf.mxu3  ;;  %v9395_v37 = vld [vmem:[#allocation11 + $0xdc8] sm:$0xf] }
 0x1d4   :  { %v2453_v30 = vadd.f32 %v2452_v61, %v2440_v24  ;;  %v8613_v24 = vld [vmem:[#allocation11 + $0x7c4] sm:$0xf0] }
 0x1d5   :  { %v9283_v61 = vld [vmem:[#allocation11 + $0xce8] sm:$0xf] }
 0x1d6   :  { %5567 = vmatpush.bf16.msra.mxu0 %v7748_v38  ;;  %5578 = vmatpush.bf16.msra.mxu1 %v8028_v41  ;;  %v2616_v52 = vmax.f32 %v2453_v30, 0.0  ;;  %v2480_v35 = vpop.f32.mrf.mxu1  ;;  %v10192_v38 = vld [vmem:[#allocation11 + $0xde0] sm:$0xf0]  ;;  %v7888_v41 = vor.u32 %v9811_v45, %v7885_v31  ;;  %v905_v45 = vperm.slane %v10639_v58, 5 }
 0x1d7   :  { %5541 = vmatpush.bf16.msrb.mxu2 %v9088_v22  ;;  %v2441_v33 = vpop.f32.mrf.mxu2  ;;  %v9396_v15 = vor.u32 %v10192_v38, %v9395_v37  ;;  %v8697_v22 = vld [vmem:[#allocation11 + $0x86c] sm:$0xf0] }
 0x1d8   :  { %v10646_v42 = vpack.c.bf16 %v2616_v52, %v2616_v52  ;;  %v8700_v49 = vor.u32 %v10014_v50, %v8697_v22  ;;  %v10157_v52 = vld [vmem:[#allocation11 + $0xcc8] sm:$0xf0]  ;;  %v9874_v33 = vld [vmem:[#allocation11 + $0x3f4] sm:$0xf]  ;;  %v8137_v37 = vld [vmem:[#allocation11 + $0x40c] sm:$0xf0]  ;;  %v2466_v38 = vadd.f32 %v10637_v43, %v905_v45 }
 0x1d9   :  { %5551 = vmatpush.bf16.msrb.mxu3 %v9396_v15  ;;  %v8140_v15 = vor.u32 %v9874_v33, %v8137_v37  ;;  %v8557_v22 = vld [vmem:[#allocation11 + $0x754] sm:$0xf0] }
 0x1da   :  { %5568 = vmatpush.bf16.msra.mxu0 %v7720_v44  ;;  %5579 = vmatpush.bf16.msra.mxu1 %v8000_v19  ;;  %v9804_v44 = vld [vmem:[#allocation11 + $0x1c4] sm:$0xf]  ;;  %v9367_v19 = vld [vmem:[#allocation11 + $0xd90] sm:$0xf]  ;;  %v8560_v43 = vor.u32 %v9979_v1, %v8557_v22  ;;  %v8445_v37 = vld [vmem:[#allocation11 + $0x674] sm:$0xf0] }
 0x1db   :  { %5542 = vmatpush.bf16.msrb.mxu2 %v9060_v57  ;;  %5520 = vmatmul.bf16.vlgmr.msrb.gmra.mxu0 %v10646_v42  ;;  %v9368_v56 = vor.u32 %v10185_v48, %v9367_v19  ;;  %v2454_v57 = vpop.f32.mrf.mxu3  ;;  %v7860_v60 = vor.u32 %v9804_v44, %v7857_v46  ;;  %v2479_v44 = vadd.f32 %v10643_v4, %v2466_v38  ;;  %v9227_v46 = vld [vmem:[#allocation11 + $0xc78] sm:$0xf]  ;;  %v9867_v19 = vld [vmem:[#allocation11 + $0x3bc] sm:$0xf]  ;;  %v9199_v4 = vld [vmem:[#allocation11 + $0xc40] sm:$0xf] }
 0x1dc   :  { %v8529_v57 = vld [vmem:[#allocation11 + $0x71c] sm:$0xf0]  ;;  %v9780_v1 = vld [vmem:[#allocation11 + $0x100] sm:$0xf0] }
 0x1dd   :  { %5552 = vmatpush.bf16.msrb.mxu3 %v9368_v56 }
 0x1de   :  { %5569 = vmatpush.bf16.msra.mxu0 %v7692_v59  ;;  %5580 = vmatpush.bf16.msra.mxu1 %v7972_v62  ;;  %v10007_v59 = vld [vmem:[#allocation11 + $0x81c] sm:$0xf]  ;;  %v8252_v62 = vor.u32 %v9902_v29, %v8249_v55  ;;  %v8109_v29 = vld [vmem:[#allocation11 + $0x3d4] sm:$0xf0]  ;;  %v9972_v55 = vld [vmem:[#allocation11 + $0x704] sm:$0xf] }
 0x1df   :  { %5543 = vmatpush.bf16.msrb.mxu2 %v9032_v0  ;;  %v8221_v0 = vld [vmem:[#allocation11 + $0x4b4] sm:$0xf0]  ;;  %v8672_v3 = vor.u32 %v10007_v59, %v8669_v53  ;;  %v8112_v59 = vor.u32 %v9867_v19, %v8109_v29  ;;  %v8532_v6 = vor.u32 %v9972_v55, %v8529_v57  ;;  %v9773_v55 = vld [vmem:[#allocation11 + $0xc8] sm:$0xf0] }
 0x1e0   :  { %v8224_v2 = vor.u32 %v9895_v51, %v8221_v0  ;;  %v10143_v51 = vld [vmem:[#allocation11 + $0xc58] sm:$0xf0] }
 0x1e1   :  { %5553 = vmatpush.bf16.msrb.mxu3 %v9340_v16  ;;  %v9860_v16 = vld [vmem:[#allocation11 + $0x384] sm:$0xf]  ;;  %v9200_v0 = vor.u32 %v10143_v51, %v9199_v4  ;;  %v7695_v4 = vld [vmem:[#allocation11 + $0x78] sm:$0xf]  ;;  %v9766_v51 = vld [vmem:[#allocation11 + $0x90] sm:$0xf0] }
 0x1e2   :  { %5570 = vmatpush.bf16.msra.mxu0 %v7664_v5  ;;  %5581 = vmatpush.bf16.msra.mxu1 %v7944_v8  ;;  %v8641_v5 = vld [vmem:[#allocation11 + $0x7fc] sm:$0xf0]  ;;  %v9888_v8 = vld [vmem:[#allocation11 + $0x464] sm:$0xf] }
 0x1e3   :  { %5544 = vmatpush.bf16.msrb.mxu2 %v9004_v21  ;;  %v8644_v11 = vor.u32 %v10000_v17, %v8641_v5  ;;  %v8196_v14 = vor.u32 %v9888_v8, %v8193_v10  ;;  %v9993_v21 = vld [vmem:[#allocation11 + $0x7ac] sm:$0xf]  ;;  %v10070_v10 = vld [vmem:[#allocation11 + $0xa14] sm:$0xf] }
 0x1e4   :  { %v8616_v30 = vor.u32 %v9993_v21, %v8613_v24  ;;  %v8921_v24 = vld [vmem:[#allocation11 + $0xa2c] sm:$0xf0] }
 0x1e5   :  { %5554 = vmatpush.bf16.msrb.mxu3 %v9312_v9 }
 0x1e6   :  { %5571 = vmatpush.bf16.msra.mxu0 %v7636_v25  ;;  %5582 = vmatpush.bf16.msra.mxu1 %v7916_v28  ;;  %v10649_v20 = vpop.f32.mrf.mxu0  ;;  %v10164_v25 = vld [vmem:[#allocation11 + $0xd00] sm:$0xf0]  ;;  %v8165_v28 = vld [vmem:[#allocation11 + $0x444] sm:$0xf0] }
 0x1e7   :  { %5545 = vmatpush.bf16.msrb.mxu2 %v8976_v27  ;;  %v9284_v36 = vor.u32 %v10164_v25, %v9283_v61  ;;  %v8168_v31 = vor.u32 %v9881_v26, %v8165_v28  ;;  %v9255_v27 = vld [vmem:[#allocation11 + $0xcb0] sm:$0xf]  ;;  %v7807_v61 = vld [vmem:[#allocation11 + $0x158] sm:$0xf]  ;;  %v9794_v25 = vld [vmem:[#allocation11 + $0x170] sm:$0xf0] }
 0x1e8   :  { %v9256_v35 = vor.u32 %v10157_v52, %v9255_v27  ;;  %v8473_v28 = vld [vmem:[#allocation11 + $0x6ac] sm:$0xf0]  ;;  %v7779_v27 = vld [vmem:[#allocation11 + $0x120] sm:$0xf]  ;;  %v9787_v52 = vld [vmem:[#allocation11 + $0x138] sm:$0xf0] }
 0x1e9   :  { %5555 = vmatpush.bf16.msrb.mxu3 %v9284_v36  ;;  %v9958_v36 = vld [vmem:[#allocation11 + $0x694] sm:$0xf] }
 0x1ea   :  { %5616 = vmatpush.bf16.msrb.mxu0 %v8728_v39  ;;  %5583 = vmatpush.bf16.msra.mxu1 %v7888_v41  ;;  %v8588_v41 = vor.u32 %v9986_v32, %v8585_v13  ;;  %v10063_v32 = vld [vmem:[#allocation11 + $0x9dc] sm:$0xf]  ;;  %v8893_v13 = vld [vmem:[#allocation11 + $0x9f4] sm:$0xf0]  ;;  %v8476_v33 = vor.u32 %v9958_v36, %v8473_v28 }
 0x1eb   :  { %5590 = vmatpush.bf16.msra.mxu2 %v8280_v47  ;;  %5572 = vmatmul.bf16.vlgmr.msra.gmra.mxu0 %v10611_v12  ;;  %v10150_v47 = vld [vmem:[#allocation11 + $0xc90] sm:$0xf0]  ;;  %v8896_v38 = vor.u32 %v10063_v32, %v8893_v13  ;;  %v7639_v32 = vld [vmem:[#allocation11 + $0x8] sm:$0xf]  ;;  %v9752_v13 = vld [vmem:[#allocation11 + $0x20] sm:$0xf0] }
 0x1ec   :  { %v9228_v48 = vor.u32 %v10150_v47, %v9227_v46  ;;  %v8417_v46 = vld [vmem:[#allocation11 + $0x63c] sm:$0xf0] }
 0x1ed   :  { %5556 = vmatpush.bf16.msrb.mxu3 %v9256_v35  ;;  %v9951_v35 = vld [vmem:[#allocation11 + $0x65c] sm:$0xf] }
 0x1ee   :  { %5617 = vmatpush.bf16.msrb.mxu0 %v8700_v49  ;;  %5584 = vmatpush.bf16.msra.mxu1 %v7860_v60  ;;  %v10654_v50 = vpop.f32.mrf.mxu1  ;;  %v2519_v18 = vpop.f32.mrf.mxu0  ;;  %v10077_v49 = vld [vmem:[#allocation11 + $0xa4c] sm:$0xf]  ;;  %v8949_v60 = vld [vmem:[#allocation11 + $0xa64] sm:$0xf0]  ;;  %v8448_v22 = vor.u32 %v9951_v35, %v8445_v37  ;;  %v8059_v35 = vld [vmem:[#allocation11 + $0x350] sm:$0xf] }
 0x1ef   :  { %5591 = vmatpush.bf16.msra.mxu2 %v8252_v62  ;;  %v2491_v39 = vpop.f32.mrf.mxu2  ;;  %v7835_v62 = vld [vmem:[#allocation11 + $0x190] sm:$0xf]  ;;  %v8952_v8 = vor.u32 %v10077_v49, %v8949_v60  ;;  %v7751_v18 = vld [vmem:[#allocation11 + $0xe8] sm:$0xf]  ;;  %v9937_v49 = vld [vmem:[#allocation11 + $0x5ec] sm:$0xf] }
 0x1f0   :  { %v2492_v56 = vadd.f32 %v2491_v39, %v2479_v44  ;;  %v7836_v9 = vor.u32 %v9801_v63, %v7835_v62  ;;  %v7780_v39 = vor.u32 %v9787_v52, %v7779_v27  ;;  %v9944_v44 = vld [vmem:[#allocation11 + $0x624] sm:$0xf]  ;;  %v7752_v19 = vor.u32 %v9780_v1, %v7751_v18  ;;  %v10042_v63 = vld [vmem:[#allocation11 + $0x934] sm:$0xf]  ;;  %v9857_v37 = vld [vmem:[#allocation11 + $0x368] sm:$0xf0] }
 0x1f1   :  { %5557 = vmatpush.bf16.msrb.mxu3 %v9228_v48  ;;  %v10049_v48 = vld [vmem:[#allocation11 + $0x96c] sm:$0xf]  ;;  %v8420_v57 = vor.u32 %v9944_v44, %v8417_v46  ;;  %v8060_v44 = vor.u32 %v9857_v37, %v8059_v35  ;;  %v9916_v46 = vld [vmem:[#allocation11 + $0x544] sm:$0xf] }
 0x1f2   :  { %5618 = vmatpush.bf16.msrb.mxu0 %v8672_v3 }
 0x1f3   :  { %5592 = vmatpush.bf16.msra.mxu2 %v8224_v2  ;;  %v2504_v53 = vpop.f32.mrf.mxu3  ;;  %v8081_v2 = vld [vmem:[#allocation11 + $0x39c] sm:$0xf0] }
 0x1f4   :  { %v2505_v34 = vadd.f32 %v2504_v53, %v2492_v56  ;;  %v8084_v7 = vor.u32 %v9860_v16, %v8081_v2  ;;  %v8837_v56 = vld [vmem:[#allocation11 + $0x984] sm:$0xf0]  ;;  %v906_v53 = vperm.slane %v10639_v58, 6  ;;  %v8361_v2 = vld [vmem:[#allocation11 + $0x5cc] sm:$0xf0] }
 0x1f5   :  { %5558 = vmatpush.bf16.msrb.mxu3 %v9200_v0  ;;  %v8840_v60 = vor.u32 %v10049_v48, %v8837_v56  ;;  %v9930_v0 = vld [vmem:[#allocation11 + $0x5b4] sm:$0xf] }
 0x1f6   :  { %5619 = vmatpush.bf16.msrb.mxu0 %v8644_v11  ;;  %v2617_v3 = vmax.f32 %v2505_v34, 0.0  ;;  %v2532_v5 = vpop.f32.mrf.mxu1  ;;  %v9965_v11 = vld [vmem:[#allocation11 + $0x6cc] sm:$0xf]  ;;  %v8809_v34 = vld [vmem:[#allocation11 + $0x94c] sm:$0xf0] }
 0x1f7   :  { %5593 = vmatpush.bf16.msra.mxu2 %v8196_v14  ;;  %v2493_v17 = vpop.f32.mrf.mxu2  ;;  %v8501_v14 = vld [vmem:[#allocation11 + $0x6e4] sm:$0xf0] }
 0x1f8   :  { %v10657_v21 = vpack.c.bf16 %v2617_v3, %v2617_v3  ;;  %v8504_v26 = vor.u32 %v9965_v11, %v8501_v14  ;;  %v2518_v3 = vadd.f32 %v10649_v20, %v906_v53  ;;  %v7667_v11 = vld [vmem:[#allocation11 + $0x40] sm:$0xf]  ;;  %v9759_v14 = vld [vmem:[#allocation11 + $0x58] sm:$0xf0]  ;;  %v10018_v53 = vld [vmem:[#allocation11 + $0x870] sm:$0xf0] }
 0x1f9   :  { %v7668_v28 = vor.u32 %v9759_v14, %v7667_v11  ;;  %v9836_v11 = vld [vmem:[#allocation11 + $0x2c0] sm:$0xf0]  ;;  %v9089_v14 = vld [vmem:[#allocation11 + $0xb7c] sm:$0xf0] }
 0x1fa   :  { %5620 = vmatpush.bf16.msrb.mxu0 %v8616_v30  ;;  %5533 = vmatmul.bf16.vlgmr.msrb.gmra.mxu1 %v10657_v21  ;;  %v8924_v30 = vor.u32 %v10070_v10, %v8921_v24  ;;  %v8781_v10 = vld [vmem:[#allocation11 + $0x914] sm:$0xf0]  ;;  %v8364_v24 = vor.u32 %v9930_v0, %v8361_v2  ;;  %v9843_v0 = vld [vmem:[#allocation11 + $0x2f8] sm:$0xf0] }
 0x1fb   :  { %5594 = vmatpush.bf16.msra.mxu2 %v8168_v31  ;;  %5629 = vmatpush.bf16.msrb.mxu1 %v8952_v8  ;;  %v2506_v45 = vpop.f32.mrf.mxu3  ;;  %v7808_v31 = vor.u32 %v9794_v25, %v7807_v61  ;;  %v10035_v8 = vld [vmem:[#allocation11 + $0x8fc] sm:$0xf]  ;;  %v2531_v61 = vadd.f32 %v10654_v50, %v2518_v3  ;;  %v8731_v50 = vld [vmem:[#allocation11 + $0x890] sm:$0xf]  ;;  %v9117_v2 = vld [vmem:[#allocation11 + $0xbb4] sm:$0xf0] }
 0x1fc   :  { %5603 = vmatpush.bf16.msra.mxu3 %v8504_v26  ;;  %v9923_v25 = vld [vmem:[#allocation11 + $0x57c] sm:$0xf]  ;;  %v8333_v26 = vld [vmem:[#allocation11 + $0x594] sm:$0xf0]  ;;  %v8784_v20 = vor.u32 %v10035_v8, %v8781_v10  ;;  %v10028_v45 = vld [vmem:[#allocation11 + $0x8c4] sm:$0xf] }
 0x1fd   :  { %v8336_v27 = vor.u32 %v9923_v25, %v8333_v26  ;;  %v8675_v3 = vld [vmem:[#allocation11 + $0x820] sm:$0xf]  ;;  %v7975_v10 = vld [vmem:[#allocation11 + $0x2a8] sm:$0xf] }
 0x1fe   :  { %5621 = vmatpush.bf16.msrb.mxu0 %v8588_v41  ;;  %v10056_v41 = vld [vmem:[#allocation11 + $0x9a4] sm:$0xf]  ;;  %v7976_v26 = vor.u32 %v9836_v11, %v7975_v10  ;;  %v8283_v10 = vld [vmem:[#allocation11 + $0x510] sm:$0xf]  ;;  %v9913_v11 = vld [vmem:[#allocation11 + $0x528] sm:$0xf0] }
 0x1ff   :  { %5595 = vmatpush.bf16.msra.mxu2 %v8140_v15  ;;  %5630 = vmatpush.bf16.msrb.mxu1 %v8924_v30  ;;  %v8865_v15 = vld [vmem:[#allocation11 + $0x9bc] sm:$0xf0] }
 0x200   :  { %5604 = vmatpush.bf16.msra.mxu3 %v8476_v33  ;;  %v8868_v47 = vor.u32 %v10056_v41, %v8865_v15  ;;  %v10133_v33 = vld [vmem:[#allocation11 + $0xc0c] sm:$0xf]  ;;  %v10674_v25 = vld [vmem:[#allocation13] sm:$0xff] }
 0x202   :  { %5622 = vmatpush.bf16.msrb.mxu0 %v8560_v43  ;;  %v7723_v43 = vld [vmem:[#allocation11 + $0xb0] sm:$0xf] }
 0x203   :  { %5596 = vmatpush.bf16.msra.mxu2 %v8112_v59  ;;  %5631 = vmatpush.bf16.msrb.mxu1 %v8896_v38  ;;  %v8389_v59 = vld [vmem:[#allocation11 + $0x604] sm:$0xf0]  ;;  %v7724_v62 = vor.u32 %v9773_v55, %v7723_v43  ;;  %v10126_v43 = vld [vmem:[#allocation11 + $0xbd4] sm:$0xf]  ;;  %v8031_v55 = vld [vmem:[#allocation11 + $0x318] sm:$0xf] }
 0x204   :  { %5605 = vmatpush.bf16.msra.mxu3 %v8448_v22  ;;  %v8392_v16 = vor.u32 %v9937_v49, %v8389_v59  ;;  %v9173_v38 = vld [vmem:[#allocation11 + $0xc24] sm:$0xf0]  ;;  %v7640_v22 = vor.u32 %v9752_v13, %v7639_v32  ;;  %v9145_v49 = vld [vmem:[#allocation11 + $0xbec] sm:$0xf0]  ;;  %v8703_v59 = vld [vmem:[#allocation11 + $0x858] sm:$0xf] }
 0x205   :  { %v9176_v48 = vor.u32 %v10133_v33, %v9173_v38  ;;  %v9061_v32 = vld [vmem:[#allocation11 + $0xb44] sm:$0xf0]  ;;  %v8619_v13 = vld [vmem:[#allocation11 + $0x7b0] sm:$0xf]  ;;  %v907_v33 = vperm.slane %v10639_v58, 7 }
 0x206   :  { %5623 = vmatpush.bf16.msrb.mxu0 %v8532_v6  ;;  %v10661_v29 = vpop.f32.mrf.mxu0  ;;  %v8812_v6 = vor.u32 %v10042_v63, %v8809_v34  ;;  %v9148_v34 = vor.u32 %v10126_v43, %v9145_v49  ;;  %v7891_v49 = vld [vmem:[#allocation11 + $0x200] sm:$0xf] }
 0x207   :  { %5597 = vmatpush.bf16.msra.mxu2 %v8084_v7  ;;  %5632 = vmatpush.bf16.msrb.mxu1 %v8868_v47  ;;  %v7696_v7 = vor.u32 %v9766_v51, %v7695_v4  ;;  %v8305_v47 = vld [vmem:[#allocation11 + $0x55c] sm:$0xf0]  ;;  %v8704_v4 = vor.u32 %v10018_v53, %v8703_v59  ;;  %v10119_v51 = vld [vmem:[#allocation11 + $0xb9c] sm:$0xf] }
 0x208   :  { %5606 = vmatpush.bf16.msra.mxu3 %v8420_v57  ;;  %v9850_v57 = vld [vmem:[#allocation11 + $0x330] sm:$0xf0]  ;;  %v9815_v59 = vld [vmem:[#allocation11 + $0x218] sm:$0xf0] }
 0x209   :  { %5624 = vmatmul.bf16.vlgmr.msrb.gmra.mxu0 %v10646_v42  ;;  %v8032_v63 = vor.u32 %v9850_v57, %v8031_v55  ;;  %v10091_v57 = vld [vmem:[#allocation11 + $0xabc] sm:$0xf] }
 0x20a   :  { %5668 = vmatpush.bf16.msra.mxu0 %v7836_v9  ;;  %5585 = vmatmul.bf16.vlgmr.msra.gmra.mxu1 %v10615_v54 }
 0x20b   :  { %5633 = vmatpush.bf16.msrb.mxu1 %v8840_v60  ;;  %v8308_v60 = vor.u32 %v9916_v46, %v8305_v47 }
 0x20c   :  { %5607 = vmatpush.bf16.msra.mxu3 %v8392_v16  ;;  %v8003_v16 = vld [vmem:[#allocation11 + $0x2e0] sm:$0xf] }
 0x20e   :  { %5669 = vmatpush.bf16.msra.mxu0 %v7808_v31  ;;  %v10666_v5 = vpop.f32.mrf.mxu1  ;;  %v2571_v9 = vpop.f32.mrf.mxu0  ;;  %v8753_v31 = vld [vmem:[#allocation11 + $0x8dc] sm:$0xf0] }
 0x20f   :  { %v2543_v17 = vpop.f32.mrf.mxu2  ;;  %5634 = vmatpush.bf16.msrb.mxu1 %v8812_v6  ;;  %v8756_v1 = vor.u32 %v10028_v45, %v8753_v31  ;;  %v8004_v6 = vor.u32 %v9843_v0, %v8003_v16  ;;  %v10112_v9 = vld [vmem:[#allocation11 + $0xb64] sm:$0xf]  ;;  %v10105_v45 = vld [vmem:[#allocation11 + $0xb2c] sm:$0xf]  ;;  %v7863_v16 = vld [vmem:[#allocation11 + $0x1c8] sm:$0xf] }
 0x210   :  { %v2544_v36 = vadd.f32 %v2543_v17, %v2531_v61  ;;  %5608 = vmatpush.bf16.msra.mxu3 %v8364_v24  ;;  %v10011_v17 = vld [vmem:[#allocation11 + $0x838] sm:$0xf0]  ;;  %v8647_v24 = vld [vmem:[#allocation11 + $0x7e8] sm:$0xf]  ;;  %v10004_v61 = vld [vmem:[#allocation11 + $0x800] sm:$0xf0]  ;;  %v9064_v37 = vor.u32 %v10105_v45, %v9061_v32 }
 0x211   :  { %v8676_v8 = vor.u32 %v10011_v17, %v8675_v3  ;;  %v9829_v31 = vld [vmem:[#allocation11 + $0x288] sm:$0xf0]  ;;  %v9808_v17 = vld [vmem:[#allocation11 + $0x1e0] sm:$0xf0]  ;;  %v7837_v45 = vld [vmem:[#allocation11 + $0x1ac] sm:$0xf0] }
 0x212   :  { %5670 = vmatpush.bf16.msra.mxu0 %v7780_v39  ;;  %v10025_v39 = vld [vmem:[#allocation11 + $0x8a8] sm:$0xf0] }
 0x213   :  { %v2556_v30 = vpop.f32.mrf.mxu3  ;;  %5635 = vmatpush.bf16.msrb.mxu1 %v8784_v20  ;;  %v8732_v56 = vor.u32 %v10025_v39, %v8731_v50  ;;  %v9092_v20 = vor.u32 %v10112_v9, %v9089_v14  ;;  %v10098_v50 = vld [vmem:[#allocation11 + $0xaf4] sm:$0xf]  ;;  %v7919_v39 = vld [vmem:[#allocation11 + $0x238] sm:$0xf]  ;;  %v10189_v9 = vld [vmem:[#allocation11 + $0xdcc] sm:$0xf] }
 0x214   :  { %v2557_v52 = vadd.f32 %v2556_v30, %v2544_v36  ;;  %5609 = vmatpush.bf16.msra.mxu3 %v8336_v27  ;;  %v7947_v30 = vld [vmem:[#allocation11 + $0x270] sm:$0xf]  ;;  %v9997_v27 = vld [vmem:[#allocation11 + $0x7c8] sm:$0xf0] }
 0x215   :  { %v7948_v35 = vor.u32 %v9829_v31, %v7947_v30  ;;  %v8620_v38 = vor.u32 %v9997_v27, %v8619_v13  ;;  %v8955_v14 = vld [vmem:[#allocation11 + $0xa50] sm:$0xf]  ;;  %v8284_v27 = vor.u32 %v9913_v11, %v8283_v10 }
 0x216   :  { %5671 = vmatpush.bf16.msra.mxu0 %v7752_v19  ;;  %v2618_v41 = vmax.f32 %v2557_v52, 0.0  ;;  %v2584_v18 = vpop.f32.mrf.mxu1  ;;  %v3142_v52 = vperm.slane %v10674_v25, 0  ;;  %v8171_v11 = vld [vmem:[#allocation11 + $0x430] sm:$0xf] }
 0x217   :  { %v2545_v15 = vpop.f32.mrf.mxu2  ;;  %5636 = vmatpush.bf16.msrb.mxu1 %v8756_v1  ;;  %v8591_v18 = vld [vmem:[#allocation11 + $0x778] sm:$0xf]  ;;  %v9990_v1 = vld [vmem:[#allocation11 + $0x790] sm:$0xf0] }
 0x218   :  { %v10669_v19 = vpack.c.bf16 %v2618_v41, %v2618_v41  ;;  %5610 = vmatpush.bf16.msra.mxu3 %v8308_v60  ;;  %v9822_v41 = vld [vmem:[#allocation11 + $0x250] sm:$0xf0]  ;;  %v9033_v15 = vld [vmem:[#allocation11 + $0xb0c] sm:$0xf0]  ;;  %v8592_v55 = vor.u32 %v9990_v1, %v8591_v18  ;;  %v9005_v60 = vld [vmem:[#allocation11 + $0xad4] sm:$0xf0] }
 0x219   :  { %v7920_v58 = vor.u32 %v9822_v41, %v7919_v39  ;;  %v9036_v43 = vor.u32 %v10098_v50, %v9033_v15  ;;  %v9906_v50 = vld [vmem:[#allocation11 + $0x4f0] sm:$0xf0]  ;;  %v8927_v39 = vld [vmem:[#allocation11 + $0xa18] sm:$0xf]  ;;  %v9791_v15 = vld [vmem:[#allocation11 + $0x15c] sm:$0xf] }
 0x21a   :  { %5672 = vmatpush.bf16.msra.mxu0 %v7724_v62  ;;  %5546 = vmatmul.bf16.vlgmr.msrb.gmra.mxu2 %v10669_v19  ;;  %v10074_v41 = vld [vmem:[#allocation11 + $0xa30] sm:$0xf0]  ;;  %v7809_v18 = vld [vmem:[#allocation11 + $0x174] sm:$0xf0] }
 0x21b   :  { %5681 = vmatpush.bf16.msra.mxu1 %v8060_v44  ;;  %v2558_v62 = vpop.f32.mrf.mxu3  ;;  %5642 = vmatpush.bf16.msrb.mxu2 %v9176_v48  ;;  %v2570_v44 = vadd.f32 %v10661_v29, %v907_v33  ;;  %v8563_v29 = vld [vmem:[#allocation11 + $0x740] sm:$0xf]  ;;  %v9369_v33 = vld [vmem:[#allocation11 + $0xdac] sm:$0xf0] }
 0x21c   :  { %5637 = vmatmul.bf16.vlgmr.msrb.gmra.mxu1 %v10657_v21  ;;  %v9983_v62 = vld [vmem:[#allocation11 + $0x758] sm:$0xf0] }
 0x21d   :  { %v2583_v53 = vadd.f32 %v10666_v5, %v2570_v44  ;;  %v8564_v3 = vor.u32 %v9983_v62, %v8563_v29  ;;  %v9397_v5 = vld [vmem:[#allocation11 + $0xde4] sm:$0xf0]  ;;  %v10168_v62 = vld [vmem:[#allocation11 + $0xd24] sm:$0xf] }
 0x21e   :  { %5673 = vmatpush.bf16.msra.mxu0 %v7696_v7  ;;  %v9120_v7 = vor.u32 %v10119_v51, %v9117_v2  ;;  %v8977_v51 = vld [vmem:[#allocation11 + $0xa9c] sm:$0xf0]  ;;  %v9008_v2 = vor.u32 %v10091_v57, %v9005_v60  ;;  %v9400_v13 = vor.u32 %v10189_v9, %v9397_v5  ;;  %v9285_v9 = vld [vmem:[#allocation11 + $0xd04] sm:$0xf0] }
 0x21f   :  { %5682 = vmatpush.bf16.msra.mxu1 %v8032_v63  ;;  %5643 = vmatpush.bf16.msrb.mxu2 %v9148_v34  ;;  %v7892_v34 = vor.u32 %v9815_v59, %v7891_v49  ;;  %v8899_v57 = vld [vmem:[#allocation11 + $0x9e0] sm:$0xf]  ;;  %v10067_v49 = vld [vmem:[#allocation11 + $0x9f8] sm:$0xf0]  ;;  %v9784_v59 = vld [vmem:[#allocation11 + $0x124] sm:$0xf] }
 0x222   :  { %5674 = vmatpush.bf16.msra.mxu0 %v7668_v28  ;;  %v8648_v28 = vor.u32 %v10004_v61, %v8647_v24  ;;  %v10081_v24 = vld [vmem:[#allocation11 + $0xa68] sm:$0xf0] }
 0x223   :  { %5683 = vmatpush.bf16.msra.mxu1 %v8004_v6  ;;  %5644 = vmatpush.bf16.msrb.mxu2 %v9120_v7  ;;  %v8535_v6 = vld [vmem:[#allocation11 + $0x708] sm:$0xf]  ;;  %v9976_v7 = vld [vmem:[#allocation11 + $0x720] sm:$0xf0] }
 0x224   :  { %v8536_v31 = vor.u32 %v9976_v7, %v8535_v6 }
 0x226   :  { %5675 = vmatpush.bf16.msra.mxu0 %v7640_v22  ;;  %v5469_v36 = vpop.f32.mrf.mxu0 }
 0x227   :  { %5684 = vmatpush.bf16.msra.mxu1 %v7976_v26  ;;  %5645 = vmatpush.bf16.msrb.mxu2 %v9092_v20  ;;  %v5470_v22 = vadd.f32 %v5469_v36, %v3142_v52  ;;  %v7864_v20 = vor.u32 %v9808_v17, %v7863_v16  ;;  %v10182_v52 = vld [vmem:[#allocation11 + $0xd94] sm:$0xf]  ;;  %v9892_v16 = vld [vmem:[#allocation11 + $0x480] sm:$0xf0]  ;;  %v7753_v17 = vld [vmem:[#allocation11 + $0x104] sm:$0xf0] }
 0x229   :  { %5676 = vmatmul.bf16.vlgmr.msra.gmra.mxu0 %v10611_v12 }
 0x22a   :  { %5720 = vmatpush.bf16.msrb.mxu0 %v8732_v56  ;;  %5598 = vmatmul.bf16.vlgmr.msra.gmra.mxu2 %v10631_v23 }
 0x22b   :  { %5685 = vmatpush.bf16.msra.mxu1 %v7948_v35  ;;  %5646 = vmatpush.bf16.msrb.mxu2 %v9064_v37  ;;  %v8956_v35 = vor.u32 %v10081_v24, %v8955_v14  ;;  %v9885_v14 = vld [vmem:[#allocation11 + $0x448] sm:$0xf0]  ;;  %v8843_v24 = vld [vmem:[#allocation11 + $0x970] sm:$0xf] }
 0x22e   :  { %5721 = vmatpush.bf16.msrb.mxu0 %v8704_v4  ;;  %v5482_v47 = vpop.f32.mrf.mxu1  ;;  %v5471_v56 = vpop.f32.mrf.mxu0  ;;  %v10084_v4 = vld [vmem:[#allocation11 + $0xa84] sm:$0xf] }
 0x22f   :  { %v2595_v46 = vpop.f32.mrf.mxu2  ;;  %v10680_v48 = vadd.f32 %v5482_v47, %v5470_v22  ;;  %5686 = vmatpush.bf16.msra.mxu1 %v7920_v58  ;;  %5647 = vmatpush.bf16.msrb.mxu2 %v9036_v43  ;;  %v8980_v30 = vor.u32 %v10084_v4, %v8977_v51  ;;  %v9372_v22 = vor.u32 %v10182_v52, %v9369_v33  ;;  %v9341_v47 = vld [vmem:[#allocation11 + $0xd74] sm:$0xf0]  ;;  %v8227_v43 = vld [vmem:[#allocation11 + $0x4a0] sm:$0xf]  ;;  %v8199_v51 = vld [vmem:[#allocation11 + $0x468] sm:$0xf] }
 0x230   :  { %v2596_v63 = vadd.f32 %v2595_v46, %v2583_v53  ;;  %v10175_v46 = vld [vmem:[#allocation11 + $0xd5c] sm:$0xf]  ;;  %v8928_v58 = vor.u32 %v10074_v41, %v8927_v39  ;;  %v7812_v56 = vor.u32 %v9791_v15, %v7809_v18  ;;  %v7781_v53 = vld [vmem:[#allocation11 + $0x13c] sm:$0xf0]  ;;  %v8200_v7 = vor.u32 %v9892_v16, %v8199_v51  ;;  %v9878_v52 = vld [vmem:[#allocation11 + $0x410] sm:$0xf0] }
 0x231   :  { %v9344_v60 = vor.u32 %v10175_v46, %v9341_v47  ;;  %v7784_v4 = vor.u32 %v9784_v59, %v7781_v53  ;;  %v8815_v33 = vld [vmem:[#allocation11 + $0x938] sm:$0xf]  ;;  %v10147_v18 = vld [vmem:[#allocation11 + $0xc7c] sm:$0xf]  ;;  %v8115_v46 = vld [vmem:[#allocation11 + $0x3c0] sm:$0xf] }
 0x232   :  { %5722 = vmatpush.bf16.msrb.mxu0 %v8676_v8  ;;  %v9871_v47 = vld [vmem:[#allocation11 + $0x3d8] sm:$0xf0]  ;;  %v9201_v53 = vld [vmem:[#allocation11 + $0xc5c] sm:$0xf0]  ;;  %v10032_v51 = vld [vmem:[#allocation11 + $0x8e0] sm:$0xf0] }
 0x233   :  { %v2608_v0 = vpop.f32.mrf.mxu3  ;;  %5687 = vmatpush.bf16.msra.mxu1 %v7892_v34  ;;  %5648 = vmatpush.bf16.msrb.mxu2 %v9008_v2  ;;  %v8900_v34 = vor.u32 %v10067_v49, %v8899_v57  ;;  %v10060_v2 = vld [vmem:[#allocation11 + $0x9c0] sm:$0xf0]  ;;  %v8116_v59 = vor.u32 %v9871_v47, %v8115_v46  ;;  %v9749_v16 = vld [vmem:[#allocation11 + $0xc] sm:$0xf]  ;;  %v8005_v46 = vld [vmem:[#allocation11 + $0x2fc] sm:$0xf0] }
 0x234   :  { %v2609_v8 = vadd.f32 %v2608_v0, %v2596_v63  ;;  %v9313_v63 = vld [vmem:[#allocation11 + $0xd3c] sm:$0xf0]  ;;  %v8871_v0 = vld [vmem:[#allocation11 + $0x9a8] sm:$0xf]  ;;  %v10140_v57 = vld [vmem:[#allocation11 + $0xc44] sm:$0xf] }
 0x235   :  { %v9316_v6 = vor.u32 %v10168_v62, %v9313_v63  ;;  %v8872_v5 = vor.u32 %v10060_v2, %v8871_v0  ;;  %v7641_v0 = vld [vmem:[#allocation11 + $0x24] sm:$0xf0]  ;;  %v8507_v2 = vld [vmem:[#allocation11 + $0x6d0] sm:$0xf]  ;;  %v10008_v47 = vld [vmem:[#allocation11 + $0x824] sm:$0xf] }
 0x236   :  { %5723 = vmatpush.bf16.msrb.mxu0 %v8648_v28  ;;  %v2619_v61 = vmax.f32 %v2609_v8, 0.0  ;;  %v5484_v36 = vpop.f32.mrf.mxu1  ;;  %v9798_v28 = vld [vmem:[#allocation11 + $0x194] sm:$0xf]  ;;  %v10161_v8 = vld [vmem:[#allocation11 + $0xcec] sm:$0xf] }
 0x237   :  { %v2597_v26 = vpop.f32.mrf.mxu2  ;;  %v7840_v37 = vor.u32 %v9798_v28, %v7837_v45  ;;  %5688 = vmatpush.bf16.msra.mxu1 %v7864_v20  ;;  %5649 = vmatpush.bf16.msrb.mxu2 %v8980_v30  ;;  %v7725_v36 = vld [vmem:[#allocation11 + $0xcc] sm:$0xf0]  ;;  %v9288_v20 = vor.u32 %v10161_v8, %v9285_v9  ;;  %v8172_v28 = vor.u32 %v9885_v14, %v8171_v11  ;;  %v10154_v45 = vld [vmem:[#allocation11 + $0xcb4] sm:$0xf] }
 0x238   :  { %v10683_v32 = vpack.c.bf16 %v2619_v61, %v2619_v61  ;;  %v10053_v61 = vld [vmem:[#allocation11 + $0x988] sm:$0xf0]  ;;  %v9770_v26 = vld [vmem:[#allocation11 + $0xb4] sm:$0xf]  ;;  %v9257_v30 = vld [vmem:[#allocation11 + $0xccc] sm:$0xf0]  ;;  %v9204_v9 = vor.u32 %v10140_v57, %v9201_v53 }
 0x239   :  { %v9260_v41 = vor.u32 %v10154_v45, %v9257_v30  ;;  %v9854_v8 = vld [vmem:[#allocation11 + $0x354] sm:$0xf]  ;;  %v8733_v14 = vld [vmem:[#allocation11 + $0x8ac] sm:$0xf0]  ;;  %v9948_v57 = vld [vmem:[#allocation11 + $0x640] sm:$0xf0] }
 0x23a   :  { %5724 = vmatpush.bf16.msrb.mxu0 %v8620_v38  ;;  %v8255_v38 = vld [vmem:[#allocation11 + $0x4d8] sm:$0xf]  ;;  %5559 = vmatmul.bf16.vlgmr.msrb.gmra.mxu3 %v10683_v32  ;;  %v10022_v11 = vld [vmem:[#allocation11 + $0x894] sm:$0xf]  ;;  %v10116_v53 = vld [vmem:[#allocation11 + $0xb80] sm:$0xf0] }
 0x23b   :  { %v2610_v1 = vpop.f32.mrf.mxu3  ;;  %5655 = vmatpush.bf16.msrb.mxu3 %v9400_v13  ;;  %5694 = vmatpush.bf16.msra.mxu2 %v8284_v27  ;;  %v8256_v44 = vor.u32 %v9906_v50, %v8255_v38  ;;  %v7728_v13 = vor.u32 %v9770_v26, %v7725_v36  ;;  %v8143_v27 = vld [vmem:[#allocation11 + $0x3f8] sm:$0xf]  ;;  %v8736_v30 = vor.u32 %v10022_v11, %v8733_v14  ;;  %v8621_v11 = vld [vmem:[#allocation11 + $0x7cc] sm:$0xf0] }
 0x23c   :  { %5733 = vmatpush.bf16.msrb.mxu1 %v8956_v35  ;;  %5650 = vmatmul.bf16.vlgmr.msrb.gmra.mxu2 %v10669_v19  ;;  %v10046_v35 = vld [vmem:[#allocation11 + $0x950] sm:$0xf0]  ;;  %v7697_v38 = vld [vmem:[#allocation11 + $0x94] sm:$0xf0]  ;;  %v8144_v15 = vor.u32 %v9878_v52, %v8143_v27  ;;  %v9847_v27 = vld [vmem:[#allocation11 + $0x31c] sm:$0xf] }
 0x23d   :  { %5689 = vmatmul.bf16.vlgmr.msra.gmra.mxu1 %v10615_v54  ;;  %v9229_v1 = vld [vmem:[#allocation11 + $0xc94] sm:$0xf0] }
 0x23e   :  { %5725 = vmatpush.bf16.msrb.mxu0 %v8592_v55  ;;  %v9899_v55 = vld [vmem:[#allocation11 + $0x4b8] sm:$0xf0]  ;;  %v9232_v49 = vor.u32 %v10147_v18, %v9229_v1  ;;  %v9123_v1 = vld [vmem:[#allocation11 + $0xba0] sm:$0xf] }
 0x23f   :  { %5656 = vmatpush.bf16.msrb.mxu3 %v9372_v22  ;;  %5695 = vmatpush.bf16.msra.mxu2 %v8256_v44  ;;  %v8228_v29 = vor.u32 %v9899_v55, %v8227_v43  ;;  %v8816_v22 = vor.u32 %v10046_v35, %v8815_v33  ;;  %v9756_v43 = vld [vmem:[#allocation11 + $0x44] sm:$0xf]  ;;  %v7669_v55 = vld [vmem:[#allocation11 + $0x5c] sm:$0xf0]  ;;  %v8033_v33 = vld [vmem:[#allocation11 + $0x334] sm:$0xf0] }
 0x240   :  { %5734 = vmatpush.bf16.msrb.mxu1 %v8928_v58  ;;  %v8787_v58 = vld [vmem:[#allocation11 + $0x900] sm:$0xf]  ;;  %v10015_v35 = vld [vmem:[#allocation11 + $0x85c] sm:$0xf] }
 0x242   :  { %5726 = vmatpush.bf16.msrb.mxu0 %v8564_v3  ;;  %v9777_v3 = vld [vmem:[#allocation11 + $0xec] sm:$0xf] }
 0x243   :  { %5657 = vmatpush.bf16.msrb.mxu3 %v9344_v60  ;;  %5696 = vmatpush.bf16.msra.mxu2 %v8228_v29  ;;  %v7756_v10 = vor.u32 %v9777_v3, %v7753_v17  ;;  %v8087_v60 = vld [vmem:[#allocation11 + $0x388] sm:$0xf]  ;;  %v9864_v29 = vld [vmem:[#allocation11 + $0x3a0] sm:$0xf0]  ;;  %v9969_v3 = vld [vmem:[#allocation11 + $0x6e8] sm:$0xf0] }
 0x244   :  { %5735 = vmatpush.bf16.msrb.mxu1 %v8900_v34  ;;  %v7672_v34 = vor.u32 %v9756_v43, %v7669_v55  ;;  %v8508_v26 = vor.u32 %v9969_v3, %v8507_v2  ;;  %v8423_v55 = vld [vmem:[#allocation11 + $0x628] sm:$0xf]  ;;  %v8395_v2 = vld [vmem:[#allocation11 + $0x5f0] sm:$0xf]  ;;  %v9941_v3 = vld [vmem:[#allocation11 + $0x608] sm:$0xf0] }
 0x246   :  { %5727 = vmatpush.bf16.msrb.mxu0 %v8536_v31  ;;  %v8844_v31 = vor.u32 %v10053_v61, %v8843_v24  ;;  %v7644_v61 = vor.u32 %v9749_v16, %v7641_v0  ;;  %v8424_v16 = vor.u32 %v9948_v57, %v8423_v55 }
 0x247   :  { %5658 = vmatpush.bf16.msrb.mxu3 %v9316_v6  ;;  %5697 = vmatpush.bf16.msra.mxu2 %v8200_v7  ;;  %v9179_v6 = vld [vmem:[#allocation11 + $0xc10] sm:$0xf]  ;;  %v10137_v7 = vld [vmem:[#allocation11 + $0xc28] sm:$0xf0] }
 0x248   :  { %5736 = vmatpush.bf16.msrb.mxu1 %v8872_v5  ;;  %v8088_v5 = vor.u32 %v9864_v29, %v8087_v60  ;;  %v9180_v36 = vor.u32 %v10137_v7, %v9179_v6  ;;  %v9833_v60 = vld [vmem:[#allocation11 + $0x2ac] sm:$0xf]  ;;  %v9067_v7 = vld [vmem:[#allocation11 + $0xb30] sm:$0xf] }
 0x249   :  { %5728 = vmatmul.bf16.vlgmr.msrb.gmra.mxu0 %v10646_v42 }
 0x24a   :  { %5772 = vmatpush.bf16.msra.mxu0 %v7840_v37  ;;  %5611 = vmatmul.bf16.vlgmr.msra.gmra.mxu3 %v10634_v40  ;;  %v9763_v37 = vld [vmem:[#allocation11 + $0x7c] sm:$0xf] }
 0x24b   :  { %5659 = vmatpush.bf16.msrb.mxu3 %v9288_v20  ;;  %5698 = vmatpush.bf16.msra.mxu2 %v8172_v28  ;;  %v7700_v44 = vor.u32 %v9763_v37, %v7697_v38  ;;  %v8479_v20 = vld [vmem:[#allocation11 + $0x698] sm:$0xf]  ;;  %v9962_v28 = vld [vmem:[#allocation11 + $0x6b0] sm:$0xf0] }
 0x24c   :  { %5737 = vmatpush.bf16.msrb.mxu1 %v8844_v31  ;;  %v9151_v31 = vld [vmem:[#allocation11 + $0xbd8] sm:$0xf]  ;;  %v8480_v38 = vor.u32 %v9962_v28, %v8479_v20  ;;  %v10102_v28 = vld [vmem:[#allocation11 + $0xb10] sm:$0xf0] }
 0x24d   :  { %v8705_v37 = vld [vmem:[#allocation11 + $0x874] sm:$0xf0] }
 0x24e   :  { %5773 = vmatpush.bf16.msra.mxu0 %v7812_v56  ;;  %v10039_v56 = vld [vmem:[#allocation11 + $0x918] sm:$0xf0]  ;;  %v8708_v18 = vor.u32 %v10015_v35, %v8705_v37  ;;  %v9039_v20 = vld [vmem:[#allocation11 + $0xaf8] sm:$0xf]  ;;  %v8339_v35 = vld [vmem:[#allocation11 + $0x580] sm:$0xf] }
 0x24f   :  { %v5495_v50 = vpop.f32.mrf.mxu2  ;;  %5660 = vmatpush.bf16.msrb.mxu3 %v9260_v41  ;;  %5699 = vmatpush.bf16.msra.mxu2 %v8144_v15  ;;  %v8788_v63 = vor.u32 %v10039_v56, %v8787_v58  ;;  %v9955_v41 = vld [vmem:[#allocation11 + $0x678] sm:$0xf0]  ;;  %v8036_v15 = vor.u32 %v9847_v27, %v8033_v33  ;;  %v8677_v58 = vld [vmem:[#allocation11 + $0x83c] sm:$0xf0]  ;;  %v8593_v27 = vld [vmem:[#allocation11 + $0x794] sm:$0xf0]  ;;  %v9040_v33 = vor.u32 %v10102_v28, %v9039_v20 }
 0x250   :  { %v5496_v39 = vadd.f32 %v5495_v50, %v10680_v48  ;;  %5738 = vmatpush.bf16.msrb.mxu1 %v8816_v22  ;;  %v10123_v22 = vld [vmem:[#allocation11 + $0xbb8] sm:$0xf0]  ;;  %v7815_v20 = vld [vmem:[#allocation11 + $0x160] sm:$0xf] }
 0x251   :  { %v9124_v43 = vor.u32 %v10123_v22, %v9123_v1  ;;  %v9927_v37 = vld [vmem:[#allocation11 + $0x598] sm:$0xf0]  ;;  %v9980_v1 = vld [vmem:[#allocation11 + $0x744] sm:$0xf]  ;;  %v8565_v22 = vld [vmem:[#allocation11 + $0x75c] sm:$0xf0] }
 0x252   :  { %5774 = vmatpush.bf16.msra.mxu0 %v7784_v4  ;;  %v8759_v4 = vld [vmem:[#allocation11 + $0x8c8] sm:$0xf]  ;;  %v8568_v57 = vor.u32 %v9980_v1, %v8565_v22  ;;  %v9795_v28 = vld [vmem:[#allocation11 + $0x178] sm:$0xf0]  ;;  %v10172_v22 = vld [vmem:[#allocation11 + $0xd40] sm:$0xf0] }
 0x253   :  { %v5508_v48 = vpop.f32.mrf.mxu3  ;;  %5661 = vmatpush.bf16.msrb.mxu3 %v9232_v49  ;;  %5700 = vmatpush.bf16.msra.mxu2 %v8116_v59  ;;  %v8760_v24 = vor.u32 %v10032_v51, %v8759_v4  ;;  %v8680_v49 = vor.u32 %v10008_v47, %v8677_v58  ;;  %v9095_v59 = vld [vmem:[#allocation11 + $0xb68] sm:$0xf]  ;;  %v9920_v58 = vld [vmem:[#allocation11 + $0x560] sm:$0xf0] }
 0x254   :  { %v10691_v62 = vadd.f32 %v5508_v48, %v5496_v39  ;;  %5739 = vmatpush.bf16.msrb.mxu1 %v8788_v63  ;;  %v8451_v39 = vld [vmem:[#allocation11 + $0x660] sm:$0xf]  ;;  %v7977_v63 = vld [vmem:[#allocation11 + $0x2c4] sm:$0xf0]  ;;  %v9096_v0 = vor.u32 %v10116_v53, %v9095_v59  ;;  %v9973_v59 = vld [vmem:[#allocation11 + $0x70c] sm:$0xf] }
 0x255   :  { %v8452_v56 = vor.u32 %v9955_v41, %v8451_v39  ;;  %v8649_v4 = vld [vmem:[#allocation11 + $0x804] sm:$0xf0]  ;;  %v9011_v39 = vld [vmem:[#allocation11 + $0xac0] sm:$0xf]  ;;  %v10095_v41 = vld [vmem:[#allocation11 + $0xad8] sm:$0xf0] }
 0x256   :  { %5775 = vmatpush.bf16.msra.mxu0 %v7756_v10  ;;  %v8061_v10 = vld [vmem:[#allocation11 + $0x36c] sm:$0xf0]  ;;  %v9012_v47 = vor.u32 %v10095_v41, %v9011_v39  ;;  %v7787_v39 = vld [vmem:[#allocation11 + $0x128] sm:$0xf]  ;;  %v9788_v41 = vld [vmem:[#allocation11 + $0x140] sm:$0xf0] }
 0x257   :  { %v5497_v17 = vpop.f32.mrf.mxu2  ;;  %v8064_v45 = vor.u32 %v9854_v8, %v8061_v10  ;;  %5662 = vmatpush.bf16.msrb.mxu3 %v9204_v9  ;;  %5701 = vmatpush.bf16.msra.mxu2 %v8088_v5  ;;  %v10109_v8 = vld [vmem:[#allocation11 + $0xb48] sm:$0xf0]  ;;  %v9826_v9 = vld [vmem:[#allocation11 + $0x274] sm:$0xf]  ;;  %v7949_v5 = vld [vmem:[#allocation11 + $0x28c] sm:$0xf0] }
 0x258   :  { %5740 = vmatpush.bf16.msrb.mxu1 %v8760_v24  ;;  %v5521_v29 = vpop.f32.mrf.mxu0  ;;  %v7980_v17 = vor.u32 %v9833_v60, %v7977_v63  ;;  %v9994_v10 = vld [vmem:[#allocation11 + $0x7b4] sm:$0xf]  ;;  %v9068_v14 = vor.u32 %v10109_v8, %v9067_v7  ;;  %v8367_v24 = vld [vmem:[#allocation11 + $0x5b8] sm:$0xf]  ;;  %v8537_v60 = vld [vmem:[#allocation11 + $0x724] sm:$0xf0] }
 0x259   :  { %v10698_v51 = vadd.f32 %v5521_v29, %v10691_v62  ;;  %v8396_v62 = vor.u32 %v9941_v3, %v8395_v2  ;;  %v9403_v29 = vld [vmem:[#allocation11 + $0xdd0] sm:$0xf]  ;;  %v10193_v63 = vld [vmem:[#allocation11 + $0xde8] sm:$0xf0]  ;;  %v8540_v8 = vor.u32 %v9973_v59, %v8537_v60  ;;  %v9319_v1 = vld [vmem:[#allocation11 + $0xd28] sm:$0xf] }
 0x25a   :  { %5776 = vmatpush.bf16.msra.mxu0 %v7728_v13  ;;  %v10130_v13 = vld [vmem:[#allocation11 + $0xbf0] sm:$0xf0]  ;;  %5702 = vmatmul.bf16.vlgmr.msra.gmra.mxu2 %v10631_v23  ;;  %v8957_v3 = vld [vmem:[#allocation11 + $0xa6c] sm:$0xf0]  ;;  %v9320_v60 = vor.u32 %v10172_v22, %v9319_v1  ;;  %v10144_v22 = vld [vmem:[#allocation11 + $0xc60] sm:$0xf0] }
 0x25b   :  { %v5510_v52 = vpop.f32.mrf.mxu3  ;;  %5707 = vmatpush.bf16.msra.mxu3 %v8508_v26  ;;  %5746 = vmatpush.bf16.msrb.mxu2 %v9180_v36  ;;  %v9152_v50 = vor.u32 %v10130_v13, %v9151_v31  ;;  %v7952_v26 = vor.u32 %v9826_v9, %v7949_v5  ;;  %v8624_v36 = vor.u32 %v9994_v10, %v8621_v11  ;;  %v7921_v31 = vld [vmem:[#allocation11 + $0x254] sm:$0xf0]  ;;  %v9987_v13 = vld [vmem:[#allocation11 + $0x77c] sm:$0xf]  ;;  %v10186_v11 = vld [vmem:[#allocation11 + $0xdb0] sm:$0xf0] }
 0x25c   :  { %5785 = vmatpush.bf16.msra.mxu1 %v8064_v45  ;;  %5663 = vmatmul.bf16.vlgmr.msrb.gmra.mxu3 %v10683_v32  ;;  %v9819_v45 = vld [vmem:[#allocation11 + $0x23c] sm:$0xf]  ;;  %v9404_v9 = vor.u32 %v10193_v63, %v9403_v29  ;;  %v9375_v10 = vld [vmem:[#allocation11 + $0xd98] sm:$0xf]  ;;  %v9291_v63 = vld [vmem:[#allocation11 + $0xcf0] sm:$0xf] }
 0x25d   :  { %5741 = vmatmul.bf16.vlgmr.msrb.gmra.mxu1 %v10657_v21 }
 0x25e   :  { %5777 = vmatpush.bf16.msra.mxu0 %v7700_v44  ;;  %v9840_v44 = vld [vmem:[#allocation11 + $0x2e4] sm:$0xf] }
 0x25f   :  { %5708 = vmatpush.bf16.msra.mxu3 %v8480_v38  ;;  %5747 = vmatpush.bf16.msrb.mxu2 %v9152_v50  ;;  %v8008_v48 = vor.u32 %v9840_v44, %v8005_v46  ;;  %v7924_v38 = vor.u32 %v9819_v45, %v7921_v31  ;;  %v8596_v50 = vor.u32 %v9987_v13, %v8593_v27  ;;  %v8311_v44 = vld [vmem:[#allocation11 + $0x548] sm:$0xf]  ;;  %v9347_v13 = vld [vmem:[#allocation11 + $0xd60] sm:$0xf]  ;;  %v10179_v27 = vld [vmem:[#allocation11 + $0xd78] sm:$0xf0] }
 0x260   :  { %5786 = vmatpush.bf16.msra.mxu1 %v8036_v15  ;;  %v9812_v15 = vld [vmem:[#allocation11 + $0x204] sm:$0xf]  ;;  %v8340_v46 = vor.u32 %v9927_v37, %v8339_v35  ;;  %v8229_v37 = vld [vmem:[#allocation11 + $0x4bc] sm:$0xf0] }
 0x261   :  { %v9896_v35 = vld [vmem:[#allocation11 + $0x4a4] sm:$0xf] }
 0x262   :  { %5778 = vmatpush.bf16.msra.mxu0 %v7672_v34  ;;  %v10001_v34 = vld [vmem:[#allocation11 + $0x7ec] sm:$0xf] }
 0x263   :  { %5709 = vmatpush.bf16.msra.mxu3 %v8452_v56  ;;  %5748 = vmatpush.bf16.msrb.mxu2 %v9124_v43  ;;  %v8652_v6 = vor.u32 %v10001_v34, %v8649_v4  ;;  %v8983_v56 = vld [vmem:[#allocation11 + $0xa88] sm:$0xf]  ;;  %v10088_v43 = vld [vmem:[#allocation11 + $0xaa0] sm:$0xf0]  ;;  %v9910_v34 = vld [vmem:[#allocation11 + $0x514] sm:$0xf] }
 0x264   :  { %5787 = vmatpush.bf16.msra.mxu1 %v8008_v48  ;;  %v9805_v48 = vld [vmem:[#allocation11 + $0x1cc] sm:$0xf]  ;;  %v8285_v4 = vld [vmem:[#allocation11 + $0x52c] sm:$0xf0]  ;;  %v8984_v2 = vor.u32 %v10088_v43, %v8983_v56  ;;  %v8201_v56 = vld [vmem:[#allocation11 + $0x484] sm:$0xf0] }
 0x265   :  { %v8288_v5 = vor.u32 %v9910_v34, %v8285_v4  ;;  %v10057_v43 = vld [vmem:[#allocation11 + $0x9ac] sm:$0xf] }
 0x266   :  { %5779 = vmatpush.bf16.msra.mxu0 %v7644_v61  ;;  %v9934_v61 = vld [vmem:[#allocation11 + $0x5d0] sm:$0xf0]  ;;  %v10165_v34 = vld [vmem:[#allocation11 + $0xd08] sm:$0xf0] }
 0x267   :  { %5710 = vmatpush.bf16.msra.mxu3 %v8424_v16  ;;  %5749 = vmatpush.bf16.msrb.mxu2 %v9096_v0  ;;  %v8368_v52 = vor.u32 %v9934_v61, %v8367_v24  ;;  %v10078_v16 = vld [vmem:[#allocation11 + $0xa54] sm:$0xf]  ;;  %v8312_v0 = vor.u32 %v9920_v58, %v8311_v44  ;;  %v9903_v24 = vld [vmem:[#allocation11 + $0x4dc] sm:$0xf]  ;;  %v8257_v61 = vld [vmem:[#allocation11 + $0x4f4] sm:$0xf0] }
 0x268   :  { %5788 = vmatpush.bf16.msra.mxu1 %v7980_v17  ;;  %v7843_v17 = vld [vmem:[#allocation11 + $0x198] sm:$0xf]  ;;  %v8260_v31 = vor.u32 %v9903_v24, %v8257_v61  ;;  %v9889_v58 = vld [vmem:[#allocation11 + $0x46c] sm:$0xf]  ;;  %v10043_v61 = vld [vmem:[#allocation11 + $0x93c] sm:$0xf] }
 0x269   :  { %5780 = vmatmul.bf16.vlgmr.msra.gmra.mxu0 %v10611_v12  ;;  %v8204_v29 = vor.u32 %v9889_v58, %v8201_v56  ;;  %v8145_v24 = vld [vmem:[#allocation11 + $0x414] sm:$0xf0] }
 0x26a   :  { %5824 = vmatpush.bf16.msrb.mxu0 %v8736_v30  ;;  %v5523_v30 = vpop.f32.mrf.mxu0 }
 0x26b   :  { %5711 = vmatpush.bf16.msra.mxu3 %v8396_v62  ;;  %5750 = vmatpush.bf16.msrb.mxu2 %v9068_v14  ;;  %v8960_v62 = vor.u32 %v10078_v16, %v8957_v3  ;;  %v9376_v30 = vor.u32 %v10186_v11, %v9375_v10  ;;  %v10050_v3 = vld [vmem:[#allocation11 + $0x974] sm:$0xf] }
 0x26c   :  { %5789 = vmatpush.bf16.msra.mxu1 %v7952_v26  ;;  %v10071_v26 = vld [vmem:[#allocation11 + $0xa1c] sm:$0xf] }
 0x26e   :  { %5825 = vmatpush.bf16.msrb.mxu0 %v8708_v18  ;;  %v7893_v18 = vld [vmem:[#allocation11 + $0x21c] sm:$0xf0] }
 0x26f   :  { %5712 = vmatpush.bf16.msra.mxu3 %v8368_v52  ;;  %5751 = vmatpush.bf16.msrb.mxu2 %v9040_v33  ;;  %v7896_v55 = vor.u32 %v9812_v15, %v7893_v18  ;;  %v7816_v33 = vor.u32 %v9795_v28, %v7815_v20  ;;  %v9348_v15 = vor.u32 %v10179_v27, %v9347_v13  ;;  %v9767_v20 = vld [vmem:[#allocation11 + $0x98] sm:$0xf0]  ;;  %v3143_v28 = vperm.slane %v10674_v25, 1  ;;  %v9235_v13 = vld [vmem:[#allocation11 + $0xc80] sm:$0xf] }
 0x270   :  { %5790 = vmatpush.bf16.msra.mxu1 %v7924_v38  ;;  %v10064_v38 = vld [vmem:[#allocation11 + $0x9e4] sm:$0xf]  ;;  %v8232_v18 = vor.u32 %v9896_v35, %v8229_v37  ;;  %v10151_v27 = vld [vmem:[#allocation11 + $0xc98] sm:$0xf0]  ;;  %v8117_v37 = vld [vmem:[#allocation11 + $0x3dc] sm:$0xf0] }
 0x271   :  { %v9868_v35 = vld [vmem:[#allocation11 + $0x3c4] sm:$0xf] }
 0x272   :  { %5826 = vmatpush.bf16.msrb.mxu0 %v8680_v49  ;;  %v7865_v49 = vld [vmem:[#allocation11 + $0x1e4] sm:$0xf0]  ;;  %v10700_v53 = vpop.f32.mrf.mxu0  ;;  %v8120_v1 = vor.u32 %v9868_v35, %v8117_v37  ;;  %v9844_v37 = vld [vmem:[#allocation11 + $0x300] sm:$0xf0] }
 0x273   :  { %5713 = vmatpush.bf16.msra.mxu3 %v8340_v46  ;;  %5752 = vmatpush.bf16.msrb.mxu2 %v9012_v47  ;;  %v7868_v7 = vor.u32 %v9805_v48, %v7865_v49  ;;  %v7788_v46 = vor.u32 %v9788_v41, %v7787_v39  ;;  %v7759_v48 = vld [vmem:[#allocation11 + $0xf0] sm:$0xf]  ;;  %v9781_v49 = vld [vmem:[#allocation11 + $0x108] sm:$0xf0]  ;;  %v7675_v39 = vld [vmem:[#allocation11 + $0x48] sm:$0xf]  ;;  %v5574_v25 = vadd.f32 %v10700_v53, %v3143_v28 }
 0x274   :  { %5791 = vmatpush.bf16.msra.mxu1 %v7896_v55  ;;  %v7760_v16 = vor.u32 %v9781_v49, %v7759_v48  ;;  %v9760_v41 = vld [vmem:[#allocation11 + $0x60] sm:$0xf0]  ;;  %v7647_v48 = vld [vmem:[#allocation11 + $0x10] sm:$0xf]  ;;  %v8011_v35 = vld [vmem:[#allocation11 + $0x2e8] sm:$0xf] }
 0x275   :  { %v7676_v58 = vor.u32 %v9760_v41, %v7675_v39  ;;  %v8509_v53 = vld [vmem:[#allocation11 + $0x6ec] sm:$0xf0] }
 0x276   :  { %5827 = vmatpush.bf16.msrb.mxu0 %v8652_v6  ;;  %v9802_v6 = vld [vmem:[#allocation11 + $0x1b0] sm:$0xf0] }
 0x277   :  { %v7844_v14 = vor.u32 %v9802_v6, %v7843_v17  ;;  %5714 = vmatpush.bf16.msra.mxu3 %v8312_v0  ;;  %5753 = vmatpush.bf16.msrb.mxu2 %v8984_v2  ;;  %v5534_v47 = vpop.f32.mrf.mxu1  ;;  %v9882_v0 = vld [vmem:[#allocation11 + $0x434] sm:$0xf]  ;;  %v8173_v2 = vld [vmem:[#allocation11 + $0x44c] sm:$0xf0]  ;;  %v7731_v17 = vld [vmem:[#allocation11 + $0xb8] sm:$0xf] }
 0x278   :  { %5792 = vmatpush.bf16.msra.mxu1 %v7868_v7  ;;  %v10707_v55 = vadd.f32 %v5534_v47, %v10698_v51  ;;  %v8845_v51 = vld [vmem:[#allocation11 + $0x98c] sm:$0xf0]  ;;  %v9774_v6 = vld [vmem:[#allocation11 + $0xd0] sm:$0xf0]  ;;  %v9292_v7 = vor.u32 %v10165_v34, %v9291_v63 }
 0x279   :  { %v8848_v10 = vor.u32 %v10050_v3, %v8845_v51  ;;  %v7732_v11 = vor.u32 %v9774_v6, %v7731_v17  ;;  %v10134_v63 = vld [vmem:[#allocation11 + $0xc14] sm:$0xf]  ;;  %v9181_v34 = vld [vmem:[#allocation11 + $0xc2c] sm:$0xf0]  ;;  %v8739_v3 = vld [vmem:[#allocation11 + $0x898] sm:$0xf] }
 0x27a   :  { %5828 = vmatpush.bf16.msrb.mxu0 %v8624_v36  ;;  %v8929_v36 = vld [vmem:[#allocation11 + $0xa34] sm:$0xf0]  ;;  %v5575_v45 = vpop.f32.mrf.mxu0  ;;  %5715 = vmatmul.bf16.vlgmr.msra.gmra.mxu3 %v10634_v40  ;;  %v10026_v51 = vld [vmem:[#allocation11 + $0x8b0] sm:$0xf0] }
 0x27b   :  { %5759 = vmatpush.bf16.msrb.mxu3 %v9404_v9  ;;  %5798 = vmatpush.bf16.msra.mxu2 %v8288_v5  ;;  %v8932_v52 = vor.u32 %v10071_v26, %v8929_v36  ;;  %v9263_v9 = vld [vmem:[#allocation11 + $0xcb8] sm:$0xf]  ;;  %v10158_v5 = vld [vmem:[#allocation11 + $0xcd0] sm:$0xf0]  ;;  %v7703_v36 = vld [vmem:[#allocation11 + $0x80] sm:$0xf] }
 0x27c   :  { %5837 = vmatpush.bf16.msrb.mxu1 %v8960_v62  ;;  %5754 = vmatmul.bf16.vlgmr.msrb.gmra.mxu2 %v10669_v19  ;;  %v8817_v26 = vld [vmem:[#allocation11 + $0x954] sm:$0xf0] }
 0x27d   :  { %5793 = vmatmul.bf16.vlgmr.msra.gmra.mxu1 %v10615_v54 }
 0x27e   :  { %5829 = vmatpush.bf16.msrb.mxu0 %v8596_v50  ;;  %v8901_v50 = vld [vmem:[#allocation11 + $0x9fc] sm:$0xf0] }
 0x27f   :  { %5760 = vmatpush.bf16.msrb.mxu3 %v9376_v30  ;;  %5799 = vmatpush.bf16.msra.mxu2 %v8260_v31  ;;  %v8904_v44 = vor.u32 %v10064_v38, %v8901_v50  ;;  %v5536_v62 = vpop.f32.mrf.mxu1  ;;  %v9264_v30 = vor.u32 %v10158_v5, %v9263_v9  ;;  %v10036_v38 = vld [vmem:[#allocation11 + $0x904] sm:$0xf]  ;;  %v8789_v50 = vld [vmem:[#allocation11 + $0x91c] sm:$0xf0]  ;;  %v9959_v9 = vld [vmem:[#allocation11 + $0x69c] sm:$0xf] }
 0x280   :  { %5838 = vmatpush.bf16.msrb.mxu1 %v8932_v52  ;;  %v8820_v52 = vor.u32 %v10043_v61, %v8817_v26  ;;  %v8792_v47 = vor.u32 %v10036_v38, %v8789_v50  ;;  %v8481_v5 = vld [vmem:[#allocation11 + $0x6b4] sm:$0xf0]  ;;  %v10127_v62 = vld [vmem:[#allocation11 + $0xbdc] sm:$0xf]  ;;  %v8711_v26 = vld [vmem:[#allocation11 + $0x860] sm:$0xf] }
 0x281   :  { %v9851_v61 = vld [vmem:[#allocation11 + $0x338] sm:$0xf0]  ;;  %v8484_v28 = vor.u32 %v9959_v9, %v8481_v5  ;;  %v8683_v38 = vld [vmem:[#allocation11 + $0x828] sm:$0xf]  ;;  %v10012_v50 = vld [vmem:[#allocation11 + $0x840] sm:$0xf0] }
 0x282   :  { %5830 = vmatpush.bf16.msrb.mxu0 %v8568_v57  ;;  %v8873_v57 = vld [vmem:[#allocation11 + $0x9c4] sm:$0xf0]  ;;  %v8369_v9 = vld [vmem:[#allocation11 + $0x5d4] sm:$0xf0] }
 0x283   :  { %5761 = vmatpush.bf16.msrb.mxu3 %v9348_v15  ;;  %5800 = vmatpush.bf16.msra.mxu2 %v8232_v18  ;;  %v8876_v4 = vor.u32 %v10057_v43, %v8873_v57  ;;  %v9207_v15 = vld [vmem:[#allocation11 + $0xc48] sm:$0xf]  ;;  %v9236_v18 = vor.u32 %v10151_v27, %v9235_v13  ;;  %v10029_v43 = vld [vmem:[#allocation11 + $0x8cc] sm:$0xf] }
 0x284   :  { %5839 = vmatpush.bf16.msrb.mxu1 %v8904_v44  ;;  %v9861_v44 = vld [vmem:[#allocation11 + $0x38c] sm:$0xf]  ;;  %v8761_v57 = vld [vmem:[#allocation11 + $0x8e4] sm:$0xf0] }
 0x285   :  { %v8764_v17 = vor.u32 %v10029_v43, %v8761_v57 }
 0x286   :  { %5831 = vmatpush.bf16.msrb.mxu0 %v8540_v8  ;;  %v10709_v59 = vpop.f32.mrf.mxu0  ;;  %v8176_v8 = vor.u32 %v9882_v0, %v8173_v2  ;;  %v9858_v2 = vld [vmem:[#allocation11 + $0x370] sm:$0xf0] }
 0x287   :  { %5762 = vmatpush.bf16.msrb.mxu3 %v9320_v60  ;;  %5801 = vmatpush.bf16.msra.mxu2 %v8204_v29  ;;  %v5586_v56 = vpop.f32.mrf.mxu1  ;;  %v9753_v60 = vld [vmem:[#allocation11 + $0x28] sm:$0xf0]  ;;  %v9966_v29 = vld [vmem:[#allocation11 + $0x6d4] sm:$0xf] }
 0x288   :  { %5840 = vmatpush.bf16.msrb.mxu1 %v8876_v4  ;;  %v10713_v49 = vadd.f32 %v5586_v56, %v5574_v25  ;;  %v8067_v4 = vld [vmem:[#allocation11 + $0x358] sm:$0xf]  ;;  %v7648_v6 = vor.u32 %v9753_v60, %v7647_v48  ;;  %v8425_v25 = vld [vmem:[#allocation11 + $0x644] sm:$0xf0]  ;;  %v10005_v56 = vld [vmem:[#allocation11 + $0x808] sm:$0xf0] }
 0x289   :  { %5832 = vmatmul.bf16.vlgmr.msrb.gmra.mxu0 %v10646_v42 }
 0x28a   :  { %5876 = vmatpush.bf16.msra.mxu0 %v7844_v14  ;;  %v9875_v14 = vld [vmem:[#allocation11 + $0x3fc] sm:$0xf] }
 0x28b   :  { %5763 = vmatpush.bf16.msrb.mxu3 %v9292_v7  ;;  %5802 = vmatpush.bf16.msra.mxu2 %v8176_v8  ;;  %v8148_v31 = vor.u32 %v9875_v14, %v8145_v24  ;;  %v8512_v7 = vor.u32 %v9966_v29, %v8509_v53  ;;  %v9184_v8 = vor.u32 %v10134_v63, %v9181_v34  ;;  %v9153_v14 = vld [vmem:[#allocation11 + $0xbf4] sm:$0xf0]  ;;  %v8039_v24 = vld [vmem:[#allocation11 + $0x320] sm:$0xf]  ;;  %v9938_v29 = vld [vmem:[#allocation11 + $0x5f4] sm:$0xf] }
 0x28c   :  { %5841 = vmatpush.bf16.msrb.mxu1 %v8848_v10  ;;  %v8068_v10 = vor.u32 %v9858_v2, %v8067_v4  ;;  %v8040_v13 = vor.u32 %v9851_v61, %v8039_v24  ;;  %v8397_v53 = vld [vmem:[#allocation11 + $0x60c] sm:$0xf0]  ;;  %v10106_v4 = vld [vmem:[#allocation11 + $0xb34] sm:$0xf]  ;;  %v9823_v24 = vld [vmem:[#allocation11 + $0x258] sm:$0xf0] }
 0x28d   :  { %v9830_v2 = vld [vmem:[#allocation11 + $0x290] sm:$0xf0]  ;;  %v8599_v61 = vld [vmem:[#allocation11 + $0x780] sm:$0xf] }
 0x28e   :  { %5877 = vmatpush.bf16.msra.mxu0 %v7816_v33  ;;  %v5627_v45 = vpop.f32.mrf.mxu0  ;;  %v7704_v33 = vor.u32 %v9767_v20, %v7703_v36  ;;  %v10019_v36 = vld [vmem:[#allocation11 + $0x878] sm:$0xf0] }
 0x28f   :  { %5764 = vmatpush.bf16.msrb.mxu3 %v9264_v30  ;;  %5803 = vmatpush.bf16.msra.mxu2 %v8148_v31  ;;  %v5588_v20 = vpop.f32.mrf.mxu1  ;;  %v9156_v45 = vor.u32 %v10127_v62, %v9153_v14  ;;  %v9952_v30 = vld [vmem:[#allocation11 + $0x664] sm:$0xf]  ;;  %v8453_v31 = vld [vmem:[#allocation11 + $0x67c] sm:$0xf0]  ;;  %v8712_v27 = vor.u32 %v10019_v36, %v8711_v26  ;;  %v9041_v62 = vld [vmem:[#allocation11 + $0xb14] sm:$0xf0] }
 0x290   :  { %5842 = vmatpush.bf16.msrb.mxu1 %v8820_v52  ;;  %v10120_v52 = vld [vmem:[#allocation11 + $0xba4] sm:$0xf]  ;;  %v8456_v39 = vor.u32 %v9952_v30, %v8453_v31  ;;  %v7927_v14 = vld [vmem:[#allocation11 + $0x240] sm:$0xf]  ;;  %v9991_v26 = vld [vmem:[#allocation11 + $0x798] sm:$0xf0] }
 0x291   :  { %v9924_v30 = vld [vmem:[#allocation11 + $0x584] sm:$0xf]  ;;  %v8341_v31 = vld [vmem:[#allocation11 + $0x59c] sm:$0xf0] }
 0x292   :  { %5878 = vmatpush.bf16.msra.mxu0 %v7788_v46  ;;  %v8089_v46 = vld [vmem:[#allocation11 + $0x3a4] sm:$0xf0] }
 0x293   :  { %5765 = vmatpush.bf16.msrb.mxu3 %v9236_v18  ;;  %5804 = vmatpush.bf16.msra.mxu2 %v8120_v1  ;;  %v8092_v0 = vor.u32 %v9861_v44, %v8089_v46  ;;  %v8012_v18 = vor.u32 %v9844_v37, %v8011_v35  ;;  %v8684_v1 = vor.u32 %v10012_v50, %v8683_v38  ;;  %v9097_v44 = vld [vmem:[#allocation11 + $0xb84] sm:$0xf0]  ;;  %v7983_v46 = vld [vmem:[#allocation11 + $0x2b0] sm:$0xf]  ;;  %v9816_v37 = vld [vmem:[#allocation11 + $0x220] sm:$0xf0] }
 0x294   :  { %5843 = vmatpush.bf16.msrb.mxu1 %v8792_v47  ;;  %v9837_v47 = vld [vmem:[#allocation11 + $0x2c8] sm:$0xf0]  ;;  %v7899_v35 = vld [vmem:[#allocation11 + $0x208] sm:$0xf]  ;;  %v9984_v50 = vld [vmem:[#allocation11 + $0x760] sm:$0xf0] }
 0x295   :  { %v7984_v63 = vor.u32 %v9837_v47, %v7983_v46  ;;  %v8571_v38 = vld [vmem:[#allocation11 + $0x748] sm:$0xf]  ;;  %v7871_v47 = vld [vmem:[#allocation11 + $0x1d0] sm:$0xf] }
 0x296   :  { %5879 = vmatpush.bf16.msra.mxu0 %v7760_v16  ;;  %v9208_v16 = vor.u32 %v10144_v22, %v9207_v15  ;;  %v9945_v15 = vld [vmem:[#allocation11 + $0x62c] sm:$0xf]  ;;  %v8572_v46 = vor.u32 %v9984_v50, %v8571_v38  ;;  %v8907_v38 = vld [vmem:[#allocation11 + $0x9e8] sm:$0xf]  ;;  %v10068_v50 = vld [vmem:[#allocation11 + $0xa00] sm:$0xf0] }
 0x297   :  { %5805 = vmatpush.bf16.msra.mxu2 %v8092_v0  ;;  %v10113_v22 = vld [vmem:[#allocation11 + $0xb6c] sm:$0xf]  ;;  %v8428_v48 = vor.u32 %v9945_v15, %v8425_v25  ;;  %v7955_v0 = vld [vmem:[#allocation11 + $0x278] sm:$0xf]  ;;  %v8344_v15 = vor.u32 %v9924_v30, %v8341_v31 }
 0x298   :  { %5766 = vmatpush.bf16.msrb.mxu3 %v9208_v16  ;;  %5844 = vmatpush.bf16.msrb.mxu1 %v8764_v17  ;;  %v9100_v60 = vor.u32 %v10113_v22, %v9097_v44  ;;  %v9069_v16 = vld [vmem:[#allocation11 + $0xb4c] sm:$0xf0]  ;;  %v7956_v5 = vor.u32 %v9830_v2, %v7955_v0  ;;  %v8985_v22 = vld [vmem:[#allocation11 + $0xaa4] sm:$0xf0]  ;;  %v7900_v44 = vor.u32 %v9816_v37, %v7899_v35  ;;  %v10082_v0 = vld [vmem:[#allocation11 + $0xa70] sm:$0xf0] }
 0x299   :  { %v10721_v57 = vpop.f32.mrf.mxu1  ;;  %v9799_v2 = vld [vmem:[#allocation11 + $0x19c] sm:$0xf]  ;;  %v8235_v35 = vld [vmem:[#allocation11 + $0x4a8] sm:$0xf]  ;;  %v9900_v37 = vld [vmem:[#allocation11 + $0x4c0] sm:$0xf0] }
 0x29a   :  { %5880 = vmatpush.bf16.msra.mxu0 %v7732_v11  ;;  %v8740_v11 = vor.u32 %v10026_v51, %v8739_v3  ;;  %5806 = vmatmul.bf16.vlgmr.msra.gmra.mxu2 %v10631_v23  ;;  %v8627_v3 = vld [vmem:[#allocation11 + $0x7b8] sm:$0xf]  ;;  %v9998_v51 = vld [vmem:[#allocation11 + $0x7d0] sm:$0xf0] }
 0x29b   :  { %5850 = vmatpush.bf16.msrb.mxu2 %v9184_v8  ;;  %5767 = vmatmul.bf16.vlgmr.msrb.gmra.mxu3 %v10683_v32  ;;  %v9931_v8 = vld [vmem:[#allocation11 + $0x5bc] sm:$0xf] }
 0x29c   :  { %5811 = vmatpush.bf16.msra.mxu3 %v8512_v7  ;;  %5889 = vmatpush.bf16.msra.mxu1 %v8068_v10  ;;  %v9072_v7 = vor.u32 %v10106_v4, %v9069_v16  ;;  %v8628_v10 = vor.u32 %v9998_v51, %v8627_v3  ;;  %v7845_v3 = vld [vmem:[#allocation11 + $0x1b4] sm:$0xf0] }
 0x29d   :  { %5845 = vmatmul.bf16.vlgmr.msrb.gmra.mxu1 %v10657_v21  ;;  %v10723_v17 = vpop.f32.mrf.mxu2 }
 0x29e   :  { %5881 = vmatpush.bf16.msra.mxu0 %v7704_v33  ;;  %v9125_v33 = vld [vmem:[#allocation11 + $0xbbc] sm:$0xf0] }
 0x29f   :  { %5851 = vmatpush.bf16.msrb.mxu2 %v9156_v45  ;;  %v9128_v41 = vor.u32 %v10120_v52, %v9125_v33  ;;  %v10092_v52 = vld [vmem:[#allocation11 + $0xac4] sm:$0xf]  ;;  %v9013_v33 = vld [vmem:[#allocation11 + $0xadc] sm:$0xf0] }
 0x2a0   :  { %5812 = vmatpush.bf16.msra.mxu3 %v8484_v28  ;;  %5890 = vmatpush.bf16.msra.mxu1 %v8040_v13  ;;  %v8372_v28 = vor.u32 %v9931_v8, %v8369_v9  ;;  %v7928_v13 = vor.u32 %v9823_v24, %v7927_v14  ;;  %v9016_v25 = vor.u32 %v10092_v52, %v9013_v33  ;;  %v10183_v9 = vld [vmem:[#allocation11 + $0xd9c] sm:$0xf]  ;;  %v8263_v14 = vld [vmem:[#allocation11 + $0x4e0] sm:$0xf] }
 0x2a1   :  { %v5640_v20 = vpop.f32.mrf.mxu1  ;;  %v9907_v24 = vld [vmem:[#allocation11 + $0x4f8] sm:$0xf0] }
 0x2a2   :  { %5882 = vmatpush.bf16.msra.mxu0 %v7676_v58  ;;  %v8655_v58 = vld [vmem:[#allocation11 + $0x7f0] sm:$0xf]  ;;  %v7817_v20 = vld [vmem:[#allocation11 + $0x17c] sm:$0xf0]  ;;  %v8264_v31 = vor.u32 %v9907_v24, %v8263_v14 }
 0x2a3   :  { %5852 = vmatpush.bf16.msrb.mxu2 %v9128_v41  ;;  %v8656_v34 = vor.u32 %v10005_v56, %v8655_v58  ;;  %v9917_v41 = vld [vmem:[#allocation11 + $0x54c] sm:$0xf]  ;;  %v8543_v56 = vld [vmem:[#allocation11 + $0x710] sm:$0xf] }
 0x2a4   :  { %5813 = vmatpush.bf16.msra.mxu3 %v8456_v39  ;;  %5891 = vmatpush.bf16.msra.mxu1 %v8012_v18  ;;  %v8313_v18 = vld [vmem:[#allocation11 + $0x564] sm:$0xf0]  ;;  %v9809_v58 = vld [vmem:[#allocation11 + $0x1e8] sm:$0xf0] }
 0x2a5   :  { %v5549_v39 = vpop.f32.mrf.mxu2  ;;  %v8316_v4 = vor.u32 %v9917_v41, %v8313_v18  ;;  %v7872_v51 = vor.u32 %v9809_v58, %v7871_v47  ;;  %v7789_v41 = vld [vmem:[#allocation11 + $0x144] sm:$0xf0]  ;;  %v10169_v18 = vld [vmem:[#allocation11 + $0xd2c] sm:$0xf]  ;;  %v8207_v47 = vld [vmem:[#allocation11 + $0x470] sm:$0xf] }
 0x2a6   :  { %5883 = vmatpush.bf16.msra.mxu0 %v7648_v6  ;;  %v10719_v43 = vpop.f32.mrf.mxu0  ;;  %v8400_v6 = vor.u32 %v9938_v29, %v8397_v53  ;;  %v9405_v29 = vld [vmem:[#allocation11 + $0xdec] sm:$0xf0]  ;;  %v8291_v53 = vld [vmem:[#allocation11 + $0x518] sm:$0xf]  ;;  %v9785_v39 = vld [vmem:[#allocation11 + $0x12c] sm:$0xf] }
 0x2a7   :  { %5853 = vmatpush.bf16.msrb.mxu2 %v9100_v60  ;;  %v10190_v60 = vld [vmem:[#allocation11 + $0xdd4] sm:$0xf]  ;;  %v9893_v58 = vld [vmem:[#allocation11 + $0x488] sm:$0xf0] }
 0x2a8   :  { %5814 = vmatpush.bf16.msra.mxu3 %v8428_v48  ;;  %5892 = vmatpush.bf16.msra.mxu1 %v7984_v63  ;;  %v9977_v48 = vld [vmem:[#allocation11 + $0x728] sm:$0xf0]  ;;  %v9914_v63 = vld [vmem:[#allocation11 + $0x530] sm:$0xf0] }
 0x2a9   :  { %5884 = vmatmul.bf16.vlgmr.msra.gmra.mxu0 %v10611_v12  ;;  %v8292_v8 = vor.u32 %v9914_v63, %v8291_v53  ;;  %v7761_v53 = vld [vmem:[#allocation11 + $0x10c] sm:$0xf0] }
 0x2aa   :  { %5928 = vmatpush.bf16.msrb.mxu0 %v8740_v11  ;;  %v10099_v11 = vld [vmem:[#allocation11 + $0xafc] sm:$0xf] }
 0x2ab   :  { %5854 = vmatpush.bf16.msrb.mxu2 %v9072_v7  ;;  %v9044_v45 = vor.u32 %v10099_v11, %v9041_v62  ;;  %v9408_v7 = vor.u32 %v10190_v60, %v9405_v29  ;;  %v7848_v11 = vor.u32 %v9799_v2, %v7845_v3  ;;  %v10061_v60 = vld [vmem:[#allocation11 + $0x9c8] sm:$0xf0]  ;;  %v9778_v29 = vld [vmem:[#allocation11 + $0xf4] sm:$0xf]  ;;  %v9293_v3 = vld [vmem:[#allocation11 + $0xd0c] sm:$0xf0] }
 0x2ac   :  { %5815 = vmatpush.bf16.msra.mxu3 %v8400_v6  ;;  %5893 = vmatpush.bf16.msra.mxu1 %v7956_v5  ;;  %v8544_v6 = vor.u32 %v9977_v48, %v8543_v56  ;;  %v9377_v5 = vld [vmem:[#allocation11 + $0xdb4] sm:$0xf0]  ;;  %v8879_v56 = vld [vmem:[#allocation11 + $0x9b0] sm:$0xf]  ;;  %v10162_v2 = vld [vmem:[#allocation11 + $0xcf4] sm:$0xf] }
 0x2ad   :  { %v10725_v62 = vpop.f32.mrf.mxu2  ;;  %v9380_v30 = vor.u32 %v10183_v9, %v9377_v5  ;;  %v8851_v9 = vld [vmem:[#allocation11 + $0x978] sm:$0xf]  ;;  %v10054_v5 = vld [vmem:[#allocation11 + $0x990] sm:$0xf0]  ;;  %v9296_v14 = vor.u32 %v10162_v2, %v9293_v3  ;;  %v8767_v2 = vld [vmem:[#allocation11 + $0x8d0] sm:$0xf] }
 0x2ae   :  { %5929 = vmatpush.bf16.msrb.mxu0 %v8712_v27  ;;  %v5679_v36 = vpop.f32.mrf.mxu0  ;;  %v8600_v27 = vor.u32 %v9991_v26, %v8599_v61  ;;  %v8935_v61 = vld [vmem:[#allocation11 + $0xa20] sm:$0xf]  ;;  %v10075_v26 = vld [vmem:[#allocation11 + $0xa38] sm:$0xf0]  ;;  %v10033_v3 = vld [vmem:[#allocation11 + $0x8e8] sm:$0xf0] }
 0x2af   :  { %5855 = vmatpush.bf16.msrb.mxu2 %v9044_v45  ;;  %v9792_v36 = vld [vmem:[#allocation11 + $0x164] sm:$0xf]  ;;  %v8936_v52 = vor.u32 %v10075_v26, %v8935_v61  ;;  %v10155_v61 = vld [vmem:[#allocation11 + $0xcbc] sm:$0xf]  ;;  %v9265_v26 = vld [vmem:[#allocation11 + $0xcd4] sm:$0xf0] }
 0x2b0   :  { %5816 = vmatpush.bf16.msra.mxu3 %v8372_v28  ;;  %5894 = vmatpush.bf16.msra.mxu1 %v7928_v13  ;;  %v10727_v28 = vld [vmem:[#allocation13] sm:$0xff]  ;;  %v7820_v33 = vor.u32 %v9792_v36, %v7817_v20  ;;  %v8852_v36 = vor.u32 %v10054_v5, %v8851_v9  ;;  %v9970_v9 = vld [vmem:[#allocation11 + $0x6f0] sm:$0xf0]  ;;  %v5548_v5 = vadd.f32 %v10723_v17, %v10707_v55 }
 0x2b1   :  { %v3144_v45 = vperm.slane %v10727_v28, 2  ;;  %v10176_v13 = vld [vmem:[#allocation11 + $0xd64] sm:$0xf] }
 0x2b2   :  { %5930 = vmatpush.bf16.msrb.mxu0 %v8684_v1  ;;  %v10085_v1 = vld [vmem:[#allocation11 + $0xa8c] sm:$0xf] }
 0x2b3   :  { %5856 = vmatpush.bf16.msrb.mxu2 %v9016_v25  ;;  %v8988_v16 = vor.u32 %v10085_v1, %v8985_v22  ;;  %v8236_v25 = vor.u32 %v9900_v37, %v8235_v35  ;;  %v9321_v1 = vld [vmem:[#allocation11 + $0xd44] sm:$0xf0]  ;;  %v8908_v22 = vor.u32 %v10068_v50, %v8907_v38  ;;  %v5678_v48 = vadd.f32 %v10719_v43, %v3144_v45  ;;  %v8179_v43 = vld [vmem:[#allocation11 + $0x438] sm:$0xf]  ;;  %v8151_v45 = vld [vmem:[#allocation11 + $0x400] sm:$0xf] }
 0x2b4   :  { %5817 = vmatpush.bf16.msra.mxu3 %v8344_v15  ;;  %5895 = vmatpush.bf16.msra.mxu1 %v7900_v44  ;;  %v7792_v44 = vor.u32 %v9785_v39, %v7789_v41  ;;  %v9268_v38 = vor.u32 %v10155_v61, %v9265_v26  ;;  %v10148_v39 = vld [vmem:[#allocation11 + $0xc84] sm:$0xf]  ;;  %v9237_v41 = vld [vmem:[#allocation11 + $0xc9c] sm:$0xf0] }
 0x2b6   :  { %5931 = vmatpush.bf16.msrb.mxu0 %v8656_v34  ;;  %v8963_v34 = vld [vmem:[#allocation11 + $0xa58] sm:$0xf] }
 0x2b7   :  { %5857 = vmatpush.bf16.msrb.mxu2 %v8988_v16  ;;  %v9324_v16 = vor.u32 %v10169_v18, %v9321_v1  ;;  %v8123_v1 = vld [vmem:[#allocation11 + $0x3c8] sm:$0xf] }
 0x2b8   :  { %5818 = vmatpush.bf16.msra.mxu3 %v8316_v4  ;;  %5896 = vmatpush.bf16.msra.mxu1 %v7872_v51  ;;  %v8880_v51 = vor.u32 %v10061_v60, %v8879_v56  ;;  %v10141_v56 = vld [vmem:[#allocation11 + $0xc4c] sm:$0xf] }
 0x2ba   :  { %5932 = vmatpush.bf16.msrb.mxu0 %v8628_v10  ;;  %v8964_v10 = vor.u32 %v10082_v0, %v8963_v34  ;;  %5858 = vmatmul.bf16.vlgmr.msrb.gmra.mxu2 %v10669_v19  ;;  %v5690_v63 = vpop.f32.mrf.mxu1  ;;  %v8208_v0 = vor.u32 %v9893_v58, %v8207_v47  ;;  %v9757_v47 = vld [vmem:[#allocation11 + $0x4c] sm:$0xf]  ;;  %v7677_v58 = vld [vmem:[#allocation11 + $0x64] sm:$0xf0] }
 0x2bb   :  { %5902 = vmatpush.bf16.msra.mxu2 %v8292_v8  ;;  %5819 = vmatmul.bf16.vlgmr.msra.gmra.mxu3 %v10634_v40  ;;  %v10737_v4 = vadd.f32 %v5690_v63, %v5678_v48  ;;  %v9886_v8 = vld [vmem:[#allocation11 + $0x450] sm:$0xf0]  ;;  %v9240_v48 = vor.u32 %v10148_v39, %v9237_v41  ;;  %v9865_v63 = vld [vmem:[#allocation11 + $0x3a8] sm:$0xf0]  ;;  %v9848_v39 = vld [vmem:[#allocation11 + $0x324] sm:$0xf] }
 0x2bc   :  { %5863 = vmatpush.bf16.msrb.mxu3 %v9408_v7  ;;  %5941 = vmatpush.bf16.msrb.mxu1 %v8964_v10  ;;  %v9771_v10 = vld [vmem:[#allocation11 + $0xbc] sm:$0xf]  ;;  %v8180_v24 = vor.u32 %v9886_v8, %v8179_v43  ;;  %v7649_v43 = vld [vmem:[#allocation11 + $0x2c] sm:$0xf0]  ;;  %v8515_v8 = vld [vmem:[#allocation11 + $0x6d8] sm:$0xf] }
 0x2bd   :  { %5897 = vmatmul.bf16.vlgmr.msra.gmra.mxu1 %v10615_v54  ;;  %v10739_v7 = vpop.f32.mrf.mxu3  ;;  %v8516_v17 = vor.u32 %v9970_v9, %v8515_v8  ;;  %v10117_v8 = vld [vmem:[#allocation11 + $0xb88] sm:$0xf0]  ;;  %v9834_v9 = vld [vmem:[#allocation11 + $0x2b4] sm:$0xf] }
 0x2be   :  { %5933 = vmatpush.bf16.msrb.mxu0 %v8600_v27  ;;  %v9349_v27 = vld [vmem:[#allocation11 + $0xd7c] sm:$0xf0] }
 0x2bf   :  { %5903 = vmatpush.bf16.msra.mxu2 %v8264_v31  ;;  %v9352_v15 = vor.u32 %v10176_v13, %v9349_v27  ;;  %v8823_v31 = vld [vmem:[#allocation11 + $0x940] sm:$0xf]  ;;  %v10047_v27 = vld [vmem:[#allocation11 + $0x958] sm:$0xf0] }
 0x2c0   :  { %5864 = vmatpush.bf16.msrb.mxu3 %v9380_v30  ;;  %5942 = vmatpush.bf16.msrb.mxu1 %v8936_v52  ;;  %v9879_v30 = vld [vmem:[#allocation11 + $0x418] sm:$0xf0]  ;;  %v9764_v52 = vld [vmem:[#allocation11 + $0x84] sm:$0xf] }
 0x2c1   :  { %v8152_v50 = vor.u32 %v9879_v30, %v8151_v45  ;;  %v8741_v45 = vld [vmem:[#allocation11 + $0x8b4] sm:$0xf0]  ;;  %v5561_v30 = vadd.f32 %v10739_v7, %v5548_v5  ;;  %v8041_v7 = vld [vmem:[#allocation11 + $0x33c] sm:$0xf0]  ;;  %v7985_v5 = vld [vmem:[#allocation11 + $0x2cc] sm:$0xf0] }
 0x2c2   :  { %5934 = vmatpush.bf16.msrb.mxu0 %v8572_v46  ;;  %v5601_v46 = vpop.f32.mrf.mxu2  ;;  %v5692_v35 = vpop.f32.mrf.mxu1 }
 0x2c3   :  { %5904 = vmatpush.bf16.msra.mxu2 %v8236_v25  ;;  %v10040_v46 = vld [vmem:[#allocation11 + $0x920] sm:$0xf0]  ;;  %v8487_v35 = vld [vmem:[#allocation11 + $0x6a0] sm:$0xf] }
 0x2c4   :  { %5865 = vmatpush.bf16.msrb.mxu3 %v9352_v15  ;;  %5943 = vmatpush.bf16.msrb.mxu1 %v8908_v22  ;;  %v8824_v15 = vor.u32 %v10047_v27, %v8823_v31  ;;  %v9872_v22 = vld [vmem:[#allocation11 + $0x3e0] sm:$0xf0]  ;;  %v8768_v31 = vor.u32 %v10033_v3, %v8767_v2  ;;  %v8431_v2 = vld [vmem:[#allocation11 + $0x630] sm:$0xf]  ;;  %v9949_v3 = vld [vmem:[#allocation11 + $0x648] sm:$0xf0] }
 0x2c5   :  { %v5562_v18 = vpop.f32.mrf.mxu3  ;;  %v8124_v60 = vor.u32 %v9872_v22, %v8123_v1 }
 0x2c6   :  { %5935 = vmatpush.bf16.msrb.mxu0 %v8544_v6  ;;  %v10735_v34 = vpop.f32.mrf.mxu0  ;;  %v7764_v6 = vor.u32 %v9778_v29, %v7761_v53  ;;  %v9209_v29 = vld [vmem:[#allocation11 + $0xc64] sm:$0xf0]  ;;  %v8095_v53 = vld [vmem:[#allocation11 + $0x390] sm:$0xf]  ;;  %v9421_v18 = vmul.f32 -1.442695, %v5561_v30  ;;  %v7988_v30 = vor.u32 %v9834_v9, %v7985_v5 }
 0x2c7   :  { %5905 = vmatpush.bf16.msra.mxu2 %v8208_v0  ;;  %v7680_v0 = vor.u32 %v9757_v47, %v7677_v58  ;;  %v9212_v61 = vor.u32 %v10141_v56, %v9209_v29  ;;  %v8096_v26 = vor.u32 %v9865_v63, %v8095_v53  ;;  %v8044_v58 = vor.u32 %v9848_v39, %v8041_v7  ;;  %v8013_v29 = vld [vmem:[#allocation11 + $0x304] sm:$0xf0]  ;;  %v10009_v53 = vld [vmem:[#allocation11 + $0x82c] sm:$0xf] }
 0x2c8   :  { %5866 = vmatpush.bf16.msrb.mxu3 %v9324_v16  ;;  %5944 = vmatpush.bf16.msrb.mxu1 %v8880_v51  ;;  %v9750_v51 = vld [vmem:[#allocation11 + $0x14] sm:$0xf]  ;;  %v8685_v63 = vld [vmem:[#allocation11 + $0x844] sm:$0xf0]  ;;  %10210 = vpow2.f32 %v9421_v18  ;;  %v10103_v18 = vld [vmem:[#allocation11 + $0xb18] sm:$0xf0] }
 0x2c9   :  { %5936 = vmatmul.bf16.vlgmr.msrb.gmra.mxu0 %v10646_v42  ;;  %v7652_v27 = vor.u32 %v9750_v51, %v7649_v43  ;;  %v9103_v43 = vld [vmem:[#allocation11 + $0xb70] sm:$0xf]  ;;  %v9921_v5 = vld [vmem:[#allocation11 + $0x568] sm:$0xf0] }
 0x2ca   :  { %5980 = vmatpush.bf16.msra.mxu0 %v7848_v11  ;;  %v7733_v11 = vld [vmem:[#allocation11 + $0xd4] sm:$0xf0]  ;;  %v10741_v13 = vpop.f32.mrf.mxu2 }
 0x2cb   :  { %v7736_v20 = vor.u32 %v9771_v10, %v7733_v11  ;;  %5906 = vmatpush.bf16.msra.mxu2 %v8180_v24  ;;  %v9187_v10 = vld [vmem:[#allocation11 + $0xc18] sm:$0xf]  ;;  %v10138_v11 = vld [vmem:[#allocation11 + $0xc30] sm:$0xf0]  ;;  %v5600_v24 = vadd.f32 %v10725_v62, %v10713_v49 }
 0x2cc   :  { %5867 = vmatpush.bf16.msrb.mxu3 %v9296_v14  ;;  %5945 = vmatpush.bf16.msrb.mxu1 %v8852_v36  ;;  %v9855_v14 = vld [vmem:[#allocation11 + $0x35c] sm:$0xf]  ;;  %v8069_v36 = vld [vmem:[#allocation11 + $0x374] sm:$0xf0] }
 0x2cd   :  { %v5612_v55 = vpop.f32.mrf.mxu3  ;;  %v8072_v49 = vor.u32 %v9855_v14, %v8069_v36  ;;  %v8403_v36 = vld [vmem:[#allocation11 + $0x5f8] sm:$0xf] }
 0x2ce   :  { %5981 = vmatpush.bf16.msra.mxu0 %v7820_v33  ;;  %v7705_v33 = vld [vmem:[#allocation11 + $0x9c] sm:$0xf0]  ;;  %v5731_v37 = vpop.f32.mrf.mxu0 }
 0x2cf   :  { %v7708_v25 = vor.u32 %v9764_v52, %v7705_v33  ;;  %5907 = vmatpush.bf16.msra.mxu2 %v8152_v50  ;;  %v9188_v52 = vor.u32 %v10138_v11, %v9187_v10  ;;  %v5613_v33 = vadd.f32 %v5612_v55, %v5600_v24  ;;  %v9963_v37 = vld [vmem:[#allocation11 + $0x6b8] sm:$0xf0]  ;;  %v10002_v10 = vld [vmem:[#allocation11 + $0x7f4] sm:$0xf]  ;;  %v8657_v11 = vld [vmem:[#allocation11 + $0x80c] sm:$0xf0] }
 0x2d0   :  { %5868 = vmatpush.bf16.msrb.mxu3 %v9268_v38  ;;  %5946 = vmatpush.bf16.msrb.mxu1 %v8824_v15  ;;  %v9159_v38 = vld [vmem:[#allocation11 + $0xbe0] sm:$0xf]  ;;  %v10131_v50 = vld [vmem:[#allocation11 + $0xbf8] sm:$0xf0]  ;;  %v10016_v15 = vld [vmem:[#allocation11 + $0x864] sm:$0xf]  ;;  %v8488_v1 = vor.u32 %v9963_v37, %v8487_v35 }
 0x2d1   :  { %v5626_v41 = vadd.f32 %v10709_v59, %v5613_v33  ;;  %v9160_v22 = vor.u32 %v10131_v50, %v9159_v38  ;;  %v9131_v59 = vld [vmem:[#allocation11 + $0xba8] sm:$0xf]  ;;  %v10110_v55 = vld [vmem:[#allocation11 + $0xb50] sm:$0xf0]  ;;  %v9995_v33 = vld [vmem:[#allocation11 + $0x7bc] sm:$0xf] }
 0x2d2   :  { %5982 = vmatpush.bf16.msra.mxu0 %v7792_v44  ;;  %v8795_v44 = vld [vmem:[#allocation11 + $0x908] sm:$0xf]  ;;  %v8629_v35 = vld [vmem:[#allocation11 + $0x7d4] sm:$0xf0]  ;;  %v8375_v38 = vld [vmem:[#allocation11 + $0x5c0] sm:$0xf] }
 0x2d3   :  { %v8796_v16 = vor.u32 %v10040_v46, %v8795_v44  ;;  %5908 = vmatpush.bf16.msra.mxu2 %v8124_v60  ;;  %v8459_v44 = vld [vmem:[#allocation11 + $0x668] sm:$0xf]  ;;  %v9956_v46 = vld [vmem:[#allocation11 + $0x680] sm:$0xf0]  ;;  %v10750_v47 = vadd.f32 %v10721_v57, %v5626_v41  ;;  %v9841_v60 = vld [vmem:[#allocation11 + $0x2ec] sm:$0xf]  ;;  %v8632_v41 = vor.u32 %v9995_v33, %v8629_v35 }
 0x2d4   :  { %5869 = vmatpush.bf16.msrb.mxu3 %v9240_v48  ;;  %v10124_v48 = vld [vmem:[#allocation11 + $0xbc0] sm:$0xf0]  ;;  %v8016_v51 = vor.u32 %v9841_v60, %v8013_v29  ;;  %v9935_v50 = vld [vmem:[#allocation11 + $0x5d8] sm:$0xf0]  ;;  %v8293_v35 = vld [vmem:[#allocation11 + $0x534] sm:$0xf0] }
 0x2d5   :  { %5947 = vmatpush.bf16.msrb.mxu1 %v8796_v16  ;;  %v5614_v57 = vpop.f32.mrf.mxu3  ;;  %v8460_v16 = vor.u32 %v9956_v46, %v8459_v44  ;;  %v7929_v46 = vld [vmem:[#allocation11 + $0x25c] sm:$0xf0]  ;;  %v8376_v29 = vor.u32 %v9935_v50, %v8375_v38  ;;  %v9911_v33 = vld [vmem:[#allocation11 + $0x51c] sm:$0xf]  ;;  %v8965_v50 = vld [vmem:[#allocation11 + $0xa74] sm:$0xf0] }
 0x2d6   :  { %5983 = vmatpush.bf16.msra.mxu0 %v7764_v6  ;;  %v5653_v6 = vpop.f32.mrf.mxu2 }
 0x2d7   :  { %5909 = vmatpush.bf16.msra.mxu2 %v8096_v26  ;;  %v8688_v6 = vor.u32 %v10009_v53, %v8685_v63  ;;  %v9104_v26 = vor.u32 %v10117_v8, %v9103_v43  ;;  %v9019_v63 = vld [vmem:[#allocation11 + $0xac8] sm:$0xf]  ;;  %v8319_v43 = vld [vmem:[#allocation11 + $0x550] sm:$0xf] }
 0x2d8   :  { %5870 = vmatpush.bf16.msrb.mxu3 %v9212_v61  ;;  %v8432_v61 = vor.u32 %v9949_v3, %v8431_v2  ;;  %v9813_v2 = vld [vmem:[#allocation11 + $0x20c] sm:$0xf]  ;;  %v7901_v3 = vld [vmem:[#allocation11 + $0x224] sm:$0xf0] }
 0x2d9   :  { %5948 = vmatpush.bf16.msrb.mxu1 %v8768_v31  ;;  %v8660_v31 = vor.u32 %v10002_v10, %v8657_v11  ;;  %v8991_v10 = vld [vmem:[#allocation11 + $0xa90] sm:$0xf]  ;;  %v10089_v11 = vld [vmem:[#allocation11 + $0xaa8] sm:$0xf0] }
 0x2da   :  { %5984 = vmatpush.bf16.msra.mxu0 %v7736_v20  ;;  %v10023_v20 = vld [vmem:[#allocation11 + $0x89c] sm:$0xf]  ;;  %5910 = vmatmul.bf16.vlgmr.msra.gmra.mxu2 %v10631_v23  ;;  %v10756_v14 = vpop.f32.mrf.mxu1  ;;  %v8992_v38 = vor.u32 %v10089_v11, %v8991_v10  ;;  %v9789_v10 = vld [vmem:[#allocation11 + $0x148] sm:$0xf0] }
 0x2db   :  { %v8744_v62 = vor.u32 %v10023_v20, %v8741_v45  ;;  %5954 = vmatpush.bf16.msrb.mxu2 %v9188_v52  ;;  %5871 = vmatmul.bf16.vlgmr.msrb.gmra.mxu3 %v10683_v32  ;;  %v9942_v20 = vld [vmem:[#allocation11 + $0x610] sm:$0xf0]  ;;  %v10211_v45 = vpop.eup %10210  ;;  %v7957_v52 = vld [vmem:[#allocation11 + $0x294] sm:$0xf0] }
 0x2dc   :  { %5915 = vmatpush.bf16.msra.mxu3 %v8516_v17  ;;  %5949 = vmatmul.bf16.vlgmr.msrb.gmra.mxu1 %v10657_v21  ;;  %v9827_v17 = vld [vmem:[#allocation11 + $0x27c] sm:$0xf]  ;;  %v10760_v37 = vadd.f32 1.0, %v10211_v45  ;;  %v7873_v45 = vld [vmem:[#allocation11 + $0x1ec] sm:$0xf0] }
 0x2dd   :  { %5993 = vmatpush.bf16.msra.mxu1 %v8072_v49  ;;  %v8404_v49 = vor.u32 %v9942_v20, %v8403_v36  ;;  %v7960_v39 = vor.u32 %v9827_v17, %v7957_v52  ;;  %v9806_v20 = vld [vmem:[#allocation11 + $0x1d4] sm:$0xf]  ;;  %v9411_v17 = vld [vmem:[#allocation11 + $0xdd8] sm:$0xf] }
 0x2de   :  { %5985 = vmatpush.bf16.msra.mxu0 %v7708_v25  ;;  %v8713_v25 = vld [vmem:[#allocation11 + $0x87c] sm:$0xf0]  ;;  %v5703_v7 = vpop.f32.mrf.mxu2  ;;  %10212 = vrcp.f32 %v10760_v37  ;;  %v10194_v52 = vld [vmem:[#allocation11 + $0xdf0] sm:$0xf0]  ;;  %vm6221_vm0 = vweird.f32 %v10760_v37 }
 0x2df   :  { %v8716_v56 = vor.u32 %v10016_v15, %v8713_v25  ;;  %5955 = vmatpush.bf16.msrb.mxu2 %v9160_v22  ;;  %v5652_v15 = vadd.f32 %v10741_v13, %v10750_v47  ;;  %v9047_v25 = vld [vmem:[#allocation11 + $0xb00] sm:$0xf]  ;;  %v10765_v22 = vadd.f32 %v5703_v7, %v10737_v4  ;;  %v5664_v44 = vpop.f32.mrf.mxu3  ;;  %v8347_v13 = vld [vmem:[#allocation11 + $0x588] sm:$0xf]  ;;  %v9928_v47 = vld [vmem:[#allocation11 + $0x5a0] sm:$0xf0] }
 0x2e0   :  { %5916 = vmatpush.bf16.msra.mxu3 %v8488_v1  ;;  %v9820_v1 = vld [vmem:[#allocation11 + $0x244] sm:$0xf]  ;;  %v9048_v53 = vor.u32 %v10103_v18, %v9047_v25  ;;  %v8348_v8 = vor.u32 %v9928_v47, %v8347_v13  ;;  %v7876_v25 = vor.u32 %v9806_v20, %v7873_v45  ;;  %v8937_v13 = vld [vmem:[#allocation11 + $0xa3c] sm:$0xf0]  ;;  %v7823_v47 = vld [vmem:[#allocation11 + $0x168] sm:$0xf] }
 0x2e1   :  { %5994 = vmatpush.bf16.msra.mxu1 %v8044_v58  ;;  %v9988_v58 = vld [vmem:[#allocation11 + $0x784] sm:$0xf]  ;;  %v7932_v57 = vor.u32 %v9820_v1, %v7929_v46  ;;  %v8296_v46 = vor.u32 %v9911_v33, %v8293_v35  ;;  %v8881_v35 = vld [vmem:[#allocation11 + $0x9cc] sm:$0xf0] }
 0x2e2   :  { %5986 = vmatpush.bf16.msra.mxu0 %v7680_v0  ;;  %v9132_v0 = vor.u32 %v10124_v48, %v9131_v59  ;;  %v5665_v59 = vadd.f32 %v5664_v44, %v5652_v15  ;;  %v5744_v48 = vpop.f32.mrf.mxu1  ;;  %v9412_v44 = vor.u32 %v10194_v52, %v9411_v17  ;;  %v10058_v17 = vld [vmem:[#allocation11 + $0x9b4] sm:$0xf] }
 0x2e4   :  { %5917 = vmatpush.bf16.msra.mxu3 %v8460_v16  ;;  %5956 = vmatpush.bf16.msrb.mxu2 %v9132_v0  ;;  %v9422_v4 = vmul.f32 -1.442695, %v5665_v59  ;;  %v10096_v0 = vld [vmem:[#allocation11 + $0xae0] sm:$0xf0] }
 0x2e5   :  { %5995 = vmatpush.bf16.msra.mxu1 %v8016_v51  ;;  %v9981_v51 = vld [vmem:[#allocation11 + $0x74c] sm:$0xf]  ;;  %v9020_v9 = vor.u32 %v10096_v0, %v9019_v63  ;;  %v9796_v63 = vld [vmem:[#allocation11 + $0x180] sm:$0xf0]  ;;  %v9355_v0 = vld [vmem:[#allocation11 + $0xd68] sm:$0xf] }
 0x2e6   :  { %5987 = vmatpush.bf16.msra.mxu0 %v7652_v27  ;;  %v10758_v24 = vpop.f32.mrf.mxu0  ;;  %v9075_v27 = vld [vmem:[#allocation11 + $0xb38] sm:$0xf]  ;;  %10214 = vpow2.f32 %v9422_v4  ;;  %v5705_v36 = vpop.f32.mrf.mxu2 }
 0x2e7   :  { %v10173_v36 = vld [vmem:[#allocation11 + $0xd48] sm:$0xf0] }
 0x2e8   :  { %5918 = vmatpush.bf16.msra.mxu3 %v8432_v61  ;;  %5957 = vmatpush.bf16.msrb.mxu2 %v9104_v26  ;;  %v7904_v61 = vor.u32 %v9813_v2, %v7901_v3  ;;  %v10180_v2 = vld [vmem:[#allocation11 + $0xd80] sm:$0xf0] }
 0x2e9   :  { %5988 = vmatmul.bf16.vlgmr.msra.gmra.mxu0 %v10611_v12  ;;  %5996 = vmatpush.bf16.msra.mxu1 %v7988_v30  ;;  %v9974_v30 = vld [vmem:[#allocation11 + $0x714] sm:$0xf]  ;;  %v9356_v45 = vor.u32 %v10180_v2, %v9355_v0  ;;  %v9271_v2 = vld [vmem:[#allocation11 + $0xcc0] sm:$0xf] }
 0x2ea   :  { %6032 = vmatpush.bf16.msrb.mxu0 %v8744_v62  ;;  %v9076_v62 = vor.u32 %v10110_v55, %v9075_v27  ;;  %v5666_v27 = vpop.f32.mrf.mxu3  ;;  %v8545_v55 = vld [vmem:[#allocation11 + $0x72c] sm:$0xf0] }
 0x2eb   :  { %v8548_v18 = vor.u32 %v9974_v30, %v8545_v55  ;;  %v9890_v27 = vld [vmem:[#allocation11 + $0x474] sm:$0xf]  ;;  %v8209_v55 = vld [vmem:[#allocation11 + $0x48c] sm:$0xf0] }
 0x2ec   :  { %5919 = vmatpush.bf16.msra.mxu3 %v8404_v49  ;;  %5958 = vmatpush.bf16.msrb.mxu2 %v9076_v62  ;;  %v10079_v49 = vld [vmem:[#allocation11 + $0xa5c] sm:$0xf]  ;;  %v8320_v62 = vor.u32 %v9921_v5, %v8319_v43  ;;  %v8237_v43 = vld [vmem:[#allocation11 + $0x4c4] sm:$0xf0]  ;;  %v7795_v5 = vld [vmem:[#allocation11 + $0x130] sm:$0xf] }
 0x2ed   :  { %5997 = vmatpush.bf16.msra.mxu1 %v7960_v39  ;;  %v7851_v39 = vld [vmem:[#allocation11 + $0x1a0] sm:$0xf]  ;;  %v8968_v59 = vor.u32 %v10079_v49, %v8965_v50  ;;  %v7796_v33 = vor.u32 %v9789_v10, %v7795_v5  ;;  %v7767_v49 = vld [vmem:[#allocation11 + $0xf8] sm:$0xf]  ;;  %v6227_v50 = vand.u32 2147483648, %v10760_v37 }
 0x2ee   :  { %6033 = vmatpush.bf16.msrb.mxu0 %v8716_v56  ;;  %v8601_v56 = vld [vmem:[#allocation11 + $0x79c] sm:$0xf0]  ;;  %v5783_v60 = vpop.f32.mrf.mxu0  ;;  %v10159_v5 = vld [vmem:[#allocation11 + $0xcd8] sm:$0xf0]  ;;  %v9876_v10 = vld [vmem:[#allocation11 + $0x404] sm:$0xf] }
 0x2ef   :  { %v8604_v16 = vor.u32 %v9988_v58, %v8601_v56  ;;  %v9383_v58 = vld [vmem:[#allocation11 + $0xda0] sm:$0xf]  ;;  %v10187_v56 = vld [vmem:[#allocation11 + $0xdb8] sm:$0xf0]  ;;  %v9904_v60 = vld [vmem:[#allocation11 + $0x4e4] sm:$0xf] }
 0x2f0   :  { %5920 = vmatpush.bf16.msra.mxu3 %v8376_v29  ;;  %5959 = vmatpush.bf16.msrb.mxu2 %v9048_v53  ;;  %v8265_v29 = vld [vmem:[#allocation11 + $0x4fc] sm:$0xf0]  ;;  %v10072_v53 = vld [vmem:[#allocation11 + $0xa24] sm:$0xf] }
 0x2f1   :  { %5998 = vmatpush.bf16.msra.mxu1 %v7932_v57  ;;  %v9384_v57 = vor.u32 %v10187_v56, %v9383_v58  ;;  %v8940_v3 = vor.u32 %v10072_v53, %v8937_v13  ;;  %v8212_v58 = vor.u32 %v9890_v27, %v8209_v55  ;;  %v8884_v56 = vor.u32 %v10058_v17, %v8881_v35  ;;  %v8825_v27 = vld [vmem:[#allocation11 + $0x95c] sm:$0xf0]  ;;  %v7711_v55 = vld [vmem:[#allocation11 + $0x88] sm:$0xf]  ;;  %v9768_v17 = vld [vmem:[#allocation11 + $0xa0] sm:$0xf0] }
 0x2f2   :  { %6034 = vmatpush.bf16.msrb.mxu0 %v8688_v6  ;;  %v8573_v6 = vld [vmem:[#allocation11 + $0x764] sm:$0xf0] }
 0x2f3   :  { %v8576_v26 = vor.u32 %v9981_v51, %v8573_v6  ;;  %v7824_v51 = vor.u32 %v9796_v63, %v7823_v47  ;;  %v9897_v6 = vld [vmem:[#allocation11 + $0x4ac] sm:$0xf]  ;;  %v8181_v47 = vld [vmem:[#allocation11 + $0x454] sm:$0xf0]  ;;  %v10051_v63 = vld [vmem:[#allocation11 + $0x97c] sm:$0xf] }
 0x2f4   :  { %5921 = vmatpush.bf16.msra.mxu3 %v8348_v8  ;;  %5960 = vmatpush.bf16.msrb.mxu2 %v9020_v9  ;;  %v10065_v8 = vld [vmem:[#allocation11 + $0x9ec] sm:$0xf]  ;;  %v8909_v9 = vld [vmem:[#allocation11 + $0xa04] sm:$0xf0]  ;;  %v8240_v30 = vor.u32 %v9897_v6, %v8237_v43  ;;  %v9189_v6 = vld [vmem:[#allocation11 + $0xc34] sm:$0xf0] }
 0x2f5   :  { %5999 = vmatpush.bf16.msra.mxu1 %v7904_v61  ;;  %v3145_v61 = vperm.slane %v10727_v28, 3  ;;  %v8912_v28 = vor.u32 %v10065_v8, %v8909_v9 }
 0x2f6   :  { %6035 = vmatpush.bf16.msrb.mxu0 %v8660_v31  ;;  %v10768_v31 = vpop.eup %10212 }
 0x2f7   :  { %v10215_v7 = vpop.eup %10214  ;;  %v6217_v15 = vmul.f32 %v10768_v31, %v10760_v37  ;;  %vm6222_vm1 = vweird.f32 %v10768_v31 }
 0x2f8   :  { %v10772_v1 = vadd.f32 1.0, %v10215_v7  ;;  %5922 = vmatpush.bf16.msra.mxu3 %v8320_v62  ;;  %5961 = vmatpush.bf16.msrb.mxu2 %v8992_v38  ;;  %v9782_v62 = vld [vmem:[#allocation11 + $0x110] sm:$0xf0]  ;;  %v6225_v38 = vand.u32 2147483647, %v10760_v37  ;;  %vm10798_vm2 = vmor %vm6221_vm0, %vm6222_vm1 }
 0x2f9   :  { %v6218_v4 = vsub.f32 1.0, %v6217_v15  ;;  %6000 = vmatpush.bf16.msra.mxu1 %v7876_v25  ;;  %v9299_v25 = vld [vmem:[#allocation11 + $0xcf8] sm:$0xf] }
 0x2fa   :  { %6036 = vmatpush.bf16.msrb.mxu0 %v8632_v41  ;;  %v9803_v41 = vld [vmem:[#allocation11 + $0x1b8] sm:$0xf0]  ;;  %10216 = vrcp.f32 %v10772_v1  ;;  %v6240_v53 = vand.u32 2147483647, %v10772_v1  ;;  %vm10807_vm4 = vcmp.eq.f32.partialorder %v6225_v38, 8.507059e+37  ;;  %vm6236_vm5 = vweird.f32 %v10772_v1 }
 0x2fb   :  { %v7852_v48 = vor.u32 %v9803_v41, %v7851_v39  ;;  %5923 = vmatmul.bf16.vlgmr.msra.gmra.mxu3 %v10634_v40  ;;  %5962 = vmatmul.bf16.vlgmr.msrb.gmra.mxu2 %v10669_v19  ;;  %v6219_v11 = vmul.f32 %v10768_v31, %v6218_v4  ;;  %v5782_v41 = vadd.f32 %v10758_v24, %v3145_v61  ;;  %v8853_v4 = vld [vmem:[#allocation11 + $0x994] sm:$0xf0]  ;;  %v10145_v24 = vld [vmem:[#allocation11 + $0xc68] sm:$0xf0] }
 0x2fc   :  { %5967 = vmatpush.bf16.msrb.mxu3 %v9412_v44  ;;  %6006 = vmatpush.bf16.msra.mxu2 %v8296_v46  ;;  %v5794_v44 = vpop.f32.mrf.mxu1  ;;  %vm6241_vm7 = vcmp.eq.f32.partialorder %v6240_v53, 8.507059e+37  ;;  %v9272_v38 = vor.u32 %v10159_v5, %v9271_v2  ;;  %v8097_v53 = vld [vmem:[#allocation11 + $0x3ac] sm:$0xf0]  ;;  %v7655_v37 = vld [vmem:[#allocation11 + $0x18] sm:$0xf] }
 0x2fd   :  { %6045 = vmatpush.bf16.msrb.mxu1 %v8968_v59  ;;  %v6220_v39 = vadd.f32 %v10768_v31, %v6219_v11  ;;  %v7768_v59 = vor.u32 %v9782_v62, %v7767_v49  ;;  %v10805_v13 = vadd.f32 %v5794_v44, %v5782_v41  ;;  %v9869_v41 = vld [vmem:[#allocation11 + $0x3cc] sm:$0xf]  ;;  %v9967_v2 = vld [vmem:[#allocation11 + $0x6dc] sm:$0xf] }
 0x2fe   :  { %6037 = vmatpush.bf16.msrb.mxu0 %v8604_v16  ;;  %v8268_v16 = vor.u32 %v9904_v60, %v8265_v29  ;;  %6001 = vmatmul.bf16.vlgmr.msra.gmra.mxu1 %v10615_v54  ;;  %v9883_v60 = vld [vmem:[#allocation11 + $0x43c] sm:$0xf] }
 0x2ff   :  { %v8184_v9 = vor.u32 %v9883_v60, %v8181_v47  ;;  %v5755_v61 = vpop.f32.mrf.mxu2  ;;  %v9859_v5 = vld [vmem:[#allocation11 + $0x378] sm:$0xf0] }
 0x300   :  { %v10781_v20 = vpop.eup %10216  ;;  %5968 = vmatpush.bf16.msrb.mxu3 %v9384_v57  ;;  %6007 = vmatpush.bf16.msra.mxu2 %v8268_v16  ;;  %v7739_v57 = vld [vmem:[#allocation11 + $0xc0] sm:$0xf]  ;;  %v9775_v16 = vld [vmem:[#allocation11 + $0xd8] sm:$0xf0] }
 0x301   :  { %v6232_v52 = vmul.f32 %v10781_v20, %v10772_v1  ;;  %6046 = vmatpush.bf16.msrb.mxu1 %v8940_v3  ;;  %vm6237_vm3 = vweird.f32 %v10781_v20  ;;  %v6224_v3 = vsel %vm10798_vm2, %v10768_v31, %v6220_v39  ;;  %v7740_v11 = vor.u32 %v9775_v16, %v7739_v57  ;;  %v5716_v31 = vpop.f32.mrf.mxu3  ;;  %v9243_v39 = vld [vmem:[#allocation11 + $0xc88] sm:$0xf]  ;;  %v8769_v16 = vld [vmem:[#allocation11 + $0x8ec] sm:$0xf0] }
 0x302   :  { %6038 = vmatpush.bf16.msrb.mxu0 %v8576_v26  ;;  %v9327_v26 = vld [vmem:[#allocation11 + $0xd30] sm:$0xf]  ;;  %vm10818_vm6 = vmor %vm6236_vm5, %vm6237_vm3 }
 0x303   :  { %v6233_v7 = vsub.f32 1.0, %v6232_v52  ;;  %v9328_v15 = vor.u32 %v10173_v36, %v9327_v26  ;;  %v8153_v26 = vld [vmem:[#allocation11 + $0x41c] sm:$0xf0]  ;;  %v10044_v36 = vld [vmem:[#allocation11 + $0x944] sm:$0xf] }
 0x304   :  { %5969 = vmatpush.bf16.msrb.mxu3 %v9356_v45  ;;  %6008 = vmatpush.bf16.msra.mxu2 %v8240_v30  ;;  %v5717_v30 = vadd.f32 %v5716_v31, %v10765_v22  ;;  %v5796_v49 = vpop.f32.mrf.mxu1  ;;  %v8828_v22 = vor.u32 %v10044_v36, %v8825_v27  ;;  %v9960_v36 = vld [vmem:[#allocation11 + $0x6a4] sm:$0xf] }
 0x305   :  { %v6234_v29 = vmul.f32 %v10781_v20, %v6233_v7  ;;  %6047 = vmatpush.bf16.msrb.mxu1 %v8912_v28  ;;  %v7712_v7 = vor.u32 %v9768_v17, %v7711_v55  ;;  %v10128_v55 = vld [vmem:[#allocation11 + $0xbe4] sm:$0xf]  ;;  %v9161_v17 = vld [vmem:[#allocation11 + $0xbfc] sm:$0xf0] }
 0x306   :  { %6039 = vmatpush.bf16.msrb.mxu0 %v8548_v18  ;;  %v6242_v18 = vand.u32 2147483648, %v10772_v1  ;;  %v10792_v46 = vpop.f32.mrf.mxu0  ;;  %v8856_v1 = vor.u32 %v10051_v63, %v8853_v4  ;;  %v5730_v35 = vadd.f32 %v10735_v34, %v5717_v30  ;;  %v9215_v34 = vld [vmem:[#allocation11 + $0xc50] sm:$0xf] }
 0x307   :  { %v6235_v0 = vadd.f32 %v10781_v20, %v6234_v29  ;;  %v9862_v29 = vld [vmem:[#allocation11 + $0x394] sm:$0xf]  ;;  %v5757_v57 = vpop.f32.mrf.mxu2 }
 0x308   :  { %v6243_v43 = vor.u32 1.1754944e-38, %v6242_v18  ;;  %5970 = vmatpush.bf16.msrb.mxu3 %v9328_v15  ;;  %6009 = vmatpush.bf16.msra.mxu2 %v8212_v58  ;;  %v8125_v15 = vld [vmem:[#allocation11 + $0x3e4] sm:$0xf0]  ;;  %v5743_v44 = vadd.f32 %v10756_v14, %v5730_v35  ;;  %v7683_v58 = vld [vmem:[#allocation11 + $0x50] sm:$0xf] }
 0x309   :  { %6040 = vmatmul.bf16.vlgmr.msrb.gmra.mxu0 %v10646_v42  ;;  %6048 = vmatpush.bf16.msrb.mxu1 %v8884_v56  ;;  %v6239_v45 = vsel %vm10818_vm6, %v10781_v20, %v6235_v0  ;;  %v10152_v20 = vld [vmem:[#allocation11 + $0xca0] sm:$0xf0]  ;;  %v8797_v18 = vld [vmem:[#allocation11 + $0x924] sm:$0xf0]  ;;  %v9761_v56 = vld [vmem:[#allocation11 + $0x68] sm:$0xf0]  ;;  %v8128_v60 = vor.u32 %v9869_v41, %v8125_v15  ;;  %v5718_v4 = vpop.f32.mrf.mxu3 }
 0x30a   :  { %6084 = vmatpush.bf16.msra.mxu0 %v7852_v48  ;;  %v10166_v48 = vld [vmem:[#allocation11 + $0xd10] sm:$0xf0]  ;;  %v6244_v28 = vsel %vm6241_vm7, %v6243_v43, %v6239_v45  ;;  %v7684_v63 = vor.u32 %v9761_v56, %v7683_v58  ;;  %v8075_v43 = vld [vmem:[#allocation11 + $0x360] sm:$0xf]  ;;  %v10020_v35 = vld [vmem:[#allocation11 + $0x880] sm:$0xf0] }
 0x30b   :  { %v9300_v8 = vor.u32 %v10166_v48, %v9299_v25  ;;  %v10037_v25 = vld [vmem:[#allocation11 + $0x90c] sm:$0xf]  ;;  %v9244_v48 = vor.u32 %v10152_v20, %v9243_v39  ;;  %v10030_v14 = vld [vmem:[#allocation11 + $0x8d4] sm:$0xf]  ;;  %v8489_v45 = vld [vmem:[#allocation11 + $0x6bc] sm:$0xf0]  ;;  %v8076_v30 = vor.u32 %v9859_v5, %v8075_v43 }
 0x30c   :  { %6010 = vmatpush.bf16.msra.mxu2 %v8184_v9  ;;  %v8800_v47 = vor.u32 %v10037_v25, %v8797_v18  ;;  %v9754_v0 = vld [vmem:[#allocation11 + $0x30] sm:$0xf0]  ;;  %v8100_v9 = vor.u32 %v9862_v29, %v8097_v53  ;;  %v8492_v49 = vor.u32 %v9960_v36, %v8489_v45  ;;  %v10121_v41 = vld [vmem:[#allocation11 + $0xbac] sm:$0xf]  ;;  %v8691_v25 = vld [vmem:[#allocation11 + $0x830] sm:$0xf] }
 0x30d   :  { %5971 = vmatpush.bf16.msrb.mxu3 %v9300_v8  ;;  %6049 = vmatpush.bf16.msrb.mxu1 %v8856_v1  ;;  %v9216_v8 = vor.u32 %v10145_v24, %v9215_v34  ;;  %v10027_v1 = vld [vmem:[#allocation11 + $0x8b8] sm:$0xf0]  ;;  %v7656_v31 = vor.u32 %v9754_v0, %v7655_v37  ;;  %v9845_v15 = vld [vmem:[#allocation11 + $0x308] sm:$0xf0]  ;;  %v9946_v56 = vld [vmem:[#allocation11 + $0x634] sm:$0xf] }
 0x30e   :  { %6085 = vmatpush.bf16.msra.mxu0 %v7824_v51  ;;  %v6228_v51 = vor.u32 1.1754944e-38, %v6227_v50  ;;  %v5835_v62 = vpop.f32.mrf.mxu0  ;;  %v8156_v50 = vor.u32 %v9876_v10, %v8153_v26  ;;  %v8747_v10 = vld [vmem:[#allocation11 + $0x8a0] sm:$0xf]  ;;  %v10013_v18 = vld [vmem:[#allocation11 + $0x848] sm:$0xf0] }
 0x30f   :  { %v8748_v27 = vor.u32 %v10027_v1, %v8747_v10  ;;  %v9164_v62 = vor.u32 %v10128_v55, %v9161_v17  ;;  %v8433_v34 = vld [vmem:[#allocation11 + $0x64c] sm:$0xf0]  ;;  %v10114_v24 = vld [vmem:[#allocation11 + $0xb74] sm:$0xf]  ;;  %v7991_v53 = vld [vmem:[#allocation11 + $0x2b8] sm:$0xf] }
 0x310   :  { %v6229_v52 = vsel %vm10807_vm4, %v6228_v51, %v6224_v3  ;;  %6011 = vmatpush.bf16.msra.mxu2 %v8156_v50  ;;  %v8517_v3 = vld [vmem:[#allocation11 + $0x6f4] sm:$0xf0]  ;;  %v10135_v51 = vld [vmem:[#allocation11 + $0xc1c] sm:$0xf]  ;;  %v8461_v50 = vld [vmem:[#allocation11 + $0x684] sm:$0xf0] }
 0x311   :  { %5972 = vmatpush.bf16.msrb.mxu3 %v9272_v38  ;;  %6050 = vmatpush.bf16.msrb.mxu1 %v8828_v22  ;;  %v9192_v26 = vor.u32 %v10135_v51, %v9189_v6  ;;  %v9953_v38 = vld [vmem:[#allocation11 + $0x66c] sm:$0xf]  ;;  %v9133_v22 = vld [vmem:[#allocation11 + $0xbc4] sm:$0xf0]  ;;  %v9105_v29 = vld [vmem:[#allocation11 + $0xb8c] sm:$0xf0] }
 0x312   :  { %6086 = vmatpush.bf16.msra.mxu0 %v7796_v33  ;;  %v6321_v33 = vpack.c.bf16 %v6244_v28, %v6229_v52  ;;  %v8047_v52 = vld [vmem:[#allocation11 + $0x328] sm:$0xf]  ;;  %v9852_v28 = vld [vmem:[#allocation11 + $0x340] sm:$0xf0]  ;;  %v9136_v58 = vor.u32 %v10121_v41, %v9133_v22  ;;  %v10006_v4 = vld [vmem:[#allocation11 + $0x810] sm:$0xf0] }
 0x313   :  { %v8048_v39 = vor.u32 %v9852_v28, %v8047_v52  ;;  %v9939_v37 = vld [vmem:[#allocation11 + $0x5fc] sm:$0xf]  ;;  %v8405_v0 = vld [vmem:[#allocation11 + $0x614] sm:$0xf0]  ;;  %v7963_v43 = vld [vmem:[#allocation11 + $0x280] sm:$0xf] }
 0x314   :  { %6325 = vst [vmem:[#allocation14] sm:$0xff] %v6321_v33  ;;  %6012 = vmatpush.bf16.msra.mxu2 %v8128_v60  ;;  %v8719_v33 = vld [vmem:[#allocation11 + $0x868] sm:$0xf]  ;;  %v8692_v60 = vor.u32 %v10013_v18, %v8691_v25  ;;  %v10107_v51 = vld [vmem:[#allocation11 + $0xb3c] sm:$0xf]  ;;  %v8408_v10 = vor.u32 %v9939_v37, %v8405_v0 }
 0x315   :  { %5973 = vmatpush.bf16.msrb.mxu3 %v9244_v48  ;;  %6051 = vmatpush.bf16.msrb.mxu1 %v8800_v47  ;;  %v8720_v20 = vor.u32 %v10020_v35, %v8719_v33  ;;  %v9838_v47 = vld [vmem:[#allocation11 + $0x2d0] sm:$0xf0]  ;;  %v9077_v6 = vld [vmem:[#allocation11 + $0xb54] sm:$0xf0]  ;;  %v9999_v5 = vld [vmem:[#allocation11 + $0x7d8] sm:$0xf0] }
 0x316   :  { %6087 = vmatpush.bf16.msra.mxu0 %v7768_v59  ;;  %v10830_v59 = vadd.f32 %v5755_v61, %v5743_v44  ;;  %v8520_v61 = vor.u32 %v9967_v2, %v8517_v3  ;;  %v8464_v44 = vor.u32 %v9953_v38, %v8461_v50  ;;  %v7992_v2 = vor.u32 %v9838_v47, %v7991_v53  ;;  %v7935_v55 = vld [vmem:[#allocation11 + $0x248] sm:$0xf]  ;;  %v9824_v17 = vld [vmem:[#allocation11 + $0x260] sm:$0xf0]  ;;  %v9925_v38 = vld [vmem:[#allocation11 + $0x58c] sm:$0xf] }
 0x317   :  { %v9080_v1 = vor.u32 %v10107_v51, %v9077_v6  ;;  %v8607_v52 = vld [vmem:[#allocation11 + $0x788] sm:$0xf]  ;;  %v9992_v28 = vld [vmem:[#allocation11 + $0x7a0] sm:$0xf0]  ;;  %v10093_v41 = vld [vmem:[#allocation11 + $0xacc] sm:$0xf] }
 0x318   :  { %6013 = vmatpush.bf16.msra.mxu2 %v8100_v9  ;;  %v8635_v9 = vld [vmem:[#allocation11 + $0x7c0] sm:$0xf]  ;;  %v8349_v50 = vld [vmem:[#allocation11 + $0x5a4] sm:$0xf0]  ;;  %v8579_v25 = vld [vmem:[#allocation11 + $0x750] sm:$0xf] }
 0x319   :  { %5974 = vmatpush.bf16.msrb.mxu3 %v9216_v8  ;;  %v9831_v8 = vld [vmem:[#allocation11 + $0x298] sm:$0xf0]  ;;  %v9021_v22 = vld [vmem:[#allocation11 + $0xae4] sm:$0xf0]  ;;  %v9985_v18 = vld [vmem:[#allocation11 + $0x768] sm:$0xf0] }
 0x31a   :  { %6088 = vmatpush.bf16.msra.mxu0 %v7740_v11  ;;  %v8772_v11 = vor.u32 %v10030_v14, %v8769_v16  ;;  %v10836_v57 = vpop.f32.mrf.mxu1  ;;  %v8436_v14 = vor.u32 %v9946_v56, %v8433_v34  ;;  %v9108_v16 = vor.u32 %v10114_v24, %v9105_v29  ;;  %v9918_v56 = vld [vmem:[#allocation11 + $0x554] sm:$0xf]  ;;  %v8321_v34 = vld [vmem:[#allocation11 + $0x56c] sm:$0xf0]  ;;  %v8580_v24 = vor.u32 %v9985_v18, %v8579_v25  ;;  %v10191_v37 = vld [vmem:[#allocation11 + $0xddc] sm:$0xf] }
 0x31b   :  { %6014 = vmatmul.bf16.vlgmr.msra.gmra.mxu2 %v10631_v23  ;;  %v8993_v47 = vld [vmem:[#allocation11 + $0xaac] sm:$0xf0]  ;;  %v9413_v0 = vld [vmem:[#allocation11 + $0xdf4] sm:$0xf0]  ;;  %v8324_v51 = vor.u32 %v9918_v56, %v8321_v34 }
 0x31c   :  { %6052 = vmatpush.bf16.msrb.mxu1 %v8772_v11  ;;  %6058 = vmatpush.bf16.msrb.mxu2 %v9192_v26  ;;  %v9932_v11 = vld [vmem:[#allocation11 + $0x5c4] sm:$0xf]  ;;  %v8636_v26 = vor.u32 %v9999_v5, %v8635_v9  ;;  %v9329_v25 = vld [vmem:[#allocation11 + $0xd4c] sm:$0xf0]  ;;  %v8215_v18 = vld [vmem:[#allocation11 + $0x478] sm:$0xf] }
 0x31d   :  { %6019 = vmatpush.bf16.msra.mxu3 %v8520_v61  ;;  %v7964_v61 = vor.u32 %v9831_v8, %v7963_v43  ;;  %v10842_v45 = vpop.f32.mrf.mxu2  ;;  %v8971_v43 = vld [vmem:[#allocation11 + $0xa60] sm:$0xf]  ;;  %v10083_v8 = vld [vmem:[#allocation11 + $0xa78] sm:$0xf0] }
 0x31e   :  { %6089 = vmatpush.bf16.msra.mxu0 %v7712_v7  ;;  %v8019_v7 = vld [vmem:[#allocation11 + $0x2f0] sm:$0xf]  ;;  %5975 = vmatmul.bf16.vlgmr.msrb.gmra.mxu3 %v10683_v32  ;;  %v10840_v36 = vpop.f32.mrf.mxu3 }
 0x31f   :  { %6053 = vmatmul.bf16.vlgmr.msrb.gmra.mxu1 %v10657_v21  ;;  %v8020_v48 = vor.u32 %v9845_v15, %v8019_v7  ;;  %v7907_v7 = vld [vmem:[#allocation11 + $0x210] sm:$0xf]  ;;  %v9817_v15 = vld [vmem:[#allocation11 + $0x228] sm:$0xf0] }
 0x320   :  { %6097 = vmatpush.bf16.msra.mxu1 %v8076_v30  ;;  %6059 = vmatpush.bf16.msrb.mxu2 %v9164_v62  ;;  %v10100_v30 = vld [vmem:[#allocation11 + $0xb04] sm:$0xf] }
 0x321   :  { %6020 = vmatpush.bf16.msra.mxu3 %v8492_v49 }
 0x322   :  { %6090 = vmatpush.bf16.msra.mxu0 %v7684_v63  ;;  %v8663_v63 = vld [vmem:[#allocation11 + $0x7f8] sm:$0xf]  ;;  %v5848_v33 = vpop.f32.mrf.mxu1 }
 0x323   :  { %v8664_v3 = vor.u32 %v10006_v4, %v8663_v63  ;;  %v7879_v63 = vld [vmem:[#allocation11 + $0x1d8] sm:$0xf]  ;;  %v9810_v4 = vld [vmem:[#allocation11 + $0x1f0] sm:$0xf0] }
 0x324   :  { %6098 = vmatpush.bf16.msra.mxu1 %v8048_v39  ;;  %6060 = vmatpush.bf16.msrb.mxu2 %v9136_v58  ;;  %v7936_v39 = vor.u32 %v9824_v17, %v7935_v55  ;;  %v9024_v58 = vor.u32 %v10093_v41, %v9021_v22  ;;  %v7880_v9 = vor.u32 %v9810_v4, %v7879_v63  ;;  %v10076_v55 = vld [vmem:[#allocation11 + $0xa40] sm:$0xf0]  ;;  %v8187_v63 = vld [vmem:[#allocation11 + $0x440] sm:$0xf]  ;;  %v9887_v4 = vld [vmem:[#allocation11 + $0x458] sm:$0xf0] }
 0x325   :  { %6021 = vmatpush.bf16.msra.mxu3 %v8464_v44  ;;  %v8352_v44 = vor.u32 %v9925_v38, %v8349_v50  ;;  %v5809_v53 = vpop.f32.mrf.mxu2  ;;  %v8915_v38 = vld [vmem:[#allocation11 + $0x9f0] sm:$0xf]  ;;  %v10069_v50 = vld [vmem:[#allocation11 + $0xa08] sm:$0xf0] }
 0x326   :  { %6091 = vmatpush.bf16.msra.mxu0 %v7656_v31  ;;  %v8377_v31 = vld [vmem:[#allocation11 + $0x5dc] sm:$0xf0]  ;;  %v5770_v29 = vpop.f32.mrf.mxu3 }
 0x327   :  { %v8380_v49 = vor.u32 %v9932_v11, %v8377_v31  ;;  %v10184_v11 = vld [vmem:[#allocation11 + $0xda4] sm:$0xf]  ;;  %v8972_v31 = vor.u32 %v10083_v8, %v8971_v43  ;;  %v9273_v43 = vld [vmem:[#allocation11 + $0xcdc] sm:$0xf0]  ;;  %v8159_v8 = vld [vmem:[#allocation11 + $0x408] sm:$0xf] }
 0x328   :  { %6099 = vmatpush.bf16.msra.mxu1 %v8020_v48  ;;  %6061 = vmatpush.bf16.msrb.mxu2 %v9108_v16  ;;  %v10086_v48 = vld [vmem:[#allocation11 + $0xa94] sm:$0xf] }
 0x329   :  { %6092 = vmatmul.bf16.vlgmr.msra.gmra.mxu0 %v10611_v12  ;;  %v10838_v12 = vpop.f32.mrf.mxu0  ;;  %6022 = vmatpush.bf16.msra.mxu3 %v8436_v14  ;;  %v8551_v14 = vld [vmem:[#allocation11 + $0x718] sm:$0xf]  ;;  %v9978_v16 = vld [vmem:[#allocation11 + $0x730] sm:$0xf0]  ;;  %v8996_v6 = vor.u32 %v10086_v48, %v8993_v47 }
 0x32a   :  { %6136 = vmatpush.bf16.msrb.mxu0 %v8748_v27  ;;  %v9049_v27 = vld [vmem:[#allocation11 + $0xb1c] sm:$0xf0]  ;;  %v8552_v5 = vor.u32 %v9978_v16, %v8551_v14  ;;  %v9301_v47 = vld [vmem:[#allocation11 + $0xd14] sm:$0xf0]  ;;  %v10055_v16 = vld [vmem:[#allocation11 + $0x998] sm:$0xf0] }
 0x32b   :  { %v9052_v62 = vor.u32 %v10100_v30, %v9049_v27  ;;  %v9908_v30 = vld [vmem:[#allocation11 + $0x500] sm:$0xf0]  ;;  %v8943_v27 = vld [vmem:[#allocation11 + $0xa28] sm:$0xf]  ;;  %v8859_v14 = vld [vmem:[#allocation11 + $0x980] sm:$0xf] }
 0x32c   :  { %6100 = vmatpush.bf16.msra.mxu1 %v7992_v2  ;;  %6062 = vmatpush.bf16.msrb.mxu2 %v9080_v1  ;;  %v8299_v2 = vld [vmem:[#allocation11 + $0x520] sm:$0xf]  ;;  %v8944_v33 = vor.u32 %v10076_v55, %v8943_v27  ;;  %v9245_v27 = vld [vmem:[#allocation11 + $0xca4] sm:$0xf0]  ;;  %v8131_v55 = vld [vmem:[#allocation11 + $0x3d0] sm:$0xf] }
 0x32d   :  { %6023 = vmatpush.bf16.msra.mxu3 %v8408_v10  ;;  %v9416_v10 = vor.u32 %v10191_v37, %v9413_v0  ;;  %v8188_v0 = vor.u32 %v9887_v4, %v8187_v63  ;;  %v10132_v63 = vld [vmem:[#allocation11 + $0xc00] sm:$0xf0] }
 0x32e   :  { %6137 = vmatpush.bf16.msrb.mxu0 %v8720_v20  ;;  %v8608_v20 = vor.u32 %v9992_v28, %v8607_v52  ;;  %v10177_v28 = vld [vmem:[#allocation11 + $0xd6c] sm:$0xf] }
 0x330   :  { %6101 = vmatpush.bf16.msra.mxu1 %v7964_v61  ;;  %6063 = vmatpush.bf16.msrb.mxu2 %v9052_v62  ;;  %v9385_v61 = vld [vmem:[#allocation11 + $0xdbc] sm:$0xf0]  ;;  %v9901_v62 = vld [vmem:[#allocation11 + $0x4c8] sm:$0xf0] }
 0x331   :  { %v5887_v35 = vpop.f32.mrf.mxu0  ;;  %6024 = vmatpush.bf16.msra.mxu3 %v8380_v49  ;;  %v9388_v17 = vor.u32 %v10184_v11, %v9385_v61  ;;  %v8243_v49 = vld [vmem:[#allocation11 + $0x4b0] sm:$0xf] }
 0x332   :  { %6138 = vmatpush.bf16.msrb.mxu0 %v8692_v60  ;;  %v7908_v60 = vor.u32 %v9817_v15, %v7907_v7  ;;  %v9357_v35 = vld [vmem:[#allocation11 + $0xd84] sm:$0xf0]  ;;  %v8244_v22 = vor.u32 %v9901_v62, %v8243_v49  ;;  %v10170_v7 = vld [vmem:[#allocation11 + $0xd34] sm:$0xf]  ;;  %v8916_v15 = vor.u32 %v10069_v50, %v8915_v38  ;;  %v9217_v62 = vld [vmem:[#allocation11 + $0xc6c] sm:$0xf0] }
 0x333   :  { %v9360_v41 = vor.u32 %v10177_v28, %v9357_v35  ;;  %v10041_v28 = vld [vmem:[#allocation11 + $0x928] sm:$0xf0]  ;;  %v10142_v49 = vld [vmem:[#allocation11 + $0xc54] sm:$0xf] }
 0x334   :  { %6102 = vmatpush.bf16.msra.mxu1 %v7936_v39  ;;  %6064 = vmatpush.bf16.msrb.mxu2 %v9024_v58  ;;  %v10847_v39 = vld [vmem:[#allocation13] sm:$0xff]  ;;  %v8887_v58 = vld [vmem:[#allocation11 + $0x9b8] sm:$0xf] }
 0x335   :  { %6025 = vmatpush.bf16.msra.mxu3 %v8352_v44  ;;  %v9894_v44 = vld [vmem:[#allocation11 + $0x490] sm:$0xf0] }
 0x336   :  { %6139 = vmatpush.bf16.msrb.mxu0 %v8664_v3  ;;  %v9915_v3 = vld [vmem:[#allocation11 + $0x538] sm:$0xf0] }
 0x337   :  { %v8300_v1 = vor.u32 %v9915_v3, %v8299_v2  ;;  %v10156_v2 = vld [vmem:[#allocation11 + $0xcc4] sm:$0xf]  ;;  %v8860_v3 = vor.u32 %v10055_v16, %v8859_v14  ;;  %v9957_v16 = vld [vmem:[#allocation11 + $0x688] sm:$0xf0] }
 0x338   :  { %6103 = vmatpush.bf16.msra.mxu1 %v7908_v60  ;;  %6065 = vmatpush.bf16.msrb.mxu2 %v8996_v6  ;;  %v8216_v60 = vor.u32 %v9894_v44, %v8215_v18  ;;  %v9195_v18 = vld [vmem:[#allocation11 + $0xc20] sm:$0xf]  ;;  %v10139_v44 = vld [vmem:[#allocation11 + $0xc38] sm:$0xf0] }
 0x339   :  { %6026 = vmatpush.bf16.msra.mxu3 %v8324_v51 }
 0x33a   :  { %6140 = vmatpush.bf16.msrb.mxu0 %v8636_v26  ;;  %v8271_v26 = vld [vmem:[#allocation11 + $0x4e8] sm:$0xf]  ;;  %v5898_v34 = vpop.f32.mrf.mxu1 }
 0x33b   :  { %v8272_v52 = vor.u32 %v9908_v30, %v8271_v26  ;;  %6066 = vmatmul.bf16.vlgmr.msrb.gmra.mxu2 %v10669_v19  ;;  %v10149_v26 = vld [vmem:[#allocation11 + $0xc8c] sm:$0xf] }
 0x33c   :  { %6104 = vmatpush.bf16.msra.mxu1 %v7880_v9  ;;  %6110 = vmatpush.bf16.msra.mxu2 %v8300_v1  ;;  %v9880_v9 = vld [vmem:[#allocation11 + $0x420] sm:$0xf0] }
 0x33d   :  { %6071 = vmatpush.bf16.msrb.mxu3 %v9416_v10  ;;  %v10858_v6 = vpop.f32.mrf.mxu2  ;;  %v8831_v10 = vld [vmem:[#allocation11 + $0x948] sm:$0xf]  ;;  %v10048_v1 = vld [vmem:[#allocation11 + $0x960] sm:$0xf0]  ;;  %v8160_v61 = vor.u32 %v9880_v9, %v8159_v8  ;;  %v10118_v8 = vld [vmem:[#allocation11 + $0xb90] sm:$0xf0] }
 0x33e   :  { %6141 = vmatpush.bf16.msrb.mxu0 %v8608_v20  ;;  %6027 = vmatmul.bf16.vlgmr.msra.gmra.mxu3 %v10634_v40  ;;  %v3146_v20 = vperm.slane %v10847_v39, 4  ;;  %v5820_v51 = vpop.f32.mrf.mxu3  ;;  %v8832_v30 = vor.u32 %v10048_v1, %v8831_v10 }
 0x33f   :  { %6105 = vmatmul.bf16.vlgmr.msra.gmra.mxu1 %v10615_v54  ;;  %v10062_v54 = vld [vmem:[#allocation11 + $0x9d0] sm:$0xf0] }
 0x340   :  { %6149 = vmatpush.bf16.msrb.mxu1 %v8972_v31  ;;  %6111 = vmatpush.bf16.msra.mxu2 %v8272_v52  ;;  %v5886_v56 = vadd.f32 %v10838_v12, %v3146_v20  ;;  %v8888_v53 = vor.u32 %v10062_v54, %v8887_v58  ;;  %v5808_v12 = vadd.f32 %v10842_v45, %v10805_v13  ;;  %v8803_v52 = vld [vmem:[#allocation11 + $0x910] sm:$0xf]  ;;  %v8103_v20 = vld [vmem:[#allocation11 + $0x398] sm:$0xf] }
 0x341   :  { %6072 = vmatpush.bf16.msrb.mxu3 %v9388_v17  ;;  %v9276_v31 = vor.u32 %v10156_v2, %v9273_v43  ;;  %v9873_v17 = vld [vmem:[#allocation11 + $0x3e8] sm:$0xf0]  ;;  %v5769_v58 = vadd.f32 %v10840_v36, %v10830_v59  ;;  %v9220_v54 = vor.u32 %v10142_v49, %v9217_v62  ;;  %v8467_v36 = vld [vmem:[#allocation11 + $0x670] sm:$0xf]  ;;  %v9111_v43 = vld [vmem:[#allocation11 + $0xb78] sm:$0xf] }
 0x342   :  { %6142 = vmatpush.bf16.msrb.mxu0 %v8580_v24  ;;  %v10163_v24 = vld [vmem:[#allocation11 + $0xcfc] sm:$0xf]  ;;  %v10854_v29 = vadd.f32 %v5898_v34, %v5886_v56  ;;  %v5900_v45 = vpop.f32.mrf.mxu1  ;;  %v8132_v35 = vor.u32 %v9873_v17, %v8131_v55  ;;  %v8383_v17 = vld [vmem:[#allocation11 + $0x5c8] sm:$0xf] }
 0x343   :  { %v9304_v37 = vor.u32 %v10163_v24, %v9301_v47  ;;  %v8495_v24 = vld [vmem:[#allocation11 + $0x6a8] sm:$0xf]  ;;  %v9423_v4 = vmul.f32 -1.442695, %v5769_v58  ;;  %v8411_v45 = vld [vmem:[#allocation11 + $0x600] sm:$0xf] }
 0x344   :  { %6150 = vmatpush.bf16.msrb.mxu1 %v8944_v33  ;;  %6112 = vmatpush.bf16.msra.mxu2 %v8244_v22  ;;  %v9248_v33 = vor.u32 %v10149_v26, %v9245_v27  ;;  %v8775_v22 = vld [vmem:[#allocation11 + $0x8d8] sm:$0xf]  ;;  %v9167_v47 = vld [vmem:[#allocation11 + $0xbe8] sm:$0xf] }
 0x345   :  { %6073 = vmatpush.bf16.msrb.mxu3 %v9360_v41  ;;  %v5861_v50 = vpop.f32.mrf.mxu2  ;;  %v9866_v41 = vld [vmem:[#allocation11 + $0x3b0] sm:$0xf0]  ;;  %v9168_v59 = vor.u32 %v10132_v63, %v9167_v47  ;;  %10218 = vpow2.f32 %v9423_v4 }
 0x346   :  { %6143 = vmatpush.bf16.msrb.mxu0 %v8552_v5  ;;  %v10852_v48 = vpop.f32.mrf.mxu0  ;;  %v5821_v5 = vadd.f32 %v5820_v51, %v5808_v12  ;;  %v5822_v38 = vpop.f32.mrf.mxu3  ;;  %v8104_v56 = vor.u32 %v9866_v41, %v8103_v20  ;;  %v9139_v12 = vld [vmem:[#allocation11 + $0xbb0] sm:$0xf]  ;;  %v9950_v51 = vld [vmem:[#allocation11 + $0x650] sm:$0xf0]  ;;  %v9929_v41 = vld [vmem:[#allocation11 + $0x5a8] sm:$0xf0] }
 0x347   :  { %v8355_v20 = vld [vmem:[#allocation11 + $0x590] sm:$0xf] }
 0x348   :  { %6151 = vmatpush.bf16.msrb.mxu1 %v8916_v15  ;;  %6113 = vmatpush.bf16.msra.mxu2 %v8216_v60  ;;  %v10861_v13 = vadd.f32 %v10792_v46, %v5821_v5  ;;  %v8804_v46 = vor.u32 %v10041_v28, %v8803_v52  ;;  %v8523_v15 = vld [vmem:[#allocation11 + $0x6e0] sm:$0xf]  ;;  %v9196_v60 = vor.u32 %v10139_v44, %v9195_v18  ;;  %v9055_v28 = vld [vmem:[#allocation11 + $0xb08] sm:$0xf]  ;;  %v9922_v18 = vld [vmem:[#allocation11 + $0x570] sm:$0xf0] }
 0x349   :  { %6144 = vmatmul.bf16.vlgmr.msrb.gmra.mxu0 %v10646_v42  ;;  %v9332_v42 = vor.u32 %v10170_v7, %v9329_v25  ;;  %v10034_v7 = vld [vmem:[#allocation11 + $0x8f0] sm:$0xf0]  ;;  %v9971_v25 = vld [vmem:[#allocation11 + $0x6f8] sm:$0xf0]  ;;  %v8999_v44 = vld [vmem:[#allocation11 + $0xa98] sm:$0xf] }
 0x34a   :  { %v8776_v34 = vor.u32 %v10034_v7, %v8775_v22  ;;  %v5847_v10 = vadd.f32 %v10836_v57, %v10861_v13  ;;  %v9936_v57 = vld [vmem:[#allocation11 + $0x5e0] sm:$0xf0]  ;;  %v9027_v22 = vld [vmem:[#allocation11 + $0xad0] sm:$0xf]  ;;  %v10097_v7 = vld [vmem:[#allocation11 + $0xae8] sm:$0xf0] }
 0x34b   :  { %6074 = vmatpush.bf16.msrb.mxu3 %v9332_v42  ;;  %v8524_v42 = vor.u32 %v9971_v25, %v8523_v15  ;;  %v10219_v5 = vpop.eup %10218  ;;  %v8384_v62 = vor.u32 %v9936_v57, %v8383_v17  ;;  %v8356_v15 = vor.u32 %v9929_v41, %v8355_v20  ;;  %v9028_v25 = vor.u32 %v10097_v7, %v9027_v22 }
 0x34c   :  { %6152 = vmatpush.bf16.msrb.mxu1 %v8888_v53  ;;  %6114 = vmatpush.bf16.msra.mxu2 %v8188_v0  ;;  %v9964_v53 = vld [vmem:[#allocation11 + $0x6c0] sm:$0xf0]  ;;  %v8468_v0 = vor.u32 %v9957_v16, %v8467_v36  ;;  %v10874_v26 = vadd.f32 1.0, %v10219_v5  ;;  %v5860_v27 = vadd.f32 %v10858_v6, %v5847_v10 }
 0x34d   :  { %v8496_v14 = vor.u32 %v9964_v53, %v8495_v24  ;;  %v10188_v36 = vld [vmem:[#allocation11 + $0xdc0] sm:$0xf0] }
 0x34e   :  { %v5939_v11 = vpop.f32.mrf.mxu0  ;;  %10220 = vrcp.f32 %v10874_v26  ;;  %vm6251_vm9 = vweird.f32 %v10874_v26 }
 0x34f   :  { %6075 = vmatpush.bf16.msrb.mxu3 %v9304_v37  ;;  %v10125_v37 = vld [vmem:[#allocation11 + $0xbc8] sm:$0xf0]  ;;  %v9943_v11 = vld [vmem:[#allocation11 + $0x618] sm:$0xf0] }
 0x350   :  { %6153 = vmatpush.bf16.msrb.mxu1 %v8860_v3  ;;  %6115 = vmatpush.bf16.msra.mxu2 %v8160_v61  ;;  %v9140_v2 = vor.u32 %v10125_v37, %v9139_v12  ;;  %v8439_v3 = vld [vmem:[#allocation11 + $0x638] sm:$0xf]  ;;  %v10111_v61 = vld [vmem:[#allocation11 + $0xb58] sm:$0xf0]  ;;  %v9363_v37 = vld [vmem:[#allocation11 + $0xd70] sm:$0xf] }
 0x351   :  { %v8440_v9 = vor.u32 %v9950_v51, %v8439_v3 }
 0x353   :  { %6076 = vmatpush.bf16.msrb.mxu3 %v9276_v31  ;;  %v9083_v31 = vld [vmem:[#allocation11 + $0xb40] sm:$0xf] }
 0x354   :  { %6154 = vmatpush.bf16.msrb.mxu1 %v8832_v30  ;;  %6116 = vmatpush.bf16.msra.mxu2 %v8132_v35  ;;  %v8412_v30 = vor.u32 %v9943_v11, %v8411_v45  ;;  %v9084_v55 = vor.u32 %v10111_v61, %v9083_v31  ;;  %v10881_v58 = vpop.eup %10220  ;;  %v9307_v31 = vld [vmem:[#allocation11 + $0xd00] sm:$0xf]  ;;  %v10167_v61 = vld [vmem:[#allocation11 + $0xd18] sm:$0xf0] }
 0x355   :  { %v6247_v47 = vmul.f32 %v10881_v58, %v10874_v26  ;;  %vm6252_vm8 = vweird.f32 %v10881_v58 }
 0x356   :  { %vm10897_vm11 = vmor %vm6251_vm9, %vm6252_vm8 }
 0x357   :  { %6077 = vmatpush.bf16.msrb.mxu3 %v9248_v33  ;;  %v10104_v33 = vld [vmem:[#allocation11 + $0xb20] sm:$0xf0]  ;;  %v6248_v16 = vsub.f32 1.0, %v6247_v47 }
 0x358   :  { %6155 = vmatpush.bf16.msrb.mxu1 %v8804_v46  ;;  %6117 = vmatpush.bf16.msra.mxu2 %v8104_v56  ;;  %v9056_v50 = vor.u32 %v10104_v33, %v9055_v28 }
 0x35b   :  { %6078 = vmatpush.bf16.msrb.mxu3 %v9220_v54  ;;  %6118 = vmatmul.bf16.vlgmr.msra.gmra.mxu2 %v10631_v23  ;;  %v10870_v23 = vpop.f32.mrf.mxu1 }
 0x35c   :  { %6156 = vmatpush.bf16.msrb.mxu1 %v8776_v34  ;;  %6162 = vmatpush.bf16.msrb.mxu2 %v9196_v60  ;;  %v10090_v34 = vld [vmem:[#allocation11 + $0xab0] sm:$0xf0]  ;;  %v10195_v60 = vld [vmem:[#allocation11 + $0xdf8] sm:$0xf0] }
 0x35d   :  { %v5911_v52 = vpop.f32.mrf.mxu2  ;;  %v9000_v63 = vor.u32 %v10090_v34, %v8999_v44  ;;  %v9223_v34 = vld [vmem:[#allocation11 + $0xc58] sm:$0xf] }
 0x35e   :  { %6079 = vmatmul.bf16.vlgmr.msrb.gmra.mxu3 %v10683_v32  ;;  %v5872_v13 = vpop.f32.mrf.mxu3  ;;  %v10878_v49 = vadd.f32 %v5911_v52, %v10854_v29  ;;  %v8327_v29 = vld [vmem:[#allocation11 + $0x558] sm:$0xf] }
 0x35f   :  { %6123 = vmatpush.bf16.msra.mxu3 %v8524_v42  ;;  %6157 = vmatmul.bf16.vlgmr.msrb.gmra.mxu1 %v10657_v21  ;;  %v9112_v21 = vor.u32 %v10118_v8, %v9111_v43  ;;  %v5873_v35 = vadd.f32 %v5872_v13, %v5860_v27  ;;  %v9419_v42 = vld [vmem:[#allocation11 + $0xde0] sm:$0xf]  ;;  %v8328_v24 = vor.u32 %v9922_v18, %v8327_v29  ;;  %v3147_v43 = vperm.slane %v10847_v39, 5  ;;  %v9335_v8 = vld [vmem:[#allocation11 + $0xd38] sm:$0xf] }
 0x360   :  { %6163 = vmatpush.bf16.msrb.mxu2 %v9168_v59  ;;  %v9420_v4 = vor.u32 %v10195_v60, %v9419_v42  ;;  %v9391_v59 = vld [vmem:[#allocation11 + $0xda8] sm:$0xf]  ;;  %v10153_v29 = vld [vmem:[#allocation11 + $0xca8] sm:$0xf0]  ;;  %v10146_v42 = vld [vmem:[#allocation11 + $0xc70] sm:$0xf0] }
 0x361   :  { %v9424_v46 = vmul.f32 -1.442695, %v5873_v35  ;;  %v9392_v12 = vor.u32 %v10188_v36, %v9391_v59 }
 0x363   :  { %6124 = vmatpush.bf16.msra.mxu3 %v8496_v14  ;;  %v5952_v38 = vpop.f32.mrf.mxu1  ;;  %10222 = vpow2.f32 %v9424_v46  ;;  %v10160_v46 = vld [vmem:[#allocation11 + $0xce0] sm:$0xf0] }
 0x364   :  { %6164 = vmatpush.bf16.msrb.mxu2 %v9140_v2  ;;  %v6249_v2 = vmul.f32 %v10881_v58, %v6248_v16  ;;  %v3148_v16 = vperm.slane %v10847_v39, 6 }
 0x365   :  { %v5913_v56 = vpop.f32.mrf.mxu2 }
 0x366   :  { %v10872_v1 = vpop.f32.mrf.mxu0  ;;  %v5874_v54 = vpop.f32.mrf.mxu3  ;;  %v6250_v10 = vadd.f32 %v10881_v58, %v6249_v2 }
 0x367   :  { %6125 = vmatpush.bf16.msra.mxu3 %v8468_v0  ;;  %v10181_v0 = vld [vmem:[#allocation11 + $0xd88] sm:$0xf0] }
 0x368   :  { %6165 = vmatpush.bf16.msrb.mxu2 %v9112_v21  ;;  %v9364_v3 = vor.u32 %v10181_v0, %v9363_v37 }
 0x369   :  { %v10223_v53 = vpop.eup %10222 }
 0x36a   :  { %v6212_v14 = vadd.f32 1.0, %v10223_v53 }
 0x36b   :  { %6126 = vmatpush.bf16.msra.mxu3 %v8440_v9  ;;  %v10174_v9 = vld [vmem:[#allocation11 + $0xd50] sm:$0xf0] }
 0x36c   :  { %6166 = vmatpush.bf16.msrb.mxu2 %v9084_v55  ;;  %10224 = vrcp.f32 %v6212_v14  ;;  %v9336_v45 = vor.u32 %v10174_v9, %v9335_v8  ;;  %v6272_v11 = vand.u32 2147483648, %v6212_v14  ;;  %v6270_v55 = vand.u32 2147483647, %v6212_v14 }
 0x36d   :  { %vm6266_vm12 = vweird.f32 %v6212_v14 }
 0x36e   :  { %v5991_v6 = vpop.f32.mrf.mxu0  ;;  %v6273_v35 = vor.u32 1.1754944e-38, %v6272_v11  ;;  %vm6271_vm15 = vcmp.eq.f32.partialorder %v6270_v55, 8.507059e+37 }
 0x36f   :  { %6127 = vmatpush.bf16.msra.mxu3 %v8412_v30  ;;  %v6255_v30 = vand.u32 2147483647, %v10874_v26 }
 0x370   :  { %6167 = vmatpush.bf16.msrb.mxu2 %v9056_v50 }
 0x371   :  { %vm6256_vm14 = vcmp.eq.f32.partialorder %v6255_v30, 8.507059e+37 }
 0x372   :  { %v10225_v51 = vpop.eup %10224 }
 0x373   :  { %6128 = vmatpush.bf16.msra.mxu3 %v8384_v62  ;;  %v6262_v5 = vmul.f32 %v10225_v51, %v6212_v14  ;;  %vm6267_vm10 = vweird.f32 %v10225_v51  ;;  %v9279_v62 = vld [vmem:[#allocation11 + $0xcc8] sm:$0xf] }
 0x374   :  { %6168 = vmatpush.bf16.msrb.mxu2 %v9028_v25  ;;  %vm6268_vm13 = vmor %vm6266_vm12, %vm6267_vm10  ;;  %v9280_v7 = vor.u32 %v10160_v46, %v9279_v62  ;;  %v9251_v25 = vld [vmem:[#allocation11 + $0xc90] sm:$0xf] }
 0x375   :  { %v6263_v21 = vsub.f32 1.0, %v6262_v5  ;;  %v9252_v56 = vor.u32 %v10153_v29, %v9251_v25 }
 0x377   :  { %6129 = vmatpush.bf16.msra.mxu3 %v8356_v15  ;;  %v6264_v27 = vmul.f32 %v10225_v51, %v6263_v21 }
 0x378   :  { %6169 = vmatpush.bf16.msrb.mxu2 %v9000_v63 }
 0x379   :  { %v6265_v28 = vadd.f32 %v10225_v51, %v6264_v27 }
 0x37b   :  { %6130 = vmatpush.bf16.msra.mxu3 %v8328_v24  ;;  %6170 = vmatmul.bf16.vlgmr.msrb.gmra.mxu2 %v10669_v19  ;;  %v5990_v19 = vadd.f32 %v10872_v1, %v3147_v43  ;;  %v6002_v17 = vpop.f32.mrf.mxu1  ;;  %v9308_v1 = vor.u32 %v10167_v61, %v9307_v31  ;;  %v6269_v38 = vsel %vm6268_vm13, %v10225_v51, %v6265_v28 }
 0x37c   :  { %v6274_v41 = vsel %vm6271_vm15, %v6273_v35, %v6269_v38 }
 0x37d   :  { %v6003_v52 = vadd.f32 %v6002_v17, %v5990_v19 }
 0x37e   :  { %6131 = vmatmul.bf16.vlgmr.msra.gmra.mxu3 %v10634_v40  ;;  %v6257_v40 = vand.u32 2147483648, %v10874_v26  ;;  %v6254_v26 = vsel %vm10897_vm11, %v10881_v58, %v6250_v10  ;;  %v5924_v6 = vpop.f32.mrf.mxu3  ;;  %v5963_v50 = vpop.f32.mrf.mxu2 }
 0x37f   :  { %6175 = vmatpush.bf16.msrb.mxu3 %v9420_v4  ;;  %v5925_v22 = vadd.f32 %v5924_v6, %v10878_v49  ;;  %v9224_v49 = vor.u32 %v10146_v42, %v9223_v34 }
 0x380   :  { %v6258_v33 = vor.u32 1.1754944e-38, %v6257_v40 }
 0x381   :  { %v5938_v18 = vadd.f32 %v10852_v48, %v5925_v22 }
 0x382   :  { %v6259_v20 = vsel %vm6256_vm14, %v6258_v33, %v6254_v26 }
 0x383   :  { %6176 = vmatpush.bf16.msrb.mxu3 %v9392_v12  ;;  %v6322_v15 = vpack.c.bf16 %v6274_v41, %v6259_v20  ;;  %v6004_v44 = vpop.f32.mrf.mxu1  ;;  %v5951_v54 = vadd.f32 %v10870_v23, %v5938_v18 }
 0x385   :  { %6326 = vst [vmem:[#allocation14 + $0x8] sm:$0xff] %v6322_v15  ;;  %v5964_v60 = vadd.f32 %v5963_v50, %v5951_v54 }
 0x386   :  { %v6041_v57 = vpop.f32.mrf.mxu0  ;;  %v5926_v24 = vpop.f32.mrf.mxu3 }
 0x387   :  { %6177 = vmatpush.bf16.msrb.mxu3 %v9364_v3  ;;  %v5965_v53 = vpop.f32.mrf.mxu2 }
 0x38b   :  { %6178 = vmatpush.bf16.msrb.mxu3 %v9336_v45 }
 0x38e   :  { %v6043_v58 = vpop.f32.mrf.mxu0 }
 0x38f   :  { %6179 = vmatpush.bf16.msrb.mxu3 %v9308_v1 }
 0x393   :  { %6180 = vmatpush.bf16.msrb.mxu3 %v9280_v7 }
 0x397   :  { %6181 = vmatpush.bf16.msrb.mxu3 %v9252_v56 }
 0x39b   :  { %6182 = vmatpush.bf16.msrb.mxu3 %v9224_v49 }
 0x39c   :  { %v6054_v47 = vpop.f32.mrf.mxu1 }
 0x39e   :  { %6183 = vmatmul.bf16.vlgmr.msrb.gmra.mxu3 %v10683_v32  ;;  %v6015_v4 = vpop.f32.mrf.mxu2 }
 0x39f   :  { %v6016_v3 = vadd.f32 %v6015_v4, %v6003_v52 }
 0x3a1   :  { %v5976_v48 = vpop.f32.mrf.mxu3 }
 0x3a2   :  { %v5977_v45 = vadd.f32 %v5976_v48, %v5964_v60 }
 0x3a4   :  { %v6056_v14 = vpop.f32.mrf.mxu1  ;;  %v9425_v40 = vmul.f32 -1.442695, %v5977_v45 }
 0x3a6   :  { %v6093_v63 = vpop.f32.mrf.mxu0  ;;  %v6017_v23 = vpop.f32.mrf.mxu2  ;;  %10226 = vpow2.f32 %v9425_v40 }
 0x3a7   :  { %v6094_v12 = vadd.f32 %v6093_v63, %v3148_v16 }
 0x3a9   :  { %v5978_v36 = vpop.f32.mrf.mxu3 }
 0x3ac   :  { %v10227_v19 = vpop.eup %10226 }
 0x3ad   :  { %v6213_v31 = vadd.f32 1.0, %v10227_v19 }
 0x3ae   :  { %v6095_v59 = vpop.f32.mrf.mxu0 }
 0x3af   :  { %10228 = vrcp.f32 %v6213_v31  ;;  %vm6281_vm1 = vweird.f32 %v6213_v31  ;;  %v6287_v20 = vand.u32 2147483648, %v6213_v31  ;;  %v6285_v22 = vand.u32 2147483647, %v6213_v31 }
 0x3b1   :  { %v6288_v18 = vor.u32 1.1754944e-38, %v6287_v20  ;;  %vm6286_vm6 = vcmp.eq.f32.partialorder %v6285_v22, 8.507059e+37 }
 0x3bc   :  { %v6106_v37 = vpop.f32.mrf.mxu1 }
 0x3bd   :  { %v6107_v0 = vadd.f32 %v6106_v37, %v6094_v12 }
 0x3be   :  { %v6067_v8 = vpop.f32.mrf.mxu2 }
 0x3c1   :  { %v6028_v51 = vpop.f32.mrf.mxu3 }
 0x3c2   :  { %v6029_v43 = vadd.f32 %v6028_v51, %v6016_v3 }
 0x3c4   :  { %v6042_v32 = vadd.f32 %v6041_v57, %v6029_v43  ;;  %v6108_v9 = vpop.f32.mrf.mxu1  ;;  %v10229_v57 = vpop.eup %10228 }
 0x3c5   :  { %v6277_v26 = vmul.f32 %v10229_v57, %v6213_v31  ;;  %vm6282_vm0 = vweird.f32 %v10229_v57 }
 0x3c6   :  { %v10909_v2 = vpop.f32.mrf.mxu0  ;;  %v6069_v21 = vpop.f32.mrf.mxu2  ;;  %v6055_v11 = vadd.f32 %v6054_v47, %v6042_v32  ;;  %vm6283_vm3 = vmor %vm6281_vm1, %vm6282_vm0 }
 0x3c7   :  { %v6278_v35 = vsub.f32 1.0, %v6277_v26 }
 0x3c8   :  { %v6068_v61 = vadd.f32 %v6067_v8, %v6055_v11 }
 0x3c9   :  { %v6030_v10 = vpop.f32.mrf.mxu3  ;;  %v6279_v62 = vmul.f32 %v10229_v57, %v6278_v35 }
 0x3cb   :  { %v6280_v6 = vadd.f32 %v10229_v57, %v6279_v62 }
 0x3cd   :  { %v6284_v29 = vsel %vm6283_vm3, %v10229_v57, %v6280_v6 }
 0x3ce   :  { %v6147_v5 = vpop.f32.mrf.mxu0  ;;  %v6289_v60 = vsel %vm6286_vm6, %v6288_v18, %v6284_v29 }
 0x3dc   :  { %v6158_v39 = vpop.f32.mrf.mxu1 }
 0x3de   :  { %v6119_v27 = vpop.f32.mrf.mxu2 }
 0x3df   :  { %v6120_v58 = vadd.f32 %v6119_v27, %v6107_v0 }
 0x3e1   :  { %v6080_v30 = vpop.f32.mrf.mxu3 }
 0x3e2   :  { %v6081_v55 = vadd.f32 %v6080_v30, %v6068_v61 }
 0x3e4   :  { %v9426_v17 = vmul.f32 -1.442695, %v6081_v55  ;;  %v6160_v13 = vpop.f32.mrf.mxu1 }
 0x3e6   :  { %10230 = vpow2.f32 %v9426_v17  ;;  %v6121_v28 = vpop.f32.mrf.mxu2 }
 0x3e9   :  { %v6082_v52 = vpop.f32.mrf.mxu3 }
 0x3ec   :  { %v10231_v1 = vpop.eup %10230 }
 0x3ed   :  { %v6214_v33 = vadd.f32 1.0, %v10231_v1 }
 0x3ef   :  { %10232 = vrcp.f32 %v6214_v33  ;;  %v6302_v41 = vand.u32 2147483648, %v6214_v33  ;;  %v6300_v15 = vand.u32 2147483647, %v6214_v33  ;;  %vm6296_vm4 = vweird.f32 %v6214_v33 }
 0x3f1   :  { %v6303_v44 = vor.u32 1.1754944e-38, %v6302_v41  ;;  %vm6301_vm7 = vcmp.eq.f32.partialorder %v6300_v15, 8.507059e+37 }
 0x3f5   :  { %v10233_v46 = vpop.eup %10232 }
 0x3f6   :  { %v6292_v38 = vmul.f32 %v10233_v46, %v6214_v33  ;;  %vm6297_vm2 = vweird.f32 %v10233_v46 }
 0x3f7   :  { %vm6298_vm5 = vmor %vm6296_vm4, %vm6297_vm2 }
 0x3f8   :  { %v6293_v50 = vsub.f32 1.0, %v6292_v38 }
 0x3fa   :  { %v6294_v7 = vmul.f32 %v10233_v46, %v6293_v50 }
 0x3fc   :  { %v6295_v25 = vadd.f32 %v10233_v46, %v6294_v7 }
 0x3fe   :  { %v6299_v56 = vsel %vm6298_vm5, %v10233_v46, %v6295_v25  ;;  %v6171_v42 = vpop.f32.mrf.mxu2 }
 0x3ff   :  { %v6304_v24 = vsel %vm6301_vm7, %v6303_v44, %v6299_v56 }
 0x400   :  { %v6323_v53 = vpack.c.bf16 %v6304_v24, %v6289_v60 }
 0x401   :  { %v6132_v54 = vpop.f32.mrf.mxu3 }
 0x402   :  { %v6133_v34 = vadd.f32 %v6132_v54, %v6120_v58  ;;  %6327 = vst [vmem:[#allocation14 + $0x10] sm:$0xff] %v6323_v53 }
 0x404   :  { %v6146_v49 = vadd.f32 %v10909_v2, %v6133_v34 }
 0x406   :  { %v6173_v63 = vpop.f32.mrf.mxu2  ;;  %v6159_v48 = vadd.f32 %v6158_v39, %v6146_v49 }
 0x408   :  { %v6172_v4 = vadd.f32 %v6171_v42, %v6159_v48 }
 0x409   :  { %v6134_v47 = vpop.f32.mrf.mxu3 }
 0x421   :  { %v6184_v14 = vpop.f32.mrf.mxu3 }
 0x422   :  { %v6185_v59 = vadd.f32 %v6184_v14, %v6172_v4 }
 0x424   :  { %v9427_v36 = vmul.f32 -1.442695, %v6185_v59 }
 0x426   :  { %10234 = vpow2.f32 %v9427_v36 }
 0x429   :  { %v6186_v23 = vpop.f32.mrf.mxu3 }
 0x42c   :  { %v10235_v16 = vpop.eup %10234 }
 0x42d   :  { %v6215_v12 = vadd.f32 1.0, %v10235_v16 }
 0x42f   :  { %10236 = vrcp.f32 %v6215_v12  ;;  %v6317_v51 = vand.u32 2147483648, %v6215_v12  ;;  %v6315_v2 = vand.u32 2147483647, %v6215_v12  ;;  %vm6311_vm9 = vweird.f32 %v6215_v12 }
 0x431   :  { %v6318_v32 = vor.u32 1.1754944e-38, %v6317_v51  ;;  %vm6316_vm11 = vcmp.eq.f32.partialorder %v6315_v2, 8.507059e+37 }
 0x435   :  { %v10237_v37 = vpop.eup %10236 }
 0x436   :  { %v6307_v0 = vmul.f32 %v10237_v37, %v6215_v12  ;;  %vm6312_vm8 = vweird.f32 %v10237_v37 }
 0x437   :  { %vm6313_vm10 = vmor %vm6311_vm9, %vm6312_vm8 }
 0x438   :  { %v6308_v3 = vsub.f32 1.0, %v6307_v0 }
 0x43a   :  { %v6309_v43 = vmul.f32 %v10237_v37, %v6308_v3 }
 0x43c   :  { %v6310_v8 = vadd.f32 %v10237_v37, %v6309_v43 }
 0x43e   :  { %v6314_v9 = vsel %vm6313_vm10, %v10237_v37, %v6310_v8 }
 0x43f   :  { %v6319_v5 = vsel %vm6316_vm11, %v6318_v32, %v6314_v9 }
 0x440   :  { %v6324_v10 = vpack.c.bf16 %v6319_v5, %v6319_v5 }
 0x442   :  { %6328 = vst [vmem:[#allocation14 + $0x18] sm:$0xf] %v6324_v10 }
 0x443   :  { %6339 = dma.vmem_to_hbm [thread:$0]  %s6335_s6, 448, %s6337_s15, [#allocation4]  }
 0x444   :  { %10441 = dma.done.wait [#allocation4], 448  }
 0x445   :  { %10442 = vsyncadd [#allocation4], 4294966848 }
 0x446   :  { %6344 = vsyncpa [#allocation3], 1 }
 0x447   :  { %6345 = vsyncpa [#allocation6], 1 }
 0x448   :  { %6346 = vsyncpa [#allocation9], 1 }
 0x449   :  { %6347 = vsyncpa [#allocation12], 1 }
 0x44a   :  { %6348 = vsyncpa [#allocation4], 1 }

</bundles_post_ra>
